<compile_context>
chip_gen: v5e
topology: v5e:2x2
jax: 0.10.0
libtpu: 0.0.40
codegen_flags: <defaults>
</compile_context>

<pallas_src>
import jax
import jax.numpy as jnp
from jax.experimental import pallas as pl
from jax.experimental.pallas import tpu as pltpu

HIDDEN = 256   # hidden_size from the spec (lane-aligned: gate slices fall on 128s)
VOCAB = 64     # input_size (vocabulary) -- small demo vocab
SEQ_LEN = 8    # demo sequence length for the fused kernel


def _gru_encoder_fused_kernel(tok_ref,        # SMEM scalar-prefetch: (T,) int32 token ids
                              emb_proj_ref,   # (V, 3H) f32  emb @ W_ih^T + b_ih  (gates r|z|n)
                              h0_ref,         # (1, H)  f32  initial hidden
                              whh_t_ref,      # (H, 3H) bf16 W_hh^T
                              bhh_ref,        # (1, 3H) f32  b_hh
                              out_ref):       # (T, H)  f32  GRU outputs (single resident slab)
    T, H = out_ref.shape

    h = h0_ref[...]                           # (1, H) f32, value-carried across the loop
    bhh = bhh_ref[...]                        # hoisted: loaded once, reused every step

    # Fully unrolled time loop (T is static) -> one kernel invocation for the whole
    # recurrence; only the h @ W_hh^T matmul and gate math sit on the serial path.
    for t in range(T):
        tok = tok_ref[t]                                          # scalar from SMEM
        # Input projection of a one-hot embedding == table lookup (b_ih already folded in).
        gi = emb_proj_ref[pl.ds(tok, 1), :]                       # (1, 3H) f32
        gh = jnp.dot(h.astype(jnp.bfloat16), whh_t_ref[...],
                     preferred_element_type=jnp.float32) + bhh    # (1, 3H) f32 (MXU)

        # PyTorch nn.GRU gate order: r, z, n  (b_hn stays inside the r multiply).
        r = jax.nn.sigmoid(gi[:, 0 * H:1 * H] + gh[:, 0 * H:1 * H])
        z = jax.nn.sigmoid(gi[:, 1 * H:2 * H] + gh[:, 1 * H:2 * H])
        n = jnp.tanh(gi[:, 2 * H:3 * H] + r * gh[:, 2 * H:3 * H])
        h = (1.0 - z) * n + z * h

        out_ref[pl.ds(t, 1), :] = h


def encoder_rnn_forward_seq(tokens, hidden, params):
    """Run the EncoderRNN over a whole token sequence in one pallas_call invocation.

    tokens: (T,) int32 token indices
    hidden: (1, 1, H) f32 initial hidden state
    returns (outputs, hidden): (T, 1, H) f32 and (1, 1, H) f32
    """
    emb_proj, whh_t, bhh = params["emb_proj"], params["whh_t"], params["bhh"]
    V = emb_proj.shape[0]
    H = whh_t.shape[0]

    # Clamp once in the wrapper (vectorized) so a bad id can never read past the
    # VMEM-resident table in-kernel.  NOTE: PyTorch nn.Embedding would raise instead.
    toks = jnp.clip(jnp.asarray(tokens, jnp.int32).reshape(-1), 0, V - 1)
    T = toks.shape[0]
    h0 = hidden.reshape(1, H).astype(jnp.float32)

    # Single grid step -> every tensor is DMA'd into VMEM exactly once.
    const2d = lambda shape: pl.BlockSpec(shape, lambda i, tok_ref: (0, 0))

    out = pl.pallas_call(
        _gru_encoder_fused_kernel,
        out_shape=jax.ShapeDtypeStruct((T, H), jnp.float32),
        grid_spec=pltpu.PrefetchScalarGridSpec(
            num_scalar_prefetch=1,                 # token ids -> SMEM
            grid=(1,),
            in_specs=[
                const2d(emb_proj.shape),           # projected embedding table (f32)
                const2d((1, H)),                   # initial hidden
                const2d(whh_t.shape),              # W_hh^T (bf16)
                const2d(bhh.shape),                # b_hh
            ],
            out_specs=const2d((T, H)),
        ),
        compiler_params=pltpu.CompilerParams(
            dimension_semantics=("arbitrary",)),   # single sequential step
    )(toks, emb_proj, h0, whh_t, bhh)

    outputs = out.reshape(T, 1, H)
    hidden_new = out[T - 1].reshape(1, 1, H)       # GRU output == new hidden state
    return outputs, hidden_new


def encoder_rnn_forward(token, hidden, params):
    """Single-step forward matching EncoderRNN.forward(input, hidden)."""
    tok = jnp.asarray(token, jnp.int32).reshape(1)
    outputs, hidden_new = encoder_rnn_forward_seq(tok, hidden, params)
    H = outputs.shape[-1]
    return outputs.reshape(1, 1, H), hidden_new


def init_params(key, input_size=VOCAB, hidden_size=HIDDEN):
    k_emb, k_wih, k_whh, k_bih, k_bhh = jax.random.split(key, 5)
    scale = 1.0 / jnp.sqrt(hidden_size)
    emb = jax.random.normal(k_emb, (input_size, hidden_size), jnp.float32)
    # nn.GRU weights: weight_ih_l0 (3H, H), weight_hh_l0 (3H, H), biases (3H,).
    wih = jax.random.uniform(k_wih, (3 * hidden_size, hidden_size),
                             jnp.float32, -scale, scale)
    whh = jax.random.uniform(k_whh, (3 * hidden_size, hidden_size),
                             jnp.float32, -scale, scale)
    bih = jax.random.uniform(k_bih, (1, 3 * hidden_size), jnp.float32, -scale, scale)
    bhh = jax.random.uniform(k_bhh, (1, 3 * hidden_size), jnp.float32, -scale, scale)
    # Fold the entire input projection (and b_ih) into a (V, 3H) f32 table: the
    # embedding lookup followed by x @ W_ih^T + b_ih is a table lookup in disguise.
    emb_proj = jnp.dot(emb, wih.T, precision=jax.lax.Precision.HIGHEST) + bih
    return {
        # kernel params
        "emb_proj": emb_proj,                          # (V, 3H) f32
        "whh_t": whh.T.astype(jnp.bfloat16),           # (H, 3H) bf16
        "bhh": bhh,                                    # (1, 3H) f32
        # kept in f32 for the pure-JAX reference path
        "emb": emb, "wih": wih, "bih": bih,
    }


def reference_forward_seq(tokens, hidden, params):
    """Pure-JAX reference mirroring torch nn.Embedding + nn.GRU over a sequence
    (f32 input projection; same bf16 W_hh storage / f32 accumulation as the kernel)."""
    H = params["emb"].shape[1]
    h = hidden.reshape(1, H).astype(jnp.float32)
    outs = []
    for t in list(tokens):
        x = params["emb"][int(t)].reshape(1, H)
        gi = jnp.dot(x, params["wih"].T,
                     precision=jax.lax.Precision.HIGHEST) + params["bih"]
        gh = jnp.dot(h.astype(jnp.bfloat16), params["whh_t"],
                     preferred_element_type=jnp.float32) + params["bhh"]
        r = jax.nn.sigmoid(gi[:, :H] + gh[:, :H])
        z = jax.nn.sigmoid(gi[:, H:2 * H] + gh[:, H:2 * H])
        n = jnp.tanh(gi[:, 2 * H:] + r * gh[:, 2 * H:])
        h = (1.0 - z) * n + z * h
        outs.append(h)
    outputs = jnp.stack(outs, axis=0)                  # (T, 1, H)
    return outputs, h.reshape(1, 1, H)


if __name__ == "__main__":
    key = jax.random.PRNGKey(0)
    params = init_params(key)

    tokens = jax.random.randint(jax.random.PRNGKey(1), (SEQ_LEN,), 0, VOCAB, jnp.int32)
    hidden = jnp.zeros((1, 1, HIDDEN), jnp.float32)    # EncoderRNN.init_hidden(1)

    # Fused-sequence kernel (one pallas_call, one invocation, unrolled T-step loop).
    outs, hid = encoder_rnn_forward_seq(tokens, hidden, params)
    outs, hid = jax.block_until_ready(outs), jax.block_until_ready(hid)

    ref_outs, ref_hid = reference_forward_seq([int(t) for t in tokens], hidden, params)
    assert outs.shape == (SEQ_LEN, 1, HIDDEN) and hid.shape == (1, 1, HIDDEN)
    assert jnp.allclose(outs, ref_outs, atol=5e-3, rtol=1e-3), "sequence output mismatch"
    assert jnp.allclose(hid, ref_hid, atol=5e-3, rtol=1e-3), "final hidden mismatch"

    # Single-step forward (original module semantics).
    out1, hid1 = encoder_rnn_forward(tokens[0], hidden, params)
    out1, hid1 = jax.block_until_ready(out1), jax.block_until_ready(hid1)
    assert out1.shape == (1, 1, HIDDEN) and hid1.shape == (1, 1, HIDDEN)
    assert jnp.allclose(out1, ref_outs[0].reshape(1, 1, HIDDEN), atol=5e-3, rtol=1e-3)
    assert jnp.allclose(hid1, out1, atol=0.0), "GRU output must equal new hidden"

    # TODO(synk): PyTorch nn.Embedding raises on out-of-range ids; the wrapper clamps instead.
    print("KERNEL_OK")
</pallas_src>

<mosaic_0001>
module attributes {stable_mosaic.version = 11 : i64} {
  func.func @_gru_encoder_fused_kernel(%arg0: i32, %arg1: memref<8xi32, #tpu.memory_space<smem>>, %arg2: memref<64x768xf32, #tpu.memory_space<vmem>>, %arg3: memref<1x256xf32, #tpu.memory_space<vmem>>, %arg4: memref<256x768xbf16, #tpu.memory_space<vmem>>, %arg5: memref<1x768xf32, #tpu.memory_space<vmem>>, %arg6: memref<8x256xf32, #tpu.memory_space<vmem>>) attributes {dimension_semantics = [#tpu.dimension_semantics<arbitrary>], iteration_bounds = array<i64: 1>, scalar_prefetch = 1 : i64, scratch_operands = 0 : i64, tpu.core_type = #tpu.core_type<tc>, window_params = [{pipeline_mode = #tpu.pipeline_mode<synchronous>, transform_indices = @transform_0, window_bounds = array<i64: 64, 768>}, {pipeline_mode = #tpu.pipeline_mode<synchronous>, transform_indices = @transform_1, window_bounds = array<i64: 1, 256>}, {pipeline_mode = #tpu.pipeline_mode<synchronous>, transform_indices = @transform_2, window_bounds = array<i64: 256, 768>}, {pipeline_mode = #tpu.pipeline_mode<synchronous>, transform_indices = @transform_3, window_bounds = array<i64: 1, 768>}, {pipeline_mode = #tpu.pipeline_mode<synchronous>, transform_indices = @transform_4, window_bounds = array<i64: 8, 256>}]} {
    %c0 = arith.constant 0 : index
    %c0_0 = arith.constant 0 : index
    %0 = vector.load %arg3[%c0, %c0_0] : memref<1x256xf32, #tpu.memory_space<vmem>>, vector<1x256xf32>
    %c0_1 = arith.constant 0 : index
    %c0_2 = arith.constant 0 : index
    %1 = vector.load %arg5[%c0_1, %c0_2] : memref<1x768xf32, #tpu.memory_space<vmem>>, vector<1x768xf32>
    %c0_3 = arith.constant 0 : index
    %2 = memref.load %arg1[%c0_3] : memref<8xi32, #tpu.memory_space<smem>>
    %3 = arith.index_cast %2 : i32 to index
    %c0_4 = arith.constant 0 : index
    %4 = vector.load %arg2[%3, %c0_4] : memref<64x768xf32, #tpu.memory_space<vmem>>, vector<1x768xf32>
    %5 = arith.truncf %0 : vector<1x256xf32> to vector<1x256xbf16>
    %c0_5 = arith.constant 0 : index
    %c0_6 = arith.constant 0 : index
    %6 = vector.load %arg4[%c0_5, %c0_6] : memref<256x768xbf16, #tpu.memory_space<vmem>>, vector<256x768xbf16>
    %cst = arith.constant dense<0.000000e+00> : vector<1x768xf32>
    %7 = tpu.matmul %5, %6, %cst {dimension_numbers = #tpu.dot_dimension_numbers<[1], [0], [0], [1], [0, 0, 1, 1], [], []>} : vector<1x256xbf16>, vector<256x768xbf16>, vector<1x768xf32> -> vector<1x768xf32>
    %8 = arith.addf %7, %1 : vector<1x768xf32>
    %9 = vector.extract_strided_slice %4 {offsets = [0, 0], sizes = [1, 256], strides = [1, 1]} : vector<1x768xf32> to vector<1x256xf32>
    %10 = vector.extract_strided_slice %8 {offsets = [0, 0], sizes = [1, 256], strides = [1, 1]} : vector<1x768xf32> to vector<1x256xf32>
    %11 = arith.addf %9, %10 : vector<1x256xf32>
    %12 = arith.negf %11 : vector<1x256xf32>
    %13 = math.exp %12 : vector<1x256xf32>
    %cst_7 = arith.constant 1.000000e+00 : f32
    %14 = vector.broadcast %cst_7 : f32 to vector<1x256xf32>
    %15 = arith.addf %14, %13 : vector<1x256xf32>
    %16 = arith.divf %14, %15 : vector<1x256xf32>
    %17 = vector.extract_strided_slice %4 {offsets = [0, 256], sizes = [1, 256], strides = [1, 1]} : vector<1x768xf32> to vector<1x256xf32>
    %18 = vector.extract_strided_slice %8 {offsets = [0, 256], sizes = [1, 256], strides = [1, 1]} : vector<1x768xf32> to vector<1x256xf32>
    %19 = arith.addf %17, %18 : vector<1x256xf32>
    %20 = arith.negf %19 : vector<1x256xf32>
    %21 = math.exp %20 : vector<1x256xf32>
    %cst_8 = arith.constant 1.000000e+00 : f32
    %22 = vector.broadcast %cst_8 : f32 to vector<1x256xf32>
    %23 = arith.addf %22, %21 : vector<1x256xf32>
    %24 = arith.divf %22, %23 : vector<1x256xf32>
    %25 = vector.extract_strided_slice %4 {offsets = [0, 512], sizes = [1, 256], strides = [1, 1]} : vector<1x768xf32> to vector<1x256xf32>
    %26 = vector.extract_strided_slice %8 {offsets = [0, 512], sizes = [1, 256], strides = [1, 1]} : vector<1x768xf32> to vector<1x256xf32>
    %27 = arith.mulf %16, %26 : vector<1x256xf32>
    %28 = arith.addf %25, %27 : vector<1x256xf32>
    %29 = math.tanh %28 : vector<1x256xf32>
    %cst_9 = arith.constant 1.000000e+00 : f32
    %30 = vector.broadcast %cst_9 : f32 to vector<1x256xf32>
    %31 = arith.subf %30, %24 : vector<1x256xf32>
    %32 = arith.mulf %31, %29 : vector<1x256xf32>
    %33 = arith.mulf %24, %0 : vector<1x256xf32>
    %34 = arith.addf %32, %33 : vector<1x256xf32>
    %c0_10 = arith.constant 0 : index
    %c0_11 = arith.constant 0 : index
    %35 = vector.load %arg6[%c0_10, %c0_11] : memref<8x256xf32, #tpu.memory_space<vmem>>, vector<1x256xf32>
    tpu.vector_store %arg6[%c0_10, %c0_11], %34 {strides = array<i32>} : memref<8x256xf32, #tpu.memory_space<vmem>>, vector<1x256xf32>,
    %c1 = arith.constant 1 : index
    %36 = memref.load %arg1[%c1] : memref<8xi32, #tpu.memory_space<smem>>
    %37 = arith.index_cast %36 : i32 to index
    %c0_12 = arith.constant 0 : index
    %38 = vector.load %arg2[%37, %c0_12] : memref<64x768xf32, #tpu.memory_space<vmem>>, vector<1x768xf32>
    %39 = arith.truncf %34 : vector<1x256xf32> to vector<1x256xbf16>
    %c0_13 = arith.constant 0 : index
    %c0_14 = arith.constant 0 : index
    %40 = vector.load %arg4[%c0_13, %c0_14] : memref<256x768xbf16, #tpu.memory_space<vmem>>, vector<256x768xbf16>
    %cst_15 = arith.constant dense<0.000000e+00> : vector<1x768xf32>
    %41 = tpu.matmul %39, %40, %cst_15 {dimension_numbers = #tpu.dot_dimension_numbers<[1], [0], [0], [1], [0, 0, 1, 1], [], []>} : vector<1x256xbf16>, vector<256x768xbf16>, vector<1x768xf32> -> vector<1x768xf32>
    %42 = arith.addf %41, %1 : vector<1x768xf32>
    %43 = vector.extract_strided_slice %38 {offsets = [0, 0], sizes = [1, 256], strides = [1, 1]} : vector<1x768xf32> to vector<1x256xf32>
    %44 = vector.extract_strided_slice %42 {offsets = [0, 0], sizes = [1, 256], strides = [1, 1]} : vector<1x768xf32> to vector<1x256xf32>
    %45 = arith.addf %43, %44 : vector<1x256xf32>
    %46 = arith.negf %45 : vector<1x256xf32>
    %47 = math.exp %46 : vector<1x256xf32>
    %cst_16 = arith.constant 1.000000e+00 : f32
    %48 = vector.broadcast %cst_16 : f32 to vector<1x256xf32>
    %49 = arith.addf %48, %47 : vector<1x256xf32>
    %50 = arith.divf %48, %49 : vector<1x256xf32>
    %51 = vector.extract_strided_slice %38 {offsets = [0, 256], sizes = [1, 256], strides = [1, 1]} : vector<1x768xf32> to vector<1x256xf32>
    %52 = vector.extract_strided_slice %42 {offsets = [0, 256], sizes = [1, 256], strides = [1, 1]} : vector<1x768xf32> to vector<1x256xf32>
    %53 = arith.addf %51, %52 : vector<1x256xf32>
    %54 = arith.negf %53 : vector<1x256xf32>
    %55 = math.exp %54 : vector<1x256xf32>
    %cst_17 = arith.constant 1.000000e+00 : f32
    %56 = vector.broadcast %cst_17 : f32 to vector<1x256xf32>
    %57 = arith.addf %56, %55 : vector<1x256xf32>
    %58 = arith.divf %56, %57 : vector<1x256xf32>
    %59 = vector.extract_strided_slice %38 {offsets = [0, 512], sizes = [1, 256], strides = [1, 1]} : vector<1x768xf32> to vector<1x256xf32>
    %60 = vector.extract_strided_slice %42 {offsets = [0, 512], sizes = [1, 256], strides = [1, 1]} : vector<1x768xf32> to vector<1x256xf32>
    %61 = arith.mulf %50, %60 : vector<1x256xf32>
    %62 = arith.addf %59, %61 : vector<1x256xf32>
    %63 = math.tanh %62 : vector<1x256xf32>
    %cst_18 = arith.constant 1.000000e+00 : f32
    %64 = vector.broadcast %cst_18 : f32 to vector<1x256xf32>
    %65 = arith.subf %64, %58 : vector<1x256xf32>
    %66 = arith.mulf %65, %63 : vector<1x256xf32>
    %67 = arith.mulf %58, %34 : vector<1x256xf32>
    %68 = arith.addf %66, %67 : vector<1x256xf32>
    %c1_19 = arith.constant 1 : index
    %c0_20 = arith.constant 0 : index
    %69 = vector.load %arg6[%c1_19, %c0_20] : memref<8x256xf32, #tpu.memory_space<vmem>>, vector<1x256xf32>
    tpu.vector_store %arg6[%c1_19, %c0_20], %68 {strides = array<i32>} : memref<8x256xf32, #tpu.memory_space<vmem>>, vector<1x256xf32>,
    %c2 = arith.constant 2 : index
    %70 = memref.load %arg1[%c2] : memref<8xi32, #tpu.memory_space<smem>>
    %71 = arith.index_cast %70 : i32 to index
    %c0_21 = arith.constant 0 : index
    %72 = vector.load %arg2[%71, %c0_21] : memref<64x768xf32, #tpu.memory_space<vmem>>, vector<1x768xf32>
    %73 = arith.truncf %68 : vector<1x256xf32> to vector<1x256xbf16>
    %c0_22 = arith.constant 0 : index
    %c0_23 = arith.constant 0 : index
    %74 = vector.load %arg4[%c0_22, %c0_23] : memref<256x768xbf16, #tpu.memory_space<vmem>>, vector<256x768xbf16>
    %cst_24 = arith.constant dense<0.000000e+00> : vector<1x768xf32>
    %75 = tpu.matmul %73, %74, %cst_24 {dimension_numbers = #tpu.dot_dimension_numbers<[1], [0], [0], [1], [0, 0, 1, 1], [], []>} : vector<1x256xbf16>, vector<256x768xbf16>, vector<1x768xf32> -> vector<1x768xf32>
    %76 = arith.addf %75, %1 : vector<1x768xf32>
    %77 = vector.extract_strided_slice %72 {offsets = [0, 0], sizes = [1, 256], strides = [1, 1]} : vector<1x768xf32> to vector<1x256xf32>
    %78 = vector.extract_strided_slice %76 {offsets = [0, 0], sizes = [1, 256], strides = [1, 1]} : vector<1x768xf32> to vector<1x256xf32>
    %79 = arith.addf %77, %78 : vector<1x256xf32>
    %80 = arith.negf %79 : vector<1x256xf32>
    %81 = math.exp %80 : vector<1x256xf32>
    %cst_25 = arith.constant 1.000000e+00 : f32
    %82 = vector.broadcast %cst_25 : f32 to vector<1x256xf32>
    %83 = arith.addf %82, %81 : vector<1x256xf32>
    %84 = arith.divf %82, %83 : vector<1x256xf32>
    %85 = vector.extract_strided_slice %72 {offsets = [0, 256], sizes = [1, 256], strides = [1, 1]} : vector<1x768xf32> to vector<1x256xf32>
    %86 = vector.extract_strided_slice %76 {offsets = [0, 256], sizes = [1, 256], strides = [1, 1]} : vector<1x768xf32> to vector<1x256xf32>
    %87 = arith.addf %85, %86 : vector<1x256xf32>
    %88 = arith.negf %87 : vector<1x256xf32>
    %89 = math.exp %88 : vector<1x256xf32>
    %cst_26 = arith.constant 1.000000e+00 : f32
    %90 = vector.broadcast %cst_26 : f32 to vector<1x256xf32>
    %91 = arith.addf %90, %89 : vector<1x256xf32>
    %92 = arith.divf %90, %91 : vector<1x256xf32>
    %93 = vector.extract_strided_slice %72 {offsets = [0, 512], sizes = [1, 256], strides = [1, 1]} : vector<1x768xf32> to vector<1x256xf32>
    %94 = vector.extract_strided_slice %76 {offsets = [0, 512], sizes = [1, 256], strides = [1, 1]} : vector<1x768xf32> to vector<1x256xf32>
    %95 = arith.mulf %84, %94 : vector<1x256xf32>
    %96 = arith.addf %93, %95 : vector<1x256xf32>
    %97 = math.tanh %96 : vector<1x256xf32>
    %cst_27 = arith.constant 1.000000e+00 : f32
    %98 = vector.broadcast %cst_27 : f32 to vector<1x256xf32>
    %99 = arith.subf %98, %92 : vector<1x256xf32>
    %100 = arith.mulf %99, %97 : vector<1x256xf32>
    %101 = arith.mulf %92, %68 : vector<1x256xf32>
    %102 = arith.addf %100, %101 : vector<1x256xf32>
    %c2_28 = arith.constant 2 : index
    %c0_29 = arith.constant 0 : index
    %103 = vector.load %arg6[%c2_28, %c0_29] : memref<8x256xf32, #tpu.memory_space<vmem>>, vector<1x256xf32>
    tpu.vector_store %arg6[%c2_28, %c0_29], %102 {strides = array<i32>} : memref<8x256xf32, #tpu.memory_space<vmem>>, vector<1x256xf32>,
    %c3 = arith.constant 3 : index
    %104 = memref.load %arg1[%c3] : memref<8xi32, #tpu.memory_space<smem>>
    %105 = arith.index_cast %104 : i32 to index
    %c0_30 = arith.constant 0 : index
    %106 = vector.load %arg2[%105, %c0_30] : memref<64x768xf32, #tpu.memory_space<vmem>>, vector<1x768xf32>
    %107 = arith.truncf %102 : vector<1x256xf32> to vector<1x256xbf16>
    %c0_31 = arith.constant 0 : index
    %c0_32 = arith.constant 0 : index
    %108 = vector.load %arg4[%c0_31, %c0_32] : memref<256x768xbf16, #tpu.memory_space<vmem>>, vector<256x768xbf16>
    %cst_33 = arith.constant dense<0.000000e+00> : vector<1x768xf32>
    %109 = tpu.matmul %107, %108, %cst_33 {dimension_numbers = #tpu.dot_dimension_numbers<[1], [0], [0], [1], [0, 0, 1, 1], [], []>} : vector<1x256xbf16>, vector<256x768xbf16>, vector<1x768xf32> -> vector<1x768xf32>
    %110 = arith.addf %109, %1 : vector<1x768xf32>
    %111 = vector.extract_strided_slice %106 {offsets = [0, 0], sizes = [1, 256], strides = [1, 1]} : vector<1x768xf32> to vector<1x256xf32>
    %112 = vector.extract_strided_slice %110 {offsets = [0, 0], sizes = [1, 256], strides = [1, 1]} : vector<1x768xf32> to vector<1x256xf32>
    %113 = arith.addf %111, %112 : vector<1x256xf32>
    %114 = arith.negf %113 : vector<1x256xf32>
    %115 = math.exp %114 : vector<1x256xf32>
    %cst_34 = arith.constant 1.000000e+00 : f32
    %116 = vector.broadcast %cst_34 : f32 to vector<1x256xf32>
    %117 = arith.addf %116, %115 : vector<1x256xf32>
    %118 = arith.divf %116, %117 : vector<1x256xf32>
    %119 = vector.extract_strided_slice %106 {offsets = [0, 256], sizes = [1, 256], strides = [1, 1]} : vector<1x768xf32> to vector<1x256xf32>
    %120 = vector.extract_strided_slice %110 {offsets = [0, 256], sizes = [1, 256], strides = [1, 1]} : vector<1x768xf32> to vector<1x256xf32>
    %121 = arith.addf %119, %120 : vector<1x256xf32>
    %122 = arith.negf %121 : vector<1x256xf32>
    %123 = math.exp %122 : vector<1x256xf32>
    %cst_35 = arith.constant 1.000000e+00 : f32
    %124 = vector.broadcast %cst_35 : f32 to vector<1x256xf32>
    %125 = arith.addf %124, %123 : vector<1x256xf32>
    %126 = arith.divf %124, %125 : vector<1x256xf32>
    %127 = vector.extract_strided_slice %106 {offsets = [0, 512], sizes = [1, 256], strides = [1, 1]} : vector<1x768xf32> to vector<1x256xf32>
    %128 = vector.extract_strided_slice %110 {offsets = [0, 512], sizes = [1, 256], strides = [1, 1]} : vector<1x768xf32> to vector<1x256xf32>
    %129 = arith.mulf %118, %128 : vector<1x256xf32>
    %130 = arith.addf %127, %129 : vector<1x256xf32>
    %131 = math.tanh %130 : vector<1x256xf32>
    %cst_36 = arith.constant 1.000000e+00 : f32
    %132 = vector.broadcast %cst_36 : f32 to vector<1x256xf32>
    %133 = arith.subf %132, %126 : vector<1x256xf32>
    %134 = arith.mulf %133, %131 : vector<1x256xf32>
    %135 = arith.mulf %126, %102 : vector<1x256xf32>
    %136 = arith.addf %134, %135 : vector<1x256xf32>
    %c3_37 = arith.constant 3 : index
    %c0_38 = arith.constant 0 : index
    %137 = vector.load %arg6[%c3_37, %c0_38] : memref<8x256xf32, #tpu.memory_space<vmem>>, vector<1x256xf32>
    tpu.vector_store %arg6[%c3_37, %c0_38], %136 {strides = array<i32>} : memref<8x256xf32, #tpu.memory_space<vmem>>, vector<1x256xf32>,
    %c4 = arith.constant 4 : index
    %138 = memref.load %arg1[%c4] : memref<8xi32, #tpu.memory_space<smem>>
    %139 = arith.index_cast %138 : i32 to index
    %c0_39 = arith.constant 0 : index
    %140 = vector.load %arg2[%139, %c0_39] : memref<64x768xf32, #tpu.memory_space<vmem>>, vector<1x768xf32>
    %141 = arith.truncf %136 : vector<1x256xf32> to vector<1x256xbf16>
    %c0_40 = arith.constant 0 : index
    %c0_41 = arith.constant 0 : index
    %142 = vector.load %arg4[%c0_40, %c0_41] : memref<256x768xbf16, #tpu.memory_space<vmem>>, vector<256x768xbf16>
    %cst_42 = arith.constant dense<0.000000e+00> : vector<1x768xf32>
    %143 = tpu.matmul %141, %142, %cst_42 {dimension_numbers = #tpu.dot_dimension_numbers<[1], [0], [0], [1], [0, 0, 1, 1], [], []>} : vector<1x256xbf16>, vector<256x768xbf16>, vector<1x768xf32> -> vector<1x768xf32>
    %144 = arith.addf %143, %1 : vector<1x768xf32>
    %145 = vector.extract_strided_slice %140 {offsets = [0, 0], sizes = [1, 256], strides = [1, 1]} : vector<1x768xf32> to vector<1x256xf32>
    %146 = vector.extract_strided_slice %144 {offsets = [0, 0], sizes = [1, 256], strides = [1, 1]} : vector<1x768xf32> to vector<1x256xf32>
    %147 = arith.addf %145, %146 : vector<1x256xf32>
    %148 = arith.negf %147 : vector<1x256xf32>
    %149 = math.exp %148 : vector<1x256xf32>
    %cst_43 = arith.constant 1.000000e+00 : f32
    %150 = vector.broadcast %cst_43 : f32 to vector<1x256xf32>
    %151 = arith.addf %150, %149 : vector<1x256xf32>
    %152 = arith.divf %150, %151 : vector<1x256xf32>
    %153 = vector.extract_strided_slice %140 {offsets = [0, 256], sizes = [1, 256], strides = [1, 1]} : vector<1x768xf32> to vector<1x256xf32>
    %154 = vector.extract_strided_slice %144 {offsets = [0, 256], sizes = [1, 256], strides = [1, 1]} : vector<1x768xf32> to vector<1x256xf32>
    %155 = arith.addf %153, %154 : vector<1x256xf32>
    %156 = arith.negf %155 : vector<1x256xf32>
    %157 = math.exp %156 : vector<1x256xf32>
    %cst_44 = arith.constant 1.000000e+00 : f32
    %158 = vector.broadcast %cst_44 : f32 to vector<1x256xf32>
    %159 = arith.addf %158, %157 : vector<1x256xf32>
    %160 = arith.divf %158, %159 : vector<1x256xf32>
    %161 = vector.extract_strided_slice %140 {offsets = [0, 512], sizes = [1, 256], strides = [1, 1]} : vector<1x768xf32> to vector<1x256xf32>
    %162 = vector.extract_strided_slice %144 {offsets = [0, 512], sizes = [1, 256], strides = [1, 1]} : vector<1x768xf32> to vector<1x256xf32>
    %163 = arith.mulf %152, %162 : vector<1x256xf32>
    %164 = arith.addf %161, %163 : vector<1x256xf32>
    %165 = math.tanh %164 : vector<1x256xf32>
    %cst_45 = arith.constant 1.000000e+00 : f32
    %166 = vector.broadcast %cst_45 : f32 to vector<1x256xf32>
    %167 = arith.subf %166, %160 : vector<1x256xf32>
    %168 = arith.mulf %167, %165 : vector<1x256xf32>
    %169 = arith.mulf %160, %136 : vector<1x256xf32>
    %170 = arith.addf %168, %169 : vector<1x256xf32>
    %c4_46 = arith.constant 4 : index
    %c0_47 = arith.constant 0 : index
    %171 = vector.load %arg6[%c4_46, %c0_47] : memref<8x256xf32, #tpu.memory_space<vmem>>, vector<1x256xf32>
    tpu.vector_store %arg6[%c4_46, %c0_47], %170 {strides = array<i32>} : memref<8x256xf32, #tpu.memory_space<vmem>>, vector<1x256xf32>,
    %c5 = arith.constant 5 : index
    %172 = memref.load %arg1[%c5] : memref<8xi32, #tpu.memory_space<smem>>
    %173 = arith.index_cast %172 : i32 to index
    %c0_48 = arith.constant 0 : index
    %174 = vector.load %arg2[%173, %c0_48] : memref<64x768xf32, #tpu.memory_space<vmem>>, vector<1x768xf32>
    %175 = arith.truncf %170 : vector<1x256xf32> to vector<1x256xbf16>
    %c0_49 = arith.constant 0 : index
    %c0_50 = arith.constant 0 : index
    %176 = vector.load %arg4[%c0_49, %c0_50] : memref<256x768xbf16, #tpu.memory_space<vmem>>, vector<256x768xbf16>
    %cst_51 = arith.constant dense<0.000000e+00> : vector<1x768xf32>
    %177 = tpu.matmul %175, %176, %cst_51 {dimension_numbers = #tpu.dot_dimension_numbers<[1], [0], [0], [1], [0, 0, 1, 1], [], []>} : vector<1x256xbf16>, vector<256x768xbf16>, vector<1x768xf32> -> vector<1x768xf32>
    %178 = arith.addf %177, %1 : vector<1x768xf32>
    %179 = vector.extract_strided_slice %174 {offsets = [0, 0], sizes = [1, 256], strides = [1, 1]} : vector<1x768xf32> to vector<1x256xf32>
    %180 = vector.extract_strided_slice %178 {offsets = [0, 0], sizes = [1, 256], strides = [1, 1]} : vector<1x768xf32> to vector<1x256xf32>
    %181 = arith.addf %179, %180 : vector<1x256xf32>
    %182 = arith.negf %181 : vector<1x256xf32>
    %183 = math.exp %182 : vector<1x256xf32>
    %cst_52 = arith.constant 1.000000e+00 : f32
    %184 = vector.broadcast %cst_52 : f32 to vector<1x256xf32>
    %185 = arith.addf %184, %183 : vector<1x256xf32>
    %186 = arith.divf %184, %185 : vector<1x256xf32>
    %187 = vector.extract_strided_slice %174 {offsets = [0, 256], sizes = [1, 256], strides = [1, 1]} : vector<1x768xf32> to vector<1x256xf32>
    %188 = vector.extract_strided_slice %178 {offsets = [0, 256], sizes = [1, 256], strides = [1, 1]} : vector<1x768xf32> to vector<1x256xf32>
    %189 = arith.addf %187, %188 : vector<1x256xf32>
    %190 = arith.negf %189 : vector<1x256xf32>
    %191 = math.exp %190 : vector<1x256xf32>
    %cst_53 = arith.constant 1.000000e+00 : f32
    %192 = vector.broadcast %cst_53 : f32 to vector<1x256xf32>
    %193 = arith.addf %192, %191 : vector<1x256xf32>
    %194 = arith.divf %192, %193 : vector<1x256xf32>
    %195 = vector.extract_strided_slice %174 {offsets = [0, 512], sizes = [1, 256], strides = [1, 1]} : vector<1x768xf32> to vector<1x256xf32>
    %196 = vector.extract_strided_slice %178 {offsets = [0, 512], sizes = [1, 256], strides = [1, 1]} : vector<1x768xf32> to vector<1x256xf32>
    %197 = arith.mulf %186, %196 : vector<1x256xf32>
    %198 = arith.addf %195, %197 : vector<1x256xf32>
    %199 = math.tanh %198 : vector<1x256xf32>
    %cst_54 = arith.constant 1.000000e+00 : f32
    %200 = vector.broadcast %cst_54 : f32 to vector<1x256xf32>
    %201 = arith.subf %200, %194 : vector<1x256xf32>
    %202 = arith.mulf %201, %199 : vector<1x256xf32>
    %203 = arith.mulf %194, %170 : vector<1x256xf32>
    %204 = arith.addf %202, %203 : vector<1x256xf32>
    %c5_55 = arith.constant 5 : index
    %c0_56 = arith.constant 0 : index
    %205 = vector.load %arg6[%c5_55, %c0_56] : memref<8x256xf32, #tpu.memory_space<vmem>>, vector<1x256xf32>
    tpu.vector_store %arg6[%c5_55, %c0_56], %204 {strides = array<i32>} : memref<8x256xf32, #tpu.memory_space<vmem>>, vector<1x256xf32>,
    %c6 = arith.constant 6 : index
    %206 = memref.load %arg1[%c6] : memref<8xi32, #tpu.memory_space<smem>>
    %207 = arith.index_cast %206 : i32 to index
    %c0_57 = arith.constant 0 : index
    %208 = vector.load %arg2[%207, %c0_57] : memref<64x768xf32, #tpu.memory_space<vmem>>, vector<1x768xf32>
    %209 = arith.truncf %204 : vector<1x256xf32> to vector<1x256xbf16>
    %c0_58 = arith.constant 0 : index
    %c0_59 = arith.constant 0 : index
    %210 = vector.load %arg4[%c0_58, %c0_59] : memref<256x768xbf16, #tpu.memory_space<vmem>>, vector<256x768xbf16>
    %cst_60 = arith.constant dense<0.000000e+00> : vector<1x768xf32>
    %211 = tpu.matmul %209, %210, %cst_60 {dimension_numbers = #tpu.dot_dimension_numbers<[1], [0], [0], [1], [0, 0, 1, 1], [], []>} : vector<1x256xbf16>, vector<256x768xbf16>, vector<1x768xf32> -> vector<1x768xf32>
    %212 = arith.addf %211, %1 : vector<1x768xf32>
    %213 = vector.extract_strided_slice %208 {offsets = [0, 0], sizes = [1, 256], strides = [1, 1]} : vector<1x768xf32> to vector<1x256xf32>
    %214 = vector.extract_strided_slice %212 {offsets = [0, 0], sizes = [1, 256], strides = [1, 1]} : vector<1x768xf32> to vector<1x256xf32>
    %215 = arith.addf %213, %214 : vector<1x256xf32>
    %216 = arith.negf %215 : vector<1x256xf32>
    %217 = math.exp %216 : vector<1x256xf32>
    %cst_61 = arith.constant 1.000000e+00 : f32
    %218 = vector.broadcast %cst_61 : f32 to vector<1x256xf32>
    %219 = arith.addf %218, %217 : vector<1x256xf32>
    %220 = arith.divf %218, %219 : vector<1x256xf32>
    %221 = vector.extract_strided_slice %208 {offsets = [0, 256], sizes = [1, 256], strides = [1, 1]} : vector<1x768xf32> to vector<1x256xf32>
    %222 = vector.extract_strided_slice %212 {offsets = [0, 256], sizes = [1, 256], strides = [1, 1]} : vector<1x768xf32> to vector<1x256xf32>
    %223 = arith.addf %221, %222 : vector<1x256xf32>
    %224 = arith.negf %223 : vector<1x256xf32>
    %225 = math.exp %224 : vector<1x256xf32>
    %cst_62 = arith.constant 1.000000e+00 : f32
    %226 = vector.broadcast %cst_62 : f32 to vector<1x256xf32>
    %227 = arith.addf %226, %225 : vector<1x256xf32>
    %228 = arith.divf %226, %227 : vector<1x256xf32>
    %229 = vector.extract_strided_slice %208 {offsets = [0, 512], sizes = [1, 256], strides = [1, 1]} : vector<1x768xf32> to vector<1x256xf32>
    %230 = vector.extract_strided_slice %212 {offsets = [0, 512], sizes = [1, 256], strides = [1, 1]} : vector<1x768xf32> to vector<1x256xf32>
    %231 = arith.mulf %220, %230 : vector<1x256xf32>
    %232 = arith.addf %229, %231 : vector<1x256xf32>
    %233 = math.tanh %232 : vector<1x256xf32>
    %cst_63 = arith.constant 1.000000e+00 : f32
    %234 = vector.broadcast %cst_63 : f32 to vector<1x256xf32>
    %235 = arith.subf %234, %228 : vector<1x256xf32>
    %236 = arith.mulf %235, %233 : vector<1x256xf32>
    %237 = arith.mulf %228, %204 : vector<1x256xf32>
    %238 = arith.addf %236, %237 : vector<1x256xf32>
    %c6_64 = arith.constant 6 : index
    %c0_65 = arith.constant 0 : index
    %239 = vector.load %arg6[%c6_64, %c0_65] : memref<8x256xf32, #tpu.memory_space<vmem>>, vector<1x256xf32>
    tpu.vector_store %arg6[%c6_64, %c0_65], %238 {strides = array<i32>} : memref<8x256xf32, #tpu.memory_space<vmem>>, vector<1x256xf32>,
    %c7 = arith.constant 7 : index
    %240 = memref.load %arg1[%c7] : memref<8xi32, #tpu.memory_space<smem>>
    %241 = arith.index_cast %240 : i32 to index
    %c0_66 = arith.constant 0 : index
    %242 = vector.load %arg2[%241, %c0_66] : memref<64x768xf32, #tpu.memory_space<vmem>>, vector<1x768xf32>
    %243 = arith.truncf %238 : vector<1x256xf32> to vector<1x256xbf16>
    %c0_67 = arith.constant 0 : index
    %c0_68 = arith.constant 0 : index
    %244 = vector.load %arg4[%c0_67, %c0_68] : memref<256x768xbf16, #tpu.memory_space<vmem>>, vector<256x768xbf16>
    %cst_69 = arith.constant dense<0.000000e+00> : vector<1x768xf32>
    %245 = tpu.matmul %243, %244, %cst_69 {dimension_numbers = #tpu.dot_dimension_numbers<[1], [0], [0], [1], [0, 0, 1, 1], [], []>} : vector<1x256xbf16>, vector<256x768xbf16>, vector<1x768xf32> -> vector<1x768xf32>
    %246 = arith.addf %245, %1 : vector<1x768xf32>
    %247 = vector.extract_strided_slice %242 {offsets = [0, 0], sizes = [1, 256], strides = [1, 1]} : vector<1x768xf32> to vector<1x256xf32>
    %248 = vector.extract_strided_slice %246 {offsets = [0, 0], sizes = [1, 256], strides = [1, 1]} : vector<1x768xf32> to vector<1x256xf32>
    %249 = arith.addf %247, %248 : vector<1x256xf32>
    %250 = arith.negf %249 : vector<1x256xf32>
    %251 = math.exp %250 : vector<1x256xf32>
    %cst_70 = arith.constant 1.000000e+00 : f32
    %252 = vector.broadcast %cst_70 : f32 to vector<1x256xf32>
    %253 = arith.addf %252, %251 : vector<1x256xf32>
    %254 = arith.divf %252, %253 : vector<1x256xf32>
    %255 = vector.extract_strided_slice %242 {offsets = [0, 256], sizes = [1, 256], strides = [1, 1]} : vector<1x768xf32> to vector<1x256xf32>
    %256 = vector.extract_strided_slice %246 {offsets = [0, 256], sizes = [1, 256], strides = [1, 1]} : vector<1x768xf32> to vector<1x256xf32>
    %257 = arith.addf %255, %256 : vector<1x256xf32>
    %258 = arith.negf %257 : vector<1x256xf32>
    %259 = math.exp %258 : vector<1x256xf32>
    %cst_71 = arith.constant 1.000000e+00 : f32
    %260 = vector.broadcast %cst_71 : f32 to vector<1x256xf32>
    %261 = arith.addf %260, %259 : vector<1x256xf32>
    %262 = arith.divf %260, %261 : vector<1x256xf32>
    %263 = vector.extract_strided_slice %242 {offsets = [0, 512], sizes = [1, 256], strides = [1, 1]} : vector<1x768xf32> to vector<1x256xf32>
    %264 = vector.extract_strided_slice %246 {offsets = [0, 512], sizes = [1, 256], strides = [1, 1]} : vector<1x768xf32> to vector<1x256xf32>
    %265 = arith.mulf %254, %264 : vector<1x256xf32>
    %266 = arith.addf %263, %265 : vector<1x256xf32>
    %267 = math.tanh %266 : vector<1x256xf32>
    %cst_72 = arith.constant 1.000000e+00 : f32
    %268 = vector.broadcast %cst_72 : f32 to vector<1x256xf32>
    %269 = arith.subf %268, %262 : vector<1x256xf32>
    %270 = arith.mulf %269, %267 : vector<1x256xf32>
    %271 = arith.mulf %262, %238 : vector<1x256xf32>
    %272 = arith.addf %270, %271 : vector<1x256xf32>
    %c7_73 = arith.constant 7 : index
    %c0_74 = arith.constant 0 : index
    %273 = vector.load %arg6[%c7_73, %c0_74] : memref<8x256xf32, #tpu.memory_space<vmem>>, vector<1x256xf32>
    tpu.vector_store %arg6[%c7_73, %c0_74], %272 {strides = array<i32>} : memref<8x256xf32, #tpu.memory_space<vmem>>, vector<1x256xf32>,
    return
  }
  func.func @transform_0(%arg0: i32, %arg1: memref<8xi32, #tpu.memory_space<smem>>) -> (i32, i32) {
    %c0_i32 = arith.constant 0 : i32
    %c0_i32_0 = arith.constant 0 : i32
    %c0_i32_1 = arith.constant 0 : i32
    return %c0_i32, %c0_i32_0 : i32, i32
  }
  func.func @transform_1(%arg0: i32, %arg1: memref<8xi32, #tpu.memory_space<smem>>) -> (i32, i32) {
    %c0_i32 = arith.constant 0 : i32
    %c0_i32_0 = arith.constant 0 : i32
    %c0_i32_1 = arith.constant 0 : i32
    return %c0_i32, %c0_i32_0 : i32, i32
  }
  func.func @transform_2(%arg0: i32, %arg1: memref<8xi32, #tpu.memory_space<smem>>) -> (i32, i32) {
    %c0_i32 = arith.constant 0 : i32
    %c0_i32_0 = arith.constant 0 : i32
    %c0_i32_1 = arith.constant 0 : i32
    return %c0_i32, %c0_i32_0 : i32, i32
  }
  func.func @transform_3(%arg0: i32, %arg1: memref<8xi32, #tpu.memory_space<smem>>) -> (i32, i32) {
    %c0_i32 = arith.constant 0 : i32
    %c0_i32_0 = arith.constant 0 : i32
    %c0_i32_1 = arith.constant 0 : i32
    return %c0_i32, %c0_i32_0 : i32, i32
  }
  func.func @transform_4(%arg0: i32, %arg1: memref<8xi32, #tpu.memory_space<smem>>) -> (i32, i32) {
    %c0_i32 = arith.constant 0 : i32
    %c0_i32_0 = arith.constant 0 : i32
    %c0_i32_1 = arith.constant 0 : i32
    return %c0_i32, %c0_i32_0 : i32, i32
  }
}

</mosaic_0001>

<bundles_post_ra>
// kernel: tpu_custom_call.1
= control target key start
LH: loop header
LB: loop body
LE: loop exit
PB: predicated region body
PF: predicated region fallthrough
CT: control target
= control target key end

     0   :  { %s10820_s21 = smov [#allocation3]   ;;  %s11350_s0 = inlined_call_operand.hbm [shape: s32[8], index: 0, kind: input, shape index: {}]   ;;  %s11351_s1 = inlined_call_operand.hbm [shape: f32[64,768], index: 1, kind: input, shape index: {}]   ;;  %s11352_s2 = inlined_call_operand.hbm [shape: f32[1,256], index: 2, kind: input, shape index: {}]   ;;  %s11353_s3 = inlined_call_operand.hbm [shape: bf16[256,768], index: 3, kind: input, shape index: {}]   ;;  %s11354_s4 = inlined_call_operand.hbm [shape: f32[1,768], index: 4, kind: input, shape index: {}]   ;;  %s11355_s5 = inlined_call_operand.hbm [shape: f32[8,256], index: 5, kind: output, shape index: {}]  }
   0x1   :  { %s11_s20 = sshll.u32 %s11350_s0, 4  ;;  %s12_s20 = int_to_ptr.hbm [resolvable:$true] %s11_s20 }
   0x2   :  { %14 = dma.hbm_to_smem %s12_s20, 16, %s10820_s21, [#allocation2] }
   0x3   :  { %10810 = dma.done.wait [#allocation2], 16 }
   0x4   :  { %10811 = vsyncadd [#allocation2], 4294967280 }
   0x5   :  { %17 = sfence }
   0x6   :  { %18 = vsyncpa [#allocation5], 0 }
   0x7   :  { %19 = vsyncpa [#allocation8], 0 }
   0x8   :  { %20 = vsyncpa [#allocation11], 0  ;;  %s40_s24 = sshll.u32 %s11352_s2, 4  ;;  %s41_s24 = int_to_ptr.hbm [resolvable:$true] %s40_s24 }
   0x9   :  { %21 = vsyncpa [#allocation6], 0  ;;  %s10821_s25 = smov [#allocation7]   ;;  %s26_s28 = sshll.u32 %s11351_s1, 4  ;;  %s27_s28 = int_to_ptr.hbm [resolvable:$true] %s26_s28 }
   0xa   :  { %s42_s26 = sshll.u32 %s10821_s25, 4  ;;  %s10822_s29 = smov [#allocation4]   ;;  %s43_s26 = int_to_ptr.vmem [resolvable:$true] %s42_s26 }
   0xb   :  { %45 = dma.hbm_to_vmem [thread:$0]  %s41_s24, 32, %s43_s26, [#allocation8]  }
   0xc   :  { %s28_s30 = sshll.u32 %s10822_s29, 4  ;;  %s10823_s6 = smov 768   ;;  %s29_s30 = int_to_ptr.vmem [resolvable:$true] %s28_s30 }
   0xd   :  { %s10824_s7 = smov 48   ;;  %s50_s2 = sshll.u32 %s11353_s3, 4  ;;  %s51_s2 = int_to_ptr.hbm [resolvable:$true] %s50_s2 }
   0xe   :  { %34 = dma.hbm_to_vmem [thread:$0]  %s27_s28, 6144, %s29_s30, [#allocation5], %s10823_s6, %s10823_s6, %s10824_s7  }
   0xf   :  { %s10825_s10 = smov [#allocation9]   ;;  %s64_s1 = sshll.u32 %s11354_s4, 4  ;;  %s65_s1 = int_to_ptr.hbm [resolvable:$true] %s64_s1 }
  0x10   :  { %s52_s11 = sshll.u32 %s10825_s10, 4  ;;  %s10826_s14 = smov 384   ;;  %s53_s11 = int_to_ptr.vmem [resolvable:$true] %s52_s11 }
  0x11   :  { %s10827_s15 = smov 24   ;;  %s10828_s16 = smov [#allocation10]  }
  0x12   :  { %58 = dma.hbm_to_vmem [thread:$0]  %s51_s2, 12288, %s53_s11, [#allocation8], %s10826_s14, %s10826_s14, %s10827_s15  }
  0x13   :  { %s66_s17 = sshll.u32 %s10828_s16, 4  ;;  %s67_s17 = int_to_ptr.vmem [resolvable:$true] %s66_s17 }
  0x14   :  { %69 = dma.hbm_to_vmem [thread:$0]  %s65_s1, 96, %s67_s17, [#allocation11]  }
  0x15   :  { %10812 = dma.done.wait [#allocation5], 6144  }
  0x16   :  { %10813 = vsyncadd [#allocation5], 4294961152 }
  0x17   :  { %10814 = dma.done.wait [#allocation8], 12320  }
  0x18   :  { %10815 = vsyncadd [#allocation8], 4294954976 }
  0x19   :  { %10816 = dma.done.wait [#allocation11], 96  }
  0x1a   :  { %10817 = vsyncadd [#allocation11], 4294967200  ;;  %v6887_v0 = vld [vmem:[#allocation9 + $0x150] sm:$0xf]  ;;  %v9864_v1 = vld [vmem:[#allocation9 + $0x164] sm:$0xf0] }
  0x1b   :  { %v9861_v2 = vld [vmem:[#allocation9 + $0x154] sm:$0xf]  ;;  %v6888_v3 = vor.u32 %v9864_v1, %v6887_v0  ;;  %v6889_v4 = vld [vmem:[#allocation9 + $0x168] sm:$0xf0]  ;;  %v7079_v9 = vld [vmem:[#allocation9 + $0x2d0] sm:$0xf] }
  0x1c   :  { %v9909_v5 = vld [vmem:[#allocation9 + $0x2d4] sm:$0xf]  ;;  %v7081_v6 = vld [vmem:[#allocation9 + $0x2e8] sm:$0xf0]  ;;  %v6892_v7 = vor.u32 %v9861_v2, %v6889_v4  ;;  %v9912_v10 = vld [vmem:[#allocation9 + $0x2e4] sm:$0xf0] }
  0x1d   :  { %v7084_v8 = vor.u32 %v9909_v5, %v7081_v6  ;;  %v6863_v11 = vld [vmem:[#allocation9 + $0x120] sm:$0xf]  ;;  %696 = vmatpush.bf16.msra.mxu0 %v6888_v3  ;;  %v7080_v12 = vor.u32 %v9912_v10, %v7079_v9  ;;  %v9858_v13 = vld [vmem:[#allocation9 + $0x134] sm:$0xf0]  ;;  %v9855_v14 = vld [vmem:[#allocation9 + $0x124] sm:$0xf] }
  0x1e   :  { %v6865_v15 = vld [vmem:[#allocation9 + $0x138] sm:$0xf0]  ;;  %722 = vmatpush.bf16.msra.mxu2 %v6892_v7  ;;  %v6864_v16 = vor.u32 %v9858_v13, %v6863_v11  ;;  %v9903_v18 = vld [vmem:[#allocation9 + $0x2a4] sm:$0xf]  ;;  %v7055_v20 = vld [vmem:[#allocation9 + $0x2a0] sm:$0xf] }
  0x1f   :  { %735 = vmatpush.bf16.msra.mxu3 %v7084_v8  ;;  %v6868_v17 = vor.u32 %v9855_v14, %v6865_v15  ;;  %v7057_v19 = vld [vmem:[#allocation9 + $0x2b8] sm:$0xf0]  ;;  %709 = vmatpush.bf16.msra.mxu1 %v7080_v12  ;;  %v9906_v22 = vld [vmem:[#allocation9 + $0x2b4] sm:$0xf0]  ;;  %v6839_v23 = vld [vmem:[#allocation9 + $0xf0] sm:$0xf] }
  0x20   :  { %v7060_v21 = vor.u32 %v9903_v18, %v7057_v19  ;;  %v9852_v24 = vld [vmem:[#allocation9 + $0x104] sm:$0xf0]  ;;  %v7056_v25 = vor.u32 %v9906_v22, %v7055_v20  ;;  %v9849_v26 = vld [vmem:[#allocation9 + $0xf4] sm:$0xf]  ;;  %v6841_v27 = vld [vmem:[#allocation9 + $0x108] sm:$0xf0] }
  0x21   :  { %v9897_v28 = vld [vmem:[#allocation9 + $0x274] sm:$0xf]  ;;  %697 = vmatpush.bf16.msra.mxu0 %v6864_v16  ;;  %v6840_v29 = vor.u32 %v9852_v24, %v6839_v23  ;;  %v7033_v30 = vld [vmem:[#allocation9 + $0x288] sm:$0xf0]  ;;  %v7031_v31 = vld [vmem:[#allocation9 + $0x270] sm:$0xf]  ;;  %v6844_v33 = vor.u32 %v9849_v26, %v6841_v27 }
  0x22   :  { %v9900_v32 = vld [vmem:[#allocation9 + $0x284] sm:$0xf0]  ;;  %723 = vmatpush.bf16.msra.mxu2 %v6868_v17  ;;  %v7036_v34 = vor.u32 %v9897_v28, %v7033_v30  ;;  %v6815_v35 = vld [vmem:[#allocation9 + $0xc0] sm:$0xf]  ;;  %v9846_v36 = vld [vmem:[#allocation9 + $0xd4] sm:$0xf0] }
  0x23   :  { %736 = vmatpush.bf16.msra.mxu3 %v7060_v21  ;;  %v9843_v37 = vld [vmem:[#allocation9 + $0xc4] sm:$0xf]  ;;  %710 = vmatpush.bf16.msra.mxu1 %v7056_v25  ;;  %v7032_v38 = vor.u32 %v9900_v32, %v7031_v31  ;;  %v6817_v39 = vld [vmem:[#allocation9 + $0xd8] sm:$0xf0]  ;;  %v7007_v42 = vld [vmem:[#allocation9 + $0x240] sm:$0xf]  ;;  %v6816_v44 = vor.u32 %v9846_v36, %v6815_v35 }
  0x24   :  { %v9891_v40 = vld [vmem:[#allocation9 + $0x244] sm:$0xf]  ;;  %v7009_v41 = vld [vmem:[#allocation9 + $0x258] sm:$0xf0]  ;;  %v9894_v43 = vld [vmem:[#allocation9 + $0x254] sm:$0xf0]  ;;  %v6820_v45 = vor.u32 %v9843_v37, %v6817_v39 }
  0x25   :  { %698 = vmatpush.bf16.msra.mxu0 %v6840_v29  ;;  %v7012_v46 = vor.u32 %v9891_v40, %v7009_v41  ;;  %v6791_v47 = vld [vmem:[#allocation9 + $0x90] sm:$0xf]  ;;  %v9840_v48 = vld [vmem:[#allocation9 + $0xa4] sm:$0xf0]  ;;  %v9837_v49 = vld [vmem:[#allocation9 + $0x94] sm:$0xf]  ;;  %v7008_v50 = vor.u32 %v9894_v43, %v7007_v42 }
  0x26   :  { %724 = vmatpush.bf16.msra.mxu2 %v6844_v33  ;;  %v6793_v51 = vld [vmem:[#allocation9 + $0xa8] sm:$0xf0]  ;;  %v9885_v52 = vld [vmem:[#allocation9 + $0x214] sm:$0xf]  ;;  %v6983_v54 = vld [vmem:[#allocation9 + $0x210] sm:$0xf]  ;;  %v6792_v56 = vor.u32 %v9840_v48, %v6791_v47 }
  0x27   :  { %737 = vmatpush.bf16.msra.mxu3 %v7036_v34  ;;  %711 = vmatpush.bf16.msra.mxu1 %v7032_v38  ;;  %v6985_v53 = vld [vmem:[#allocation9 + $0x228] sm:$0xf0]  ;;  %v9888_v55 = vld [vmem:[#allocation9 + $0x224] sm:$0xf0]  ;;  %v6796_v57 = vor.u32 %v9837_v49, %v6793_v51  ;;  %v6767_v59 = vld [vmem:[#allocation9 + $0x60] sm:$0xf] }
  0x28   :  { %v6988_v58 = vor.u32 %v9885_v52, %v6985_v53  ;;  %v9834_v60 = vld [vmem:[#allocation9 + $0x74] sm:$0xf0]  ;;  %v9831_v61 = vld [vmem:[#allocation9 + $0x64] sm:$0xf]  ;;  %v6984_v62 = vor.u32 %v9888_v55, %v6983_v54  ;;  %v6769_v63 = vld [vmem:[#allocation9 + $0x78] sm:$0xf0] }
  0x29   :  { %699 = vmatpush.bf16.msra.mxu0 %v6816_v44  ;;  %v9879_v0 = vld [vmem:[#allocation9 + $0x1e4] sm:$0xf]  ;;  %v6961_v1 = vld [vmem:[#allocation9 + $0x1f8] sm:$0xf0]  ;;  %v6959_v2 = vld [vmem:[#allocation9 + $0x1e0] sm:$0xf]  ;;  %v6768_v4 = vor.u32 %v9834_v60, %v6767_v59  ;;  %v6772_v5 = vor.u32 %v9831_v61, %v6769_v63 }
  0x2a   :  { %725 = vmatpush.bf16.msra.mxu2 %v6820_v45  ;;  %v9882_v3 = vld [vmem:[#allocation9 + $0x1f4] sm:$0xf0]  ;;  %v6964_v6 = vor.u32 %v9879_v0, %v6961_v1  ;;  %v6743_v7 = vld [vmem:[#allocation9 + $0x30] sm:$0xf]  ;;  %v9828_v8 = vld [vmem:[#allocation9 + $0x44] sm:$0xf0] }
  0x2b   :  { %738 = vmatpush.bf16.msra.mxu3 %v7012_v46  ;;  %712 = vmatpush.bf16.msra.mxu1 %v7008_v50  ;;  %v9825_v9 = vld [vmem:[#allocation9 + $0x34] sm:$0xf]  ;;  %v6960_v10 = vor.u32 %v9882_v3, %v6959_v2  ;;  %v6745_v11 = vld [vmem:[#allocation9 + $0x48] sm:$0xf0]  ;;  %v6935_v14 = vld [vmem:[#allocation9 + $0x1b0] sm:$0xf]  ;;  %v6744_v16 = vor.u32 %v9828_v8, %v6743_v7 }
  0x2c   :  { %v9873_v12 = vld [vmem:[#allocation9 + $0x1b4] sm:$0xf]  ;;  %v6937_v13 = vld [vmem:[#allocation9 + $0x1c8] sm:$0xf0]  ;;  %v9876_v15 = vld [vmem:[#allocation9 + $0x1c4] sm:$0xf0]  ;;  %v6748_v19 = vor.u32 %v9825_v9, %v6745_v11 }
  0x2d   :  { %700 = vmatpush.bf16.msra.mxu0 %v6792_v56  ;;  %v6719_v17 = vld [vmem:[#allocation9] sm:$0xf]  ;;  %v9822_v18 = vld [vmem:[#allocation9 + $0x14] sm:$0xf0]  ;;  %v6940_v20 = vor.u32 %v9873_v12, %v6937_v13  ;;  %v9819_v21 = vld [vmem:[#allocation9 + $0x4] sm:$0xf]  ;;  %v6936_v24 = vor.u32 %v9876_v15, %v6935_v14 }
  0x2e   :  { %726 = vmatpush.bf16.msra.mxu2 %v6796_v57  ;;  %v6721_v22 = vld [vmem:[#allocation9 + $0x18] sm:$0xf0]  ;;  %v9867_v23 = vld [vmem:[#allocation9 + $0x184] sm:$0xf]  ;;  %v6895_v26 = vld [vmem:[#allocation9 + $0x158] sm:$0xf]  ;;  %v6720_v31 = vor.u32 %v9822_v18, %v6719_v17 }
  0x2f   :  { %739 = vmatpush.bf16.msra.mxu3 %v6988_v58  ;;  %713 = vmatpush.bf16.msra.mxu1 %v6984_v62  ;;  %v6913_v25 = vld [vmem:[#allocation9 + $0x198] sm:$0xf0]  ;;  %v9865_v27 = vld [vmem:[#allocation9 + $0x16c] sm:$0xf0]  ;;  %v6897_v29 = vld [vmem:[#allocation9 + $0x170] sm:$0xf0]  ;;  %v6724_v35 = vor.u32 %v9819_v21, %v6721_v22 }
  0x30   :  { %v9862_v28 = vld [vmem:[#allocation9 + $0x15c] sm:$0xf]  ;;  %v7089_v32 = vld [vmem:[#allocation9 + $0x2f0] sm:$0xf0]  ;;  %v6911_v33 = vld [vmem:[#allocation9 + $0x180] sm:$0xf]  ;;  %v6916_v36 = vor.u32 %v9867_v23, %v6913_v25  ;;  %v6896_v40 = vor.u32 %v9865_v27, %v6895_v26 }
  0x31   :  { %701 = vmatpush.bf16.msra.mxu0 %v6768_v4  ;;  %v9910_v30 = vld [vmem:[#allocation9 + $0x2dc] sm:$0xf]  ;;  %v9870_v34 = vld [vmem:[#allocation9 + $0x194] sm:$0xf0]  ;;  %v9913_v38 = vld [vmem:[#allocation9 + $0x2ec] sm:$0xf0]  ;;  %v6900_v41 = vor.u32 %v9862_v28, %v6897_v29 }
  0x32   :  { %727 = vmatpush.bf16.msra.mxu2 %v6772_v5  ;;  %v7087_v37 = vld [vmem:[#allocation9 + $0x2d8] sm:$0xf]  ;;  %v86_v39 = vld [vmem:[#allocation7] sm:$0x3]  ;;  %v6871_v42 = vld [vmem:[#allocation9 + $0x128] sm:$0xf]  ;;  %v7092_v45 = vor.u32 %v9910_v30, %v7089_v32  ;;  %v6912_v46 = vor.u32 %v9870_v34, %v6911_v33 }
  0x33   :  { %740 = vmatpush.bf16.msra.mxu3 %v6964_v6  ;;  %714 = vmatpush.bf16.msra.mxu1 %v6960_v10  ;;  %v101_v43 = vperm.slane %v86_v39, 0  ;;  %v102_v44 = vperm.slane %v86_v39, 1  ;;  %v9859_v47 = vld [vmem:[#allocation9 + $0x13c] sm:$0xf0]  ;;  %v9856_v48 = vld [vmem:[#allocation9 + $0x12c] sm:$0xf]  ;;  %v7088_v50 = vor.u32 %v9913_v38, %v7087_v37 }
  0x34   :  { %v6873_v49 = vld [vmem:[#allocation9 + $0x140] sm:$0xf0]  ;;  %v9904_v51 = vld [vmem:[#allocation9 + $0x2ac] sm:$0xf]  ;;  %v7063_v54 = vld [vmem:[#allocation9 + $0x2a8] sm:$0xf]  ;;  %v6872_v57 = vor.u32 %v9859_v47, %v6871_v42 }
  0x35   :  { %702 = vmatpush.bf16.msra.mxu0 %v6744_v16  ;;  %v7065_v52 = vld [vmem:[#allocation9 + $0x2c0] sm:$0xf0]  ;;  %v10875_v53 = vpack.c.bf16 %v101_v43, %v101_v43  ;;  %v9907_v55 = vld [vmem:[#allocation9 + $0x2bc] sm:$0xf0]  ;;  %v10877_v56 = vpack.c.bf16 %v102_v44, %v102_v44  ;;  %v6876_v58 = vor.u32 %v9856_v48, %v6873_v49  ;;  %v6847_v59 = vld [vmem:[#allocation9 + $0xf8] sm:$0xf] }
  0x36   :  { %728 = vmatpush.bf16.msra.mxu2 %v6748_v19  ;;  %v7068_v60 = vor.u32 %v9904_v51, %v7065_v52  ;;  %v9853_v61 = vld [vmem:[#allocation9 + $0x10c] sm:$0xf0]  ;;  %v9850_v62 = vld [vmem:[#allocation9 + $0xfc] sm:$0xf]  ;;  %v6849_v63 = vld [vmem:[#allocation9 + $0x110] sm:$0xf0]  ;;  %v7064_v0 = vor.u32 %v9907_v55, %v7063_v54 }
  0x37   :  { %741 = vmatpush.bf16.msra.mxu3 %v6940_v20  ;;  %715 = vmatpush.bf16.msra.mxu1 %v6936_v24  ;;  %v9898_v1 = vld [vmem:[#allocation9 + $0x27c] sm:$0xf]  ;;  %v7041_v2 = vld [vmem:[#allocation9 + $0x290] sm:$0xf0]  ;;  %v7039_v3 = vld [vmem:[#allocation9 + $0x278] sm:$0xf]  ;;  %v6848_v5 = vor.u32 %v9853_v61, %v6847_v59  ;;  %v6852_v6 = vor.u32 %v9850_v62, %v6849_v63 }
  0x38   :  { %v9901_v4 = vld [vmem:[#allocation9 + $0x28c] sm:$0xf0]  ;;  %v6823_v7 = vld [vmem:[#allocation9 + $0xc8] sm:$0xf]  ;;  %v7044_v8 = vor.u32 %v9898_v1, %v7041_v2  ;;  %v9847_v9 = vld [vmem:[#allocation9 + $0xdc] sm:$0xf0] }
  0x39   :  { %703 = vmatpush.bf16.msra.mxu0 %v6720_v31  ;;  %v9844_v10 = vld [vmem:[#allocation9 + $0xcc] sm:$0xf]  ;;  %v6825_v11 = vld [vmem:[#allocation9 + $0xe0] sm:$0xf0]  ;;  %v7040_v12 = vor.u32 %v9901_v4, %v7039_v3  ;;  %v7015_v15 = vld [vmem:[#allocation9 + $0x248] sm:$0xf]  ;;  %v6824_v17 = vor.u32 %v9847_v9, %v6823_v7 }
  0x3a   :  { %729 = vmatpush.bf16.msra.mxu2 %v6724_v35  ;;  %v9892_v13 = vld [vmem:[#allocation9 + $0x24c] sm:$0xf]  ;;  %v7017_v14 = vld [vmem:[#allocation9 + $0x260] sm:$0xf0]  ;;  %v9895_v16 = vld [vmem:[#allocation9 + $0x25c] sm:$0xf0]  ;;  %v6828_v18 = vor.u32 %v9844_v10, %v6825_v11 }
  0x3b   :  { %742 = vmatpush.bf16.msra.mxu3 %v6916_v36  ;;  %716 = vmatpush.bf16.msra.mxu1 %v6912_v46  ;;  %v6799_v19 = vld [vmem:[#allocation9 + $0x98] sm:$0xf]  ;;  %v7020_v20 = vor.u32 %v9892_v13, %v7017_v14  ;;  %v9841_v21 = vld [vmem:[#allocation9 + $0xac] sm:$0xf0]  ;;  %v9838_v22 = vld [vmem:[#allocation9 + $0x9c] sm:$0xf]  ;;  %v7016_v24 = vor.u32 %v9895_v16, %v7015_v15 }
  0x3c   :  { %704 = vmatmul.bf16.vlgmr.msra.gmra.mxu0 %v10875_v53  ;;  %v6801_v23 = vld [vmem:[#allocation9 + $0xb0] sm:$0xf0]  ;;  %v9886_v25 = vld [vmem:[#allocation9 + $0x21c] sm:$0xf]  ;;  %v6991_v27 = vld [vmem:[#allocation9 + $0x218] sm:$0xf]  ;;  %v6800_v29 = vor.u32 %v9841_v21, %v6799_v19 }
  0x3d   :  { %748 = vmatpush.bf16.msrb.mxu0 %v6896_v40  ;;  %730 = vmatmul.bf16.vlgmr.msra.gmra.mxu2 %v10875_v53  ;;  %v6993_v26 = vld [vmem:[#allocation9 + $0x230] sm:$0xf0]  ;;  %v9889_v28 = vld [vmem:[#allocation9 + $0x22c] sm:$0xf0]  ;;  %v6804_v30 = vor.u32 %v9838_v22, %v6801_v23  ;;  %v6775_v31 = vld [vmem:[#allocation9 + $0x68] sm:$0xf] }
  0x3e   :  { %774 = vmatpush.bf16.msrb.mxu2 %v6900_v41  ;;  %743 = vmatmul.bf16.vlgmr.msra.gmra.mxu3 %v10877_v56  ;;  %v6996_v32 = vor.u32 %v9886_v25, %v6993_v26  ;;  %v9835_v33 = vld [vmem:[#allocation9 + $0x7c] sm:$0xf0]  ;;  %v9832_v34 = vld [vmem:[#allocation9 + $0x6c] sm:$0xf]  ;;  %v6777_v35 = vld [vmem:[#allocation9 + $0x80] sm:$0xf0]  ;;  %v6992_v36 = vor.u32 %v9889_v28, %v6991_v27 }
  0x3f   :  { %787 = vmatpush.bf16.msrb.mxu3 %v7092_v45  ;;  %761 = vmatpush.bf16.msrb.mxu1 %v7088_v50  ;;  %v9880_v37 = vld [vmem:[#allocation9 + $0x1ec] sm:$0xf]  ;;  %v6969_v38 = vld [vmem:[#allocation9 + $0x200] sm:$0xf0]  ;;  %v6967_v39 = vld [vmem:[#allocation9 + $0x1e8] sm:$0xf]  ;;  %v6776_v41 = vor.u32 %v9835_v33, %v6775_v31  ;;  %v6780_v42 = vor.u32 %v9832_v34, %v6777_v35 }
  0x40   :  { %717 = vmatmul.bf16.vlgmr.msra.gmra.mxu1 %v10877_v56  ;;  %v9883_v40 = vld [vmem:[#allocation9 + $0x1fc] sm:$0xf0]  ;;  %v6751_v43 = vld [vmem:[#allocation9 + $0x38] sm:$0xf]  ;;  %v6972_v44 = vor.u32 %v9880_v37, %v6969_v38  ;;  %v9829_v45 = vld [vmem:[#allocation9 + $0x4c] sm:$0xf0] }
  0x41   :  { %749 = vmatpush.bf16.msrb.mxu0 %v6872_v57  ;;  %v9826_v46 = vld [vmem:[#allocation9 + $0x3c] sm:$0xf]  ;;  %v6753_v47 = vld [vmem:[#allocation9 + $0x50] sm:$0xf0]  ;;  %v6968_v48 = vor.u32 %v9883_v40, %v6967_v39  ;;  %v6943_v51 = vld [vmem:[#allocation9 + $0x1b8] sm:$0xf]  ;;  %v6752_v54 = vor.u32 %v9829_v45, %v6751_v43 }
  0x42   :  { %775 = vmatpush.bf16.msrb.mxu2 %v6876_v58  ;;  %v9874_v49 = vld [vmem:[#allocation9 + $0x1bc] sm:$0xf]  ;;  %v6945_v50 = vld [vmem:[#allocation9 + $0x1d0] sm:$0xf0]  ;;  %v9877_v52 = vld [vmem:[#allocation9 + $0x1cc] sm:$0xf0]  ;;  %v6756_v55 = vor.u32 %v9826_v46, %v6753_v47 }
  0x43   :  { %788 = vmatpush.bf16.msrb.mxu3 %v7068_v60  ;;  %762 = vmatpush.bf16.msrb.mxu1 %v7064_v0  ;;  %v6727_v57 = vld [vmem:[#allocation9 + $0x8] sm:$0xf]  ;;  %v9823_v58 = vld [vmem:[#allocation9 + $0x1c] sm:$0xf0]  ;;  %v9820_v59 = vld [vmem:[#allocation9 + $0xc] sm:$0xf]  ;;  %v6948_v60 = vor.u32 %v9874_v49, %v6945_v50  ;;  %v6944_v0 = vor.u32 %v9877_v52, %v6943_v51 }
  0x44   :  { %v6729_v61 = vld [vmem:[#allocation9 + $0x20] sm:$0xf0]  ;;  %v9868_v62 = vld [vmem:[#allocation9 + $0x18c] sm:$0xf]  ;;  %v6903_v1 = vld [vmem:[#allocation9 + $0x160] sm:$0xf]  ;;  %v6728_v7 = vor.u32 %v9823_v58, %v6727_v57 }
  0x45   :  { %750 = vmatpush.bf16.msrb.mxu0 %v6848_v5  ;;  %v6921_v63 = vld [vmem:[#allocation9 + $0x1a0] sm:$0xf0]  ;;  %v9866_v2 = vld [vmem:[#allocation9 + $0x174] sm:$0xf0]  ;;  %v6905_v4 = vld [vmem:[#allocation9 + $0x178] sm:$0xf0] }
  0x46   :  { %776 = vmatpush.bf16.msrb.mxu2 %v6852_v6  ;;  %v9863_v3 = vld [vmem:[#allocation9 + $0x164] sm:$0xf]  ;;  %v7097_v6 = vld [vmem:[#allocation9 + $0x2f8] sm:$0xf0]  ;;  %v6919_v9 = vld [vmem:[#allocation9 + $0x188] sm:$0xf]  ;;  %v6924_v11 = vor.u32 %v9868_v62, %v6921_v63 }
  0x47   :  { %789 = vmatpush.bf16.msrb.mxu3 %v7044_v8  ;;  %763 = vmatpush.bf16.msrb.mxu1 %v7040_v12  ;;  %v9911_v5 = vld [vmem:[#allocation9 + $0x2e4] sm:$0xf]  ;;  %v6732_v8 = vor.u32 %v9820_v59, %v6729_v61  ;;  %v9871_v10 = vld [vmem:[#allocation9 + $0x19c] sm:$0xf0]  ;;  %v6904_v12 = vor.u32 %v9866_v2, %v6903_v1  ;;  %v9914_v14 = vld [vmem:[#allocation9 + $0x2f4] sm:$0xf0]  ;;  %v6908_v15 = vor.u32 %v9863_v3, %v6905_v4 }
  0x48   :  { %v7095_v13 = vld [vmem:[#allocation9 + $0x2e0] sm:$0xf]  ;;  %v7100_v16 = vor.u32 %v9911_v5, %v7097_v6  ;;  %v9857_v19 = vld [vmem:[#allocation9 + $0x134] sm:$0xf]  ;;  %v6881_v21 = vld [vmem:[#allocation9 + $0x148] sm:$0xf0] }
  0x49   :  { %751 = vmatpush.bf16.msrb.mxu0 %v6824_v17  ;;  %v6879_v17 = vld [vmem:[#allocation9 + $0x130] sm:$0xf]  ;;  %v9905_v22 = vld [vmem:[#allocation9 + $0x2b4] sm:$0xf]  ;;  %v7073_v23 = vld [vmem:[#allocation9 + $0x2c8] sm:$0xf0]  ;;  %v6884_v28 = vor.u32 %v9857_v19, %v6881_v21 }
  0x4a   :  { %777 = vmatpush.bf16.msrb.mxu2 %v6828_v18  ;;  %v9860_v18 = vld [vmem:[#allocation9 + $0x144] sm:$0xf0]  ;;  %v7071_v26 = vld [vmem:[#allocation9 + $0x2b0] sm:$0xf]  ;;  %v9854_v31 = vld [vmem:[#allocation9 + $0x114] sm:$0xf0] }
  0x4b   :  { %790 = vmatpush.bf16.msrb.mxu3 %v7020_v20  ;;  %764 = vmatpush.bf16.msrb.mxu1 %v7016_v24  ;;  %v6920_v20 = vor.u32 %v9871_v10, %v6919_v9  ;;  %v7096_v24 = vor.u32 %v9914_v14, %v7095_v13  ;;  %v6880_v25 = vor.u32 %v9860_v18, %v6879_v17  ;;  %v9908_v27 = vld [vmem:[#allocation9 + $0x2c4] sm:$0xf0]  ;;  %v6857_v33 = vld [vmem:[#allocation9 + $0x118] sm:$0xf0]  ;;  %v9899_v34 = vld [vmem:[#allocation9 + $0x284] sm:$0xf] }
  0x4c   :  { %v7049_v35 = vld [vmem:[#allocation9 + $0x298] sm:$0xf0]  ;;  %v7047_v38 = vld [vmem:[#allocation9 + $0x280] sm:$0xf]  ;;  %v9902_v39 = vld [vmem:[#allocation9 + $0x294] sm:$0xf0] }
  0x4d   :  { %752 = vmatpush.bf16.msrb.mxu0 %v6800_v29  ;;  %v7076_v29 = vor.u32 %v9905_v22, %v7073_v23  ;;  %v9848_v43 = vld [vmem:[#allocation9 + $0xe4] sm:$0xf0]  ;;  %v6833_v45 = vld [vmem:[#allocation9 + $0xe8] sm:$0xf0]  ;;  %v9893_v46 = vld [vmem:[#allocation9 + $0x254] sm:$0xf] }
  0x4e   :  { %778 = vmatpush.bf16.msrb.mxu2 %v6804_v30  ;;  %v6855_v30 = vld [vmem:[#allocation9 + $0x100] sm:$0xf]  ;;  %v7025_v47 = vld [vmem:[#allocation9 + $0x268] sm:$0xf0]  ;;  %v7023_v50 = vld [vmem:[#allocation9 + $0x250] sm:$0xf] }
  0x4f   :  { %791 = vmatpush.bf16.msrb.mxu3 %v6996_v32  ;;  %765 = vmatpush.bf16.msrb.mxu1 %v6992_v36  ;;  %v9851_v32 = vld [vmem:[#allocation9 + $0x104] sm:$0xf]  ;;  %v7072_v36 = vor.u32 %v9908_v27, %v7071_v26  ;;  %v6856_v37 = vor.u32 %v9854_v31, %v6855_v30  ;;  %v9896_v51 = vld [vmem:[#allocation9 + $0x264] sm:$0xf0]  ;;  %v9842_v57 = vld [vmem:[#allocation9 + $0xb4] sm:$0xf0] }
  0x50   :  { %v6860_v40 = vor.u32 %v9851_v32, %v6857_v33  ;;  %v9839_v58 = vld [vmem:[#allocation9 + $0xa4] sm:$0xf]  ;;  %v6809_v59 = vld [vmem:[#allocation9 + $0xb8] sm:$0xf0]  ;;  %v7024_v62 = vor.u32 %v9896_v51, %v7023_v50  ;;  %v9890_v1 = vld [vmem:[#allocation9 + $0x234] sm:$0xf0] }
  0x51   :  { %753 = vmatpush.bf16.msrb.mxu0 %v6776_v41  ;;  %v7052_v41 = vor.u32 %v9899_v34, %v7049_v35  ;;  %v7001_v61 = vld [vmem:[#allocation9 + $0x238] sm:$0xf0]  ;;  %v6812_v2 = vor.u32 %v9839_v58, %v6809_v59  ;;  %v6783_v4 = vld [vmem:[#allocation9 + $0x70] sm:$0xf]  ;;  %v9836_v5 = vld [vmem:[#allocation9 + $0x84] sm:$0xf0] }
  0x52   :  { %779 = vmatpush.bf16.msrb.mxu2 %v6780_v42  ;;  %v6831_v42 = vld [vmem:[#allocation9 + $0xd0] sm:$0xf]  ;;  %v9833_v6 = vld [vmem:[#allocation9 + $0x74] sm:$0xf]  ;;  %v6977_v9 = vld [vmem:[#allocation9 + $0x208] sm:$0xf0] }
  0x53   :  { %792 = vmatpush.bf16.msrb.mxu3 %v6972_v44  ;;  %766 = vmatpush.bf16.msrb.mxu1 %v6968_v48  ;;  %v9845_v44 = vld [vmem:[#allocation9 + $0xd4] sm:$0xf]  ;;  %v7048_v48 = vor.u32 %v9902_v39, %v7047_v38  ;;  %v6832_v49 = vor.u32 %v9848_v43, %v6831_v42  ;;  %v9884_v13 = vld [vmem:[#allocation9 + $0x204] sm:$0xf0]  ;;  %v9830_v17 = vld [vmem:[#allocation9 + $0x54] sm:$0xf0] }
  0x54   :  { %v6836_v52 = vor.u32 %v9845_v44, %v6833_v45  ;;  %v9827_v18 = vld [vmem:[#allocation9 + $0x44] sm:$0xf]  ;;  %v6761_v19 = vld [vmem:[#allocation9 + $0x58] sm:$0xf0]  ;;  %v9821_v30 = vld [vmem:[#allocation9 + $0x14] sm:$0xf] }
  0x55   :  { %754 = vmatpush.bf16.msrb.mxu0 %v6752_v54  ;;  %v7028_v54 = vor.u32 %v9893_v46, %v7025_v47  ;;  %v6953_v21 = vld [vmem:[#allocation9 + $0x1d8] sm:$0xf0]  ;;  %v6764_v26 = vor.u32 %v9827_v18, %v6761_v19  ;;  %v6737_v31 = vld [vmem:[#allocation9 + $0x28] sm:$0xf0]  ;;  %v9869_v32 = vld [vmem:[#allocation9 + $0x194] sm:$0xf] }
  0x56   :  { %780 = vmatpush.bf16.msrb.mxu2 %v6756_v55  ;;  %v6807_v55 = vld [vmem:[#allocation9 + $0xa0] sm:$0xf]  ;;  %v6929_v33 = vld [vmem:[#allocation9 + $0x1a8] sm:$0xf0]  ;;  %v6740_v38 = vor.u32 %v9821_v30, %v6737_v31  ;;  %s88_s3 = sld [smem:[#allocation3]]  ;;  %vm855_vm0 = vcmask 1040384  }
  0x57   :  { %793 = vmatpush.bf16.msrb.mxu3 %v6948_v60  ;;  %767 = vmatpush.bf16.msrb.mxu1 %v6944_v0  ;;  %v9887_v60 = vld [vmem:[#allocation9 + $0x224] sm:$0xf]  ;;  %v6808_v63 = vor.u32 %v9842_v57, %v6807_v55  ;;  %v6999_v0 = vld [vmem:[#allocation9 + $0x220] sm:$0xf]  ;;  %v6932_v39 = vor.u32 %v9869_v32, %v6929_v33  ;;  %v9960_v42 = vld [vmem:[#allocation9 + $0x164] sm:$0xf0] }
  0x58   :  { %v7004_v3 = vor.u32 %v9887_v60, %v7001_v61  ;;  %v7000_v10 = vor.u32 %v9890_v1, %v6999_v0  ;;  %v7467_v43 = vld [vmem:[#allocation9 + $0x2d0] sm:$0xf]  ;;  %v10008_v45 = vld [vmem:[#allocation9 + $0x2e4] sm:$0xf0]  ;;  %v9957_v46 = vld [vmem:[#allocation9 + $0x154] sm:$0xf] }
  0x59   :  { %755 = vmatpush.bf16.msrb.mxu0 %v6728_v7  ;;  %v6785_v7 = vld [vmem:[#allocation9 + $0x88] sm:$0xf0]  ;;  %v10005_v50 = vld [vmem:[#allocation9 + $0x2d4] sm:$0xf]  ;;  %v7251_v58 = vld [vmem:[#allocation9 + $0x120] sm:$0xf] }
  0x5a   :  { %781 = vmatpush.bf16.msrb.mxu2 %v6732_v8  ;;  %v9881_v8 = vld [vmem:[#allocation9 + $0x1f4] sm:$0xf]  ;;  %v6788_v14 = vor.u32 %v9833_v6, %v6785_v7  ;;  %v7277_v47 = vld [vmem:[#allocation9 + $0x168] sm:$0xf0]  ;;  %v9954_v59 = vld [vmem:[#allocation9 + $0x134] sm:$0xf0] }
  0x5b   :  { %794 = vmatpush.bf16.msrb.mxu3 %v6924_v11  ;;  %768 = vmatpush.bf16.msrb.mxu1 %v6920_v20  ;;  %v6784_v11 = vor.u32 %v9836_v5, %v6783_v4  ;;  %v9875_v20 = vld [vmem:[#allocation9 + $0x1c4] sm:$0xf]  ;;  %v7469_v51 = vld [vmem:[#allocation9 + $0x2e8] sm:$0xf0]  ;;  %v7252_v60 = vor.u32 %v9954_v59, %v7251_v58  ;;  %v7443_v61 = vld [vmem:[#allocation9 + $0x2a0] sm:$0xf] }
  0x5c   :  { %756 = vmatmul.bf16.vlgmr.msrb.gmra.mxu0 %v10875_v53  ;;  %v6956_v27 = vor.u32 %v9875_v20, %v6953_v21  ;;  %s89_s4 = sshra.s32 %s88_s3, 3  ;;  %s92_s19 = sand.u32 7, %s88_s3  ;;  %v7445_v4 = vld [vmem:[#allocation9 + $0x2b8] sm:$0xf0]  ;;  %v7229_v20 = vld [vmem:[#allocation9 + $0x108] sm:$0xf0] }
  0x5d   :  { %800 = vmatpush.bf16.msra.mxu0 %v6904_v12  ;;  %782 = vmatmul.bf16.vlgmr.msrb.gmra.mxu2 %v10875_v53  ;;  %v6975_v12 = vld [vmem:[#allocation9 + $0x1f0] sm:$0xf]  ;;  %s6716_s18 = smul.u32 48, %s89_s4  ;;  %v9993_v21 = vld [vmem:[#allocation9 + $0x274] sm:$0xf]  ;;  %s10976_s22 = sld [smem:[#allocation3 + $0x1]] }
  0x5e   :  { %826 = vmatpush.bf16.msra.mxu2 %v6908_v15  ;;  %795 = vmatmul.bf16.vlgmr.msrb.gmra.mxu3 %v10877_v56  ;;  %v6980_v15 = vor.u32 %v9881_v8, %v6977_v9  ;;  %v6976_v22 = vor.u32 %v9884_v13, %v6975_v12  ;;  %v9942_v30 = vld [vmem:[#allocation9 + $0xd4] sm:$0xf0]  ;;  %v7395_v31 = vld [vmem:[#allocation9 + $0x240] sm:$0xf]  ;;  %s11035_s0 = sld [smem:[#allocation3 + $0x2]] }
  0x5f   :  { %839 = vmatpush.bf16.msra.mxu3 %v7100_v16  ;;  %813 = vmatpush.bf16.msra.mxu1 %v7096_v24  ;;  %v6759_v16 = vld [vmem:[#allocation9 + $0x40] sm:$0xf]  ;;  %s10899_s20 = sadd.s32 %s6716_s18, %s92_s19  ;;  %v9990_v33 = vld [vmem:[#allocation9 + $0x254] sm:$0xf0]  ;;  %s11094_s8 = sld [smem:[#allocation3 + $0x3]] }
  0x60   :  { %769 = vmatmul.bf16.vlgmr.msrb.gmra.mxu1 %v10877_v56  ;;  %v6760_v23 = vor.u32 %v9830_v17, %v6759_v16  ;;  %v6951_v24 = vld [vmem:[#allocation9 + $0x1c0] sm:$0xf]  ;;  %v9996_v16 = vld [vmem:[#allocation9 + $0x284] sm:$0xf0]  ;;  %v9945_v17 = vld [vmem:[#allocation9 + $0xf4] sm:$0xf] }
  0x61   :  { %801 = vmatpush.bf16.msra.mxu0 %v6880_v25  ;;  %v9878_v25 = vld [vmem:[#allocation9 + $0x1d4] sm:$0xf0]  ;;  %s96_s21 = scalar_lea.vmem [#allocation4], %s10899_s20  ;;  %s11153_s13 = sld [smem:[#allocation3 + $0x4]] }
  0x62   :  { %827 = vmatpush.bf16.msra.mxu2 %v6884_v28  ;;  %v6735_v28 = vld [vmem:[#allocation9 + $0x10] sm:$0xf]  ;;  %v6952_v34 = vor.u32 %v9878_v25, %v6951_v24  ;;  %v97_v18 = vld [vmem:[%s96_s21] ss:$8 sm:$0xf]  ;;  %s11212_s3 = sld [smem:[#allocation3 + $0x5]] }
  0x63   :  { %840 = vmatpush.bf16.msra.mxu3 %v7076_v29  ;;  %814 = vmatpush.bf16.msra.mxu1 %v7072_v36  ;;  %v9824_v29 = vld [vmem:[#allocation9 + $0x24] sm:$0xf0]  ;;  %v6927_v36 = vld [vmem:[#allocation9 + $0x190] sm:$0xf]  ;;  %s927_s23 = sshra.s32 %s10976_s22, 3  ;;  %s930_s24 = sand.u32 7, %s10976_s22 }
  0x64   :  { %v6736_v35 = vor.u32 %v9824_v29, %v6735_v28  ;;  %v98_v24 = vld [vmem:[%s96_s21] ss:$8 sm:$0x30]  ;;  %v7203_v29 = vld [vmem:[#allocation9 + $0xc0] sm:$0xf]  ;;  %s7104_s25 = smul.u32 48, %s927_s23 }
  0x65   :  { %802 = vmatpush.bf16.msra.mxu0 %v6856_v37  ;;  %v9872_v37 = vld [vmem:[#allocation9 + $0x1a4] sm:$0xf0]  ;;  %v7204_v32 = vor.u32 %v9942_v30, %v7203_v29  ;;  %v9915_v29 = vld [vmem:[#allocation9 + $0x4] sm:$0xf]  ;;  %v7109_v30 = vld [vmem:[#allocation9 + $0x18] sm:$0xf0] }
  0x66   :  { %828 = vmatpush.bf16.msra.mxu2 %v6860_v40  ;;  %v6928_v40 = vor.u32 %v9872_v37, %v6927_v36  ;;  %v7396_v37 = vor.u32 %v9990_v33, %v7395_v31  ;;  %v9963_v33 = vld [vmem:[#allocation9 + $0x184] sm:$0xf]  ;;  %s10982_s26 = sadd.s32 %s7104_s25, %s930_s24  ;;  %s1748_s28 = sshra.s32 %s11035_s0, 3 }
  0x67   :  { %841 = vmatpush.bf16.msra.mxu3 %v7052_v41  ;;  %815 = vmatpush.bf16.msra.mxu1 %v7048_v48  ;;  %v7275_v41 = vld [vmem:[#allocation9 + $0x150] sm:$0xf]  ;;  %v7468_v48 = vor.u32 %v10008_v45, %v7467_v43  ;;  %s934_s27 = scalar_lea.vmem [#allocation4], %s10982_s26  ;;  %s1751_s29 = sand.u32 7, %s11035_s0 }
  0x68   :  { %v7276_v44 = vor.u32 %v9960_v42, %v7275_v41  ;;  %v10904_v41 = vor.u32 %v98_v24, %v97_v18  ;;  %v7179_v45 = vld [vmem:[#allocation9 + $0x90] sm:$0xf]  ;;  %v7133_v18 = vld [vmem:[#allocation9 + $0x48] sm:$0xf0]  ;;  %v7107_v24 = vld [vmem:[#allocation9] sm:$0xf] }
  0x69   :  { %803 = vmatpush.bf16.msra.mxu0 %v6832_v49  ;;  %v7280_v49 = vor.u32 %v9957_v46, %v7277_v47  ;;  %v9936_v46 = vld [vmem:[#allocation9 + $0xa4] sm:$0xf0]  ;;  %s7492_s30 = smul.u32 48, %s1748_s28  ;;  %s2569_s9 = sshra.s32 %s11094_s8, 3 }
  0x6a   :  { %829 = vmatpush.bf16.msra.mxu2 %v6836_v52  ;;  %v7472_v52 = vor.u32 %v10005_v50, %v7469_v51  ;;  %v7180_v47 = vor.u32 %v9936_v46, %v7179_v45  ;;  %v9933_v50 = vld [vmem:[#allocation9 + $0x94] sm:$0xf]  ;;  %v10006_v45 = vld [vmem:[#allocation9 + $0x2dc] sm:$0xf]  ;;  %s2572_s2 = sand.u32 7, %s11094_s8  ;;  %s7880_s10 = smul.u32 48, %s2569_s9 }
  0x6b   :  { %842 = vmatpush.bf16.msra.mxu3 %v7028_v54  ;;  %816 = vmatpush.bf16.msra.mxu1 %v7024_v62  ;;  %v10002_v62 = vld [vmem:[#allocation9 + $0x2b4] sm:$0xf0]  ;;  %s11041_s6 = sadd.s32 %s7492_s30, %s1751_s29  ;;  %s3390_s1 = sshra.s32 %s11153_s13, 3 }
  0x6c   :  { %v7444_v1 = vor.u32 %v10002_v62, %v7443_v61  ;;  %v7155_v61 = vld [vmem:[#allocation9 + $0x60] sm:$0xf]  ;;  %v9930_v62 = vld [vmem:[#allocation9 + $0x74] sm:$0xf0]  ;;  %s1755_s7 = scalar_lea.vmem [#allocation4], %s11041_s6  ;;  %s11100_s11 = sadd.s32 %s7880_s10, %s2572_s2 }
  0x6d   :  { %804 = vmatpush.bf16.msra.mxu0 %v6808_v63  ;;  %v9951_v63 = vld [vmem:[#allocation9 + $0x124] sm:$0xf]  ;;  %s2576_s12 = scalar_lea.vmem [#allocation4], %s11100_s11  ;;  %s3393_s14 = sand.u32 7, %s11153_s13 }
  0x6e   :  { %830 = vmatpush.bf16.msra.mxu2 %v6812_v2  ;;  %v7253_v2 = vld [vmem:[#allocation9 + $0x138] sm:$0xf0]  ;;  %s8268_s15 = smul.u32 48, %s3390_s1  ;;  %s4211_s4 = sshra.s32 %s11212_s3, 3 }
  0x6f   :  { %843 = vmatpush.bf16.msra.mxu3 %v7004_v3  ;;  %817 = vmatpush.bf16.msra.mxu1 %v7000_v10  ;;  %v9999_v3 = vld [vmem:[#allocation9 + $0x2a4] sm:$0xf]  ;;  %v7256_v7 = vor.u32 %v9951_v63, %v7253_v2  ;;  %v7227_v10 = vld [vmem:[#allocation9 + $0xf0] sm:$0xf]  ;;  %v7347_v63 = vld [vmem:[#allocation9 + $0x1e0] sm:$0xf] }
  0x70   :  { %v7448_v8 = vor.u32 %v9999_v3, %v7445_v4  ;;  %v9927_v2 = vld [vmem:[#allocation9 + $0x64] sm:$0xf]  ;;  %v7157_v3 = vld [vmem:[#allocation9 + $0x78] sm:$0xf0]  ;;  %s11159_s16 = sadd.s32 %s8268_s15, %s3393_s14  ;;  %s4214_s18 = sand.u32 7, %s11212_s3 }
  0x71   :  { %805 = vmatpush.bf16.msra.mxu0 %v6784_v11  ;;  %v9948_v11 = vld [vmem:[#allocation9 + $0x104] sm:$0xf0]  ;;  %s3397_s17 = scalar_lea.vmem [#allocation4], %s11159_s16  ;;  %s8656_s19 = smul.u32 48, %s4211_s4 }
  0x72   :  { %831 = vmatpush.bf16.msra.mxu2 %v6788_v14  ;;  %v7228_v14 = vor.u32 %v9948_v11, %v7227_v10  ;;  %v7131_v10 = vld [vmem:[#allocation9 + $0x30] sm:$0xf]  ;;  %v9924_v11 = vld [vmem:[#allocation9 + $0x44] sm:$0xf0]  ;;  %s11271_s22 = sld [smem:[#allocation3 + $0x6]]  ;;  %s10829_s8 = smov [#allocation12]  }
  0x73   :  { %844 = vmatpush.bf16.msra.mxu3 %v6980_v15  ;;  %818 = vmatpush.bf16.msra.mxu1 %v6976_v22  ;;  %v7419_v15 = vld [vmem:[#allocation9 + $0x270] sm:$0xf]  ;;  %v7421_v22 = vld [vmem:[#allocation9 + $0x288] sm:$0xf0]  ;;  %s11218_s20 = sadd.s32 %s8656_s19, %s4214_s18  ;;  %s9431_s0 = sld [smem:[#allocation3 + $0x7]] }
  0x74   :  { %v7420_v19 = vor.u32 %v9996_v16, %v7419_v15  ;;  %v9972_v15 = vld [vmem:[#allocation9 + $0x1c4] sm:$0xf0]  ;;  %v9921_v16 = vld [vmem:[#allocation9 + $0x34] sm:$0xf]  ;;  %s4218_s21 = scalar_lea.vmem [#allocation4], %s11218_s20  ;;  %s6678_s9 = sshll.u32 %s10829_s8, 4  ;;  %s6679_s9 = int_to_ptr.vmem [resolvable:$true] %s6678_s9 }
  0x75   :  { %806 = vmatpush.bf16.msra.mxu0 %v6760_v23  ;;  %s6680_s11 = sshll.u32 %s11355_s5, 4  ;;  %s6681_s11 = int_to_ptr.hbm [resolvable:$true] %s6680_s11 }
  0x76   :  { %832 = vmatpush.bf16.msra.mxu2 %v6764_v26  ;;  %v7232_v26 = vor.u32 %v9945_v17, %v7229_v20  ;;  %v7325_v20 = vld [vmem:[#allocation9 + $0x1c8] sm:$0xf0] }
  0x77   :  { %845 = vmatpush.bf16.msra.mxu3 %v6956_v27  ;;  %819 = vmatpush.bf16.msra.mxu1 %v6952_v34  ;;  %v7424_v27 = vor.u32 %v9993_v21, %v7421_v22  ;;  %v9939_v34 = vld [vmem:[#allocation9 + $0xc4] sm:$0xf]  ;;  %v7136_v22 = vor.u32 %v9921_v16, %v7133_v18  ;;  %v9946_v18 = vld [vmem:[#allocation9 + $0xfc] sm:$0xf] }
  0x78   :  { %s5032_s23 = sshra.s32 %s11271_s22, 3  ;;  %s5035_s24 = sand.u32 7, %s11271_s22 }
  0x79   :  { %807 = vmatpush.bf16.msra.mxu0 %v6736_v35  ;;  %v7205_v35 = vld [vmem:[#allocation9 + $0xd8] sm:$0xf0]  ;;  %s9044_s25 = smul.u32 48, %s5032_s23  ;;  %s5853_s28 = sshra.s32 %s9431_s0, 3 }
  0x7a   :  { %833 = vmatpush.bf16.msra.mxu2 %v6740_v38  ;;  %v7208_v38 = vor.u32 %v9939_v34, %v7205_v35  ;;  %v7301_v34 = vld [vmem:[#allocation9 + $0x198] sm:$0xf0]  ;;  %v7283_v35 = vld [vmem:[#allocation9 + $0x158] sm:$0xf]  ;;  %s9432_s29 = smul.u32 48, %s5853_s28  ;;  %s5856_s30 = sand.u32 7, %s9431_s0 }
  0x7b   :  { %846 = vmatpush.bf16.msra.mxu3 %v6932_v39  ;;  %820 = vmatpush.bf16.msra.mxu1 %v6928_v40  ;;  %v9987_v39 = vld [vmem:[#allocation9 + $0x244] sm:$0xf]  ;;  %v7397_v40 = vld [vmem:[#allocation9 + $0x258] sm:$0xf0]  ;;  %s11277_s26 = sadd.s32 %s9044_s25, %s5035_s24 }
  0x7c   :  { %808 = vmatmul.bf16.vlgmr.msra.gmra.mxu0 %v10875_v53  ;;  %v7400_v43 = vor.u32 %v9987_v39, %v7397_v40  ;;  %v10009_v39 = vld [vmem:[#allocation9 + $0x2ec] sm:$0xf0]  ;;  %s5859_s6 = sadd.s32 %s9432_s29, %s5856_s30 }
  0x7d   :  { %834 = vmatmul.bf16.vlgmr.msra.gmra.mxu2 %v10875_v53  ;;  %1521 = vmatpush.bf16.msrb.mxu0 %v7276_v44  ;;  %v10891_v53 = vld [vmem:[#allocation10] sm:$0x3f] }
  0x7e   :  { %847 = vmatmul.bf16.vlgmr.msra.gmra.mxu3 %v10877_v56  ;;  %821 = vmatmul.bf16.vlgmr.msra.gmra.mxu1 %v10877_v56  ;;  %v10894_v54 = vperm.slane %v10891_v53, 1  ;;  %v10897_v57 = vperm.slane %v10891_v53, 0  ;;  %v10912_v21 = vperm.slane %v10891_v53, 2 }
  0x7f   :  { %1534 = vmatpush.bf16.msrb.mxu1 %v7468_v48  ;;  %1547 = vmatpush.bf16.msrb.mxu2 %v7280_v49  ;;  %v7371_v48 = vld [vmem:[#allocation9 + $0x210] sm:$0xf]  ;;  %v9984_v49 = vld [vmem:[#allocation9 + $0x224] sm:$0xf0] }
  0x80   :  { %1560 = vmatpush.bf16.msrb.mxu3 %v7472_v52  ;;  %v7372_v51 = vor.u32 %v9984_v49, %v7371_v48  ;;  %v7181_v52 = vld [vmem:[#allocation9 + $0xa8] sm:$0xf0] }
  0x81   :  { %1522 = vmatpush.bf16.msrb.mxu0 %v7252_v60  ;;  %v7184_v59 = vor.u32 %v9933_v50, %v7181_v52  ;;  %v7477_v50 = vld [vmem:[#allocation9 + $0x2f0] sm:$0xf0] }
  0x82   :  { %v7480_v52 = vor.u32 %v10006_v45, %v7477_v50  ;;  %v9985_v50 = vld [vmem:[#allocation9 + $0x22c] sm:$0xf0] }
  0x83   :  { %1535 = vmatpush.bf16.msrb.mxu1 %v7444_v1  ;;  %1548 = vmatpush.bf16.msrb.mxu2 %v7256_v7  ;;  %v9978_v1 = vld [vmem:[#allocation9 + $0x1f4] sm:$0xf0]  ;;  %v7349_v7 = vld [vmem:[#allocation9 + $0x1f8] sm:$0xf0] }
  0x84   :  { %1561 = vmatpush.bf16.msrb.mxu3 %v7448_v8  ;;  %v7348_v4 = vor.u32 %v9978_v1, %v7347_v63  ;;  %v879_v1 = vrot.slane %v10904_v41, 2 }
  0x85   :  { %1523 = vmatpush.bf16.msrb.mxu0 %v7228_v14  ;;  %v7132_v14 = vor.u32 %v9924_v11, %v7131_v10 }
  0x87   :  { %1536 = vmatpush.bf16.msrb.mxu1 %v7420_v19  ;;  %1549 = vmatpush.bf16.msrb.mxu2 %v7232_v26  ;;  %v9969_v19 = vld [vmem:[#allocation9 + $0x1b4] sm:$0xf]  ;;  %v7299_v26 = vld [vmem:[#allocation9 + $0x180] sm:$0xf] }
  0x88   :  { %1562 = vmatpush.bf16.msrb.mxu3 %v7424_v27 }
  0x89   :  { %1524 = vmatpush.bf16.msrb.mxu0 %v7204_v32  ;;  %v7112_v32 = vor.u32 %v9915_v29, %v7109_v30  ;;  %v9943_v29 = vld [vmem:[#allocation9 + $0xdc] sm:$0xf0] }
  0x8b   :  { %1537 = vmatpush.bf16.msrb.mxu1 %v7396_v37  ;;  %1550 = vmatpush.bf16.msrb.mxu2 %v7208_v38  ;;  %v9961_v37 = vld [vmem:[#allocation9 + $0x16c] sm:$0xf0]  ;;  %v7475_v38 = vld [vmem:[#allocation9 + $0x2d8] sm:$0xf] }
  0x8c   :  { %1563 = vmatpush.bf16.msrb.mxu3 %v7400_v43  ;;  %v7284_v40 = vor.u32 %v9961_v37, %v7283_v35  ;;  %v9958_v43 = vld [vmem:[#allocation9 + $0x15c] sm:$0xf] }
  0x8d   :  { %1525 = vmatpush.bf16.msrb.mxu0 %v7180_v47 }
  0x8f   :  { %1538 = vmatpush.bf16.msrb.mxu1 %v7372_v51  ;;  %1551 = vmatpush.bf16.msrb.mxu2 %v7184_v59 }
  0x93   :  { %1539 = vmatpush.bf16.msrb.mxu1 %v7348_v4  ;;  %v7261_v4 = vld [vmem:[#allocation9 + $0x140] sm:$0xf0] }
  0xb9   :  { %v705_v56 = vpop.f32.mrf.mxu0 }
  0xba   :  { %v706_v9 = vadd.f32 %v705_v56, %v10897_v57  ;;  %v9981_v56 = vld [vmem:[#allocation9 + $0x214] sm:$0xf] }
  0xbd   :  { %v718_v55 = vpop.f32.mrf.mxu1 }
  0xbe   :  { %v719_v28 = vadd.f32 %v718_v55, %v706_v9  ;;  %v7373_v55 = vld [vmem:[#allocation9 + $0x228] sm:$0xf0] }
  0xbf   :  { %v7376_v60 = vor.u32 %v9981_v56, %v7373_v55  ;;  %v7259_v56 = vld [vmem:[#allocation9 + $0x128] sm:$0xf]  ;;  %v9955_v55 = vld [vmem:[#allocation9 + $0x13c] sm:$0xf0] }
  0xc0   :  { %v731_v0 = vpop.f32.mrf.mxu2  ;;  %v7260_v59 = vor.u32 %v9955_v55, %v7259_v56  ;;  %v7189_v56 = vld [vmem:[#allocation9 + $0xb0] sm:$0xf0]  ;;  %v9982_v55 = vld [vmem:[#allocation9 + $0x21c] sm:$0xf] }
  0xc1   :  { %v732_v5 = vadd.f32 %v731_v0, %v10894_v54  ;;  %v744_v6 = vpop.f32.mrf.mxu3  ;;  %v707_v13 = vpop.f32.mrf.mxu0  ;;  %1564 = vmatpush.bf16.msrb.mxu3 %v7376_v60  ;;  %v7156_v0 = vor.u32 %v9930_v62, %v7155_v61  ;;  %v7451_v60 = vld [vmem:[#allocation9 + $0x2a8] sm:$0xf]  ;;  %v10003_v61 = vld [vmem:[#allocation9 + $0x2bc] sm:$0xf0] }
  0xc2   :  { %v10909_v13 = vperm.slane %v10891_v53, 3 }
  0xc3   :  { %v745_v12 = vadd.f32 %v744_v6, %v732_v5  ;;  %v7160_v5 = vor.u32 %v9927_v2, %v7157_v3  ;;  %v9975_v6 = vld [vmem:[#allocation9 + $0x1e4] sm:$0xf]  ;;  %1526 = vmatpush.bf16.msrb.mxu0 %v7156_v0  ;;  %v7452_v2 = vor.u32 %v10003_v61, %v7451_v60  ;;  %v9952_v3 = vld [vmem:[#allocation9 + $0x12c] sm:$0xf] }
  0xc4   :  { %v7352_v9 = vor.u32 %v9975_v6, %v7349_v7  ;;  %v10000_v6 = vld [vmem:[#allocation9 + $0x2ac] sm:$0xf]  ;;  %v7453_v7 = vld [vmem:[#allocation9 + $0x2c0] sm:$0xf0] }
  0xc5   :  { %v854_v23 = vrot.slane %v745_v12, 7  ;;  %v720_v25 = vpop.f32.mrf.mxu1  ;;  %v7323_v12 = vld [vmem:[#allocation9 + $0x1b0] sm:$0xf]  ;;  %1552 = vmatpush.bf16.msrb.mxu2 %v7160_v5  ;;  %v7264_v5 = vor.u32 %v9952_v3, %v7261_v4  ;;  %v7456_v11 = vor.u32 %v10000_v6, %v7453_v7  ;;  %v9979_v3 = vld [vmem:[#allocation9 + $0x1fc] sm:$0xf0] }
  0xc6   :  { %1565 = vmatpush.bf16.msrb.mxu3 %v7352_v9  ;;  %v7324_v17 = vor.u32 %v9972_v15, %v7323_v12  ;;  %v9918_v25 = vld [vmem:[#allocation9 + $0x14] sm:$0xf0]  ;;  %v9949_v12 = vld [vmem:[#allocation9 + $0x10c] sm:$0xf0]  ;;  %v9928_v4 = vld [vmem:[#allocation9 + $0x6c] sm:$0xf] }
  0xc7   :  { %v856_v44 = vsel %vm855_vm0, %v719_v28, %v854_v23  ;;  %1527 = vmatpush.bf16.msrb.mxu0 %v7132_v14  ;;  %v7328_v23 = vor.u32 %v9969_v19, %v7325_v20  ;;  %v7108_v27 = vor.u32 %v9918_v25, %v7107_v24  ;;  %v9966_v28 = vld [vmem:[#allocation9 + $0x194] sm:$0xf0]  ;;  %v9997_v15 = vld [vmem:[#allocation9 + $0x28c] sm:$0xf0]  ;;  %v7237_v19 = vld [vmem:[#allocation9 + $0x110] sm:$0xf0] }
  0xc8   :  { %v733_v36 = vpop.f32.mrf.mxu2  ;;  %v858_v58 = vadd.f32 %v856_v44, %v10904_v41  ;;  %1540 = vmatpush.bf16.msrb.mxu1 %v7324_v17  ;;  %v7300_v31 = vor.u32 %v9966_v28, %v7299_v26  ;;  %v7285_v44 = vld [vmem:[#allocation9 + $0x170] sm:$0xf0]  ;;  %v7427_v14 = vld [vmem:[#allocation9 + $0x278] sm:$0xf]  ;;  %v9994_v20 = vld [vmem:[#allocation9 + $0x27c] sm:$0xf] }
  0xc9   :  { %v746_v42 = vpop.f32.mrf.mxu3  ;;  %1553 = vmatpush.bf16.msrb.mxu2 %v7136_v22  ;;  %v7304_v36 = vor.u32 %v9963_v33, %v7301_v34  ;;  %v7288_v49 = vor.u32 %v9958_v43, %v7285_v44  ;;  %v7428_v17 = vor.u32 %v9997_v15, %v7427_v14  ;;  %v7429_v24 = vld [vmem:[#allocation9 + $0x290] sm:$0xf0]  ;;  %v7211_v28 = vld [vmem:[#allocation9 + $0xc8] sm:$0xf]  ;;  %v9991_v33 = vld [vmem:[#allocation9 + $0x25c] sm:$0xf0] }
  0xca   :  { %v7101_v8 = vmul.f32 -1.442695, %v858_v58  ;;  %1566 = vmatpush.bf16.msrb.mxu3 %v7328_v23  ;;  %v7476_v42 = vor.u32 %v10009_v39, %v7475_v38  ;;  %v7240_v23 = vor.u32 %v9946_v18, %v7237_v19  ;;  %v9940_v34 = vld [vmem:[#allocation9 + $0xcc] sm:$0xf]  ;;  %v7213_v38 = vld [vmem:[#allocation9 + $0xe0] sm:$0xf0] }
  0xcb   :  { %1528 = vmatpush.bf16.msrb.mxu0 %v7108_v27  ;;  %v7432_v27 = vor.u32 %v9994_v20, %v7429_v24  ;;  %v9988_v39 = vld [vmem:[#allocation9 + $0x24c] sm:$0xf]  ;;  %v7216_v43 = vor.u32 %v9940_v34, %v7213_v38  ;;  %v7139_v14 = vld [vmem:[#allocation9 + $0x38] sm:$0xf]  ;;  %v9925_v15 = vld [vmem:[#allocation9 + $0x4c] sm:$0xf0] }
  0xcc   :  { %10597 = vpow2.f32 %v7101_v8  ;;  %1541 = vmatpush.bf16.msrb.mxu1 %v7300_v31  ;;  %v7235_v8 = vld [vmem:[#allocation9 + $0xf8] sm:$0xf]  ;;  %v7212_v31 = vor.u32 %v9943_v29, %v7211_v28  ;;  %v7140_v18 = vor.u32 %v9925_v15, %v7139_v14  ;;  %v9973_v19 = vld [vmem:[#allocation9 + $0x1cc] sm:$0xf0]  ;;  %v9922_v20 = vld [vmem:[#allocation9 + $0x3c] sm:$0xf] }
  0xcd   :  { %1554 = vmatpush.bf16.msrb.mxu2 %v7112_v32  ;;  %v7236_v16 = vor.u32 %v9949_v12, %v7235_v8  ;;  %v7403_v32 = vld [vmem:[#allocation9 + $0x248] sm:$0xf]  ;;  %v9976_v8 = vld [vmem:[#allocation9 + $0x1ec] sm:$0xf]  ;;  %v9970_v24 = vld [vmem:[#allocation9 + $0x1bc] sm:$0xf] }
  0xce   :  { %1567 = vmatpush.bf16.msrb.mxu3 %v7304_v36  ;;  %v7404_v37 = vor.u32 %v9991_v33, %v7403_v32  ;;  %v10929_v29 = vperm.slane %v10891_v53, 4  ;;  %v9919_v32 = vld [vmem:[#allocation9 + $0x1c] sm:$0xf0]  ;;  %v7307_v34 = vld [vmem:[#allocation9 + $0x188] sm:$0xf] }
  0xcf   :  { %1573 = vmatpush.bf16.msra.mxu0 %v7284_v40  ;;  %v7405_v40 = vld [vmem:[#allocation9 + $0x260] sm:$0xf0] }
  0xd0   :  { %1586 = vmatpush.bf16.msra.mxu1 %v7476_v42  ;;  %v7408_v44 = vor.u32 %v9988_v39, %v7405_v40  ;;  %v7117_v39 = vld [vmem:[#allocation9 + $0x20] sm:$0xf0]  ;;  %v9964_v40 = vld [vmem:[#allocation9 + $0x18c] sm:$0xf] }
  0xd1   :  { %1599 = vmatpush.bf16.msra.mxu2 %v7288_v49  ;;  %v7379_v49 = vld [vmem:[#allocation9 + $0x218] sm:$0xf] }
  0xd2   :  { %v10598_v46 = vpop.eup %10597  ;;  %1612 = vmatpush.bf16.msra.mxu3 %v7480_v52  ;;  %v7380_v52 = vor.u32 %v9985_v50, %v7379_v49 }
  0xd3   :  { %v10915_v62 = vadd.f32 1.0, %v10598_v46  ;;  %1574 = vmatpush.bf16.msra.mxu0 %v7260_v59  ;;  %v7187_v46 = vld [vmem:[#allocation9 + $0x98] sm:$0xf] }
  0xd4   :  { %1587 = vmatpush.bf16.msra.mxu1 %v7452_v2 }
  0xd5   :  { %1600 = vmatpush.bf16.msra.mxu2 %v7264_v5  ;;  %10599 = vrcp.f32 %v10915_v62  ;;  %v7165_v5 = vld [vmem:[#allocation9 + $0x80] sm:$0xf0]  ;;  %vm868_vm1 = vweird.f32 %v10915_v62  ;;  %v872_v49 = vand.u32 2147483647, %v10915_v62  ;;  %v874_v50 = vand.u32 2147483648, %v10915_v62 }
  0xd6   :  { %1613 = vmatpush.bf16.msra.mxu3 %v7456_v11  ;;  %v7168_v7 = vor.u32 %v9928_v4, %v7165_v5  ;;  %v912_v5 = vrot.slane %v10904_v41, 4 }
  0xd7   :  { %1575 = vmatpush.bf16.msra.mxu0 %v7236_v16  ;;  %v7331_v16 = vld [vmem:[#allocation9 + $0x1b8] sm:$0xf]  ;;  %vm873_vm4 = vcmp.eq.f32.partialorder %v872_v49, 8.507059e+37  ;;  %v7269_v49 = vld [vmem:[#allocation9 + $0x148] sm:$0xf0] }
  0xd8   :  { %1588 = vmatpush.bf16.msra.mxu1 %v7428_v17 }
  0xd9   :  { %v757_v47 = vpop.f32.mrf.mxu0  ;;  %1601 = vmatpush.bf16.msra.mxu2 %v7240_v23  ;;  %v7141_v23 = vld [vmem:[#allocation9 + $0x50] sm:$0xf0] }
  0xda   :  { %v758_v51 = vadd.f32 %v757_v47, %v10912_v21  ;;  %1614 = vmatpush.bf16.msra.mxu3 %v7432_v27  ;;  %v9937_v47 = vld [vmem:[#allocation9 + $0xac] sm:$0xf0]  ;;  %v7144_v27 = vor.u32 %v9922_v20, %v7141_v23 }
  0xdb   :  { %1576 = vmatpush.bf16.msra.mxu0 %v7212_v31  ;;  %v10921_v61 = vpop.eup %10599  ;;  %v7115_v31 = vld [vmem:[#allocation9 + $0x8] sm:$0xf] }
  0xdc   :  { %1589 = vmatpush.bf16.msra.mxu1 %v7404_v37  ;;  %v7116_v33 = vor.u32 %v9919_v32, %v7115_v31  ;;  %vm869_vm2 = vweird.f32 %v10921_v61  ;;  %v7293_v31 = vld [vmem:[#allocation9 + $0x178] sm:$0xf0]  ;;  %v10007_v32 = vld [vmem:[#allocation9 + $0x2e4] sm:$0xf] }
  0xdd   :  { %v770_v48 = vpop.f32.mrf.mxu1  ;;  %1602 = vmatpush.bf16.msra.mxu2 %v7216_v43  ;;  %vm870_vm3 = vmor %vm868_vm1, %vm869_vm2 }
  0xde   :  { %v771_v10 = vadd.f32 %v770_v48, %v758_v51  ;;  %v7188_v48 = vor.u32 %v9937_v47, %v7187_v46  ;;  %v9934_v51 = vld [vmem:[#allocation9 + $0x9c] sm:$0xf]  ;;  %1615 = vmatpush.bf16.msra.mxu3 %v7408_v44  ;;  %v10933_v47 = vperm.slane %v10891_v53, 5 }
  0xdf   :  { %v7192_v59 = vor.u32 %v9934_v51, %v7189_v56 }
  0xe0   :  { %v783_v58 = vpop.f32.mrf.mxu2  ;;  %1577 = vmatpush.bf16.msra.mxu0 %v7188_v48  ;;  %1590 = vmatpush.bf16.msra.mxu1 %v7380_v52 }
  0xe1   :  { %v784_v63 = vadd.f32 %v783_v58, %v10909_v13  ;;  %v796_v0 = vpop.f32.mrf.mxu3  ;;  %v759_v25 = vpop.f32.mrf.mxu0  ;;  %v7381_v58 = vld [vmem:[#allocation9 + $0x230] sm:$0xf0]  ;;  %1603 = vmatpush.bf16.msra.mxu2 %v7192_v59 }
  0xe2   :  { %v7384_v60 = vor.u32 %v9982_v55, %v7381_v58 }
  0xe3   :  { %v797_v9 = vadd.f32 %v796_v0, %v784_v63  ;;  %v7163_v63 = vld [vmem:[#allocation9 + $0x68] sm:$0xf]  ;;  %v9931_v0 = vld [vmem:[#allocation9 + $0x7c] sm:$0xf0] }
  0xe4   :  { %v7164_v2 = vor.u32 %v9931_v0, %v7163_v63  ;;  %1616 = vmatpush.bf16.msra.mxu3 %v7384_v60  ;;  %v875_v60 = vor.u32 1.1754944e-38, %v874_v50  ;;  %v10001_v50 = vld [vmem:[#allocation9 + $0x2b4] sm:$0xf] }
  0xe5   :  { %v883_v22 = vrot.slane %v797_v9, 7  ;;  %v772_v26 = vpop.f32.mrf.mxu1  ;;  %v7357_v9 = vld [vmem:[#allocation9 + $0x200] sm:$0xf0]  ;;  %1604 = vmatpush.bf16.msra.mxu2 %v7168_v7 }
  0xe6   :  { %v7360_v11 = vor.u32 %v9976_v8, %v7357_v9  ;;  %1578 = vmatpush.bf16.msra.mxu0 %v7164_v2  ;;  %v7333_v26 = vld [vmem:[#allocation9 + $0x1d0] sm:$0xf0] }
  0xe7   :  { %v884_v30 = vsel %vm855_vm0, %v771_v10, %v883_v22  ;;  %v864_v10 = vmul.f32 %v10921_v61, %v10915_v62  ;;  %v7332_v22 = vor.u32 %v9973_v19, %v7331_v16  ;;  %v7336_v28 = vor.u32 %v9970_v24, %v7333_v26  ;;  %v9962_v26 = vld [vmem:[#allocation9 + $0x174] sm:$0xf0] }
  0xe8   :  { %v886_v35 = vadd.f32 %v884_v30, %v879_v1  ;;  %v785_v36 = vpop.f32.mrf.mxu2  ;;  %v7355_v1 = vld [vmem:[#allocation9 + $0x1e8] sm:$0xf]  ;;  %1617 = vmatpush.bf16.msra.mxu3 %v7360_v11  ;;  %v920_v16 = vlaneseq }
  0xe9   :  { %v798_v42 = vpop.f32.mrf.mxu3  ;;  %v7356_v6 = vor.u32 %v9979_v3, %v7355_v1  ;;  %v865_v25 = vsub.f32 1.0, %v864_v10  ;;  %1605 = vmatpush.bf16.msra.mxu2 %v7144_v27  ;;  %v9916_v36 = vld [vmem:[#allocation9 + $0xc] sm:$0xf]  ;;  %v7483_v27 = vld [vmem:[#allocation9 + $0x2e0] sm:$0xf] }
  0xea   :  { %v7102_v45 = vmul.f32 -1.442695, %v886_v35  ;;  %1579 = vmatpush.bf16.msra.mxu0 %v7140_v18  ;;  %v9967_v35 = vld [vmem:[#allocation9 + $0x19c] sm:$0xf0]  ;;  %v7309_v42 = vld [vmem:[#allocation9 + $0x1a0] sm:$0xf0]  ;;  %v7120_v44 = vor.u32 %v9916_v36, %v7117_v39 }
  0xeb   :  { %1591 = vmatpush.bf16.msra.mxu1 %v7356_v6  ;;  %v866_v37 = vmul.f32 %v10921_v61, %v865_v25  ;;  %v7308_v38 = vor.u32 %v9967_v35, %v7307_v34  ;;  %vm10949_vm9 = vcmp.lt.s32.totalorder %v920_v16, 256  ;;  %v7291_v25 = vld [vmem:[#allocation9 + $0x160] sm:$0xf] }
  0xec   :  { %10601 = vpow2.f32 %v7102_v45  ;;  %1618 = vmatpush.bf16.msra.mxu3 %v7336_v28  ;;  %v7312_v45 = vor.u32 %v9964_v40, %v7309_v42  ;;  %v10010_v28 = vld [vmem:[#allocation9 + $0x2f4] sm:$0xf0]  ;;  %v7267_v40 = vld [vmem:[#allocation9 + $0x130] sm:$0xf]  ;;  %v9956_v42 = vld [vmem:[#allocation9 + $0x144] sm:$0xf0] }
  0xed   :  { %1606 = vmatpush.bf16.msra.mxu2 %v7120_v44  ;;  %v867_v52 = vadd.f32 %v10921_v61, %v866_v37  ;;  %v7484_v39 = vor.u32 %v10010_v28, %v7483_v27  ;;  %v7195_v16 = vld [vmem:[#allocation9 + $0xa0] sm:$0xf]  ;;  %v9983_v27 = vld [vmem:[#allocation9 + $0x224] sm:$0xf]  ;;  %v7389_v28 = vld [vmem:[#allocation9 + $0x238] sm:$0xf0] }
  0xee   :  { %1580 = vmatpush.bf16.msra.mxu0 %v7116_v33  ;;  %v7485_v33 = vld [vmem:[#allocation9 + $0x2f8] sm:$0xf0] }
  0xef   :  { %1592 = vmatpush.bf16.msra.mxu1 %v7332_v22  ;;  %v871_v62 = vsel %vm870_vm3, %v10921_v61, %v867_v52  ;;  %v10677_v22 = vld [vmem:[#allocation7] sm:$0x3]  ;;  %v7488_v44 = vor.u32 %v10007_v32, %v7485_v33  ;;  %v7268_v52 = vor.u32 %v9956_v42, %v7267_v40  ;;  %v7171_v32 = vld [vmem:[#allocation9 + $0x70] sm:$0xf]  ;;  %v9932_v33 = vld [vmem:[#allocation9 + $0x84] sm:$0xf0] }
  0xf0   :  { %1619 = vmatpush.bf16.msra.mxu3 %v7312_v45  ;;  %v876_v4 = vsel %vm873_vm4, %v875_v60, %v871_v62  ;;  %v7459_v45 = vld [vmem:[#allocation9 + $0x2b0] sm:$0xf]  ;;  %v7435_v60 = vld [vmem:[#allocation9 + $0x280] sm:$0xf]  ;;  %v9995_v62 = vld [vmem:[#allocation9 + $0x284] sm:$0xf] }
  0xf1   :  { %v9929_v40 = vld [vmem:[#allocation9 + $0x74] sm:$0xf]  ;;  %v7173_v42 = vld [vmem:[#allocation9 + $0x88] sm:$0xf0] }
  0xf2   :  { %v10602_v12 = vpop.eup %10601 }
  0xf3   :  { %v10925_v17 = vadd.f32 1.0, %v10602_v12  ;;  %1593 = vmatpush.bf16.msra.mxu1 %v7308_v38  ;;  %v7292_v38 = vor.u32 %v9962_v26, %v7291_v25  ;;  %v9935_v25 = vld [vmem:[#allocation9 + $0xa4] sm:$0xf]  ;;  %v7197_v26 = vld [vmem:[#allocation9 + $0xb8] sm:$0xf0] }
  0xf5   :  { %10603 = vrcp.f32 %v10925_v17  ;;  %vm896_vm5 = vweird.f32 %v10925_v17  ;;  %v902_v8 = vand.u32 2147483648, %v10925_v17  ;;  %v900_v12 = vand.u32 2147483647, %v10925_v17 }
  0xf7   :  { %v903_v15 = vor.u32 1.1754944e-38, %v902_v8  ;;  %vm901_vm8 = vcmp.eq.f32.partialorder %v900_v12, 8.507059e+37  ;;  %v7221_v12 = vld [vmem:[#allocation9 + $0xe8] sm:$0xf0] }
  0xf9   :  { %v809_v30 = vpop.f32.mrf.mxu0 }
  0xfa   :  { %v810_v51 = vadd.f32 %v809_v30, %v10929_v29  ;;  %v9959_v30 = vld [vmem:[#allocation9 + $0x164] sm:$0xf] }
  0xfb   :  { %v822_v43 = vpop.f32.mrf.mxu1  ;;  %v10604_v46 = vpop.eup %10603 }
  0xfc   :  { %v892_v48 = vmul.f32 %v10604_v46, %v10925_v17  ;;  %v823_v0 = vadd.f32 %v822_v43, %v810_v51  ;;  %vm897_vm6 = vweird.f32 %v10604_v46  ;;  %v7296_v43 = vor.u32 %v9959_v30, %v7293_v31  ;;  %v7461_v51 = vld [vmem:[#allocation9 + $0x2c8] sm:$0xf0] }
  0xfd   :  { %vm898_vm7 = vmor %vm896_vm5, %vm897_vm6 }
  0xfe   :  { %v893_v53 = vsub.f32 1.0, %v892_v48  ;;  %v9953_v48 = vld [vmem:[#allocation9 + $0x134] sm:$0xf] }
 0x100   :  { %v835_v56 = vpop.f32.mrf.mxu2  ;;  %v894_v63 = vmul.f32 %v10604_v46, %v893_v53 }
 0x101   :  { %v848_v55 = vpop.f32.mrf.mxu3  ;;  %v836_v58 = vadd.f32 %v835_v56, %v10933_v47  ;;  %v811_v59 = vpop.f32.mrf.mxu0  ;;  %v7243_v56 = vld [vmem:[#allocation9 + $0x100] sm:$0xf] }
 0x102   :  { %v895_v6 = vadd.f32 %v10604_v46, %v894_v63  ;;  %v7464_v59 = vor.u32 %v10001_v50, %v7461_v51  ;;  %v9998_v63 = vld [vmem:[#allocation9 + $0x294] sm:$0xf0]  ;;  %v7176_v50 = vor.u32 %v9929_v40, %v7173_v42  ;;  %v7615_v40 = vld [vmem:[#allocation9 + $0xf0] sm:$0xf]  ;;  %v10044_v42 = vld [vmem:[#allocation9 + $0x104] sm:$0xf0] }
 0x103   :  { %v849_v1 = vadd.f32 %v848_v55, %v836_v58  ;;  %v824_v2 = vpop.f32.mrf.mxu1  ;;  %v9950_v55 = vld [vmem:[#allocation9 + $0x114] sm:$0xf0]  ;;  %v7272_v58 = vor.u32 %v9953_v48, %v7269_v49  ;;  %v7147_v48 = vld [vmem:[#allocation9 + $0x40] sm:$0xf] }
 0x104   :  { %v899_v14 = vsel %vm898_vm7, %v10604_v46, %v895_v6  ;;  %v10004_v46 = vld [vmem:[#allocation9 + $0x2c4] sm:$0xf0]  ;;  %v7437_v2 = vld [vmem:[#allocation9 + $0x298] sm:$0xf0]  ;;  %v9926_v49 = vld [vmem:[#allocation9 + $0x54] sm:$0xf0] }
 0x105   :  { %v908_v3 = vrot.slane %v849_v1, 7  ;;  %v904_v41 = vsel %vm901_vm8, %v903_v15, %v899_v14  ;;  %v7460_v53 = vor.u32 %v10004_v46, %v7459_v45  ;;  %v7245_v1 = vld [vmem:[#allocation9 + $0x118] sm:$0xf0]  ;;  %v9944_v6 = vld [vmem:[#allocation9 + $0xe4] sm:$0xf0]  ;;  %v7440_v8 = vor.u32 %v9995_v62, %v7437_v2 }
 0x106   :  { %v916_v18 = vsub.f32 1.0, %v904_v41  ;;  %v918_v23 = vmul.f32 %v10677_v22, %v904_v41  ;;  %v7413_v14 = vld [vmem:[#allocation9 + $0x268] sm:$0xf0]  ;;  %v7387_v22 = vld [vmem:[#allocation9 + $0x220] sm:$0xf]  ;;  %v7172_v45 = vor.u32 %v9932_v33, %v7171_v32 }
 0x107   :  { %v909_v7 = vsel %vm855_vm0, %v823_v0, %v908_v3  ;;  %v9947_v0 = vld [vmem:[#allocation9 + $0x104] sm:$0xf]  ;;  %v7244_v3 = vor.u32 %v9950_v55, %v7243_v56  ;;  %v7149_v55 = vld [vmem:[#allocation9 + $0x58] sm:$0xf0] }
 0x108   :  { %v911_v9 = vmul.f32 %v909_v7, %v876_v4  ;;  %v837_v10 = vpop.f32.mrf.mxu2  ;;  %v7436_v4 = vor.u32 %v9998_v63, %v7435_v60  ;;  %v7248_v7 = vor.u32 %v9947_v0, %v7245_v1  ;;  %v9923_v56 = vld [vmem:[#allocation9 + $0x44] sm:$0xf]  ;;  %v7148_v60 = vor.u32 %v9926_v49, %v7147_v48  ;;  %v7123_v0 = vld [vmem:[#allocation9 + $0x10] sm:$0xf]  ;;  %v9920_v1 = vld [vmem:[#allocation9 + $0x24] sm:$0xf0] }
 0x109   :  { %v850_v11 = vpop.f32.mrf.mxu3  ;;  %v9992_v10 = vld [vmem:[#allocation9 + $0x264] sm:$0xf0]  ;;  %v7152_v62 = vor.u32 %v9923_v56, %v7149_v55  ;;  %v7641_v32 = vld [vmem:[#allocation9 + $0x138] sm:$0xf0]  ;;  %v7617_v48 = vld [vmem:[#allocation9 + $0x108] sm:$0xf0] }
 0x10a   :  { %v914_v61 = vadd.f32 %v912_v5, %v911_v9  ;;  %v7219_v5 = vld [vmem:[#allocation9 + $0xd0] sm:$0xf]  ;;  %v9941_v11 = vld [vmem:[#allocation9 + $0xd4] sm:$0xf]  ;;  %v7591_v56 = vld [vmem:[#allocation9 + $0xc0] sm:$0xf] }
 0x10b   :  { %v7411_v9 = vld [vmem:[#allocation9 + $0x250] sm:$0xf]  ;;  %v7220_v15 = vor.u32 %v9944_v6, %v7219_v5  ;;  %v9917_v5 = vld [vmem:[#allocation9 + $0x14] sm:$0xf]  ;;  %v7125_v6 = vld [vmem:[#allocation9 + $0x28] sm:$0xf0] }
 0x10c   :  { %10605 = vtanh.f32 %v914_v61  ;;  %v9989_v61 = vld [vmem:[#allocation9 + $0x254] sm:$0xf]  ;;  %v7412_v41 = vor.u32 %v9992_v10, %v7411_v9  ;;  %v7124_v9 = vor.u32 %v9920_v1, %v7123_v0  ;;  %v10038_v55 = vld [vmem:[#allocation9 + $0xd4] sm:$0xf0]  ;;  %v7593_v0 = vld [vmem:[#allocation9 + $0xd8] sm:$0xf0] }
 0x112   :  { %v10606_v19 = vpop.eup %10605 }
 0x113   :  { %v917_v20 = vmul.f32 %v10606_v19, %v916_v18  ;;  %v9938_v18 = vld [vmem:[#allocation9 + $0xb4] sm:$0xf0]  ;;  %v7224_v19 = vor.u32 %v9941_v11, %v7221_v12  ;;  %v7128_v11 = vor.u32 %v9917_v5, %v7125_v6  ;;  %v7567_v5 = vld [vmem:[#allocation9 + $0x90] sm:$0xf]  ;;  %v10032_v6 = vld [vmem:[#allocation9 + $0xa4] sm:$0xf0] }
 0x114   :  { %v7196_v30 = vor.u32 %v9938_v18, %v7195_v16  ;;  %v10104_v16 = vld [vmem:[#allocation9 + $0x2e4] sm:$0xf0]  ;;  %v10053_v18 = vld [vmem:[#allocation9 + $0x154] sm:$0xf] }
 0x115   :  { %v10953_v17 = vadd.f32 %v918_v23, %v917_v20  ;;  %v7416_v20 = vor.u32 %v9989_v61, %v7413_v14  ;;  %v9986_v23 = vld [vmem:[#allocation9 + $0x234] sm:$0xf0]  ;;  %v7663_v61 = vld [vmem:[#allocation9 + $0x150] sm:$0xf]  ;;  %v10056_v14 = vld [vmem:[#allocation9 + $0x164] sm:$0xf0] }
 0x116   :  { %v7388_v31 = vor.u32 %v9986_v23, %v7387_v22  ;;  %v10101_v23 = vld [vmem:[#allocation9 + $0x2d4] sm:$0xf] }
 0x117   :  { %924 = vst.msk [vmem:[#allocation12] ss:$8 sm:$0x3] %vm10949_vm9, %v10953_v17  ;;  %v939_v34 = vperm.slane %v10953_v17, 0  ;;  %v940_v35 = vperm.slane %v10953_v17, 1 }
 0x119   :  { %v10960_v36 = vpack.c.bf16 %v939_v34, %v939_v34  ;;  %v10962_v37 = vpack.c.bf16 %v940_v35, %v940_v35  ;;  %v7200_v34 = vor.u32 %v9935_v25, %v7197_v26  ;;  %v7392_v35 = vor.u32 %v9983_v27, %v7389_v28  ;;  %v7857_v25 = vld [vmem:[#allocation9 + $0x2e8] sm:$0xf0]  ;;  %v10050_v27 = vld [vmem:[#allocation9 + $0x134] sm:$0xf0] }
 0x11a   :  { %v7860_v26 = vor.u32 %v10101_v23, %v7857_v25  ;;  %v10074_v25 = vld [vmem:[#allocation9 + $0x1f4] sm:$0xf0] }
 0x11b   :  { %1529 = vmatmul.bf16.vlgmr.msrb.gmra.mxu0 %v10960_v36  ;;  %1542 = vmatmul.bf16.vlgmr.msrb.gmra.mxu1 %v10962_v37 }
 0x11c   :  { %1555 = vmatmul.bf16.vlgmr.msrb.gmra.mxu2 %v10960_v36  ;;  %1568 = vmatmul.bf16.vlgmr.msrb.gmra.mxu3 %v10962_v37 }
 0x11d   :  { %1625 = vmatpush.bf16.msrb.mxu0 %v7292_v38  ;;  %1638 = vmatpush.bf16.msrb.mxu1 %v7484_v39  ;;  %v7363_v38 = vld [vmem:[#allocation9 + $0x1f0] sm:$0xf]  ;;  %v9980_v39 = vld [vmem:[#allocation9 + $0x204] sm:$0xf0] }
 0x11e   :  { %1651 = vmatpush.bf16.msrb.mxu2 %v7296_v43  ;;  %1664 = vmatpush.bf16.msrb.mxu3 %v7488_v44  ;;  %v9977_v43 = vld [vmem:[#allocation9 + $0x1f4] sm:$0xf]  ;;  %v7365_v44 = vld [vmem:[#allocation9 + $0x208] sm:$0xf0]  ;;  %v7364_v46 = vor.u32 %v9980_v39, %v7363_v38  ;;  %v7833_v38 = vld [vmem:[#allocation9 + $0x2b8] sm:$0xf0] }
 0x11f   :  { %v7368_v51 = vor.u32 %v9977_v43, %v7365_v44  ;;  %v7807_v43 = vld [vmem:[#allocation9 + $0x270] sm:$0xf]  ;;  %v7616_v44 = vor.u32 %v10044_v42, %v7615_v40  ;;  %v7521_v40 = vld [vmem:[#allocation9 + $0x48] sm:$0xf0] }
 0x121   :  { %1626 = vmatpush.bf16.msrb.mxu0 %v7268_v52  ;;  %1639 = vmatpush.bf16.msrb.mxu1 %v7460_v53  ;;  %v7339_v52 = vld [vmem:[#allocation9 + $0x1c0] sm:$0xf]  ;;  %v9974_v53 = vld [vmem:[#allocation9 + $0x1d4] sm:$0xf0] }
 0x122   :  { %1652 = vmatpush.bf16.msrb.mxu2 %v7272_v58  ;;  %1665 = vmatpush.bf16.msrb.mxu3 %v7464_v59  ;;  %v9971_v58 = vld [vmem:[#allocation9 + $0x1c4] sm:$0xf]  ;;  %v7341_v59 = vld [vmem:[#allocation9 + $0x1d8] sm:$0xf0]  ;;  %v7340_v63 = vor.u32 %v9974_v53, %v7339_v52  ;;  %v7809_v52 = vld [vmem:[#allocation9 + $0x288] sm:$0xf0] }
 0x123   :  { %v7344_v2 = vor.u32 %v9971_v58, %v7341_v59  ;;  %v7783_v58 = vld [vmem:[#allocation9 + $0x240] sm:$0xf]  ;;  %v7592_v59 = vor.u32 %v10038_v55, %v7591_v56 }
 0x125   :  { %1627 = vmatpush.bf16.msrb.mxu0 %v7244_v3  ;;  %1640 = vmatpush.bf16.msrb.mxu1 %v7436_v4  ;;  %v7315_v3 = vld [vmem:[#allocation9 + $0x190] sm:$0xf]  ;;  %v9968_v4 = vld [vmem:[#allocation9 + $0x1a4] sm:$0xf0] }
 0x126   :  { %1653 = vmatpush.bf16.msrb.mxu2 %v7248_v7  ;;  %1666 = vmatpush.bf16.msrb.mxu3 %v7440_v8  ;;  %v9965_v7 = vld [vmem:[#allocation9 + $0x194] sm:$0xf]  ;;  %v7317_v8 = vld [vmem:[#allocation9 + $0x1a8] sm:$0xf0]  ;;  %v7316_v10 = vor.u32 %v9968_v4, %v7315_v3  ;;  %v7785_v3 = vld [vmem:[#allocation9 + $0x258] sm:$0xf0] }
 0x127   :  { %v7320_v12 = vor.u32 %v9965_v7, %v7317_v8  ;;  %v7568_v7 = vor.u32 %v10032_v6, %v7567_v5  ;;  %v7759_v8 = vld [vmem:[#allocation9 + $0x210] sm:$0xf]  ;;  %v10059_v5 = vld [vmem:[#allocation9 + $0x184] sm:$0xf]  ;;  %v7689_v6 = vld [vmem:[#allocation9 + $0x198] sm:$0xf0] }
 0x129   :  { %1628 = vmatpush.bf16.msrb.mxu0 %v7220_v15  ;;  %1641 = vmatpush.bf16.msrb.mxu1 %v7412_v41  ;;  %v7855_v15 = vld [vmem:[#allocation9 + $0x2d0] sm:$0xf]  ;;  %v7664_v41 = vor.u32 %v10056_v14, %v7663_v61  ;;  %v10077_v61 = vld [vmem:[#allocation9 + $0x214] sm:$0xf]  ;;  %v7761_v14 = vld [vmem:[#allocation9 + $0x228] sm:$0xf0] }
 0x12a   :  { %1654 = vmatpush.bf16.msrb.mxu2 %v7224_v19  ;;  %1667 = vmatpush.bf16.msrb.mxu3 %v7416_v20  ;;  %v7665_v19 = vld [vmem:[#allocation9 + $0x168] sm:$0xf0]  ;;  %v7856_v20 = vor.u32 %v10104_v16, %v7855_v15 }
 0x12b   :  { %1581 = vmatmul.bf16.vlgmr.msra.gmra.mxu0 %v10960_v36  ;;  %1594 = vmatmul.bf16.vlgmr.msra.gmra.mxu1 %v10962_v37  ;;  %v7668_v22 = vor.u32 %v10053_v18, %v7665_v19  ;;  %v7543_v19 = vld [vmem:[#allocation9 + $0x60] sm:$0xf] }
 0x12c   :  { %1607 = vmatmul.bf16.vlgmr.msra.gmra.mxu2 %v10960_v36  ;;  %1620 = vmatmul.bf16.vlgmr.msra.gmra.mxu3 %v10962_v37 }
 0x12d   :  { %1629 = vmatpush.bf16.msrb.mxu0 %v7196_v30  ;;  %1642 = vmatpush.bf16.msrb.mxu1 %v7388_v31  ;;  %v10098_v30 = vld [vmem:[#allocation9 + $0x2b4] sm:$0xf0]  ;;  %v10047_v31 = vld [vmem:[#allocation9 + $0x124] sm:$0xf] }
 0x12e   :  { %1655 = vmatpush.bf16.msrb.mxu2 %v7200_v34  ;;  %1668 = vmatpush.bf16.msrb.mxu3 %v7392_v35  ;;  %v7644_v34 = vor.u32 %v10047_v31, %v7641_v32  ;;  %v10095_v35 = vld [vmem:[#allocation9 + $0x2a4] sm:$0xf]  ;;  %v7519_v32 = vld [vmem:[#allocation9 + $0x30] sm:$0xf] }
 0x12f   :  { %v7836_v39 = vor.u32 %v10095_v35, %v7833_v38  ;;  %v10068_v38 = vld [vmem:[#allocation9 + $0x1c4] sm:$0xf0] }
 0x131   :  { %1630 = vmatpush.bf16.msrb.mxu0 %v7172_v45  ;;  %1643 = vmatpush.bf16.msrb.mxu1 %v7364_v46  ;;  %v10092_v45 = vld [vmem:[#allocation9 + $0x284] sm:$0xf0]  ;;  %v10041_v46 = vld [vmem:[#allocation9 + $0xf4] sm:$0xf] }
 0x132   :  { %1656 = vmatpush.bf16.msrb.mxu2 %v7176_v50  ;;  %1669 = vmatpush.bf16.msrb.mxu3 %v7368_v51  ;;  %v7808_v49 = vor.u32 %v10092_v45, %v7807_v43  ;;  %v7620_v50 = vor.u32 %v10041_v46, %v7617_v48  ;;  %v10089_v51 = vld [vmem:[#allocation9 + $0x274] sm:$0xf]  ;;  %v7713_v45 = vld [vmem:[#allocation9 + $0x1c8] sm:$0xf0] }
 0x133   :  { %v7812_v53 = vor.u32 %v10089_v51, %v7809_v52  ;;  %v935_v48 = vld [vmem:[%s934_s27] ss:$8 sm:$0xf] }
 0x135   :  { %1631 = vmatpush.bf16.msrb.mxu0 %v7148_v60  ;;  %1644 = vmatpush.bf16.msrb.mxu1 %v7340_v63  ;;  %v10086_v60 = vld [vmem:[#allocation9 + $0x254] sm:$0xf0]  ;;  %v10035_v63 = vld [vmem:[#allocation9 + $0xc4] sm:$0xf] }
 0x136   :  { %1657 = vmatpush.bf16.msrb.mxu2 %v7152_v62  ;;  %1670 = vmatpush.bf16.msrb.mxu3 %v7344_v2  ;;  %v7784_v1 = vor.u32 %v10086_v60, %v7783_v58  ;;  %v7596_v62 = vor.u32 %v10035_v63, %v7593_v0  ;;  %v10083_v2 = vld [vmem:[#allocation9 + $0x244] sm:$0xf]  ;;  %v7495_v58 = vld [vmem:[#allocation9] sm:$0xf]  ;;  %v10062_v0 = vld [vmem:[#allocation9 + $0x194] sm:$0xf0] }
 0x137   :  { %v7788_v4 = vor.u32 %v10083_v2, %v7785_v3  ;;  %v7687_v60 = vld [vmem:[#allocation9 + $0x180] sm:$0xf] }
 0x138   :  { %v7688_v3 = vor.u32 %v10062_v0, %v7687_v60  ;;  %v10039_v0 = vld [vmem:[#allocation9 + $0xdc] sm:$0xf0] }
 0x139   :  { %1632 = vmatpush.bf16.msrb.mxu0 %v7124_v9  ;;  %1645 = vmatpush.bf16.msrb.mxu1 %v7316_v10  ;;  %v10080_v9 = vld [vmem:[#allocation9 + $0x224] sm:$0xf0]  ;;  %v10029_v10 = vld [vmem:[#allocation9 + $0x94] sm:$0xf] }
 0x13a   :  { %1658 = vmatpush.bf16.msrb.mxu2 %v7128_v11  ;;  %1671 = vmatpush.bf16.msrb.mxu3 %v7320_v12  ;;  %v7760_v11 = vor.u32 %v10080_v9, %v7759_v8  ;;  %v7569_v12 = vld [vmem:[#allocation9 + $0xa8] sm:$0xf0]  ;;  %v7692_v9 = vor.u32 %v10059_v5, %v7689_v6 }
 0x13b   :  { %v7572_v15 = vor.u32 %v10029_v10, %v7569_v12  ;;  %v10057_v10 = vld [vmem:[#allocation9 + $0x16c] sm:$0xf0] }
 0x13c   :  { %1633 = vmatmul.bf16.vlgmr.msrb.gmra.mxu0 %v10960_v36  ;;  %1646 = vmatmul.bf16.vlgmr.msrb.gmra.mxu1 %v10962_v37  ;;  %v10105_v12 = vld [vmem:[#allocation9 + $0x2ec] sm:$0xf0] }
 0x13d   :  { %1659 = vmatmul.bf16.vlgmr.msrb.gmra.mxu2 %v10960_v36  ;;  %1672 = vmatmul.bf16.vlgmr.msrb.gmra.mxu3 %v10962_v37  ;;  %v7639_v36 = vld [vmem:[#allocation9 + $0x120] sm:$0xf] }
 0x13e   :  { %2342 = vmatpush.bf16.msra.mxu0 %v7664_v41  ;;  %2355 = vmatpush.bf16.msra.mxu1 %v7856_v20  ;;  %v7831_v37 = vld [vmem:[#allocation9 + $0x2a0] sm:$0xf]  ;;  %v7640_v28 = vor.u32 %v10050_v27, %v7639_v36  ;;  %v7764_v41 = vor.u32 %v10077_v61, %v7761_v14  ;;  %v10026_v20 = vld [vmem:[#allocation9 + $0x74] sm:$0xf0]  ;;  %v7545_v36 = vld [vmem:[#allocation9 + $0x78] sm:$0xf0] }
 0x13f   :  { %2368 = vmatpush.bf16.msra.mxu2 %v7668_v22  ;;  %2381 = vmatpush.bf16.msra.mxu3 %v7860_v26  ;;  %v7832_v33 = vor.u32 %v10098_v30, %v7831_v37  ;;  %v7735_v22 = vld [vmem:[#allocation9 + $0x1e0] sm:$0xf]  ;;  %v7544_v23 = vor.u32 %v10026_v20, %v7543_v19  ;;  %v10023_v26 = vld [vmem:[#allocation9 + $0x64] sm:$0xf]  ;;  %v7737_v30 = vld [vmem:[#allocation9 + $0x1f8] sm:$0xf0] }
 0x140   :  { %v7736_v27 = vor.u32 %v10074_v25, %v7735_v22  ;;  %v7548_v37 = vor.u32 %v10023_v26, %v7545_v36  ;;  %v7673_v19 = vld [vmem:[#allocation9 + $0x170] sm:$0xf0]  ;;  %v10102_v22 = vld [vmem:[#allocation9 + $0x2dc] sm:$0xf]  ;;  %v7647_v25 = vld [vmem:[#allocation9 + $0x128] sm:$0xf] }
 0x142   :  { %2343 = vmatpush.bf16.msra.mxu0 %v7640_v28  ;;  %2356 = vmatpush.bf16.msra.mxu1 %v7832_v33  ;;  %v10071_v28 = vld [vmem:[#allocation9 + $0x1e4] sm:$0xf]  ;;  %v10020_v33 = vld [vmem:[#allocation9 + $0x44] sm:$0xf0] }
 0x143   :  { %2369 = vmatpush.bf16.msra.mxu2 %v7644_v34  ;;  %2382 = vmatpush.bf16.msra.mxu3 %v7836_v39  ;;  %v7740_v31 = vor.u32 %v10071_v28, %v7737_v30  ;;  %v7711_v34 = vld [vmem:[#allocation9 + $0x1b0] sm:$0xf]  ;;  %v7520_v35 = vor.u32 %v10020_v33, %v7519_v32  ;;  %v10017_v39 = vld [vmem:[#allocation9 + $0x34] sm:$0xf] }
 0x144   :  { %v7712_v42 = vor.u32 %v10068_v38, %v7711_v34  ;;  %v7524_v43 = vor.u32 %v10017_v39, %v7521_v40  ;;  %v10048_v34 = vld [vmem:[#allocation9 + $0x12c] sm:$0xf] }
 0x145   :  { %v10096_v38 = vld [vmem:[#allocation9 + $0x2ac] sm:$0xf] }
 0x146   :  { %2344 = vmatpush.bf16.msra.mxu0 %v7616_v44  ;;  %2357 = vmatpush.bf16.msra.mxu1 %v7808_v49  ;;  %v10065_v44 = vld [vmem:[#allocation9 + $0x1b4] sm:$0xf]  ;;  %v936_v49 = vld [vmem:[%s934_s27] ss:$8 sm:$0x30]  ;;  %s5039_s27 = scalar_lea.vmem [#allocation4], %s11277_s26 }
 0x147   :  { %2370 = vmatpush.bf16.msra.mxu2 %v7620_v50  ;;  %2383 = vmatpush.bf16.msra.mxu3 %v7812_v53  ;;  %v7716_v51 = vor.u32 %v10065_v44, %v7713_v45  ;;  %v10987_v8 = vor.u32 %v936_v49, %v935_v48  ;;  %v10045_v48 = vld [vmem:[#allocation9 + $0x10c] sm:$0xf0] }
 0x14a   :  { %2345 = vmatpush.bf16.msra.mxu0 %v7592_v59  ;;  %2358 = vmatpush.bf16.msra.mxu1 %v7784_v1  ;;  %v10014_v59 = vld [vmem:[#allocation9 + $0x14] sm:$0xf0]  ;;  %v10011_v1 = vld [vmem:[#allocation9 + $0x4] sm:$0xf] }
 0x14b   :  { %2371 = vmatpush.bf16.msra.mxu2 %v7596_v62  ;;  %2384 = vmatpush.bf16.msra.mxu3 %v7788_v4  ;;  %v7496_v63 = vor.u32 %v10014_v59, %v7495_v58  ;;  %v7497_v62 = vld [vmem:[#allocation9 + $0x18] sm:$0xf0]  ;;  %v7817_v58 = vld [vmem:[#allocation9 + $0x290] sm:$0xf0] }
 0x14c   :  { %v7500_v4 = vor.u32 %v10011_v1, %v7497_v62  ;;  %v7791_v1 = vld [vmem:[#allocation9 + $0x248] sm:$0xf] }
 0x14e   :  { %2346 = vmatpush.bf16.msra.mxu0 %v7568_v7  ;;  %2359 = vmatpush.bf16.msra.mxu1 %v7760_v11  ;;  %v7671_v7 = vld [vmem:[#allocation9 + $0x158] sm:$0xf] }
 0x14f   :  { %2372 = vmatpush.bf16.msra.mxu2 %v7572_v15  ;;  %2385 = vmatpush.bf16.msra.mxu3 %v7764_v41  ;;  %v7863_v11 = vld [vmem:[#allocation9 + $0x2d8] sm:$0xf]  ;;  %v7672_v15 = vor.u32 %v10057_v10, %v7671_v7  ;;  %v10084_v10 = vld [vmem:[#allocation9 + $0x24c] sm:$0xf] }
 0x150   :  { %v7864_v41 = vor.u32 %v10105_v12, %v7863_v11  ;;  %v7793_v11 = vld [vmem:[#allocation9 + $0x260] sm:$0xf0] }
 0x152   :  { %2347 = vmatpush.bf16.msra.mxu0 %v7544_v23  ;;  %2360 = vmatpush.bf16.msra.mxu1 %v7736_v27  ;;  %v7865_v23 = vld [vmem:[#allocation9 + $0x2f0] sm:$0xf0]  ;;  %v10051_v27 = vld [vmem:[#allocation9 + $0x13c] sm:$0xf0] }
 0x153   :  { %2373 = vmatpush.bf16.msra.mxu2 %v7548_v37  ;;  %2386 = vmatpush.bf16.msra.mxu3 %v7740_v31  ;;  %v7868_v36 = vor.u32 %v10102_v22, %v7865_v23  ;;  %v7839_v37 = vld [vmem:[#allocation9 + $0x2a8] sm:$0xf]  ;;  %v7648_v32 = vor.u32 %v10051_v27, %v7647_v25  ;;  %v7767_v22 = vld [vmem:[#allocation9 + $0x218] sm:$0xf]  ;;  %v10081_v27 = vld [vmem:[#allocation9 + $0x22c] sm:$0xf0] }
 0x156   :  { %2348 = vmatpush.bf16.msra.mxu0 %v7520_v35  ;;  %2361 = vmatpush.bf16.msra.mxu1 %v7712_v42  ;;  %v7649_v35 = vld [vmem:[#allocation9 + $0x140] sm:$0xf0] }
 0x157   :  { %2374 = vmatpush.bf16.msra.mxu2 %v7524_v43  ;;  %2387 = vmatpush.bf16.msra.mxu3 %v7716_v51  ;;  %v7652_v42 = vor.u32 %v10048_v34, %v7649_v35  ;;  %v7841_v43 = vld [vmem:[#allocation9 + $0x2c0] sm:$0xf0]  ;;  %v10093_v51 = vld [vmem:[#allocation9 + $0x28c] sm:$0xf0] }
 0x158   :  { %v7844_v45 = vor.u32 %v10096_v38, %v7841_v43  ;;  %v7551_v38 = vld [vmem:[#allocation9 + $0x68] sm:$0xf] }
 0x15a   :  { %2349 = vmatpush.bf16.msra.mxu0 %v7496_v63  ;;  %2362 = vmatpush.bf16.msra.mxu1 %v7688_v3  ;;  %v7599_v63 = vld [vmem:[#allocation9 + $0xc8] sm:$0xf]  ;;  %v10036_v3 = vld [vmem:[#allocation9 + $0xcc] sm:$0xf] }
 0x15b   :  { %2375 = vmatpush.bf16.msra.mxu2 %v7500_v4  ;;  %2388 = vmatpush.bf16.msra.mxu3 %v7692_v9  ;;  %v7600_v62 = vor.u32 %v10039_v0, %v7599_v63  ;;  %v7601_v4 = vld [vmem:[#allocation9 + $0xe0] sm:$0xf0]  ;;  %v7527_v63 = vld [vmem:[#allocation9 + $0x38] sm:$0xf]  ;;  %v10021_v0 = vld [vmem:[#allocation9 + $0x4c] sm:$0xf0] }
 0x15c   :  { %v7604_v9 = vor.u32 %v10036_v3, %v7601_v4  ;;  %v10069_v3 = vld [vmem:[#allocation9 + $0x1cc] sm:$0xf0]  ;;  %v10018_v4 = vld [vmem:[#allocation9 + $0x3c] sm:$0xf] }
 0x15e   :  { %2394 = vmatpush.bf16.msrb.mxu0 %v7672_v15  ;;  %2407 = vmatpush.bf16.msrb.mxu1 %v7864_v41  ;;  %v7796_v41 = vor.u32 %v10084_v10, %v7793_v11  ;;  %v7721_v10 = vld [vmem:[#allocation9 + $0x1d0] sm:$0xf0] }
 0x15f   :  { %2433 = vmatpush.bf16.msrb.mxu3 %v7868_v36 }
 0x162   :  { %2395 = vmatpush.bf16.msrb.mxu0 %v7648_v32 }
 0x163   :  { %2434 = vmatpush.bf16.msrb.mxu3 %v7844_v45  ;;  %v10075_v45 = vld [vmem:[#allocation9 + $0x1fc] sm:$0xf0] }
 0x198   :  { %v1530_v16 = vpop.f32.mrf.mxu0  ;;  %v10980_v18 = vpop.f32.mrf.mxu1 }
 0x199   :  { %v1531_v52 = vadd.f32 %v1530_v16, %v10897_v57  ;;  %v10054_v16 = vld [vmem:[#allocation9 + $0x15c] sm:$0xf] }
 0x19a   :  { %v7676_v20 = vor.u32 %v10054_v16, %v7673_v19  ;;  %v7575_v19 = vld [vmem:[#allocation9 + $0x98] sm:$0xf] }
 0x19b   :  { %v1544_v61 = vadd.f32 %v10980_v18, %v1531_v52  ;;  %v10099_v18 = vld [vmem:[#allocation9 + $0x2bc] sm:$0xf0]  ;;  %v10042_v52 = vld [vmem:[#allocation9 + $0xfc] sm:$0xf] }
 0x19c   :  { %2420 = vmatpush.bf16.msrb.mxu2 %v7676_v20  ;;  %v7840_v33 = vor.u32 %v10099_v18, %v7839_v37  ;;  %v10033_v20 = vld [vmem:[#allocation9 + $0xac] sm:$0xf0]  ;;  %v10030_v37 = vld [vmem:[#allocation9 + $0x9c] sm:$0xf]  ;;  %v7768_v18 = vor.u32 %v10081_v27, %v7767_v22  ;;  %v7697_v27 = vld [vmem:[#allocation9 + $0x1a0] sm:$0xf0] }
 0x19d   :  { %v7576_v36 = vor.u32 %v10033_v20, %v7575_v19  ;;  %v10063_v19 = vld [vmem:[#allocation9 + $0x19c] sm:$0xf0]  ;;  %v10012_v20 = vld [vmem:[#allocation9 + $0xc] sm:$0xf] }
 0x19e   :  { %2408 = vmatpush.bf16.msrb.mxu1 %v7840_v33 }
 0x19f   :  { %v1556_v46 = vpop.f32.mrf.mxu2  ;;  %v1569_v50 = vpop.f32.mrf.mxu3 }
 0x1a0   :  { %v1557_v53 = vadd.f32 %v1556_v46, %v10894_v54  ;;  %v1532_v56 = vpop.f32.mrf.mxu0  ;;  %v1545_v55 = vpop.f32.mrf.mxu1  ;;  %v7623_v46 = vld [vmem:[#allocation9 + $0xf8] sm:$0xf]  ;;  %2421 = vmatpush.bf16.msrb.mxu2 %v7652_v42 }
 0x1a1   :  { %v7624_v49 = vor.u32 %v10045_v48, %v7623_v46  ;;  %v7625_v56 = vld [vmem:[#allocation9 + $0x110] sm:$0xf0]  ;;  %v10090_v55 = vld [vmem:[#allocation9 + $0x27c] sm:$0xf] }
 0x1a2   :  { %v1570_v2 = vadd.f32 %v1569_v50, %v1557_v53  ;;  %v7815_v50 = vld [vmem:[#allocation9 + $0x278] sm:$0xf]  ;;  %v7628_v59 = vor.u32 %v10042_v52, %v7625_v56  ;;  %v7820_v60 = vor.u32 %v10090_v55, %v7817_v58  ;;  %v7745_v56 = vld [vmem:[#allocation9 + $0x200] sm:$0xf0] }
 0x1a3   :  { %v7816_v53 = vor.u32 %v10093_v51, %v7815_v50  ;;  %2396 = vmatpush.bf16.msrb.mxu0 %v7624_v49  ;;  %v10024_v51 = vld [vmem:[#allocation9 + $0x6c] sm:$0xf] }
 0x1a4   :  { %v1679_v14 = vrot.slane %v1570_v2, 7  ;;  %v10087_v2 = vld [vmem:[#allocation9 + $0x25c] sm:$0xf0]  ;;  %2422 = vmatpush.bf16.msrb.mxu2 %v7628_v59  ;;  %2435 = vmatpush.bf16.msrb.mxu3 %v7820_v60 }
 0x1a5   :  { %2409 = vmatpush.bf16.msrb.mxu1 %v7816_v53  ;;  %v7792_v7 = vor.u32 %v10087_v2, %v7791_v1  ;;  %v10072_v53 = vld [vmem:[#allocation9 + $0x1ec] sm:$0xf]  ;;  %v7719_v2 = vld [vmem:[#allocation9 + $0x1b8] sm:$0xf] }
 0x1a6   :  { %v1680_v26 = vsel %vm855_vm0, %v1544_v61, %v1679_v14  ;;  %v7748_v60 = vor.u32 %v10072_v53, %v7745_v56 }
 0x1a7   :  { %v1682_v28 = vadd.f32 %v1680_v26, %v10987_v8  ;;  %v1558_v30 = vpop.f32.mrf.mxu2  ;;  %v1571_v31 = vpop.f32.mrf.mxu3  ;;  %v1703_v26 = vrot.slane %v10987_v8, 2  ;;  %2397 = vmatpush.bf16.msrb.mxu0 %v7600_v62  ;;  %v7528_v62 = vor.u32 %v10021_v0, %v7527_v63 }
 0x1a8   :  { %v1582_v39 = vpop.f32.mrf.mxu0  ;;  %v10992_v40 = vpop.f32.mrf.mxu1  ;;  %2423 = vmatpush.bf16.msrb.mxu2 %v7604_v9  ;;  %v10078_v30 = vld [vmem:[#allocation9 + $0x21c] sm:$0xf]  ;;  %v7769_v31 = vld [vmem:[#allocation9 + $0x230] sm:$0xf0]  ;;  %2436 = vmatpush.bf16.msrb.mxu3 %v7796_v41 }
 0x1a9   :  { %v7489_v44 = vmul.f32 -1.442695, %v1682_v28  ;;  %v1583_v12 = vadd.f32 %v1582_v39, %v10912_v21  ;;  %2410 = vmatpush.bf16.msrb.mxu1 %v7792_v7  ;;  %v7577_v28 = vld [vmem:[#allocation9 + $0xb0] sm:$0xf0]  ;;  %v7772_v35 = vor.u32 %v10078_v30, %v7769_v31  ;;  %v10027_v39 = vld [vmem:[#allocation9 + $0x7c] sm:$0xf0] }
 0x1aa   :  { %v7580_v34 = vor.u32 %v10030_v37, %v7577_v28  ;;  %v7552_v43 = vor.u32 %v10027_v39, %v7551_v38  ;;  %v7529_v7 = vld [vmem:[#allocation9 + $0x50] sm:$0xf0]  ;;  %v10066_v9 = vld [vmem:[#allocation9 + $0x1bc] sm:$0xf] }
 0x1ab   :  { %10607 = vpow2.f32 %v7489_v44  ;;  %v1596_v32 = vadd.f32 %v10992_v40, %v1583_v12  ;;  %2398 = vmatpush.bf16.msrb.mxu0 %v7576_v36  ;;  %v7743_v44 = vld [vmem:[#allocation9 + $0x1e8] sm:$0xf]  ;;  %v7553_v40 = vld [vmem:[#allocation9 + $0x80] sm:$0xf0]  ;;  %v7532_v11 = vor.u32 %v10018_v4, %v7529_v7  ;;  %v7724_v12 = vor.u32 %v10066_v9, %v7721_v10  ;;  %v10060_v36 = vld [vmem:[#allocation9 + $0x18c] sm:$0xf] }
 0x1ac   :  { %2424 = vmatpush.bf16.msrb.mxu2 %v7580_v34  ;;  %v7744_v50 = vor.u32 %v10075_v45, %v7743_v44  ;;  %2437 = vmatpush.bf16.msrb.mxu3 %v7772_v35  ;;  %v7556_v52 = vor.u32 %v10024_v51, %v7553_v40  ;;  %v7700_v30 = vor.u32 %v10060_v36, %v7697_v27  ;;  %v7679_v7 = vld [vmem:[#allocation9 + $0x160] sm:$0xf]  ;;  %v10058_v9 = vld [vmem:[#allocation9 + $0x174] sm:$0xf0]  ;;  %v10052_v36 = vld [vmem:[#allocation9 + $0x144] sm:$0xf0] }
 0x1ad   :  { %2411 = vmatpush.bf16.msrb.mxu1 %v7768_v18 }
 0x1af   :  { %v1608_v5 = vpop.f32.mrf.mxu2  ;;  %v1621_v6 = vpop.f32.mrf.mxu3  ;;  %2399 = vmatpush.bf16.msrb.mxu0 %v7552_v43 }
 0x1b0   :  { %v1609_v61 = vadd.f32 %v1608_v5, %v10909_v13  ;;  %v1584_v14 = vpop.f32.mrf.mxu0  ;;  %v1597_v15 = vpop.f32.mrf.mxu1  ;;  %2425 = vmatpush.bf16.msrb.mxu2 %v7556_v52  ;;  %2438 = vmatpush.bf16.msrb.mxu3 %v7748_v60  ;;  %v1736_v52 = vrot.slane %v10987_v8, 4 }
 0x1b1   :  { %v10608_v16 = vpop.eup %10607  ;;  %2412 = vmatpush.bf16.msrb.mxu1 %v7744_v50  ;;  %v7503_v14 = vld [vmem:[#allocation9 + $0x8] sm:$0xf]  ;;  %v10015_v15 = vld [vmem:[#allocation9 + $0x1c] sm:$0xf0] }
 0x1b2   :  { %v10996_v23 = vadd.f32 1.0, %v10608_v16  ;;  %v1622_v25 = vadd.f32 %v1621_v6, %v1609_v61  ;;  %v7720_v6 = vor.u32 %v10069_v3, %v7719_v2  ;;  %v7504_v41 = vor.u32 %v10015_v15, %v7503_v14  ;;  %v7695_v16 = vld [vmem:[#allocation9 + $0x188] sm:$0xf]  ;;  %v7681_v14 = vld [vmem:[#allocation9 + $0x178] sm:$0xf0] }
 0x1b3   :  { %2400 = vmatpush.bf16.msrb.mxu0 %v7528_v62  ;;  %v10103_v15 = vld [vmem:[#allocation9 + $0x2e4] sm:$0xf] }
 0x1b4   :  { %10609 = vrcp.f32 %v10996_v23  ;;  %v1707_v33 = vrot.slane %v1622_v25, 7  ;;  %2426 = vmatpush.bf16.msrb.mxu2 %v7532_v11  ;;  %v7696_v25 = vor.u32 %v10063_v19, %v7695_v16  ;;  %2439 = vmatpush.bf16.msrb.mxu3 %v7724_v12  ;;  %v1698_v35 = vand.u32 2147483648, %v10996_v23  ;;  %v7871_v11 = vld [vmem:[#allocation9 + $0x2e0] sm:$0xf]  ;;  %v10106_v12 = vld [vmem:[#allocation9 + $0x2f4] sm:$0xf0] }
 0x1b5   :  { %2413 = vmatpush.bf16.msrb.mxu1 %v7720_v6  ;;  %vm1692_vm11 = vweird.f32 %v10996_v23  ;;  %v1696_v43 = vand.u32 2147483647, %v10996_v23 }
 0x1b6   :  { %v1708_v42 = vsel %vm855_vm0, %v1596_v32, %v1707_v33 }
 0x1b7   :  { %v1710_v46 = vadd.f32 %v1708_v42, %v1703_v26  ;;  %v1610_v48 = vpop.f32.mrf.mxu2  ;;  %v1623_v49 = vpop.f32.mrf.mxu3  ;;  %v7505_v26 = vld [vmem:[#allocation9 + $0x20] sm:$0xf0]  ;;  %2401 = vmatpush.bf16.msrb.mxu0 %v7504_v41  ;;  %vm1697_vm13 = vcmp.eq.f32.partialorder %v1696_v43, 8.507059e+37  ;;  %v7873_v41 = vld [vmem:[#allocation9 + $0x2f8] sm:$0xf0] }
 0x1b8   :  { %v7508_v28 = vor.u32 %v10012_v20, %v7505_v26  ;;  %2440 = vmatpush.bf16.msrb.mxu3 %v7700_v30  ;;  %v1699_v48 = vor.u32 1.1754944e-38, %v1698_v35  ;;  %v7655_v26 = vld [vmem:[#allocation9 + $0x130] sm:$0xf]  ;;  %v10049_v30 = vld [vmem:[#allocation9 + $0x134] sm:$0xf] }
 0x1b9   :  { %v7490_v55 = vmul.f32 -1.442695, %v1710_v46  ;;  %v1634_v58 = vpop.f32.mrf.mxu0  ;;  %v1647_v59 = vpop.f32.mrf.mxu1  ;;  %2414 = vmatpush.bf16.msrb.mxu1 %v7696_v25  ;;  %v7872_v25 = vor.u32 %v10106_v12, %v7871_v11  ;;  %v10079_v11 = vld [vmem:[#allocation9 + $0x224] sm:$0xf]  ;;  %v7777_v12 = vld [vmem:[#allocation9 + $0x238] sm:$0xf0] }
 0x1ba   :  { %v10610_v1 = vpop.eup %10609  ;;  %v1635_v32 = vadd.f32 %v1634_v58, %v10929_v29  ;;  %2427 = vmatpush.bf16.msrb.mxu2 %v7508_v28  ;;  %v10100_v28 = vld [vmem:[#allocation9 + $0x2c4] sm:$0xf0] }
 0x1bb   :  { %10611 = vpow2.f32 %v7490_v55  ;;  %v1688_v5 = vmul.f32 %v10610_v1, %v10996_v23  ;;  %vm1693_vm10 = vweird.f32 %v10610_v1 }
 0x1bc   :  { %vm1694_vm12 = vmor %vm1692_vm11, %vm1693_vm10  ;;  %v1648_v46 = vadd.f32 %v1647_v59, %v1635_v32  ;;  %v10097_v32 = vld [vmem:[#allocation9 + $0x2b4] sm:$0xf] }
 0x1bd   :  { %v1689_v61 = vsub.f32 1.0, %v1688_v5 }
 0x1bf   :  { %v1690_v22 = vmul.f32 %v10610_v1, %v1689_v61  ;;  %v10055_v61 = vld [vmem:[#allocation9 + $0x164] sm:$0xf] }
 0x1c0   :  { %v1660_v37 = vpop.f32.mrf.mxu2  ;;  %v1673_v18 = vpop.f32.mrf.mxu3  ;;  %v7684_v27 = vor.u32 %v10055_v61, %v7681_v14 }
 0x1c1   :  { %v10612_v31 = vpop.eup %10611  ;;  %v1661_v33 = vadd.f32 %v1660_v37, %v10933_v47  ;;  %v1691_v34 = vadd.f32 %v10610_v1, %v1690_v22  ;;  %v1636_v38 = vpop.f32.mrf.mxu0  ;;  %v7680_v22 = vor.u32 %v10058_v9, %v7679_v7  ;;  %v7876_v37 = vor.u32 %v10103_v15, %v7873_v41  ;;  %v10031_v7 = vld [vmem:[#allocation9 + $0xa4] sm:$0xf]  ;;  %v7585_v9 = vld [vmem:[#allocation9 + $0xb8] sm:$0xf0]  ;;  %v7559_v15 = vld [vmem:[#allocation9 + $0x70] sm:$0xf] }
 0x1c2   :  { %v1649_v39 = vpop.f32.mrf.mxu1  ;;  %v1714_v42 = vadd.f32 1.0, %v10612_v31  ;;  %v7657_v31 = vld [vmem:[#allocation9 + $0x148] sm:$0xf0]  ;;  %v7631_v38 = vld [vmem:[#allocation9 + $0x100] sm:$0xf] }
 0x1c3   :  { %v1674_v44 = vadd.f32 %v1673_v18, %v1661_v33  ;;  %v1695_v45 = vsel %vm1694_vm12, %v10610_v1, %v1691_v34  ;;  %v7847_v18 = vld [vmem:[#allocation9 + $0x2b0] sm:$0xf]  ;;  %v7849_v33 = vld [vmem:[#allocation9 + $0x2c8] sm:$0xf0]  ;;  %v7656_v34 = vor.u32 %v10052_v36, %v7655_v26  ;;  %v10046_v39 = vld [vmem:[#allocation9 + $0x114] sm:$0xf0] }
 0x1c4   :  { %10613 = vrcp.f32 %v1714_v42  ;;  %v1700_v50 = vsel %vm1697_vm13, %v1699_v48, %v1695_v45  ;;  %v1726_v63 = vand.u32 2147483648, %v1714_v42  ;;  %v1724_v1 = vand.u32 2147483647, %v1714_v42  ;;  %v10094_v45 = vld [vmem:[#allocation9 + $0x294] sm:$0xf0] }
 0x1c5   :  { %v1732_v49 = vrot.slane %v1674_v44, 7  ;;  %vm1720_vm15 = vweird.f32 %v1714_v42  ;;  %v7848_v35 = vor.u32 %v10100_v28, %v7847_v18  ;;  %v7852_v43 = vor.u32 %v10097_v32, %v7849_v33  ;;  %v7823_v44 = vld [vmem:[#allocation9 + $0x280] sm:$0xf]  ;;  %v7633_v48 = vld [vmem:[#allocation9 + $0x118] sm:$0xf0] }
 0x1c6   :  { %v1727_v62 = vor.u32 1.1754944e-38, %v1726_v63  ;;  %vm1725_vm2 = vcmp.eq.f32.partialorder %v1724_v1, 8.507059e+37  ;;  %v7609_v63 = vld [vmem:[#allocation9 + $0xe8] sm:$0xf0]  ;;  %v10028_v41 = vld [vmem:[#allocation9 + $0x84] sm:$0xf0] }
 0x1c7   :  { %v1733_v51 = vsel %vm855_vm0, %v1648_v46, %v1732_v49  ;;  %v10043_v46 = vld [vmem:[#allocation9 + $0x104] sm:$0xf]  ;;  %v7801_v1 = vld [vmem:[#allocation9 + $0x268] sm:$0xf0]  ;;  %v10025_v26 = vld [vmem:[#allocation9 + $0x74] sm:$0xf]  ;;  %v7560_v18 = vor.u32 %v10028_v41, %v7559_v15 }
 0x1c8   :  { %v1735_v40 = vmul.f32 %v1733_v51, %v1700_v50  ;;  %v1662_v23 = vpop.f32.mrf.mxu2  ;;  %v1675_v53 = vpop.f32.mrf.mxu3  ;;  %v10091_v49 = vld [vmem:[#allocation9 + $0x284] sm:$0xf]  ;;  %v7825_v50 = vld [vmem:[#allocation9 + $0x298] sm:$0xf0]  ;;  %v7632_v51 = vor.u32 %v10046_v39, %v7631_v38  ;;  %v7561_v36 = vld [vmem:[#allocation9 + $0x88] sm:$0xf0] }
 0x1c9   :  { %v10040_v23 = vld [vmem:[#allocation9 + $0xe4] sm:$0xf0]  ;;  %v7636_v53 = vor.u32 %v10043_v46, %v7633_v48  ;;  %v7564_v32 = vor.u32 %v10025_v26, %v7561_v36  ;;  %v10019_v38 = vld [vmem:[#allocation9 + $0x44] sm:$0xf]  ;;  %v7537_v39 = vld [vmem:[#allocation9 + $0x58] sm:$0xf0] }
 0x1ca   :  { %v10614_v56 = vpop.eup %10613  ;;  %v1738_v58 = vadd.f32 %v1736_v52, %v1735_v40  ;;  %v7824_v40 = vor.u32 %v10094_v45, %v7823_v44  ;;  %v7607_v52 = vld [vmem:[#allocation9 + $0xd0] sm:$0xf]  ;;  %v10016_v48 = vld [vmem:[#allocation9 + $0x24] sm:$0xf0]  ;;  %v8029_v15 = vld [vmem:[#allocation9 + $0x138] sm:$0xf0] }
 0x1cb   :  { %v1716_v55 = vmul.f32 %v10614_v56, %v1714_v42  ;;  %vm1721_vm14 = vweird.f32 %v10614_v56  ;;  %v7660_v42 = vor.u32 %v10049_v30, %v7657_v31  ;;  %v7535_v30 = vld [vmem:[#allocation9 + $0x40] sm:$0xf]  ;;  %v10022_v31 = vld [vmem:[#allocation9 + $0x54] sm:$0xf0]  ;;  %v7511_v46 = vld [vmem:[#allocation9 + $0x10] sm:$0xf] }
 0x1cc   :  { %10615 = vtanh.f32 %v1738_v58  ;;  %vm1722_vm1 = vmor %vm1720_vm15, %vm1721_vm14  ;;  %v10088_v58 = vld [vmem:[#allocation9 + $0x264] sm:$0xf0]  ;;  %v7536_v44 = vor.u32 %v10022_v31, %v7535_v30  ;;  %v8003_v26 = vld [vmem:[#allocation9 + $0xf0] sm:$0xf] }
 0x1cd   :  { %v1717_v60 = vsub.f32 1.0, %v1716_v55  ;;  %v7799_v55 = vld [vmem:[#allocation9 + $0x250] sm:$0xf]  ;;  %v10140_v36 = vld [vmem:[#allocation9 + $0x104] sm:$0xf0] }
 0x1ce   :  { %v8005_v30 = vld [vmem:[#allocation9 + $0x108] sm:$0xf0] }
 0x1cf   :  { %v1718_v0 = vmul.f32 %v10614_v56, %v1717_v60  ;;  %v10037_v60 = vld [vmem:[#allocation9 + $0xd4] sm:$0xf] }
 0x1d1   :  { %v1719_v59 = vadd.f32 %v10614_v56, %v1718_v0  ;;  %v10085_v0 = vld [vmem:[#allocation9 + $0x254] sm:$0xf] }
 0x1d2   :  { %v10616_v8 = vpop.eup %10615 }
 0x1d3   :  { %v1723_v2 = vsel %vm1722_vm1, %v10614_v56, %v1719_v59  ;;  %v7828_v56 = vor.u32 %v10091_v49, %v7825_v50  ;;  %v7608_v59 = vor.u32 %v10040_v23, %v7607_v52  ;;  %v7540_v49 = vor.u32 %v10019_v38, %v7537_v39  ;;  %v10013_v52 = vld [vmem:[#allocation9 + $0x14] sm:$0xf]  ;;  %v7513_v23 = vld [vmem:[#allocation9 + $0x28] sm:$0xf0]  ;;  %v7979_v38 = vld [vmem:[#allocation9 + $0xc0] sm:$0xf] }
 0x1d4   :  { %v1728_v3 = vsel %vm1725_vm2, %v1727_v62, %v1723_v2  ;;  %v7800_v62 = vor.u32 %v10088_v58, %v7799_v55  ;;  %v7583_v2 = vld [vmem:[#allocation9 + $0xa0] sm:$0xf]  ;;  %v7512_v55 = vor.u32 %v10016_v48, %v7511_v46  ;;  %v10134_v39 = vld [vmem:[#allocation9 + $0xd4] sm:$0xf0]  ;;  %v7981_v46 = vld [vmem:[#allocation9 + $0xd8] sm:$0xf0] }
 0x1d5   :  { %v1740_v4 = vsub.f32 1.0, %v1728_v3  ;;  %v1742_v6 = vmul.f32 %v1728_v3, %v10953_v17  ;;  %v10034_v3 = vld [vmem:[#allocation9 + $0xb4] sm:$0xf0] }
 0x1d6   :  { %v7584_v61 = vor.u32 %v10034_v3, %v7583_v2  ;;  %v10200_v2 = vld [vmem:[#allocation9 + $0x2e4] sm:$0xf0]  ;;  %v10149_v3 = vld [vmem:[#allocation9 + $0x154] sm:$0xf] }
 0x1d7   :  { %v1741_v5 = vmul.f32 %v10616_v8, %v1740_v4  ;;  %v7612_v4 = vor.u32 %v10037_v60, %v7609_v63  ;;  %v7804_v8 = vor.u32 %v10085_v0, %v7801_v1  ;;  %v7516_v60 = vor.u32 %v10013_v52, %v7513_v23  ;;  %v8051_v0 = vld [vmem:[#allocation9 + $0x150] sm:$0xf]  ;;  %v10152_v1 = vld [vmem:[#allocation9 + $0x164] sm:$0xf0] }
 0x1d8   :  { %v7955_v52 = vld [vmem:[#allocation9 + $0x90] sm:$0xf]  ;;  %v10128_v23 = vld [vmem:[#allocation9 + $0xa4] sm:$0xf0] }
 0x1d9   :  { %v11012_v10 = vadd.f32 %v1742_v6, %v1741_v5  ;;  %v7775_v5 = vld [vmem:[#allocation9 + $0x220] sm:$0xf]  ;;  %v10082_v6 = vld [vmem:[#allocation9 + $0x234] sm:$0xf0] }
 0x1da   :  { %v7776_v14 = vor.u32 %v10082_v6, %v7775_v5  ;;  %v10197_v6 = vld [vmem:[#allocation9 + $0x2d4] sm:$0xf] }
 0x1db   :  { %1745 = vst.msk [vmem:[#allocation12 + $0x1] ss:$8 sm:$0x3] %vm10949_vm9, %v11012_v10  ;;  %v1760_v16 = vperm.slane %v11012_v10, 0  ;;  %v1761_v19 = vperm.slane %v11012_v10, 1 }
 0x1dd   :  { %v11019_v20 = vpack.c.bf16 %v1760_v16, %v1760_v16  ;;  %v11021_v17 = vpack.c.bf16 %v1761_v19, %v1761_v19  ;;  %v7588_v16 = vor.u32 %v10031_v7, %v7585_v9  ;;  %v7780_v19 = vor.u32 %v10079_v11, %v7777_v12  ;;  %v8245_v7 = vld [vmem:[#allocation9 + $0x2e8] sm:$0xf0]  ;;  %v10146_v11 = vld [vmem:[#allocation9 + $0x134] sm:$0xf0] }
 0x1de   :  { %v8248_v9 = vor.u32 %v10197_v6, %v8245_v7  ;;  %v10170_v7 = vld [vmem:[#allocation9 + $0x1f4] sm:$0xf0] }
 0x1df   :  { %2350 = vmatmul.bf16.vlgmr.msra.gmra.mxu0 %v11019_v20  ;;  %2363 = vmatmul.bf16.vlgmr.msra.gmra.mxu1 %v11021_v17 }
 0x1e0   :  { %2376 = vmatmul.bf16.vlgmr.msra.gmra.mxu2 %v11019_v20  ;;  %2389 = vmatmul.bf16.vlgmr.msra.gmra.mxu3 %v11021_v17 }
 0x1e1   :  { %2446 = vmatpush.bf16.msra.mxu0 %v7680_v22  ;;  %2459 = vmatpush.bf16.msra.mxu1 %v7872_v25  ;;  %v7751_v22 = vld [vmem:[#allocation9 + $0x1f0] sm:$0xf]  ;;  %v10076_v25 = vld [vmem:[#allocation9 + $0x204] sm:$0xf0] }
 0x1e2   :  { %2472 = vmatpush.bf16.msra.mxu2 %v7684_v27  ;;  %2485 = vmatpush.bf16.msra.mxu3 %v7876_v37  ;;  %v10073_v27 = vld [vmem:[#allocation9 + $0x1f4] sm:$0xf]  ;;  %v7753_v37 = vld [vmem:[#allocation9 + $0x208] sm:$0xf0]  ;;  %v7752_v28 = vor.u32 %v10076_v25, %v7751_v22  ;;  %v8221_v22 = vld [vmem:[#allocation9 + $0x2b8] sm:$0xf0] }
 0x1e3   :  { %v7756_v33 = vor.u32 %v10073_v27, %v7753_v37  ;;  %v8195_v27 = vld [vmem:[#allocation9 + $0x270] sm:$0xf]  ;;  %v8004_v37 = vor.u32 %v10140_v36, %v8003_v26  ;;  %v7909_v26 = vld [vmem:[#allocation9 + $0x48] sm:$0xf0] }
 0x1e5   :  { %2447 = vmatpush.bf16.msra.mxu0 %v7656_v34  ;;  %2460 = vmatpush.bf16.msra.mxu1 %v7848_v35  ;;  %v7727_v34 = vld [vmem:[#allocation9 + $0x1c0] sm:$0xf]  ;;  %v10070_v35 = vld [vmem:[#allocation9 + $0x1d4] sm:$0xf0] }
 0x1e6   :  { %2473 = vmatpush.bf16.msra.mxu2 %v7660_v42  ;;  %2486 = vmatpush.bf16.msra.mxu3 %v7852_v43  ;;  %v10067_v42 = vld [vmem:[#allocation9 + $0x1c4] sm:$0xf]  ;;  %v7729_v43 = vld [vmem:[#allocation9 + $0x1d8] sm:$0xf0]  ;;  %v7728_v45 = vor.u32 %v10070_v35, %v7727_v34  ;;  %v8197_v34 = vld [vmem:[#allocation9 + $0x288] sm:$0xf0] }
 0x1e7   :  { %v7732_v50 = vor.u32 %v10067_v42, %v7729_v43  ;;  %v8171_v42 = vld [vmem:[#allocation9 + $0x240] sm:$0xf]  ;;  %v7980_v43 = vor.u32 %v10134_v39, %v7979_v38 }
 0x1e9   :  { %2448 = vmatpush.bf16.msra.mxu0 %v7632_v51  ;;  %2461 = vmatpush.bf16.msra.mxu1 %v7824_v40  ;;  %v7703_v51 = vld [vmem:[#allocation9 + $0x190] sm:$0xf]  ;;  %v10064_v40 = vld [vmem:[#allocation9 + $0x1a4] sm:$0xf0] }
 0x1ea   :  { %2474 = vmatpush.bf16.msra.mxu2 %v7636_v53  ;;  %2487 = vmatpush.bf16.msra.mxu3 %v7828_v56  ;;  %v10061_v53 = vld [vmem:[#allocation9 + $0x194] sm:$0xf]  ;;  %v7705_v56 = vld [vmem:[#allocation9 + $0x1a8] sm:$0xf0]  ;;  %v7704_v58 = vor.u32 %v10064_v40, %v7703_v51  ;;  %v8173_v51 = vld [vmem:[#allocation9 + $0x258] sm:$0xf0] }
 0x1eb   :  { %v7708_v63 = vor.u32 %v10061_v53, %v7705_v56  ;;  %v7956_v53 = vor.u32 %v10128_v23, %v7955_v52  ;;  %v8147_v56 = vld [vmem:[#allocation9 + $0x210] sm:$0xf]  ;;  %v10155_v52 = vld [vmem:[#allocation9 + $0x184] sm:$0xf]  ;;  %v8077_v23 = vld [vmem:[#allocation9 + $0x198] sm:$0xf0] }
 0x1ed   :  { %2449 = vmatpush.bf16.msra.mxu0 %v7608_v59  ;;  %2462 = vmatpush.bf16.msra.mxu1 %v7800_v62  ;;  %v8243_v59 = vld [vmem:[#allocation9 + $0x2d0] sm:$0xf]  ;;  %v8052_v62 = vor.u32 %v10152_v1, %v8051_v0  ;;  %v10173_v0 = vld [vmem:[#allocation9 + $0x214] sm:$0xf]  ;;  %v8149_v1 = vld [vmem:[#allocation9 + $0x228] sm:$0xf0] }
 0x1ee   :  { %2475 = vmatpush.bf16.msra.mxu2 %v7612_v4  ;;  %2488 = vmatpush.bf16.msra.mxu3 %v7804_v8  ;;  %v8053_v4 = vld [vmem:[#allocation9 + $0x168] sm:$0xf0]  ;;  %v8244_v8 = vor.u32 %v10200_v2, %v8243_v59 }
 0x1ef   :  { %2402 = vmatmul.bf16.vlgmr.msrb.gmra.mxu0 %v11019_v20  ;;  %2415 = vmatmul.bf16.vlgmr.msrb.gmra.mxu1 %v11021_v17  ;;  %v8056_v5 = vor.u32 %v10149_v3, %v8053_v4  ;;  %v7931_v4 = vld [vmem:[#allocation9 + $0x60] sm:$0xf] }
 0x1f0   :  { %2428 = vmatmul.bf16.vlgmr.msrb.gmra.mxu2 %v11019_v20  ;;  %2441 = vmatmul.bf16.vlgmr.msrb.gmra.mxu3 %v11021_v17 }
 0x1f1   :  { %2450 = vmatpush.bf16.msra.mxu0 %v7584_v61  ;;  %2463 = vmatpush.bf16.msra.mxu1 %v7776_v14  ;;  %v10194_v61 = vld [vmem:[#allocation9 + $0x2b4] sm:$0xf0]  ;;  %v10143_v14 = vld [vmem:[#allocation9 + $0x124] sm:$0xf] }
 0x1f2   :  { %2476 = vmatpush.bf16.msra.mxu2 %v7588_v16  ;;  %2489 = vmatpush.bf16.msra.mxu3 %v7780_v19  ;;  %v8032_v16 = vor.u32 %v10143_v14, %v8029_v15  ;;  %v10191_v19 = vld [vmem:[#allocation9 + $0x2a4] sm:$0xf]  ;;  %v7907_v15 = vld [vmem:[#allocation9 + $0x30] sm:$0xf] }
 0x1f3   :  { %v8224_v25 = vor.u32 %v10191_v19, %v8221_v22  ;;  %v10164_v22 = vld [vmem:[#allocation9 + $0x1c4] sm:$0xf0] }
 0x1f5   :  { %2451 = vmatpush.bf16.msra.mxu0 %v7560_v18  ;;  %2464 = vmatpush.bf16.msra.mxu1 %v7752_v28  ;;  %v10188_v18 = vld [vmem:[#allocation9 + $0x284] sm:$0xf0]  ;;  %v10137_v28 = vld [vmem:[#allocation9 + $0xf4] sm:$0xf] }
 0x1f6   :  { %2477 = vmatpush.bf16.msra.mxu2 %v7564_v32  ;;  %2490 = vmatpush.bf16.msra.mxu3 %v7756_v33  ;;  %v8196_v31 = vor.u32 %v10188_v18, %v8195_v27  ;;  %v8008_v32 = vor.u32 %v10137_v28, %v8005_v30  ;;  %v10185_v33 = vld [vmem:[#allocation9 + $0x274] sm:$0xf]  ;;  %v8101_v18 = vld [vmem:[#allocation9 + $0x1c8] sm:$0xf0] }
 0x1f7   :  { %v8200_v35 = vor.u32 %v10185_v33, %v8197_v34  ;;  %v1756_v30 = vld [vmem:[%s1755_s7] ss:$8 sm:$0xf] }
 0x1f9   :  { %2452 = vmatpush.bf16.msra.mxu0 %v7536_v44  ;;  %2465 = vmatpush.bf16.msra.mxu1 %v7728_v45  ;;  %v10182_v44 = vld [vmem:[#allocation9 + $0x254] sm:$0xf0]  ;;  %v10131_v45 = vld [vmem:[#allocation9 + $0xc4] sm:$0xf] }
 0x1fa   :  { %2478 = vmatpush.bf16.msra.mxu2 %v7540_v49  ;;  %2491 = vmatpush.bf16.msra.mxu3 %v7732_v50  ;;  %v8172_v48 = vor.u32 %v10182_v44, %v8171_v42  ;;  %v7984_v49 = vor.u32 %v10131_v45, %v7981_v46  ;;  %v10179_v50 = vld [vmem:[#allocation9 + $0x244] sm:$0xf]  ;;  %v7883_v42 = vld [vmem:[#allocation9] sm:$0xf]  ;;  %v10158_v46 = vld [vmem:[#allocation9 + $0x194] sm:$0xf0] }
 0x1fb   :  { %v8176_v40 = vor.u32 %v10179_v50, %v8173_v51  ;;  %v8075_v44 = vld [vmem:[#allocation9 + $0x180] sm:$0xf] }
 0x1fc   :  { %v8076_v51 = vor.u32 %v10158_v46, %v8075_v44  ;;  %v10135_v46 = vld [vmem:[#allocation9 + $0xdc] sm:$0xf0] }
 0x1fd   :  { %2453 = vmatpush.bf16.msra.mxu0 %v7512_v55  ;;  %2466 = vmatpush.bf16.msra.mxu1 %v7704_v58  ;;  %v10176_v55 = vld [vmem:[#allocation9 + $0x224] sm:$0xf0]  ;;  %v10125_v58 = vld [vmem:[#allocation9 + $0x94] sm:$0xf] }
 0x1fe   :  { %2479 = vmatpush.bf16.msra.mxu2 %v7516_v60  ;;  %2492 = vmatpush.bf16.msra.mxu3 %v7708_v63  ;;  %v8148_v60 = vor.u32 %v10176_v55, %v8147_v56  ;;  %v7957_v63 = vld [vmem:[#allocation9 + $0xa8] sm:$0xf0]  ;;  %v8080_v55 = vor.u32 %v10155_v52, %v8077_v23 }
 0x1ff   :  { %v7960_v59 = vor.u32 %v10125_v58, %v7957_v63  ;;  %v10153_v58 = vld [vmem:[#allocation9 + $0x16c] sm:$0xf0] }
 0x200   :  { %2454 = vmatmul.bf16.vlgmr.msra.gmra.mxu0 %v11019_v20  ;;  %2467 = vmatmul.bf16.vlgmr.msra.gmra.mxu1 %v11021_v17  ;;  %v10201_v63 = vld [vmem:[#allocation9 + $0x2ec] sm:$0xf0] }
 0x201   :  { %2480 = vmatmul.bf16.vlgmr.msra.gmra.mxu2 %v11019_v20  ;;  %2493 = vmatmul.bf16.vlgmr.msra.gmra.mxu3 %v11021_v17  ;;  %v8027_v20 = vld [vmem:[#allocation9 + $0x120] sm:$0xf] }
 0x202   :  { %3163 = vmatpush.bf16.msrb.mxu0 %v8052_v62  ;;  %3176 = vmatpush.bf16.msrb.mxu1 %v8244_v8  ;;  %v8219_v17 = vld [vmem:[#allocation9 + $0x2a0] sm:$0xf]  ;;  %v8028_v12 = vor.u32 %v10146_v11, %v8027_v20  ;;  %v8152_v62 = vor.u32 %v10173_v0, %v8149_v1  ;;  %v10122_v8 = vld [vmem:[#allocation9 + $0x74] sm:$0xf0]  ;;  %v7933_v20 = vld [vmem:[#allocation9 + $0x78] sm:$0xf0] }
 0x203   :  { %3189 = vmatpush.bf16.msrb.mxu2 %v8056_v5  ;;  %3202 = vmatpush.bf16.msrb.mxu3 %v8248_v9  ;;  %v8220_v41 = vor.u32 %v10194_v61, %v8219_v17  ;;  %v8123_v5 = vld [vmem:[#allocation9 + $0x1e0] sm:$0xf]  ;;  %v7932_v6 = vor.u32 %v10122_v8, %v7931_v4  ;;  %v10119_v9 = vld [vmem:[#allocation9 + $0x64] sm:$0xf]  ;;  %v8125_v61 = vld [vmem:[#allocation9 + $0x1f8] sm:$0xf0] }
 0x204   :  { %v8124_v11 = vor.u32 %v10170_v7, %v8123_v5  ;;  %v7936_v17 = vor.u32 %v10119_v9, %v7933_v20  ;;  %v8061_v4 = vld [vmem:[#allocation9 + $0x170] sm:$0xf0]  ;;  %v10198_v5 = vld [vmem:[#allocation9 + $0x2dc] sm:$0xf]  ;;  %v8035_v7 = vld [vmem:[#allocation9 + $0x128] sm:$0xf] }
 0x206   :  { %3164 = vmatpush.bf16.msrb.mxu0 %v8028_v12  ;;  %3177 = vmatpush.bf16.msrb.mxu1 %v8220_v41  ;;  %v10167_v12 = vld [vmem:[#allocation9 + $0x1e4] sm:$0xf]  ;;  %v10116_v41 = vld [vmem:[#allocation9 + $0x44] sm:$0xf0] }
 0x207   :  { %3190 = vmatpush.bf16.msrb.mxu2 %v8032_v16  ;;  %3203 = vmatpush.bf16.msrb.mxu3 %v8224_v25  ;;  %v8128_v14 = vor.u32 %v10167_v12, %v8125_v61  ;;  %v8099_v16 = vld [vmem:[#allocation9 + $0x1b0] sm:$0xf]  ;;  %v7908_v19 = vor.u32 %v10116_v41, %v7907_v15  ;;  %v10113_v25 = vld [vmem:[#allocation9 + $0x34] sm:$0xf] }
 0x208   :  { %v8100_v36 = vor.u32 %v10164_v22, %v8099_v16  ;;  %v7912_v27 = vor.u32 %v10113_v25, %v7909_v26  ;;  %v10144_v16 = vld [vmem:[#allocation9 + $0x12c] sm:$0xf] }
 0x209   :  { %v10192_v22 = vld [vmem:[#allocation9 + $0x2ac] sm:$0xf] }
 0x20a   :  { %3165 = vmatpush.bf16.msrb.mxu0 %v8004_v37  ;;  %3178 = vmatpush.bf16.msrb.mxu1 %v8196_v31  ;;  %v10161_v37 = vld [vmem:[#allocation9 + $0x1b4] sm:$0xf]  ;;  %v1757_v31 = vld [vmem:[%s1755_s7] ss:$8 sm:$0x30]  ;;  %s5860_s7 = scalar_lea.vmem [#allocation4], %s5859_s6 }
 0x20b   :  { %3191 = vmatpush.bf16.msrb.mxu2 %v8008_v32  ;;  %3204 = vmatpush.bf16.msrb.mxu3 %v8200_v35  ;;  %v8104_v33 = vor.u32 %v10161_v37, %v8101_v18  ;;  %v11046_v56 = vor.u32 %v1757_v31, %v1756_v30  ;;  %v10141_v30 = vld [vmem:[#allocation9 + $0x10c] sm:$0xf0] }
 0x20e   :  { %3166 = vmatpush.bf16.msrb.mxu0 %v7980_v43  ;;  %3179 = vmatpush.bf16.msrb.mxu1 %v8172_v48  ;;  %v10110_v43 = vld [vmem:[#allocation9 + $0x14] sm:$0xf0]  ;;  %v10107_v48 = vld [vmem:[#allocation9 + $0x4] sm:$0xf] }
 0x20f   :  { %3192 = vmatpush.bf16.msrb.mxu2 %v7984_v49  ;;  %3205 = vmatpush.bf16.msrb.mxu3 %v8176_v40  ;;  %v7884_v45 = vor.u32 %v10110_v43, %v7883_v42  ;;  %v7885_v49 = vld [vmem:[#allocation9 + $0x18] sm:$0xf0]  ;;  %v8205_v42 = vld [vmem:[#allocation9 + $0x290] sm:$0xf0] }
 0x210   :  { %v7888_v40 = vor.u32 %v10107_v48, %v7885_v49  ;;  %v8179_v48 = vld [vmem:[#allocation9 + $0x248] sm:$0xf] }
 0x212   :  { %3167 = vmatpush.bf16.msrb.mxu0 %v7956_v53  ;;  %3180 = vmatpush.bf16.msrb.mxu1 %v8148_v60  ;;  %v8059_v53 = vld [vmem:[#allocation9 + $0x158] sm:$0xf] }
 0x213   :  { %3193 = vmatpush.bf16.msrb.mxu2 %v7960_v59  ;;  %3206 = vmatpush.bf16.msrb.mxu3 %v8152_v62  ;;  %v8251_v60 = vld [vmem:[#allocation9 + $0x2d8] sm:$0xf]  ;;  %v8060_v59 = vor.u32 %v10153_v58, %v8059_v53  ;;  %v10180_v58 = vld [vmem:[#allocation9 + $0x24c] sm:$0xf] }
 0x214   :  { %v8252_v62 = vor.u32 %v10201_v63, %v8251_v60  ;;  %v8181_v60 = vld [vmem:[#allocation9 + $0x260] sm:$0xf0] }
 0x216   :  { %3168 = vmatpush.bf16.msrb.mxu0 %v7932_v6  ;;  %3181 = vmatpush.bf16.msrb.mxu1 %v8124_v11  ;;  %v8253_v6 = vld [vmem:[#allocation9 + $0x2f0] sm:$0xf0]  ;;  %v10147_v11 = vld [vmem:[#allocation9 + $0x13c] sm:$0xf0] }
 0x217   :  { %3194 = vmatpush.bf16.msrb.mxu2 %v7936_v17  ;;  %3207 = vmatpush.bf16.msrb.mxu3 %v8128_v14  ;;  %v8256_v20 = vor.u32 %v10198_v5, %v8253_v6  ;;  %v8227_v17 = vld [vmem:[#allocation9 + $0x2a8] sm:$0xf]  ;;  %v8036_v15 = vor.u32 %v10147_v11, %v8035_v7  ;;  %v8155_v5 = vld [vmem:[#allocation9 + $0x218] sm:$0xf]  ;;  %v10177_v11 = vld [vmem:[#allocation9 + $0x22c] sm:$0xf0] }
 0x21a   :  { %3169 = vmatpush.bf16.msrb.mxu0 %v7908_v19  ;;  %3182 = vmatpush.bf16.msrb.mxu1 %v8100_v36  ;;  %v8037_v19 = vld [vmem:[#allocation9 + $0x140] sm:$0xf0] }
 0x21b   :  { %3195 = vmatpush.bf16.msrb.mxu2 %v7912_v27  ;;  %3208 = vmatpush.bf16.msrb.mxu3 %v8104_v33  ;;  %v8040_v36 = vor.u32 %v10144_v16, %v8037_v19  ;;  %v8229_v27 = vld [vmem:[#allocation9 + $0x2c0] sm:$0xf0]  ;;  %v10189_v33 = vld [vmem:[#allocation9 + $0x28c] sm:$0xf0] }
 0x21c   :  { %v8232_v18 = vor.u32 %v10192_v22, %v8229_v27  ;;  %v7939_v22 = vld [vmem:[#allocation9 + $0x68] sm:$0xf] }
 0x21e   :  { %3170 = vmatpush.bf16.msrb.mxu0 %v7884_v45  ;;  %3183 = vmatpush.bf16.msrb.mxu1 %v8076_v51  ;;  %v7987_v45 = vld [vmem:[#allocation9 + $0xc8] sm:$0xf]  ;;  %v10132_v51 = vld [vmem:[#allocation9 + $0xcc] sm:$0xf] }
 0x21f   :  { %3196 = vmatpush.bf16.msrb.mxu2 %v7888_v40  ;;  %3209 = vmatpush.bf16.msrb.mxu3 %v8080_v55  ;;  %v7988_v49 = vor.u32 %v10135_v46, %v7987_v45  ;;  %v7989_v40 = vld [vmem:[#allocation9 + $0xe0] sm:$0xf0]  ;;  %v7915_v45 = vld [vmem:[#allocation9 + $0x38] sm:$0xf]  ;;  %v10117_v46 = vld [vmem:[#allocation9 + $0x4c] sm:$0xf0] }
 0x220   :  { %v7992_v55 = vor.u32 %v10132_v51, %v7989_v40  ;;  %v10165_v51 = vld [vmem:[#allocation9 + $0x1cc] sm:$0xf0]  ;;  %v10114_v40 = vld [vmem:[#allocation9 + $0x3c] sm:$0xf] }
 0x222   :  { %3215 = vmatpush.bf16.msra.mxu0 %v8060_v59  ;;  %3228 = vmatpush.bf16.msra.mxu1 %v8252_v62  ;;  %v8184_v62 = vor.u32 %v10180_v58, %v8181_v60  ;;  %v8109_v58 = vld [vmem:[#allocation9 + $0x1d0] sm:$0xf0] }
 0x223   :  { %3254 = vmatpush.bf16.msra.mxu3 %v8256_v20 }
 0x226   :  { %3216 = vmatpush.bf16.msra.mxu0 %v8036_v15 }
 0x227   :  { %3255 = vmatpush.bf16.msra.mxu3 %v8232_v18  ;;  %v10171_v18 = vld [vmem:[#allocation9 + $0x1fc] sm:$0xf0] }
 0x25c   :  { %v2351_v2 = vpop.f32.mrf.mxu0  ;;  %v11039_v3 = vpop.f32.mrf.mxu1 }
 0x25d   :  { %v2352_v34 = vadd.f32 %v2351_v2, %v10897_v57  ;;  %v10150_v2 = vld [vmem:[#allocation9 + $0x15c] sm:$0xf] }
 0x25e   :  { %v8064_v8 = vor.u32 %v10150_v2, %v8061_v4  ;;  %v7963_v4 = vld [vmem:[#allocation9 + $0x98] sm:$0xf] }
 0x25f   :  { %v2365_v0 = vadd.f32 %v11039_v3, %v2352_v34  ;;  %v10195_v3 = vld [vmem:[#allocation9 + $0x2bc] sm:$0xf0]  ;;  %v10138_v34 = vld [vmem:[#allocation9 + $0xfc] sm:$0xf] }
 0x260   :  { %3241 = vmatpush.bf16.msra.mxu2 %v8064_v8  ;;  %v8228_v41 = vor.u32 %v10195_v3, %v8227_v17  ;;  %v10129_v8 = vld [vmem:[#allocation9 + $0xac] sm:$0xf0]  ;;  %v10126_v17 = vld [vmem:[#allocation9 + $0x9c] sm:$0xf]  ;;  %v8156_v3 = vor.u32 %v10177_v11, %v8155_v5  ;;  %v8085_v11 = vld [vmem:[#allocation9 + $0x1a0] sm:$0xf0] }
 0x261   :  { %v7964_v20 = vor.u32 %v10129_v8, %v7963_v4  ;;  %v10159_v4 = vld [vmem:[#allocation9 + $0x19c] sm:$0xf0]  ;;  %v10108_v8 = vld [vmem:[#allocation9 + $0xc] sm:$0xf] }
 0x262   :  { %3229 = vmatpush.bf16.msra.mxu1 %v8228_v41 }
 0x263   :  { %v2377_v28 = vpop.f32.mrf.mxu2  ;;  %v2390_v32 = vpop.f32.mrf.mxu3 }
 0x264   :  { %v2378_v35 = vadd.f32 %v2377_v28, %v10894_v54  ;;  %v2353_v38 = vpop.f32.mrf.mxu0  ;;  %v2366_v39 = vpop.f32.mrf.mxu1  ;;  %v8011_v28 = vld [vmem:[#allocation9 + $0xf8] sm:$0xf]  ;;  %3242 = vmatpush.bf16.msra.mxu2 %v8040_v36 }
 0x265   :  { %v8012_v31 = vor.u32 %v10141_v30, %v8011_v28  ;;  %v8013_v38 = vld [vmem:[#allocation9 + $0x110] sm:$0xf0]  ;;  %v10186_v39 = vld [vmem:[#allocation9 + $0x27c] sm:$0xf] }
 0x266   :  { %v2391_v50 = vadd.f32 %v2390_v32, %v2378_v35  ;;  %v8203_v32 = vld [vmem:[#allocation9 + $0x278] sm:$0xf]  ;;  %v8016_v43 = vor.u32 %v10138_v34, %v8013_v38  ;;  %v8208_v44 = vor.u32 %v10186_v39, %v8205_v42  ;;  %v8133_v38 = vld [vmem:[#allocation9 + $0x200] sm:$0xf0] }
 0x267   :  { %v8204_v35 = vor.u32 %v10189_v33, %v8203_v32  ;;  %3217 = vmatpush.bf16.msra.mxu0 %v8012_v31  ;;  %v10120_v33 = vld [vmem:[#allocation9 + $0x6c] sm:$0xf] }
 0x268   :  { %v2500_v1 = vrot.slane %v2391_v50, 7  ;;  %v10183_v50 = vld [vmem:[#allocation9 + $0x25c] sm:$0xf0]  ;;  %3243 = vmatpush.bf16.msra.mxu2 %v8016_v43  ;;  %3256 = vmatpush.bf16.msra.mxu3 %v8208_v44 }
 0x269   :  { %3230 = vmatpush.bf16.msra.mxu1 %v8204_v35  ;;  %v8180_v53 = vor.u32 %v10183_v50, %v8179_v48  ;;  %v10168_v35 = vld [vmem:[#allocation9 + $0x1ec] sm:$0xf]  ;;  %v8107_v50 = vld [vmem:[#allocation9 + $0x1b8] sm:$0xf] }
 0x26a   :  { %v2501_v9 = vsel %vm855_vm0, %v2365_v0, %v2500_v1  ;;  %v8136_v44 = vor.u32 %v10168_v35, %v8133_v38 }
 0x26b   :  { %v2503_v12 = vadd.f32 %v2501_v9, %v11046_v56  ;;  %v2379_v61 = vpop.f32.mrf.mxu2  ;;  %v2392_v14 = vpop.f32.mrf.mxu3  ;;  %v2524_v9 = vrot.slane %v11046_v56, 2  ;;  %3218 = vmatpush.bf16.msra.mxu0 %v7988_v49  ;;  %v7916_v49 = vor.u32 %v10117_v46, %v7915_v45 }
 0x26c   :  { %v2403_v25 = vpop.f32.mrf.mxu0  ;;  %v11051_v26 = vpop.f32.mrf.mxu1  ;;  %3244 = vmatpush.bf16.msra.mxu2 %v7992_v55  ;;  %v10174_v61 = vld [vmem:[#allocation9 + $0x21c] sm:$0xf]  ;;  %v8157_v14 = vld [vmem:[#allocation9 + $0x230] sm:$0xf0]  ;;  %3257 = vmatpush.bf16.msra.mxu3 %v8184_v62 }
 0x26d   :  { %v7877_v37 = vmul.f32 -1.442695, %v2503_v12  ;;  %v2404_v63 = vadd.f32 %v2403_v25, %v10912_v21  ;;  %3231 = vmatpush.bf16.msra.mxu1 %v8180_v53  ;;  %v7965_v12 = vld [vmem:[#allocation9 + $0xb0] sm:$0xf0]  ;;  %v8160_v19 = vor.u32 %v10174_v61, %v8157_v14  ;;  %v10123_v25 = vld [vmem:[#allocation9 + $0x7c] sm:$0xf0] }
 0x26e   :  { %v7968_v16 = vor.u32 %v10126_v17, %v7965_v12  ;;  %v7940_v27 = vor.u32 %v10123_v25, %v7939_v22  ;;  %v7917_v53 = vld [vmem:[#allocation9 + $0x50] sm:$0xf0]  ;;  %v10162_v55 = vld [vmem:[#allocation9 + $0x1bc] sm:$0xf] }
 0x26f   :  { %10617 = vpow2.f32 %v7877_v37  ;;  %v2417_v15 = vadd.f32 %v11051_v26, %v2404_v63  ;;  %3219 = vmatpush.bf16.msra.mxu0 %v7964_v20  ;;  %v8131_v37 = vld [vmem:[#allocation9 + $0x1e8] sm:$0xf]  ;;  %v7941_v26 = vld [vmem:[#allocation9 + $0x80] sm:$0xf0]  ;;  %v7920_v60 = vor.u32 %v10114_v40, %v7917_v53  ;;  %v8112_v63 = vor.u32 %v10162_v55, %v8109_v58  ;;  %v10156_v20 = vld [vmem:[#allocation9 + $0x18c] sm:$0xf] }
 0x270   :  { %3245 = vmatpush.bf16.msra.mxu2 %v7968_v16  ;;  %v8132_v32 = vor.u32 %v10171_v18, %v8131_v37  ;;  %3258 = vmatpush.bf16.msra.mxu3 %v8160_v19  ;;  %v7944_v34 = vor.u32 %v10120_v33, %v7941_v26  ;;  %v8088_v61 = vor.u32 %v10156_v20, %v8085_v11  ;;  %v8067_v53 = vld [vmem:[#allocation9 + $0x160] sm:$0xf]  ;;  %v10154_v55 = vld [vmem:[#allocation9 + $0x174] sm:$0xf0]  ;;  %v10148_v20 = vld [vmem:[#allocation9 + $0x144] sm:$0xf0] }
 0x271   :  { %3232 = vmatpush.bf16.msra.mxu1 %v8156_v3 }
 0x273   :  { %v2429_v52 = vpop.f32.mrf.mxu2  ;;  %v2442_v23 = vpop.f32.mrf.mxu3  ;;  %3220 = vmatpush.bf16.msra.mxu0 %v7940_v27 }
 0x274   :  { %v2430_v0 = vadd.f32 %v2429_v52, %v10909_v13  ;;  %v2405_v1 = vpop.f32.mrf.mxu0  ;;  %v2418_v59 = vpop.f32.mrf.mxu1  ;;  %3246 = vmatpush.bf16.msra.mxu2 %v7944_v34  ;;  %3259 = vmatpush.bf16.msra.mxu3 %v8136_v44  ;;  %v2557_v34 = vrot.slane %v11046_v56, 4 }
 0x275   :  { %v10618_v2 = vpop.eup %10617  ;;  %3233 = vmatpush.bf16.msra.mxu1 %v8132_v32  ;;  %v7891_v1 = vld [vmem:[#allocation9 + $0x8] sm:$0xf]  ;;  %v10111_v59 = vld [vmem:[#allocation9 + $0x1c] sm:$0xf0] }
 0x276   :  { %v11055_v6 = vadd.f32 1.0, %v10618_v2  ;;  %v2443_v7 = vadd.f32 %v2442_v23, %v2430_v0  ;;  %v8108_v23 = vor.u32 %v10165_v51, %v8107_v50  ;;  %v7892_v62 = vor.u32 %v10111_v59, %v7891_v1  ;;  %v8083_v2 = vld [vmem:[#allocation9 + $0x188] sm:$0xf]  ;;  %v8069_v1 = vld [vmem:[#allocation9 + $0x178] sm:$0xf0] }
 0x277   :  { %3221 = vmatpush.bf16.msra.mxu0 %v7916_v49  ;;  %v10199_v59 = vld [vmem:[#allocation9 + $0x2e4] sm:$0xf] }
 0x278   :  { %10619 = vrcp.f32 %v11055_v6  ;;  %v2528_v41 = vrot.slane %v2443_v7, 7  ;;  %3247 = vmatpush.bf16.msra.mxu2 %v7920_v60  ;;  %v8084_v7 = vor.u32 %v10159_v4, %v8083_v2  ;;  %3260 = vmatpush.bf16.msra.mxu3 %v8112_v63  ;;  %v2519_v19 = vand.u32 2147483648, %v11055_v6  ;;  %v8259_v60 = vld [vmem:[#allocation9 + $0x2e0] sm:$0xf]  ;;  %v10202_v63 = vld [vmem:[#allocation9 + $0x2f4] sm:$0xf0] }
 0x279   :  { %3234 = vmatpush.bf16.msra.mxu1 %v8108_v23  ;;  %vm2513_vm4 = vweird.f32 %v11055_v6  ;;  %v2517_v27 = vand.u32 2147483647, %v11055_v6 }
 0x27a   :  { %v2529_v36 = vsel %vm855_vm0, %v2417_v15, %v2528_v41 }
 0x27b   :  { %v2531_v28 = vadd.f32 %v2529_v36, %v2524_v9  ;;  %v2431_v30 = vpop.f32.mrf.mxu2  ;;  %v2444_v31 = vpop.f32.mrf.mxu3  ;;  %v7893_v9 = vld [vmem:[#allocation9 + $0x20] sm:$0xf0]  ;;  %3222 = vmatpush.bf16.msra.mxu0 %v7892_v62  ;;  %vm2518_vm6 = vcmp.eq.f32.partialorder %v2517_v27, 8.507059e+37  ;;  %v8261_v62 = vld [vmem:[#allocation9 + $0x2f8] sm:$0xf0] }
 0x27c   :  { %v7896_v12 = vor.u32 %v10108_v8, %v7893_v9  ;;  %3261 = vmatpush.bf16.msra.mxu3 %v8088_v61  ;;  %v2520_v30 = vor.u32 1.1754944e-38, %v2519_v19  ;;  %v8043_v9 = vld [vmem:[#allocation9 + $0x130] sm:$0xf]  ;;  %v10145_v61 = vld [vmem:[#allocation9 + $0x134] sm:$0xf] }
 0x27d   :  { %v7878_v39 = vmul.f32 -1.442695, %v2531_v28  ;;  %v2455_v42 = vpop.f32.mrf.mxu0  ;;  %v2468_v43 = vpop.f32.mrf.mxu1  ;;  %3235 = vmatpush.bf16.msra.mxu1 %v8084_v7  ;;  %v8260_v7 = vor.u32 %v10202_v63, %v8259_v60  ;;  %v10175_v60 = vld [vmem:[#allocation9 + $0x224] sm:$0xf]  ;;  %v8165_v63 = vld [vmem:[#allocation9 + $0x238] sm:$0xf0] }
 0x27e   :  { %v10620_v48 = vpop.eup %10619  ;;  %v2456_v15 = vadd.f32 %v2455_v42, %v10929_v29  ;;  %3248 = vmatpush.bf16.msra.mxu2 %v7896_v12  ;;  %v10196_v12 = vld [vmem:[#allocation9 + $0x2c4] sm:$0xf0] }
 0x27f   :  { %10621 = vpow2.f32 %v7878_v39  ;;  %v2509_v52 = vmul.f32 %v10620_v48, %v11055_v6  ;;  %vm2514_vm3 = vweird.f32 %v10620_v48 }
 0x280   :  { %vm2515_vm5 = vmor %vm2513_vm4, %vm2514_vm3  ;;  %v2469_v28 = vadd.f32 %v2468_v43, %v2456_v15  ;;  %v10193_v15 = vld [vmem:[#allocation9 + $0x2b4] sm:$0xf] }
 0x281   :  { %v2510_v0 = vsub.f32 1.0, %v2509_v52 }
 0x283   :  { %v2511_v5 = vmul.f32 %v10620_v48, %v2510_v0  ;;  %v10151_v0 = vld [vmem:[#allocation9 + $0x164] sm:$0xf] }
 0x284   :  { %v2481_v17 = vpop.f32.mrf.mxu2  ;;  %v2494_v3 = vpop.f32.mrf.mxu3  ;;  %v8072_v11 = vor.u32 %v10151_v0, %v8069_v1 }
 0x285   :  { %v10622_v14 = vpop.eup %10621  ;;  %v2482_v41 = vadd.f32 %v2481_v17, %v10933_v47  ;;  %v2512_v16 = vadd.f32 %v10620_v48, %v2511_v5  ;;  %v2457_v22 = vpop.f32.mrf.mxu0  ;;  %v8068_v5 = vor.u32 %v10154_v55, %v8067_v53  ;;  %v8264_v17 = vor.u32 %v10199_v59, %v8261_v62  ;;  %v10127_v53 = vld [vmem:[#allocation9 + $0xa4] sm:$0xf]  ;;  %v7973_v55 = vld [vmem:[#allocation9 + $0xb8] sm:$0xf0]  ;;  %v7947_v59 = vld [vmem:[#allocation9 + $0x70] sm:$0xf] }
 0x286   :  { %v2470_v25 = vpop.f32.mrf.mxu1  ;;  %v2535_v36 = vadd.f32 1.0, %v10622_v14  ;;  %v8045_v14 = vld [vmem:[#allocation9 + $0x148] sm:$0xf0]  ;;  %v8019_v22 = vld [vmem:[#allocation9 + $0x100] sm:$0xf] }
 0x287   :  { %v2495_v37 = vadd.f32 %v2494_v3, %v2482_v41  ;;  %v2516_v18 = vsel %vm2515_vm5, %v10620_v48, %v2512_v16  ;;  %v8235_v3 = vld [vmem:[#allocation9 + $0x2b0] sm:$0xf]  ;;  %v8237_v41 = vld [vmem:[#allocation9 + $0x2c8] sm:$0xf0]  ;;  %v8044_v16 = vor.u32 %v10148_v20, %v8043_v9  ;;  %v10142_v25 = vld [vmem:[#allocation9 + $0x114] sm:$0xf0] }
 0x288   :  { %10623 = vrcp.f32 %v2535_v36  ;;  %v2521_v32 = vsel %vm2518_vm6, %v2520_v30, %v2516_v18  ;;  %v2547_v45 = vand.u32 2147483648, %v2535_v36  ;;  %v2545_v48 = vand.u32 2147483647, %v2535_v36  ;;  %v10190_v18 = vld [vmem:[#allocation9 + $0x294] sm:$0xf0] }
 0x289   :  { %v2553_v31 = vrot.slane %v2495_v37, 7  ;;  %vm2541_vm8 = vweird.f32 %v2535_v36  ;;  %v8236_v19 = vor.u32 %v10196_v12, %v8235_v3  ;;  %v8240_v27 = vor.u32 %v10193_v15, %v8237_v41  ;;  %v8211_v37 = vld [vmem:[#allocation9 + $0x280] sm:$0xf]  ;;  %v8021_v30 = vld [vmem:[#allocation9 + $0x118] sm:$0xf0] }
 0x28a   :  { %v2548_v49 = vor.u32 1.1754944e-38, %v2547_v45  ;;  %vm2546_vm11 = vcmp.eq.f32.partialorder %v2545_v48, 8.507059e+37  ;;  %v7997_v45 = vld [vmem:[#allocation9 + $0xe8] sm:$0xf0]  ;;  %v10124_v62 = vld [vmem:[#allocation9 + $0x84] sm:$0xf0] }
 0x28b   :  { %v2554_v33 = vsel %vm855_vm0, %v2469_v28, %v2553_v31  ;;  %v10139_v28 = vld [vmem:[#allocation9 + $0x104] sm:$0xf]  ;;  %v8189_v48 = vld [vmem:[#allocation9 + $0x268] sm:$0xf0]  ;;  %v10121_v9 = vld [vmem:[#allocation9 + $0x74] sm:$0xf]  ;;  %v7948_v3 = vor.u32 %v10124_v62, %v7947_v59 }
 0x28c   :  { %v2556_v26 = vmul.f32 %v2554_v33, %v2521_v32  ;;  %v2483_v6 = vpop.f32.mrf.mxu2  ;;  %v2496_v35 = vpop.f32.mrf.mxu3  ;;  %v10187_v31 = vld [vmem:[#allocation9 + $0x284] sm:$0xf]  ;;  %v8213_v32 = vld [vmem:[#allocation9 + $0x298] sm:$0xf0]  ;;  %v8020_v33 = vor.u32 %v10142_v25, %v8019_v22  ;;  %v7949_v20 = vld [vmem:[#allocation9 + $0x88] sm:$0xf0] }
 0x28d   :  { %v10136_v6 = vld [vmem:[#allocation9 + $0xe4] sm:$0xf0]  ;;  %v8024_v35 = vor.u32 %v10139_v28, %v8021_v30  ;;  %v7952_v15 = vor.u32 %v10121_v9, %v7949_v20  ;;  %v10115_v22 = vld [vmem:[#allocation9 + $0x44] sm:$0xf]  ;;  %v7925_v25 = vld [vmem:[#allocation9 + $0x58] sm:$0xf0] }
 0x28e   :  { %v10624_v38 = vpop.eup %10623  ;;  %v2559_v42 = vadd.f32 %v2557_v34, %v2556_v26  ;;  %v8212_v26 = vor.u32 %v10190_v18, %v8211_v37  ;;  %v7995_v34 = vld [vmem:[#allocation9 + $0xd0] sm:$0xf]  ;;  %v10112_v30 = vld [vmem:[#allocation9 + $0x24] sm:$0xf0]  ;;  %v8417_v59 = vld [vmem:[#allocation9 + $0x138] sm:$0xf0] }
 0x28f   :  { %v2537_v39 = vmul.f32 %v10624_v38, %v2535_v36  ;;  %vm2542_vm7 = vweird.f32 %v10624_v38  ;;  %v8048_v36 = vor.u32 %v10145_v61, %v8045_v14  ;;  %v7923_v61 = vld [vmem:[#allocation9 + $0x40] sm:$0xf]  ;;  %v10118_v14 = vld [vmem:[#allocation9 + $0x54] sm:$0xf0]  ;;  %v7899_v28 = vld [vmem:[#allocation9 + $0x10] sm:$0xf] }
 0x290   :  { %10625 = vtanh.f32 %v2559_v42  ;;  %vm2543_vm10 = vmor %vm2541_vm8, %vm2542_vm7  ;;  %v10184_v42 = vld [vmem:[#allocation9 + $0x264] sm:$0xf0]  ;;  %v7924_v37 = vor.u32 %v10118_v14, %v7923_v61  ;;  %v8391_v9 = vld [vmem:[#allocation9 + $0xf0] sm:$0xf] }
 0x291   :  { %v2538_v44 = vsub.f32 1.0, %v2537_v39  ;;  %v8187_v39 = vld [vmem:[#allocation9 + $0x250] sm:$0xf]  ;;  %v10236_v20 = vld [vmem:[#allocation9 + $0x104] sm:$0xf0] }
 0x292   :  { %v8393_v61 = vld [vmem:[#allocation9 + $0x108] sm:$0xf0] }
 0x293   :  { %v2539_v46 = vmul.f32 %v10624_v38, %v2538_v44  ;;  %v10133_v44 = vld [vmem:[#allocation9 + $0xd4] sm:$0xf] }
 0x295   :  { %v2540_v43 = vadd.f32 %v10624_v38, %v2539_v46  ;;  %v10181_v46 = vld [vmem:[#allocation9 + $0x254] sm:$0xf] }
 0x296   :  { %v10626_v56 = vpop.eup %10625 }
 0x297   :  { %v2544_v50 = vsel %vm2543_vm10, %v10624_v38, %v2540_v43  ;;  %v8216_v38 = vor.u32 %v10187_v31, %v8213_v32  ;;  %v7996_v43 = vor.u32 %v10136_v6, %v7995_v34  ;;  %v7928_v31 = vor.u32 %v10115_v22, %v7925_v25  ;;  %v10109_v34 = vld [vmem:[#allocation9 + $0x14] sm:$0xf]  ;;  %v7901_v6 = vld [vmem:[#allocation9 + $0x28] sm:$0xf0]  ;;  %v8367_v22 = vld [vmem:[#allocation9 + $0xc0] sm:$0xf] }
 0x298   :  { %v2549_v51 = vsel %vm2546_vm11, %v2548_v49, %v2544_v50  ;;  %v8188_v49 = vor.u32 %v10184_v42, %v8187_v39  ;;  %v7971_v50 = vld [vmem:[#allocation9 + $0xa0] sm:$0xf]  ;;  %v7900_v39 = vor.u32 %v10112_v30, %v7899_v28  ;;  %v10230_v25 = vld [vmem:[#allocation9 + $0xd4] sm:$0xf0]  ;;  %v8369_v28 = vld [vmem:[#allocation9 + $0xd8] sm:$0xf0] }
 0x299   :  { %v2561_v40 = vsub.f32 1.0, %v2549_v51  ;;  %v2563_v23 = vmul.f32 %v2549_v51, %v11012_v10  ;;  %v10130_v51 = vld [vmem:[#allocation9 + $0xb4] sm:$0xf0] }
 0x29a   :  { %v7972_v0 = vor.u32 %v10130_v51, %v7971_v50  ;;  %v10296_v50 = vld [vmem:[#allocation9 + $0x2e4] sm:$0xf0]  ;;  %v10245_v51 = vld [vmem:[#allocation9 + $0x154] sm:$0xf] }
 0x29b   :  { %v2562_v52 = vmul.f32 %v10626_v56, %v2561_v40  ;;  %v8000_v40 = vor.u32 %v10133_v44, %v7997_v45  ;;  %v8192_v56 = vor.u32 %v10181_v46, %v8189_v48  ;;  %v7904_v44 = vor.u32 %v10109_v34, %v7901_v6  ;;  %v8439_v46 = vld [vmem:[#allocation9 + $0x150] sm:$0xf]  ;;  %v10248_v48 = vld [vmem:[#allocation9 + $0x164] sm:$0xf0] }
 0x29c   :  { %v8343_v34 = vld [vmem:[#allocation9 + $0x90] sm:$0xf]  ;;  %v10224_v6 = vld [vmem:[#allocation9 + $0xa4] sm:$0xf0] }
 0x29d   :  { %v11071_v58 = vadd.f32 %v2563_v23, %v2562_v52  ;;  %v8163_v52 = vld [vmem:[#allocation9 + $0x220] sm:$0xf]  ;;  %v10178_v23 = vld [vmem:[#allocation9 + $0x234] sm:$0xf0] }
 0x29e   :  { %v8164_v1 = vor.u32 %v10178_v23, %v8163_v52  ;;  %v10293_v23 = vld [vmem:[#allocation9 + $0x2d4] sm:$0xf] }
 0x29f   :  { %2566 = vst.msk [vmem:[#allocation12 + $0x2] ss:$8 sm:$0x3] %vm10949_vm9, %v11071_v58  ;;  %v2581_v2 = vperm.slane %v11071_v58, 0  ;;  %v2582_v4 = vperm.slane %v11071_v58, 1 }
 0x2a1   :  { %v11078_v8 = vpack.c.bf16 %v2581_v2, %v2581_v2  ;;  %v11080_v10 = vpack.c.bf16 %v2582_v4, %v2582_v4  ;;  %v7976_v2 = vor.u32 %v10127_v53, %v7973_v55  ;;  %v8168_v4 = vor.u32 %v10175_v60, %v8165_v63  ;;  %v8633_v53 = vld [vmem:[#allocation9 + $0x2e8] sm:$0xf0]  ;;  %v10242_v60 = vld [vmem:[#allocation9 + $0x134] sm:$0xf0] }
 0x2a2   :  { %v8636_v55 = vor.u32 %v10293_v23, %v8633_v53  ;;  %v10266_v53 = vld [vmem:[#allocation9 + $0x1f4] sm:$0xf0] }
 0x2a3   :  { %3171 = vmatmul.bf16.vlgmr.msrb.gmra.mxu0 %v11078_v8  ;;  %3184 = vmatmul.bf16.vlgmr.msrb.gmra.mxu1 %v11080_v10 }
 0x2a4   :  { %3197 = vmatmul.bf16.vlgmr.msrb.gmra.mxu2 %v11078_v8  ;;  %3210 = vmatmul.bf16.vlgmr.msrb.gmra.mxu3 %v11080_v10 }
 0x2a5   :  { %3267 = vmatpush.bf16.msrb.mxu0 %v8068_v5  ;;  %3280 = vmatpush.bf16.msrb.mxu1 %v8260_v7  ;;  %v8139_v5 = vld [vmem:[#allocation9 + $0x1f0] sm:$0xf]  ;;  %v10172_v7 = vld [vmem:[#allocation9 + $0x204] sm:$0xf0] }
 0x2a6   :  { %3293 = vmatpush.bf16.msrb.mxu2 %v8072_v11  ;;  %3306 = vmatpush.bf16.msrb.mxu3 %v8264_v17  ;;  %v10169_v11 = vld [vmem:[#allocation9 + $0x1f4] sm:$0xf]  ;;  %v8141_v17 = vld [vmem:[#allocation9 + $0x208] sm:$0xf0]  ;;  %v8140_v12 = vor.u32 %v10172_v7, %v8139_v5  ;;  %v8609_v5 = vld [vmem:[#allocation9 + $0x2b8] sm:$0xf0] }
 0x2a7   :  { %v8144_v41 = vor.u32 %v10169_v11, %v8141_v17  ;;  %v8583_v11 = vld [vmem:[#allocation9 + $0x270] sm:$0xf]  ;;  %v8392_v17 = vor.u32 %v10236_v20, %v8391_v9  ;;  %v8297_v9 = vld [vmem:[#allocation9 + $0x48] sm:$0xf0] }
 0x2a9   :  { %3268 = vmatpush.bf16.msrb.mxu0 %v8044_v16  ;;  %3281 = vmatpush.bf16.msrb.mxu1 %v8236_v19  ;;  %v8115_v16 = vld [vmem:[#allocation9 + $0x1c0] sm:$0xf]  ;;  %v10166_v19 = vld [vmem:[#allocation9 + $0x1d4] sm:$0xf0] }
 0x2aa   :  { %3294 = vmatpush.bf16.msrb.mxu2 %v8048_v36  ;;  %3307 = vmatpush.bf16.msrb.mxu3 %v8240_v27  ;;  %v10163_v36 = vld [vmem:[#allocation9 + $0x1c4] sm:$0xf]  ;;  %v8117_v27 = vld [vmem:[#allocation9 + $0x1d8] sm:$0xf0]  ;;  %v8116_v18 = vor.u32 %v10166_v19, %v8115_v16  ;;  %v8585_v16 = vld [vmem:[#allocation9 + $0x288] sm:$0xf0] }
 0x2ab   :  { %v8120_v32 = vor.u32 %v10163_v36, %v8117_v27  ;;  %v8559_v36 = vld [vmem:[#allocation9 + $0x240] sm:$0xf]  ;;  %v8368_v27 = vor.u32 %v10230_v25, %v8367_v22 }
 0x2ad   :  { %3269 = vmatpush.bf16.msrb.mxu0 %v8020_v33  ;;  %3282 = vmatpush.bf16.msrb.mxu1 %v8212_v26  ;;  %v8091_v33 = vld [vmem:[#allocation9 + $0x190] sm:$0xf]  ;;  %v10160_v26 = vld [vmem:[#allocation9 + $0x1a4] sm:$0xf0] }
 0x2ae   :  { %3295 = vmatpush.bf16.msrb.mxu2 %v8024_v35  ;;  %3308 = vmatpush.bf16.msrb.mxu3 %v8216_v38  ;;  %v10157_v35 = vld [vmem:[#allocation9 + $0x194] sm:$0xf]  ;;  %v8093_v38 = vld [vmem:[#allocation9 + $0x1a8] sm:$0xf0]  ;;  %v8092_v42 = vor.u32 %v10160_v26, %v8091_v33  ;;  %v8561_v33 = vld [vmem:[#allocation9 + $0x258] sm:$0xf0] }
 0x2af   :  { %v8096_v45 = vor.u32 %v10157_v35, %v8093_v38  ;;  %v8344_v35 = vor.u32 %v10224_v6, %v8343_v34  ;;  %v8535_v38 = vld [vmem:[#allocation9 + $0x210] sm:$0xf]  ;;  %v10251_v34 = vld [vmem:[#allocation9 + $0x184] sm:$0xf]  ;;  %v8465_v6 = vld [vmem:[#allocation9 + $0x198] sm:$0xf0] }
 0x2b1   :  { %3270 = vmatpush.bf16.msrb.mxu0 %v7996_v43  ;;  %3283 = vmatpush.bf16.msrb.mxu1 %v8188_v49  ;;  %v8631_v43 = vld [vmem:[#allocation9 + $0x2d0] sm:$0xf]  ;;  %v8440_v49 = vor.u32 %v10248_v48, %v8439_v46  ;;  %v10269_v46 = vld [vmem:[#allocation9 + $0x214] sm:$0xf]  ;;  %v8537_v48 = vld [vmem:[#allocation9 + $0x228] sm:$0xf0] }
 0x2b2   :  { %3296 = vmatpush.bf16.msrb.mxu2 %v8000_v40  ;;  %3309 = vmatpush.bf16.msrb.mxu3 %v8192_v56  ;;  %v8441_v40 = vld [vmem:[#allocation9 + $0x168] sm:$0xf0]  ;;  %v8632_v56 = vor.u32 %v10296_v50, %v8631_v43 }
 0x2b3   :  { %3223 = vmatmul.bf16.vlgmr.msra.gmra.mxu0 %v11078_v8  ;;  %3236 = vmatmul.bf16.vlgmr.msra.gmra.mxu1 %v11080_v10  ;;  %v8444_v52 = vor.u32 %v10245_v51, %v8441_v40  ;;  %v8319_v40 = vld [vmem:[#allocation9 + $0x60] sm:$0xf] }
 0x2b4   :  { %3249 = vmatmul.bf16.vlgmr.msra.gmra.mxu2 %v11078_v8  ;;  %3262 = vmatmul.bf16.vlgmr.msra.gmra.mxu3 %v11080_v10 }
 0x2b5   :  { %3271 = vmatpush.bf16.msrb.mxu0 %v7972_v0  ;;  %3284 = vmatpush.bf16.msrb.mxu1 %v8164_v1  ;;  %v10290_v0 = vld [vmem:[#allocation9 + $0x2b4] sm:$0xf0]  ;;  %v10239_v1 = vld [vmem:[#allocation9 + $0x124] sm:$0xf] }
 0x2b6   :  { %3297 = vmatpush.bf16.msrb.mxu2 %v7976_v2  ;;  %3310 = vmatpush.bf16.msrb.mxu3 %v8168_v4  ;;  %v8420_v2 = vor.u32 %v10239_v1, %v8417_v59  ;;  %v10287_v4 = vld [vmem:[#allocation9 + $0x2a4] sm:$0xf]  ;;  %v8295_v59 = vld [vmem:[#allocation9 + $0x30] sm:$0xf] }
 0x2b7   :  { %v8612_v7 = vor.u32 %v10287_v4, %v8609_v5  ;;  %v10260_v5 = vld [vmem:[#allocation9 + $0x1c4] sm:$0xf0] }
 0x2b9   :  { %3272 = vmatpush.bf16.msrb.mxu0 %v7948_v3  ;;  %3285 = vmatpush.bf16.msrb.mxu1 %v8140_v12  ;;  %v10284_v3 = vld [vmem:[#allocation9 + $0x284] sm:$0xf0]  ;;  %v10233_v12 = vld [vmem:[#allocation9 + $0xf4] sm:$0xf] }
 0x2ba   :  { %3298 = vmatpush.bf16.msrb.mxu2 %v7952_v15  ;;  %3311 = vmatpush.bf16.msrb.mxu3 %v8144_v41  ;;  %v8584_v14 = vor.u32 %v10284_v3, %v8583_v11  ;;  %v8396_v15 = vor.u32 %v10233_v12, %v8393_v61  ;;  %v10281_v41 = vld [vmem:[#allocation9 + $0x274] sm:$0xf]  ;;  %v8489_v3 = vld [vmem:[#allocation9 + $0x1c8] sm:$0xf0] }
 0x2bb   :  { %v8588_v19 = vor.u32 %v10281_v41, %v8585_v16  ;;  %v2577_v61 = vld [vmem:[%s2576_s12] ss:$8 sm:$0xf] }
 0x2bd   :  { %3273 = vmatpush.bf16.msrb.mxu0 %v7924_v37  ;;  %3286 = vmatpush.bf16.msrb.mxu1 %v8116_v18  ;;  %v10278_v37 = vld [vmem:[#allocation9 + $0x254] sm:$0xf0]  ;;  %v10227_v18 = vld [vmem:[#allocation9 + $0xc4] sm:$0xf] }
 0x2be   :  { %3299 = vmatpush.bf16.msrb.mxu2 %v7928_v31  ;;  %3312 = vmatpush.bf16.msrb.mxu3 %v8120_v32  ;;  %v8560_v30 = vor.u32 %v10278_v37, %v8559_v36  ;;  %v8372_v31 = vor.u32 %v10227_v18, %v8369_v28  ;;  %v10275_v32 = vld [vmem:[#allocation9 + $0x244] sm:$0xf]  ;;  %v8271_v36 = vld [vmem:[#allocation9] sm:$0xf]  ;;  %v10254_v28 = vld [vmem:[#allocation9 + $0x194] sm:$0xf0] }
 0x2bf   :  { %v8564_v26 = vor.u32 %v10275_v32, %v8561_v33  ;;  %v8463_v37 = vld [vmem:[#allocation9 + $0x180] sm:$0xf] }
 0x2c0   :  { %v8464_v33 = vor.u32 %v10254_v28, %v8463_v37  ;;  %v10231_v28 = vld [vmem:[#allocation9 + $0xdc] sm:$0xf0] }
 0x2c1   :  { %3274 = vmatpush.bf16.msrb.mxu0 %v7900_v39  ;;  %3287 = vmatpush.bf16.msrb.mxu1 %v8092_v42  ;;  %v10272_v39 = vld [vmem:[#allocation9 + $0x224] sm:$0xf0]  ;;  %v10221_v42 = vld [vmem:[#allocation9 + $0x94] sm:$0xf] }
 0x2c2   :  { %3300 = vmatpush.bf16.msrb.mxu2 %v7904_v44  ;;  %3313 = vmatpush.bf16.msrb.mxu3 %v8096_v45  ;;  %v8536_v44 = vor.u32 %v10272_v39, %v8535_v38  ;;  %v8345_v45 = vld [vmem:[#allocation9 + $0xa8] sm:$0xf0]  ;;  %v8468_v39 = vor.u32 %v10251_v34, %v8465_v6 }
 0x2c3   :  { %v8348_v43 = vor.u32 %v10221_v42, %v8345_v45  ;;  %v10249_v42 = vld [vmem:[#allocation9 + $0x16c] sm:$0xf0] }
 0x2c4   :  { %3275 = vmatmul.bf16.vlgmr.msrb.gmra.mxu0 %v11078_v8  ;;  %3288 = vmatmul.bf16.vlgmr.msrb.gmra.mxu1 %v11080_v10  ;;  %v10297_v45 = vld [vmem:[#allocation9 + $0x2ec] sm:$0xf0] }
 0x2c5   :  { %3301 = vmatmul.bf16.vlgmr.msrb.gmra.mxu2 %v11078_v8  ;;  %3314 = vmatmul.bf16.vlgmr.msrb.gmra.mxu3 %v11080_v10  ;;  %v8415_v8 = vld [vmem:[#allocation9 + $0x120] sm:$0xf] }
 0x2c6   :  { %3984 = vmatpush.bf16.msra.mxu0 %v8440_v49  ;;  %3997 = vmatpush.bf16.msra.mxu1 %v8632_v56  ;;  %v8607_v10 = vld [vmem:[#allocation9 + $0x2a0] sm:$0xf]  ;;  %v8416_v63 = vor.u32 %v10242_v60, %v8415_v8  ;;  %v8540_v49 = vor.u32 %v10269_v46, %v8537_v48  ;;  %v10218_v56 = vld [vmem:[#allocation9 + $0x74] sm:$0xf0]  ;;  %v8321_v8 = vld [vmem:[#allocation9 + $0x78] sm:$0xf0] }
 0x2c7   :  { %4010 = vmatpush.bf16.msra.mxu2 %v8444_v52  ;;  %4023 = vmatpush.bf16.msra.mxu3 %v8636_v55  ;;  %v8608_v62 = vor.u32 %v10290_v0, %v8607_v10  ;;  %v8511_v52 = vld [vmem:[#allocation9 + $0x1e0] sm:$0xf]  ;;  %v8320_v23 = vor.u32 %v10218_v56, %v8319_v40  ;;  %v10215_v55 = vld [vmem:[#allocation9 + $0x64] sm:$0xf]  ;;  %v8513_v0 = vld [vmem:[#allocation9 + $0x1f8] sm:$0xf0] }
 0x2c8   :  { %v8512_v60 = vor.u32 %v10266_v53, %v8511_v52  ;;  %v8324_v10 = vor.u32 %v10215_v55, %v8321_v8  ;;  %v8449_v40 = vld [vmem:[#allocation9 + $0x170] sm:$0xf0]  ;;  %v10294_v52 = vld [vmem:[#allocation9 + $0x2dc] sm:$0xf]  ;;  %v8423_v53 = vld [vmem:[#allocation9 + $0x128] sm:$0xf] }
 0x2ca   :  { %3985 = vmatpush.bf16.msra.mxu0 %v8416_v63  ;;  %3998 = vmatpush.bf16.msra.mxu1 %v8608_v62  ;;  %v10263_v63 = vld [vmem:[#allocation9 + $0x1e4] sm:$0xf]  ;;  %v10212_v62 = vld [vmem:[#allocation9 + $0x44] sm:$0xf0] }
 0x2cb   :  { %4011 = vmatpush.bf16.msra.mxu2 %v8420_v2  ;;  %4024 = vmatpush.bf16.msra.mxu3 %v8612_v7  ;;  %v8516_v1 = vor.u32 %v10263_v63, %v8513_v0  ;;  %v8487_v2 = vld [vmem:[#allocation9 + $0x1b0] sm:$0xf]  ;;  %v8296_v4 = vor.u32 %v10212_v62, %v8295_v59  ;;  %v10209_v7 = vld [vmem:[#allocation9 + $0x34] sm:$0xf] }
 0x2cc   :  { %v8488_v20 = vor.u32 %v10260_v5, %v8487_v2  ;;  %v8300_v11 = vor.u32 %v10209_v7, %v8297_v9  ;;  %v10240_v2 = vld [vmem:[#allocation9 + $0x12c] sm:$0xf] }
 0x2cd   :  { %v10288_v5 = vld [vmem:[#allocation9 + $0x2ac] sm:$0xf] }
 0x2ce   :  { %3986 = vmatpush.bf16.msra.mxu0 %v8392_v17  ;;  %3999 = vmatpush.bf16.msra.mxu1 %v8584_v14  ;;  %v10257_v17 = vld [vmem:[#allocation9 + $0x1b4] sm:$0xf]  ;;  %v2578_v14 = vld [vmem:[%s2576_s12] ss:$8 sm:$0x30] }
 0x2cf   :  { %4012 = vmatpush.bf16.msra.mxu2 %v8396_v15  ;;  %4025 = vmatpush.bf16.msra.mxu3 %v8588_v19  ;;  %v8492_v41 = vor.u32 %v10257_v17, %v8489_v3  ;;  %v11105_v38 = vor.u32 %v2578_v14, %v2577_v61  ;;  %v10237_v61 = vld [vmem:[#allocation9 + $0x10c] sm:$0xf0] }
 0x2d2   :  { %3987 = vmatpush.bf16.msra.mxu0 %v8368_v27  ;;  %4000 = vmatpush.bf16.msra.mxu1 %v8560_v30  ;;  %v10206_v27 = vld [vmem:[#allocation9 + $0x14] sm:$0xf0]  ;;  %v10203_v30 = vld [vmem:[#allocation9 + $0x4] sm:$0xf] }
 0x2d3   :  { %4013 = vmatpush.bf16.msra.mxu2 %v8372_v31  ;;  %4026 = vmatpush.bf16.msra.mxu3 %v8564_v26  ;;  %v8272_v18 = vor.u32 %v10206_v27, %v8271_v36  ;;  %v8273_v31 = vld [vmem:[#allocation9 + $0x18] sm:$0xf0]  ;;  %v8593_v36 = vld [vmem:[#allocation9 + $0x290] sm:$0xf0] }
 0x2d4   :  { %v8276_v26 = vor.u32 %v10203_v30, %v8273_v31  ;;  %v8567_v30 = vld [vmem:[#allocation9 + $0x248] sm:$0xf] }
 0x2d6   :  { %3988 = vmatpush.bf16.msra.mxu0 %v8344_v35  ;;  %4001 = vmatpush.bf16.msra.mxu1 %v8536_v44  ;;  %v8447_v35 = vld [vmem:[#allocation9 + $0x158] sm:$0xf] }
 0x2d7   :  { %4014 = vmatpush.bf16.msra.mxu2 %v8348_v43  ;;  %4027 = vmatpush.bf16.msra.mxu3 %v8540_v49  ;;  %v8639_v44 = vld [vmem:[#allocation9 + $0x2d8] sm:$0xf]  ;;  %v8448_v43 = vor.u32 %v10249_v42, %v8447_v35  ;;  %v10276_v42 = vld [vmem:[#allocation9 + $0x24c] sm:$0xf] }
 0x2d8   :  { %v8640_v49 = vor.u32 %v10297_v45, %v8639_v44  ;;  %v8569_v44 = vld [vmem:[#allocation9 + $0x260] sm:$0xf0] }
 0x2da   :  { %3989 = vmatpush.bf16.msra.mxu0 %v8320_v23  ;;  %4002 = vmatpush.bf16.msra.mxu1 %v8512_v60  ;;  %v8641_v23 = vld [vmem:[#allocation9 + $0x2f0] sm:$0xf0]  ;;  %v10243_v60 = vld [vmem:[#allocation9 + $0x13c] sm:$0xf0] }
 0x2db   :  { %4015 = vmatpush.bf16.msra.mxu2 %v8324_v10  ;;  %4028 = vmatpush.bf16.msra.mxu3 %v8516_v1  ;;  %v8644_v8 = vor.u32 %v10294_v52, %v8641_v23  ;;  %v8615_v10 = vld [vmem:[#allocation9 + $0x2a8] sm:$0xf]  ;;  %v8424_v59 = vor.u32 %v10243_v60, %v8423_v53  ;;  %v8543_v52 = vld [vmem:[#allocation9 + $0x218] sm:$0xf]  ;;  %v10273_v60 = vld [vmem:[#allocation9 + $0x22c] sm:$0xf0] }
 0x2de   :  { %3990 = vmatpush.bf16.msra.mxu0 %v8296_v4  ;;  %4003 = vmatpush.bf16.msra.mxu1 %v8488_v20  ;;  %v8425_v4 = vld [vmem:[#allocation9 + $0x140] sm:$0xf0] }
 0x2df   :  { %4016 = vmatpush.bf16.msra.mxu2 %v8300_v11  ;;  %4029 = vmatpush.bf16.msra.mxu3 %v8492_v41  ;;  %v8428_v20 = vor.u32 %v10240_v2, %v8425_v4  ;;  %v8617_v11 = vld [vmem:[#allocation9 + $0x2c0] sm:$0xf0]  ;;  %v10285_v41 = vld [vmem:[#allocation9 + $0x28c] sm:$0xf0] }
 0x2e0   :  { %v8620_v3 = vor.u32 %v10288_v5, %v8617_v11  ;;  %v8327_v5 = vld [vmem:[#allocation9 + $0x68] sm:$0xf] }
 0x2e2   :  { %3991 = vmatpush.bf16.msra.mxu0 %v8272_v18  ;;  %4004 = vmatpush.bf16.msra.mxu1 %v8464_v33  ;;  %v8375_v18 = vld [vmem:[#allocation9 + $0xc8] sm:$0xf]  ;;  %v10228_v33 = vld [vmem:[#allocation9 + $0xcc] sm:$0xf] }
 0x2e3   :  { %4017 = vmatpush.bf16.msra.mxu2 %v8276_v26  ;;  %4030 = vmatpush.bf16.msra.mxu3 %v8468_v39  ;;  %v8376_v31 = vor.u32 %v10231_v28, %v8375_v18  ;;  %v8377_v26 = vld [vmem:[#allocation9 + $0xe0] sm:$0xf0]  ;;  %v8303_v18 = vld [vmem:[#allocation9 + $0x38] sm:$0xf]  ;;  %v10213_v28 = vld [vmem:[#allocation9 + $0x4c] sm:$0xf0] }
 0x2e4   :  { %v8380_v39 = vor.u32 %v10228_v33, %v8377_v26  ;;  %v10261_v33 = vld [vmem:[#allocation9 + $0x1cc] sm:$0xf0]  ;;  %v10210_v26 = vld [vmem:[#allocation9 + $0x3c] sm:$0xf] }
 0x2e6   :  { %4036 = vmatpush.bf16.msrb.mxu0 %v8448_v43  ;;  %4049 = vmatpush.bf16.msrb.mxu1 %v8640_v49  ;;  %v8572_v49 = vor.u32 %v10276_v42, %v8569_v44  ;;  %v8497_v42 = vld [vmem:[#allocation9 + $0x1d0] sm:$0xf0] }
 0x2e7   :  { %4075 = vmatpush.bf16.msrb.mxu3 %v8644_v8 }
 0x2ea   :  { %4037 = vmatpush.bf16.msrb.mxu0 %v8424_v59 }
 0x2eb   :  { %4076 = vmatpush.bf16.msrb.mxu3 %v8620_v3  ;;  %v10267_v3 = vld [vmem:[#allocation9 + $0x1fc] sm:$0xf0] }
 0x320   :  { %v3172_v50 = vpop.f32.mrf.mxu0  ;;  %v11098_v51 = vpop.f32.mrf.mxu1 }
 0x321   :  { %v3173_v16 = vadd.f32 %v3172_v50, %v10897_v57  ;;  %v10246_v50 = vld [vmem:[#allocation9 + $0x15c] sm:$0xf] }
 0x322   :  { %v8452_v56 = vor.u32 %v10246_v50, %v8449_v40  ;;  %v8351_v40 = vld [vmem:[#allocation9 + $0x98] sm:$0xf] }
 0x323   :  { %v3186_v46 = vadd.f32 %v11098_v51, %v3173_v16  ;;  %v10291_v51 = vld [vmem:[#allocation9 + $0x2bc] sm:$0xf0]  ;;  %v10234_v16 = vld [vmem:[#allocation9 + $0xfc] sm:$0xf] }
 0x324   :  { %4062 = vmatpush.bf16.msrb.mxu2 %v8452_v56  ;;  %v8616_v62 = vor.u32 %v10291_v51, %v8615_v10  ;;  %v10225_v56 = vld [vmem:[#allocation9 + $0xac] sm:$0xf0]  ;;  %v10222_v10 = vld [vmem:[#allocation9 + $0x9c] sm:$0xf]  ;;  %v8544_v51 = vor.u32 %v10273_v60, %v8543_v52  ;;  %v8473_v60 = vld [vmem:[#allocation9 + $0x1a0] sm:$0xf0] }
 0x325   :  { %v8352_v8 = vor.u32 %v10225_v56, %v8351_v40  ;;  %v10255_v40 = vld [vmem:[#allocation9 + $0x19c] sm:$0xf0]  ;;  %v10204_v56 = vld [vmem:[#allocation9 + $0xc] sm:$0xf] }
 0x326   :  { %4050 = vmatpush.bf16.msrb.mxu1 %v8616_v62 }
 0x327   :  { %v3198_v12 = vpop.f32.mrf.mxu2  ;;  %v3211_v15 = vpop.f32.mrf.mxu3 }
 0x328   :  { %v3199_v19 = vadd.f32 %v3198_v12, %v10894_v54  ;;  %v3174_v22 = vpop.f32.mrf.mxu0  ;;  %v3187_v25 = vpop.f32.mrf.mxu1  ;;  %v8399_v12 = vld [vmem:[#allocation9 + $0xf8] sm:$0xf]  ;;  %4063 = vmatpush.bf16.msrb.mxu2 %v8428_v20 }
 0x329   :  { %v8400_v14 = vor.u32 %v10237_v61, %v8399_v12  ;;  %v8401_v22 = vld [vmem:[#allocation9 + $0x110] sm:$0xf0]  ;;  %v10282_v25 = vld [vmem:[#allocation9 + $0x27c] sm:$0xf] }
 0x32a   :  { %v3212_v32 = vadd.f32 %v3211_v15, %v3199_v19  ;;  %v8591_v15 = vld [vmem:[#allocation9 + $0x278] sm:$0xf]  ;;  %v8404_v27 = vor.u32 %v10234_v16, %v8401_v22  ;;  %v8596_v37 = vor.u32 %v10282_v25, %v8593_v36  ;;  %v8521_v22 = vld [vmem:[#allocation9 + $0x200] sm:$0xf0] }
 0x32b   :  { %v8592_v19 = vor.u32 %v10285_v41, %v8591_v15  ;;  %4038 = vmatpush.bf16.msrb.mxu0 %v8400_v14  ;;  %v10216_v41 = vld [vmem:[#allocation9 + $0x6c] sm:$0xf] }
 0x32c   :  { %v3321_v48 = vrot.slane %v3212_v32, 7  ;;  %v10279_v32 = vld [vmem:[#allocation9 + $0x25c] sm:$0xf0]  ;;  %4064 = vmatpush.bf16.msrb.mxu2 %v8404_v27  ;;  %4077 = vmatpush.bf16.msrb.mxu3 %v8596_v37 }
 0x32d   :  { %4051 = vmatpush.bf16.msrb.mxu1 %v8592_v19  ;;  %v8568_v35 = vor.u32 %v10279_v32, %v8567_v30  ;;  %v10264_v19 = vld [vmem:[#allocation9 + $0x1ec] sm:$0xf]  ;;  %v8495_v32 = vld [vmem:[#allocation9 + $0x1b8] sm:$0xf] }
 0x32e   :  { %v3322_v55 = vsel %vm855_vm0, %v3186_v46, %v3321_v48  ;;  %v8524_v37 = vor.u32 %v10264_v19, %v8521_v22 }
 0x32f   :  { %v3324_v63 = vadd.f32 %v3322_v55, %v11105_v38  ;;  %v3200_v0 = vpop.f32.mrf.mxu2  ;;  %v3213_v1 = vpop.f32.mrf.mxu3  ;;  %v3345_v55 = vrot.slane %v11105_v38, 2  ;;  %4039 = vmatpush.bf16.msrb.mxu0 %v8376_v31  ;;  %v8304_v31 = vor.u32 %v10213_v28, %v8303_v18 }
 0x330   :  { %v3224_v7 = vpop.f32.mrf.mxu0  ;;  %v11110_v9 = vpop.f32.mrf.mxu1  ;;  %4065 = vmatpush.bf16.msrb.mxu2 %v8380_v39  ;;  %v10270_v0 = vld [vmem:[#allocation9 + $0x21c] sm:$0xf]  ;;  %v8545_v1 = vld [vmem:[#allocation9 + $0x230] sm:$0xf0]  ;;  %4078 = vmatpush.bf16.msrb.mxu3 %v8572_v49 }
 0x331   :  { %v8265_v17 = vmul.f32 -1.442695, %v3324_v63  ;;  %v3225_v45 = vadd.f32 %v3224_v7, %v10912_v21  ;;  %4052 = vmatpush.bf16.msrb.mxu1 %v8568_v35  ;;  %v8353_v63 = vld [vmem:[#allocation9 + $0xb0] sm:$0xf0]  ;;  %v8548_v4 = vor.u32 %v10270_v0, %v8545_v1  ;;  %v10219_v7 = vld [vmem:[#allocation9 + $0x7c] sm:$0xf0] }
 0x332   :  { %v8356_v2 = vor.u32 %v10222_v10, %v8353_v63  ;;  %v8328_v11 = vor.u32 %v10219_v7, %v8327_v5  ;;  %v8305_v35 = vld [vmem:[#allocation9 + $0x50] sm:$0xf0]  ;;  %v10258_v39 = vld [vmem:[#allocation9 + $0x1bc] sm:$0xf] }
 0x333   :  { %10627 = vpow2.f32 %v8265_v17  ;;  %v3238_v59 = vadd.f32 %v11110_v9, %v3225_v45  ;;  %4040 = vmatpush.bf16.msrb.mxu0 %v8352_v8  ;;  %v8519_v17 = vld [vmem:[#allocation9 + $0x1e8] sm:$0xf]  ;;  %v8329_v9 = vld [vmem:[#allocation9 + $0x80] sm:$0xf0]  ;;  %v8308_v44 = vor.u32 %v10210_v26, %v8305_v35  ;;  %v8500_v45 = vor.u32 %v10258_v39, %v8497_v42  ;;  %v10252_v8 = vld [vmem:[#allocation9 + $0x18c] sm:$0xf] }
 0x334   :  { %4066 = vmatpush.bf16.msrb.mxu2 %v8356_v2  ;;  %v8520_v15 = vor.u32 %v10267_v3, %v8519_v17  ;;  %4079 = vmatpush.bf16.msrb.mxu3 %v8548_v4  ;;  %v8332_v16 = vor.u32 %v10216_v41, %v8329_v9  ;;  %v8476_v0 = vor.u32 %v10252_v8, %v8473_v60  ;;  %v8455_v35 = vld [vmem:[#allocation9 + $0x160] sm:$0xf]  ;;  %v10250_v39 = vld [vmem:[#allocation9 + $0x174] sm:$0xf0]  ;;  %v10244_v8 = vld [vmem:[#allocation9 + $0x144] sm:$0xf0] }
 0x335   :  { %4053 = vmatpush.bf16.msrb.mxu1 %v8544_v51 }
 0x337   :  { %v3250_v34 = vpop.f32.mrf.mxu2  ;;  %v3263_v6 = vpop.f32.mrf.mxu3  ;;  %4041 = vmatpush.bf16.msrb.mxu0 %v8328_v11 }
 0x338   :  { %v3251_v46 = vadd.f32 %v3250_v34, %v10909_v13  ;;  %v3226_v48 = vpop.f32.mrf.mxu0  ;;  %v3239_v43 = vpop.f32.mrf.mxu1  ;;  %4067 = vmatpush.bf16.msrb.mxu2 %v8332_v16  ;;  %4080 = vmatpush.bf16.msrb.mxu3 %v8524_v37  ;;  %v3378_v16 = vrot.slane %v11105_v38, 4 }
 0x339   :  { %v10628_v50 = vpop.eup %10627  ;;  %4054 = vmatpush.bf16.msrb.mxu1 %v8520_v15  ;;  %v8279_v48 = vld [vmem:[#allocation9 + $0x8] sm:$0xf]  ;;  %v10207_v43 = vld [vmem:[#allocation9 + $0x1c] sm:$0xf0] }
 0x33a   :  { %v11114_v23 = vadd.f32 1.0, %v10628_v50  ;;  %v3264_v53 = vadd.f32 %v3263_v6, %v3251_v46  ;;  %v8496_v6 = vor.u32 %v10261_v33, %v8495_v32  ;;  %v8280_v49 = vor.u32 %v10207_v43, %v8279_v48  ;;  %v8471_v50 = vld [vmem:[#allocation9 + $0x188] sm:$0xf]  ;;  %v8457_v48 = vld [vmem:[#allocation9 + $0x178] sm:$0xf0] }
 0x33b   :  { %4042 = vmatpush.bf16.msrb.mxu0 %v8304_v31  ;;  %v10295_v43 = vld [vmem:[#allocation9 + $0x2e4] sm:$0xf] }
 0x33c   :  { %10629 = vrcp.f32 %v11114_v23  ;;  %v3349_v62 = vrot.slane %v3264_v53, 7  ;;  %4068 = vmatpush.bf16.msrb.mxu2 %v8308_v44  ;;  %v8472_v53 = vor.u32 %v10255_v40, %v8471_v50  ;;  %4081 = vmatpush.bf16.msrb.mxu3 %v8500_v45  ;;  %v3340_v4 = vand.u32 2147483648, %v11114_v23  ;;  %v8647_v44 = vld [vmem:[#allocation9 + $0x2e0] sm:$0xf]  ;;  %v10298_v45 = vld [vmem:[#allocation9 + $0x2f4] sm:$0xf0] }
 0x33d   :  { %4055 = vmatpush.bf16.msrb.mxu1 %v8496_v6  ;;  %vm3334_vm13 = vweird.f32 %v11114_v23  ;;  %v3338_v11 = vand.u32 2147483647, %v11114_v23 }
 0x33e   :  { %v3350_v20 = vsel %vm855_vm0, %v3238_v59, %v3349_v62 }
 0x33f   :  { %v3352_v12 = vadd.f32 %v3350_v20, %v3345_v55  ;;  %v3252_v61 = vpop.f32.mrf.mxu2  ;;  %v3265_v14 = vpop.f32.mrf.mxu3  ;;  %v8281_v55 = vld [vmem:[#allocation9 + $0x20] sm:$0xf0]  ;;  %4043 = vmatpush.bf16.msrb.mxu0 %v8280_v49  ;;  %vm3339_vm15 = vcmp.eq.f32.partialorder %v3338_v11, 8.507059e+37  ;;  %v8649_v49 = vld [vmem:[#allocation9 + $0x2f8] sm:$0xf0] }
 0x340   :  { %v8284_v63 = vor.u32 %v10204_v56, %v8281_v55  ;;  %4082 = vmatpush.bf16.msrb.mxu3 %v8476_v0  ;;  %v3341_v61 = vor.u32 1.1754944e-38, %v3340_v4  ;;  %v8431_v55 = vld [vmem:[#allocation9 + $0x130] sm:$0xf]  ;;  %v10241_v0 = vld [vmem:[#allocation9 + $0x134] sm:$0xf] }
 0x341   :  { %v8266_v25 = vmul.f32 -1.442695, %v3352_v12  ;;  %v3276_v36 = vpop.f32.mrf.mxu0  ;;  %v3289_v27 = vpop.f32.mrf.mxu1  ;;  %4056 = vmatpush.bf16.msrb.mxu1 %v8472_v53  ;;  %v8648_v53 = vor.u32 %v10298_v45, %v8647_v44  ;;  %v10271_v44 = vld [vmem:[#allocation9 + $0x224] sm:$0xf]  ;;  %v8553_v45 = vld [vmem:[#allocation9 + $0x238] sm:$0xf0] }
 0x342   :  { %v10630_v30 = vpop.eup %10629  ;;  %v3277_v59 = vadd.f32 %v3276_v36, %v10929_v29  ;;  %4069 = vmatpush.bf16.msrb.mxu2 %v8284_v63  ;;  %v10292_v63 = vld [vmem:[#allocation9 + $0x2c4] sm:$0xf0] }
 0x343   :  { %10631 = vpow2.f32 %v8266_v25  ;;  %v3330_v34 = vmul.f32 %v10630_v30, %v11114_v23  ;;  %vm3335_vm12 = vweird.f32 %v10630_v30 }
 0x344   :  { %vm3336_vm14 = vmor %vm3334_vm13, %vm3335_vm12  ;;  %v3290_v12 = vadd.f32 %v3289_v27, %v3277_v59  ;;  %v10289_v59 = vld [vmem:[#allocation9 + $0x2b4] sm:$0xf] }
 0x345   :  { %v3331_v46 = vsub.f32 1.0, %v3330_v34 }
 0x347   :  { %v3332_v52 = vmul.f32 %v10630_v30, %v3331_v46  ;;  %v10247_v46 = vld [vmem:[#allocation9 + $0x164] sm:$0xf] }
 0x348   :  { %v3302_v10 = vpop.f32.mrf.mxu2  ;;  %v3315_v51 = vpop.f32.mrf.mxu3  ;;  %v8460_v60 = vor.u32 %v10247_v46, %v8457_v48 }
 0x349   :  { %v10632_v1 = vpop.eup %10631  ;;  %v3303_v62 = vadd.f32 %v3302_v10, %v10933_v47  ;;  %v3333_v2 = vadd.f32 %v10630_v30, %v3332_v52  ;;  %v3278_v5 = vpop.f32.mrf.mxu0  ;;  %v8456_v52 = vor.u32 %v10250_v39, %v8455_v35  ;;  %v8652_v10 = vor.u32 %v10295_v43, %v8649_v49  ;;  %v10223_v35 = vld [vmem:[#allocation9 + $0xa4] sm:$0xf]  ;;  %v8361_v39 = vld [vmem:[#allocation9 + $0xb8] sm:$0xf0]  ;;  %v8335_v43 = vld [vmem:[#allocation9 + $0x70] sm:$0xf] }
 0x34a   :  { %v3291_v7 = vpop.f32.mrf.mxu1  ;;  %v3356_v20 = vadd.f32 1.0, %v10632_v1  ;;  %v8433_v1 = vld [vmem:[#allocation9 + $0x148] sm:$0xf0]  ;;  %v8407_v5 = vld [vmem:[#allocation9 + $0x100] sm:$0xf] }
 0x34b   :  { %v3316_v17 = vadd.f32 %v3315_v51, %v3303_v62  ;;  %v3337_v3 = vsel %vm3336_vm14, %v10630_v30, %v3333_v2  ;;  %v8623_v51 = vld [vmem:[#allocation9 + $0x2b0] sm:$0xf]  ;;  %v8625_v62 = vld [vmem:[#allocation9 + $0x2c8] sm:$0xf0]  ;;  %v8432_v2 = vor.u32 %v10244_v8, %v8431_v55  ;;  %v10238_v7 = vld [vmem:[#allocation9 + $0x114] sm:$0xf0] }
 0x34c   :  { %10633 = vrcp.f32 %v3356_v20  ;;  %v3342_v15 = vsel %vm3339_vm15, %v3341_v61, %v3337_v3  ;;  %v3368_v18 = vand.u32 2147483648, %v3356_v20  ;;  %v3366_v30 = vand.u32 2147483647, %v3356_v20  ;;  %v10286_v3 = vld [vmem:[#allocation9 + $0x294] sm:$0xf0] }
 0x34d   :  { %v3374_v14 = vrot.slane %v3316_v17, 7  ;;  %vm3362_vm2 = vweird.f32 %v3356_v20  ;;  %v8624_v4 = vor.u32 %v10292_v63, %v8623_v51  ;;  %v8628_v11 = vor.u32 %v10289_v59, %v8625_v62  ;;  %v8599_v17 = vld [vmem:[#allocation9 + $0x280] sm:$0xf]  ;;  %v8409_v61 = vld [vmem:[#allocation9 + $0x118] sm:$0xf0] }
 0x34e   :  { %v3369_v31 = vor.u32 1.1754944e-38, %v3368_v18  ;;  %vm3367_vm4 = vcmp.eq.f32.partialorder %v3366_v30, 8.507059e+37  ;;  %v8385_v18 = vld [vmem:[#allocation9 + $0xe8] sm:$0xf0]  ;;  %v10220_v49 = vld [vmem:[#allocation9 + $0x84] sm:$0xf0] }
 0x34f   :  { %v3375_v41 = vsel %vm855_vm0, %v3290_v12, %v3374_v14  ;;  %v10235_v12 = vld [vmem:[#allocation9 + $0x104] sm:$0xf]  ;;  %v8577_v30 = vld [vmem:[#allocation9 + $0x268] sm:$0xf0]  ;;  %v10217_v55 = vld [vmem:[#allocation9 + $0x74] sm:$0xf]  ;;  %v8336_v51 = vor.u32 %v10220_v49, %v8335_v43 }
 0x350   :  { %v3377_v9 = vmul.f32 %v3375_v41, %v3342_v15  ;;  %v3304_v23 = vpop.f32.mrf.mxu2  ;;  %v3317_v19 = vpop.f32.mrf.mxu3  ;;  %v10283_v14 = vld [vmem:[#allocation9 + $0x284] sm:$0xf]  ;;  %v8601_v15 = vld [vmem:[#allocation9 + $0x298] sm:$0xf0]  ;;  %v8408_v41 = vor.u32 %v10238_v7, %v8407_v5  ;;  %v8337_v8 = vld [vmem:[#allocation9 + $0x88] sm:$0xf0] }
 0x351   :  { %v10232_v23 = vld [vmem:[#allocation9 + $0xe4] sm:$0xf0]  ;;  %v8412_v19 = vor.u32 %v10235_v12, %v8409_v61  ;;  %v8340_v59 = vor.u32 %v10217_v55, %v8337_v8  ;;  %v10211_v5 = vld [vmem:[#allocation9 + $0x44] sm:$0xf]  ;;  %v8313_v7 = vld [vmem:[#allocation9 + $0x58] sm:$0xf0] }
 0x352   :  { %v10634_v22 = vpop.eup %10633  ;;  %v3380_v36 = vadd.f32 %v3378_v16, %v3377_v9  ;;  %v8600_v9 = vor.u32 %v10286_v3, %v8599_v17  ;;  %v8383_v16 = vld [vmem:[#allocation9 + $0xd0] sm:$0xf]  ;;  %v10208_v61 = vld [vmem:[#allocation9 + $0x24] sm:$0xf0]  ;;  %v8805_v43 = vld [vmem:[#allocation9 + $0x138] sm:$0xf0] }
 0x353   :  { %v3358_v25 = vmul.f32 %v10634_v22, %v3356_v20  ;;  %vm3363_vm1 = vweird.f32 %v10634_v22  ;;  %v8436_v20 = vor.u32 %v10241_v0, %v8433_v1  ;;  %v8311_v0 = vld [vmem:[#allocation9 + $0x40] sm:$0xf]  ;;  %v10214_v1 = vld [vmem:[#allocation9 + $0x54] sm:$0xf0]  ;;  %v8287_v12 = vld [vmem:[#allocation9 + $0x10] sm:$0xf] }
 0x354   :  { %10635 = vtanh.f32 %v3380_v36  ;;  %vm3364_vm3 = vmor %vm3362_vm2, %vm3363_vm1  ;;  %v10280_v36 = vld [vmem:[#allocation9 + $0x264] sm:$0xf0]  ;;  %v8312_v17 = vor.u32 %v10214_v1, %v8311_v0  ;;  %v8779_v55 = vld [vmem:[#allocation9 + $0xf0] sm:$0xf] }
 0x355   :  { %v3359_v37 = vsub.f32 1.0, %v3358_v25  ;;  %v8575_v25 = vld [vmem:[#allocation9 + $0x250] sm:$0xf]  ;;  %v10332_v8 = vld [vmem:[#allocation9 + $0x104] sm:$0xf0] }
 0x356   :  { %v8781_v0 = vld [vmem:[#allocation9 + $0x108] sm:$0xf0] }
 0x357   :  { %v3360_v28 = vmul.f32 %v10634_v22, %v3359_v37  ;;  %v10229_v37 = vld [vmem:[#allocation9 + $0xd4] sm:$0xf] }
 0x359   :  { %v3361_v27 = vadd.f32 %v10634_v22, %v3360_v28  ;;  %v10277_v28 = vld [vmem:[#allocation9 + $0x254] sm:$0xf] }
 0x35a   :  { %v10636_v38 = vpop.eup %10635 }
 0x35b   :  { %v3365_v32 = vsel %vm3364_vm3, %v10634_v22, %v3361_v27  ;;  %v8604_v22 = vor.u32 %v10283_v14, %v8601_v15  ;;  %v8384_v27 = vor.u32 %v10232_v23, %v8383_v16  ;;  %v8316_v14 = vor.u32 %v10211_v5, %v8313_v7  ;;  %v10205_v16 = vld [vmem:[#allocation9 + $0x14] sm:$0xf]  ;;  %v8289_v23 = vld [vmem:[#allocation9 + $0x28] sm:$0xf0]  ;;  %v8755_v5 = vld [vmem:[#allocation9 + $0xc0] sm:$0xf] }
 0x35c   :  { %v3370_v33 = vsel %vm3367_vm4, %v3369_v31, %v3365_v32  ;;  %v8576_v31 = vor.u32 %v10280_v36, %v8575_v25  ;;  %v8359_v32 = vld [vmem:[#allocation9 + $0xa0] sm:$0xf]  ;;  %v8288_v25 = vor.u32 %v10208_v61, %v8287_v12  ;;  %v10326_v7 = vld [vmem:[#allocation9 + $0xd4] sm:$0xf0]  ;;  %v8757_v12 = vld [vmem:[#allocation9 + $0xd8] sm:$0xf0] }
 0x35d   :  { %v3382_v26 = vsub.f32 1.0, %v3370_v33  ;;  %v3384_v6 = vmul.f32 %v3370_v33, %v11071_v58  ;;  %v10226_v33 = vld [vmem:[#allocation9 + $0xb4] sm:$0xf0] }
 0x35e   :  { %v8360_v46 = vor.u32 %v10226_v33, %v8359_v32  ;;  %v10392_v32 = vld [vmem:[#allocation9 + $0x2e4] sm:$0xf0]  ;;  %v10341_v33 = vld [vmem:[#allocation9 + $0x154] sm:$0xf] }
 0x35f   :  { %v3383_v34 = vmul.f32 %v10636_v38, %v3382_v26  ;;  %v8388_v26 = vor.u32 %v10229_v37, %v8385_v18  ;;  %v8580_v38 = vor.u32 %v10277_v28, %v8577_v30  ;;  %v8292_v37 = vor.u32 %v10205_v16, %v8289_v23  ;;  %v8827_v28 = vld [vmem:[#allocation9 + $0x150] sm:$0xf]  ;;  %v10344_v30 = vld [vmem:[#allocation9 + $0x164] sm:$0xf0] }
 0x360   :  { %v8731_v16 = vld [vmem:[#allocation9 + $0x90] sm:$0xf]  ;;  %v10320_v23 = vld [vmem:[#allocation9 + $0xa4] sm:$0xf0] }
 0x361   :  { %v11130_v42 = vadd.f32 %v3384_v6, %v3383_v34  ;;  %v8551_v34 = vld [vmem:[#allocation9 + $0x220] sm:$0xf]  ;;  %v10274_v6 = vld [vmem:[#allocation9 + $0x234] sm:$0xf0] }
 0x362   :  { %v8552_v48 = vor.u32 %v10274_v6, %v8551_v34  ;;  %v10389_v6 = vld [vmem:[#allocation9 + $0x2d4] sm:$0xf] }
 0x363   :  { %3387 = vst.msk [vmem:[#allocation12 + $0x3] ss:$8 sm:$0x3] %vm10949_vm9, %v11130_v42  ;;  %v3402_v50 = vperm.slane %v11130_v42, 0  ;;  %v3403_v40 = vperm.slane %v11130_v42, 1 }
 0x365   :  { %v11137_v56 = vpack.c.bf16 %v3402_v50, %v3402_v50  ;;  %v11139_v58 = vpack.c.bf16 %v3403_v40, %v3403_v40  ;;  %v8364_v50 = vor.u32 %v10223_v35, %v8361_v39  ;;  %v8556_v40 = vor.u32 %v10271_v44, %v8553_v45  ;;  %v9021_v35 = vld [vmem:[#allocation9 + $0x2e8] sm:$0xf0]  ;;  %v10338_v44 = vld [vmem:[#allocation9 + $0x134] sm:$0xf0] }
 0x366   :  { %v9024_v39 = vor.u32 %v10389_v6, %v9021_v35  ;;  %v10362_v35 = vld [vmem:[#allocation9 + $0x1f4] sm:$0xf0] }
 0x367   :  { %3992 = vmatmul.bf16.vlgmr.msra.gmra.mxu0 %v11137_v56  ;;  %4005 = vmatmul.bf16.vlgmr.msra.gmra.mxu1 %v11139_v58 }
 0x368   :  { %4018 = vmatmul.bf16.vlgmr.msra.gmra.mxu2 %v11137_v56  ;;  %4031 = vmatmul.bf16.vlgmr.msra.gmra.mxu3 %v11139_v58 }
 0x369   :  { %4088 = vmatpush.bf16.msra.mxu0 %v8456_v52  ;;  %4101 = vmatpush.bf16.msra.mxu1 %v8648_v53  ;;  %v8527_v52 = vld [vmem:[#allocation9 + $0x1f0] sm:$0xf]  ;;  %v10268_v53 = vld [vmem:[#allocation9 + $0x204] sm:$0xf0] }
 0x36a   :  { %4114 = vmatpush.bf16.msra.mxu2 %v8460_v60  ;;  %4127 = vmatpush.bf16.msra.mxu3 %v8652_v10  ;;  %v10265_v60 = vld [vmem:[#allocation9 + $0x1f4] sm:$0xf]  ;;  %v8529_v10 = vld [vmem:[#allocation9 + $0x208] sm:$0xf0]  ;;  %v8528_v63 = vor.u32 %v10268_v53, %v8527_v52  ;;  %v8997_v52 = vld [vmem:[#allocation9 + $0x2b8] sm:$0xf0] }
 0x36b   :  { %v8532_v62 = vor.u32 %v10265_v60, %v8529_v10  ;;  %v8971_v60 = vld [vmem:[#allocation9 + $0x270] sm:$0xf]  ;;  %v8780_v10 = vor.u32 %v10332_v8, %v8779_v55  ;;  %v8685_v55 = vld [vmem:[#allocation9 + $0x48] sm:$0xf0] }
 0x36d   :  { %4089 = vmatpush.bf16.msra.mxu0 %v8432_v2  ;;  %4102 = vmatpush.bf16.msra.mxu1 %v8624_v4  ;;  %v8503_v2 = vld [vmem:[#allocation9 + $0x1c0] sm:$0xf]  ;;  %v10262_v4 = vld [vmem:[#allocation9 + $0x1d4] sm:$0xf0] }
 0x36e   :  { %4115 = vmatpush.bf16.msra.mxu2 %v8436_v20  ;;  %4128 = vmatpush.bf16.msra.mxu3 %v8628_v11  ;;  %v10259_v20 = vld [vmem:[#allocation9 + $0x1c4] sm:$0xf]  ;;  %v8505_v11 = vld [vmem:[#allocation9 + $0x1d8] sm:$0xf0]  ;;  %v8504_v3 = vor.u32 %v10262_v4, %v8503_v2  ;;  %v8973_v2 = vld [vmem:[#allocation9 + $0x288] sm:$0xf0] }
 0x36f   :  { %v8508_v15 = vor.u32 %v10259_v20, %v8505_v11  ;;  %v8947_v20 = vld [vmem:[#allocation9 + $0x240] sm:$0xf]  ;;  %v8756_v11 = vor.u32 %v10326_v7, %v8755_v5 }
 0x371   :  { %4090 = vmatpush.bf16.msra.mxu0 %v8408_v41  ;;  %4103 = vmatpush.bf16.msra.mxu1 %v8600_v9  ;;  %v8479_v41 = vld [vmem:[#allocation9 + $0x190] sm:$0xf]  ;;  %v10256_v9 = vld [vmem:[#allocation9 + $0x1a4] sm:$0xf0] }
 0x372   :  { %4116 = vmatpush.bf16.msra.mxu2 %v8412_v19  ;;  %4129 = vmatpush.bf16.msra.mxu3 %v8604_v22  ;;  %v10253_v19 = vld [vmem:[#allocation9 + $0x194] sm:$0xf]  ;;  %v8481_v22 = vld [vmem:[#allocation9 + $0x1a8] sm:$0xf0]  ;;  %v8480_v36 = vor.u32 %v10256_v9, %v8479_v41  ;;  %v8949_v41 = vld [vmem:[#allocation9 + $0x258] sm:$0xf0] }
 0x373   :  { %v8484_v18 = vor.u32 %v10253_v19, %v8481_v22  ;;  %v8732_v19 = vor.u32 %v10320_v23, %v8731_v16  ;;  %v8923_v22 = vld [vmem:[#allocation9 + $0x210] sm:$0xf]  ;;  %v10347_v16 = vld [vmem:[#allocation9 + $0x184] sm:$0xf]  ;;  %v8853_v23 = vld [vmem:[#allocation9 + $0x198] sm:$0xf0] }
 0x375   :  { %4091 = vmatpush.bf16.msra.mxu0 %v8384_v27  ;;  %4104 = vmatpush.bf16.msra.mxu1 %v8576_v31  ;;  %v9019_v27 = vld [vmem:[#allocation9 + $0x2d0] sm:$0xf]  ;;  %v8828_v31 = vor.u32 %v10344_v30, %v8827_v28  ;;  %v10365_v28 = vld [vmem:[#allocation9 + $0x214] sm:$0xf]  ;;  %v8925_v30 = vld [vmem:[#allocation9 + $0x228] sm:$0xf0] }
 0x376   :  { %4117 = vmatpush.bf16.msra.mxu2 %v8388_v26  ;;  %4130 = vmatpush.bf16.msra.mxu3 %v8580_v38  ;;  %v8829_v26 = vld [vmem:[#allocation9 + $0x168] sm:$0xf0]  ;;  %v9020_v38 = vor.u32 %v10392_v32, %v9019_v27 }
 0x377   :  { %4044 = vmatmul.bf16.vlgmr.msrb.gmra.mxu0 %v11137_v56  ;;  %4057 = vmatmul.bf16.vlgmr.msrb.gmra.mxu1 %v11139_v58  ;;  %v8832_v34 = vor.u32 %v10341_v33, %v8829_v26  ;;  %v8707_v26 = vld [vmem:[#allocation9 + $0x60] sm:$0xf] }
 0x378   :  { %4070 = vmatmul.bf16.vlgmr.msrb.gmra.mxu2 %v11137_v56  ;;  %4083 = vmatmul.bf16.vlgmr.msrb.gmra.mxu3 %v11139_v58 }
 0x379   :  { %4092 = vmatpush.bf16.msra.mxu0 %v8360_v46  ;;  %4105 = vmatpush.bf16.msra.mxu1 %v8552_v48  ;;  %v10386_v46 = vld [vmem:[#allocation9 + $0x2b4] sm:$0xf0]  ;;  %v10335_v48 = vld [vmem:[#allocation9 + $0x124] sm:$0xf] }
 0x37a   :  { %4118 = vmatpush.bf16.msra.mxu2 %v8364_v50  ;;  %4131 = vmatpush.bf16.msra.mxu3 %v8556_v40  ;;  %v8808_v50 = vor.u32 %v10335_v48, %v8805_v43  ;;  %v10383_v40 = vld [vmem:[#allocation9 + $0x2a4] sm:$0xf]  ;;  %v8683_v43 = vld [vmem:[#allocation9 + $0x30] sm:$0xf] }
 0x37b   :  { %v9000_v53 = vor.u32 %v10383_v40, %v8997_v52  ;;  %v10356_v52 = vld [vmem:[#allocation9 + $0x1c4] sm:$0xf0] }
 0x37d   :  { %4093 = vmatpush.bf16.msra.mxu0 %v8336_v51  ;;  %4106 = vmatpush.bf16.msra.mxu1 %v8528_v63  ;;  %v10380_v51 = vld [vmem:[#allocation9 + $0x284] sm:$0xf0]  ;;  %v10329_v63 = vld [vmem:[#allocation9 + $0xf4] sm:$0xf] }
 0x37e   :  { %4119 = vmatpush.bf16.msra.mxu2 %v8340_v59  ;;  %4132 = vmatpush.bf16.msra.mxu3 %v8532_v62  ;;  %v8972_v1 = vor.u32 %v10380_v51, %v8971_v60  ;;  %v8784_v59 = vor.u32 %v10329_v63, %v8781_v0  ;;  %v10377_v62 = vld [vmem:[#allocation9 + $0x274] sm:$0xf]  ;;  %v8877_v51 = vld [vmem:[#allocation9 + $0x1c8] sm:$0xf0] }
 0x37f   :  { %v8976_v4 = vor.u32 %v10377_v62, %v8973_v2  ;;  %v3398_v0 = vld [vmem:[%s3397_s17] ss:$8 sm:$0xf] }
 0x381   :  { %4094 = vmatpush.bf16.msra.mxu0 %v8312_v17  ;;  %4107 = vmatpush.bf16.msra.mxu1 %v8504_v3  ;;  %v10374_v17 = vld [vmem:[#allocation9 + $0x254] sm:$0xf0]  ;;  %v10323_v3 = vld [vmem:[#allocation9 + $0xc4] sm:$0xf] }
 0x382   :  { %4120 = vmatpush.bf16.msra.mxu2 %v8316_v14  ;;  %4133 = vmatpush.bf16.msra.mxu3 %v8508_v15  ;;  %v8948_v61 = vor.u32 %v10374_v17, %v8947_v20  ;;  %v8760_v14 = vor.u32 %v10323_v3, %v8757_v12  ;;  %v10371_v15 = vld [vmem:[#allocation9 + $0x244] sm:$0xf]  ;;  %v8659_v20 = vld [vmem:[#allocation9] sm:$0xf]  ;;  %v10350_v12 = vld [vmem:[#allocation9 + $0x194] sm:$0xf0] }
 0x383   :  { %v8952_v9 = vor.u32 %v10371_v15, %v8949_v41  ;;  %v8851_v17 = vld [vmem:[#allocation9 + $0x180] sm:$0xf] }
 0x384   :  { %v8852_v41 = vor.u32 %v10350_v12, %v8851_v17  ;;  %v10327_v12 = vld [vmem:[#allocation9 + $0xdc] sm:$0xf0] }
 0x385   :  { %4095 = vmatpush.bf16.msra.mxu0 %v8288_v25  ;;  %4108 = vmatpush.bf16.msra.mxu1 %v8480_v36  ;;  %v10368_v25 = vld [vmem:[#allocation9 + $0x224] sm:$0xf0]  ;;  %v10317_v36 = vld [vmem:[#allocation9 + $0x94] sm:$0xf] }
 0x386   :  { %4121 = vmatpush.bf16.msra.mxu2 %v8292_v37  ;;  %4134 = vmatpush.bf16.msra.mxu3 %v8484_v18  ;;  %v8924_v37 = vor.u32 %v10368_v25, %v8923_v22  ;;  %v8733_v18 = vld [vmem:[#allocation9 + $0xa8] sm:$0xf0]  ;;  %v8856_v25 = vor.u32 %v10347_v16, %v8853_v23 }
 0x387   :  { %v8736_v27 = vor.u32 %v10317_v36, %v8733_v18  ;;  %v10345_v36 = vld [vmem:[#allocation9 + $0x16c] sm:$0xf0] }
 0x388   :  { %4096 = vmatmul.bf16.vlgmr.msra.gmra.mxu0 %v11137_v56  ;;  %4109 = vmatmul.bf16.vlgmr.msra.gmra.mxu1 %v11139_v58  ;;  %v10393_v18 = vld [vmem:[#allocation9 + $0x2ec] sm:$0xf0] }
 0x389   :  { %4122 = vmatmul.bf16.vlgmr.msra.gmra.mxu2 %v11137_v56  ;;  %4135 = vmatmul.bf16.vlgmr.msra.gmra.mxu3 %v11139_v58  ;;  %v8803_v56 = vld [vmem:[#allocation9 + $0x120] sm:$0xf] }
 0x38a   :  { %4805 = vmatpush.bf16.msrb.mxu0 %v8828_v31  ;;  %4818 = vmatpush.bf16.msrb.mxu1 %v9020_v38  ;;  %v8995_v58 = vld [vmem:[#allocation9 + $0x2a0] sm:$0xf]  ;;  %v8804_v45 = vor.u32 %v10338_v44, %v8803_v56  ;;  %v8928_v31 = vor.u32 %v10365_v28, %v8925_v30  ;;  %v10314_v38 = vld [vmem:[#allocation9 + $0x74] sm:$0xf0]  ;;  %v8709_v56 = vld [vmem:[#allocation9 + $0x78] sm:$0xf0] }
 0x38b   :  { %4831 = vmatpush.bf16.msrb.mxu2 %v8832_v34  ;;  %4844 = vmatpush.bf16.msrb.mxu3 %v9024_v39  ;;  %v8996_v49 = vor.u32 %v10386_v46, %v8995_v58  ;;  %v8899_v34 = vld [vmem:[#allocation9 + $0x1e0] sm:$0xf]  ;;  %v8708_v6 = vor.u32 %v10314_v38, %v8707_v26  ;;  %v10311_v39 = vld [vmem:[#allocation9 + $0x64] sm:$0xf]  ;;  %v8901_v46 = vld [vmem:[#allocation9 + $0x1f8] sm:$0xf0] }
 0x38c   :  { %v8900_v44 = vor.u32 %v10362_v35, %v8899_v34  ;;  %v8712_v58 = vor.u32 %v10311_v39, %v8709_v56  ;;  %v8837_v26 = vld [vmem:[#allocation9 + $0x170] sm:$0xf0]  ;;  %v10390_v34 = vld [vmem:[#allocation9 + $0x2dc] sm:$0xf]  ;;  %v8811_v35 = vld [vmem:[#allocation9 + $0x128] sm:$0xf] }
 0x38e   :  { %4806 = vmatpush.bf16.msrb.mxu0 %v8804_v45  ;;  %4819 = vmatpush.bf16.msrb.mxu1 %v8996_v49  ;;  %v10359_v45 = vld [vmem:[#allocation9 + $0x1e4] sm:$0xf]  ;;  %v10308_v49 = vld [vmem:[#allocation9 + $0x44] sm:$0xf0] }
 0x38f   :  { %4832 = vmatpush.bf16.msrb.mxu2 %v8808_v50  ;;  %4845 = vmatpush.bf16.msrb.mxu3 %v9000_v53  ;;  %v8904_v48 = vor.u32 %v10359_v45, %v8901_v46  ;;  %v8875_v50 = vld [vmem:[#allocation9 + $0x1b0] sm:$0xf]  ;;  %v8684_v40 = vor.u32 %v10308_v49, %v8683_v43  ;;  %v10305_v53 = vld [vmem:[#allocation9 + $0x34] sm:$0xf] }
 0x390   :  { %v8876_v8 = vor.u32 %v10356_v52, %v8875_v50  ;;  %v8688_v60 = vor.u32 %v10305_v53, %v8685_v55  ;;  %v10336_v50 = vld [vmem:[#allocation9 + $0x12c] sm:$0xf] }
 0x391   :  { %v10384_v52 = vld [vmem:[#allocation9 + $0x2ac] sm:$0xf] }
 0x392   :  { %4807 = vmatpush.bf16.msrb.mxu0 %v8780_v10  ;;  %4820 = vmatpush.bf16.msrb.mxu1 %v8972_v1  ;;  %v10353_v10 = vld [vmem:[#allocation9 + $0x1b4] sm:$0xf]  ;;  %v3399_v1 = vld [vmem:[%s3397_s17] ss:$8 sm:$0x30] }
 0x393   :  { %4833 = vmatpush.bf16.msrb.mxu2 %v8784_v59  ;;  %4846 = vmatpush.bf16.msrb.mxu3 %v8976_v4  ;;  %v8880_v62 = vor.u32 %v10353_v10, %v8877_v51  ;;  %v11164_v22 = vor.u32 %v3399_v1, %v3398_v0  ;;  %v10333_v0 = vld [vmem:[#allocation9 + $0x10c] sm:$0xf0] }
 0x396   :  { %4808 = vmatpush.bf16.msrb.mxu0 %v8756_v11  ;;  %4821 = vmatpush.bf16.msrb.mxu1 %v8948_v61  ;;  %v10302_v11 = vld [vmem:[#allocation9 + $0x14] sm:$0xf0]  ;;  %v10299_v61 = vld [vmem:[#allocation9 + $0x4] sm:$0xf] }
 0x397   :  { %4834 = vmatpush.bf16.msrb.mxu2 %v8760_v14  ;;  %4847 = vmatpush.bf16.msrb.mxu3 %v8952_v9  ;;  %v8660_v3 = vor.u32 %v10302_v11, %v8659_v20  ;;  %v8661_v14 = vld [vmem:[#allocation9 + $0x18] sm:$0xf0]  ;;  %v8981_v20 = vld [vmem:[#allocation9 + $0x290] sm:$0xf0] }
 0x398   :  { %v8664_v9 = vor.u32 %v10299_v61, %v8661_v14  ;;  %v8955_v61 = vld [vmem:[#allocation9 + $0x248] sm:$0xf] }
 0x39a   :  { %4809 = vmatpush.bf16.msrb.mxu0 %v8732_v19  ;;  %4822 = vmatpush.bf16.msrb.mxu1 %v8924_v37  ;;  %v8835_v19 = vld [vmem:[#allocation9 + $0x158] sm:$0xf] }
 0x39b   :  { %4835 = vmatpush.bf16.msrb.mxu2 %v8736_v27  ;;  %4848 = vmatpush.bf16.msrb.mxu3 %v8928_v31  ;;  %v9027_v37 = vld [vmem:[#allocation9 + $0x2d8] sm:$0xf]  ;;  %v8836_v27 = vor.u32 %v10345_v36, %v8835_v19  ;;  %v10372_v36 = vld [vmem:[#allocation9 + $0x24c] sm:$0xf] }
 0x39c   :  { %v9028_v31 = vor.u32 %v10393_v18, %v9027_v37  ;;  %v8957_v37 = vld [vmem:[#allocation9 + $0x260] sm:$0xf0] }
 0x39e   :  { %4810 = vmatpush.bf16.msrb.mxu0 %v8708_v6  ;;  %4823 = vmatpush.bf16.msrb.mxu1 %v8900_v44  ;;  %v9029_v6 = vld [vmem:[#allocation9 + $0x2f0] sm:$0xf0]  ;;  %v10339_v44 = vld [vmem:[#allocation9 + $0x13c] sm:$0xf0] }
 0x39f   :  { %4836 = vmatpush.bf16.msrb.mxu2 %v8712_v58  ;;  %4849 = vmatpush.bf16.msrb.mxu3 %v8904_v48  ;;  %v9032_v56 = vor.u32 %v10390_v34, %v9029_v6  ;;  %v9003_v58 = vld [vmem:[#allocation9 + $0x2a8] sm:$0xf]  ;;  %v8812_v43 = vor.u32 %v10339_v44, %v8811_v35  ;;  %v8931_v34 = vld [vmem:[#allocation9 + $0x218] sm:$0xf]  ;;  %v10369_v44 = vld [vmem:[#allocation9 + $0x22c] sm:$0xf0] }
 0x3a2   :  { %4811 = vmatpush.bf16.msrb.mxu0 %v8684_v40  ;;  %4824 = vmatpush.bf16.msrb.mxu1 %v8876_v8  ;;  %v8813_v40 = vld [vmem:[#allocation9 + $0x140] sm:$0xf0] }
 0x3a3   :  { %4837 = vmatpush.bf16.msrb.mxu2 %v8688_v60  ;;  %4850 = vmatpush.bf16.msrb.mxu3 %v8880_v62  ;;  %v8816_v8 = vor.u32 %v10336_v50, %v8813_v40  ;;  %v9005_v60 = vld [vmem:[#allocation9 + $0x2c0] sm:$0xf0]  ;;  %v10381_v62 = vld [vmem:[#allocation9 + $0x28c] sm:$0xf0] }
 0x3a4   :  { %v9008_v51 = vor.u32 %v10384_v52, %v9005_v60  ;;  %v8715_v52 = vld [vmem:[#allocation9 + $0x68] sm:$0xf] }
 0x3a6   :  { %4812 = vmatpush.bf16.msrb.mxu0 %v8660_v3  ;;  %4825 = vmatpush.bf16.msrb.mxu1 %v8852_v41  ;;  %v8763_v3 = vld [vmem:[#allocation9 + $0xc8] sm:$0xf]  ;;  %v10324_v41 = vld [vmem:[#allocation9 + $0xcc] sm:$0xf] }
 0x3a7   :  { %4838 = vmatpush.bf16.msrb.mxu2 %v8664_v9  ;;  %4851 = vmatpush.bf16.msrb.mxu3 %v8856_v25  ;;  %v8764_v14 = vor.u32 %v10327_v12, %v8763_v3  ;;  %v8765_v9 = vld [vmem:[#allocation9 + $0xe0] sm:$0xf0]  ;;  %v8691_v3 = vld [vmem:[#allocation9 + $0x38] sm:$0xf]  ;;  %v10309_v12 = vld [vmem:[#allocation9 + $0x4c] sm:$0xf0] }
 0x3a8   :  { %v8768_v25 = vor.u32 %v10324_v41, %v8765_v9  ;;  %v10357_v41 = vld [vmem:[#allocation9 + $0x1cc] sm:$0xf0]  ;;  %v10306_v9 = vld [vmem:[#allocation9 + $0x3c] sm:$0xf] }
 0x3aa   :  { %4857 = vmatpush.bf16.msra.mxu0 %v8836_v27  ;;  %4870 = vmatpush.bf16.msra.mxu1 %v9028_v31  ;;  %v8960_v31 = vor.u32 %v10372_v36, %v8957_v37  ;;  %v8885_v36 = vld [vmem:[#allocation9 + $0x1d0] sm:$0xf0] }
 0x3ab   :  { %4896 = vmatpush.bf16.msra.mxu3 %v9032_v56 }
 0x3ae   :  { %4858 = vmatpush.bf16.msra.mxu0 %v8812_v43 }
 0x3af   :  { %4897 = vmatpush.bf16.msra.mxu3 %v9008_v51  ;;  %v10363_v51 = vld [vmem:[#allocation9 + $0x1fc] sm:$0xf0] }
 0x3e4   :  { %v3993_v32 = vpop.f32.mrf.mxu0  ;;  %v11157_v33 = vpop.f32.mrf.mxu1 }
 0x3e5   :  { %v3994_v2 = vadd.f32 %v3993_v32, %v10897_v57  ;;  %v10342_v32 = vld [vmem:[#allocation9 + $0x15c] sm:$0xf] }
 0x3e6   :  { %v8840_v38 = vor.u32 %v10342_v32, %v8837_v26  ;;  %v8739_v26 = vld [vmem:[#allocation9 + $0x98] sm:$0xf] }
 0x3e7   :  { %v4007_v28 = vadd.f32 %v11157_v33, %v3994_v2  ;;  %v10387_v33 = vld [vmem:[#allocation9 + $0x2bc] sm:$0xf0]  ;;  %v10330_v2 = vld [vmem:[#allocation9 + $0xfc] sm:$0xf] }
 0x3e8   :  { %4883 = vmatpush.bf16.msra.mxu2 %v8840_v38  ;;  %v9004_v49 = vor.u32 %v10387_v33, %v9003_v58  ;;  %v10321_v38 = vld [vmem:[#allocation9 + $0xac] sm:$0xf0]  ;;  %v10318_v58 = vld [vmem:[#allocation9 + $0x9c] sm:$0xf]  ;;  %v8932_v33 = vor.u32 %v10369_v44, %v8931_v34  ;;  %v8861_v44 = vld [vmem:[#allocation9 + $0x1a0] sm:$0xf0] }
 0x3e9   :  { %v8740_v56 = vor.u32 %v10321_v38, %v8739_v26  ;;  %v10351_v26 = vld [vmem:[#allocation9 + $0x19c] sm:$0xf0]  ;;  %v10300_v38 = vld [vmem:[#allocation9 + $0xc] sm:$0xf] }
 0x3ea   :  { %4871 = vmatpush.bf16.msra.mxu1 %v9004_v49 }
 0x3eb   :  { %v4019_v63 = vpop.f32.mrf.mxu2  ;;  %v4032_v59 = vpop.f32.mrf.mxu3 }
 0x3ec   :  { %v4020_v4 = vadd.f32 %v4019_v63, %v10894_v54  ;;  %v3995_v5 = vpop.f32.mrf.mxu0  ;;  %v4008_v7 = vpop.f32.mrf.mxu1  ;;  %v8787_v63 = vld [vmem:[#allocation9 + $0xf8] sm:$0xf]  ;;  %4884 = vmatpush.bf16.msra.mxu2 %v8816_v8 }
 0x3ed   :  { %v8788_v1 = vor.u32 %v10333_v0, %v8787_v63  ;;  %v8789_v5 = vld [vmem:[#allocation9 + $0x110] sm:$0xf0]  ;;  %v10378_v7 = vld [vmem:[#allocation9 + $0x27c] sm:$0xf] }
 0x3ee   :  { %v4033_v15 = vadd.f32 %v4032_v59, %v4020_v4  ;;  %v8979_v59 = vld [vmem:[#allocation9 + $0x278] sm:$0xf]  ;;  %v8792_v11 = vor.u32 %v10330_v2, %v8789_v5  ;;  %v8984_v17 = vor.u32 %v10378_v7, %v8981_v20  ;;  %v8909_v5 = vld [vmem:[#allocation9 + $0x200] sm:$0xf0] }
 0x3ef   :  { %v8980_v4 = vor.u32 %v10381_v62, %v8979_v59  ;;  %4859 = vmatpush.bf16.msra.mxu0 %v8788_v1  ;;  %v10312_v62 = vld [vmem:[#allocation9 + $0x6c] sm:$0xf] }
 0x3f0   :  { %v4142_v30 = vrot.slane %v4033_v15, 7  ;;  %v10375_v15 = vld [vmem:[#allocation9 + $0x25c] sm:$0xf0]  ;;  %4885 = vmatpush.bf16.msra.mxu2 %v8792_v11  ;;  %4898 = vmatpush.bf16.msra.mxu3 %v8984_v17 }
 0x3f1   :  { %4872 = vmatpush.bf16.msra.mxu1 %v8980_v4  ;;  %v8956_v19 = vor.u32 %v10375_v15, %v8955_v61  ;;  %v10360_v4 = vld [vmem:[#allocation9 + $0x1ec] sm:$0xf]  ;;  %v8883_v15 = vld [vmem:[#allocation9 + $0x1b8] sm:$0xf] }
 0x3f2   :  { %v4143_v39 = vsel %vm855_vm0, %v4007_v28, %v4142_v30  ;;  %v8912_v17 = vor.u32 %v10360_v4, %v8909_v5 }
 0x3f3   :  { %v4145_v45 = vadd.f32 %v4143_v39, %v11164_v22  ;;  %v4021_v46 = vpop.f32.mrf.mxu2  ;;  %v4034_v48 = vpop.f32.mrf.mxu3  ;;  %v4166_v39 = vrot.slane %v11164_v22, 2  ;;  %4860 = vmatpush.bf16.msra.mxu0 %v8764_v14  ;;  %v8692_v14 = vor.u32 %v10309_v12, %v8691_v3 }
 0x3f4   :  { %v4045_v53 = vpop.f32.mrf.mxu0  ;;  %v11169_v55 = vpop.f32.mrf.mxu1  ;;  %4886 = vmatpush.bf16.msra.mxu2 %v8768_v25  ;;  %v10366_v46 = vld [vmem:[#allocation9 + $0x21c] sm:$0xf]  ;;  %v8933_v48 = vld [vmem:[#allocation9 + $0x230] sm:$0xf0]  ;;  %4899 = vmatpush.bf16.msra.mxu3 %v8960_v31 }
 0x3f5   :  { %v8653_v10 = vmul.f32 -1.442695, %v4145_v45  ;;  %v4046_v18 = vadd.f32 %v4045_v53, %v10912_v21  ;;  %4873 = vmatpush.bf16.msra.mxu1 %v8956_v19  ;;  %v8741_v45 = vld [vmem:[#allocation9 + $0xb0] sm:$0xf0]  ;;  %v8936_v40 = vor.u32 %v10366_v46, %v8933_v48  ;;  %v10315_v53 = vld [vmem:[#allocation9 + $0x7c] sm:$0xf0] }
 0x3f6   :  { %v8744_v50 = vor.u32 %v10318_v58, %v8741_v45  ;;  %v8716_v60 = vor.u32 %v10315_v53, %v8715_v52  ;;  %v8693_v19 = vld [vmem:[#allocation9 + $0x50] sm:$0xf0]  ;;  %v10354_v25 = vld [vmem:[#allocation9 + $0x1bc] sm:$0xf] }
 0x3f7   :  { %10637 = vpow2.f32 %v8653_v10  ;;  %v4059_v43 = vadd.f32 %v11169_v55, %v4046_v18  ;;  %4861 = vmatpush.bf16.msra.mxu0 %v8740_v56  ;;  %v8907_v10 = vld [vmem:[#allocation9 + $0x1e8] sm:$0xf]  ;;  %v8717_v55 = vld [vmem:[#allocation9 + $0x80] sm:$0xf0]  ;;  %v8696_v37 = vor.u32 %v10306_v9, %v8693_v19  ;;  %v8888_v18 = vor.u32 %v10354_v25, %v8885_v36  ;;  %v10348_v56 = vld [vmem:[#allocation9 + $0x18c] sm:$0xf] }
 0x3f8   :  { %4887 = vmatpush.bf16.msra.mxu2 %v8744_v50  ;;  %v8908_v59 = vor.u32 %v10363_v51, %v8907_v10  ;;  %4900 = vmatpush.bf16.msra.mxu3 %v8936_v40  ;;  %v8720_v2 = vor.u32 %v10312_v62, %v8717_v55  ;;  %v8864_v46 = vor.u32 %v10348_v56, %v8861_v44  ;;  %v8843_v19 = vld [vmem:[#allocation9 + $0x160] sm:$0xf]  ;;  %v10346_v25 = vld [vmem:[#allocation9 + $0x174] sm:$0xf0]  ;;  %v10340_v56 = vld [vmem:[#allocation9 + $0x144] sm:$0xf0] }
 0x3f9   :  { %4874 = vmatpush.bf16.msra.mxu1 %v8932_v33 }
 0x3fb   :  { %v4071_v16 = vpop.f32.mrf.mxu2  ;;  %v4084_v23 = vpop.f32.mrf.mxu3  ;;  %4862 = vmatpush.bf16.msra.mxu0 %v8716_v60 }
 0x3fc   :  { %v4072_v28 = vadd.f32 %v4071_v16, %v10909_v13  ;;  %v4047_v30 = vpop.f32.mrf.mxu0  ;;  %v4060_v27 = vpop.f32.mrf.mxu1  ;;  %4888 = vmatpush.bf16.msra.mxu2 %v8720_v2  ;;  %4901 = vmatpush.bf16.msra.mxu3 %v8912_v17  ;;  %v4199_v2 = vrot.slane %v11164_v22, 4 }
 0x3fd   :  { %v10638_v32 = vpop.eup %10637  ;;  %4875 = vmatpush.bf16.msra.mxu1 %v8908_v59  ;;  %v8667_v30 = vld [vmem:[#allocation9 + $0x8] sm:$0xf]  ;;  %v10303_v27 = vld [vmem:[#allocation9 + $0x1c] sm:$0xf0] }
 0x3fe   :  { %v11173_v6 = vadd.f32 1.0, %v10638_v32  ;;  %v4085_v35 = vadd.f32 %v4084_v23, %v4072_v28  ;;  %v8884_v23 = vor.u32 %v10357_v41, %v8883_v15  ;;  %v8668_v31 = vor.u32 %v10303_v27, %v8667_v30  ;;  %v8859_v32 = vld [vmem:[#allocation9 + $0x188] sm:$0xf]  ;;  %v8845_v30 = vld [vmem:[#allocation9 + $0x178] sm:$0xf0] }
 0x3ff   :  { %4863 = vmatpush.bf16.msra.mxu0 %v8692_v14  ;;  %v10391_v27 = vld [vmem:[#allocation9 + $0x2e4] sm:$0xf] }
 0x400   :  { %10639 = vrcp.f32 %v11173_v6  ;;  %v4170_v49 = vrot.slane %v4085_v35, 7  ;;  %4889 = vmatpush.bf16.msra.mxu2 %v8696_v37  ;;  %v8860_v35 = vor.u32 %v10351_v26, %v8859_v32  ;;  %4902 = vmatpush.bf16.msra.mxu3 %v8888_v18  ;;  %v4161_v40 = vand.u32 2147483648, %v11173_v6  ;;  %v9035_v37 = vld [vmem:[#allocation9 + $0x2e0] sm:$0xf]  ;;  %v10394_v18 = vld [vmem:[#allocation9 + $0x2f4] sm:$0xf0] }
 0x401   :  { %4876 = vmatpush.bf16.msra.mxu1 %v8884_v23  ;;  %vm4155_vm6 = vweird.f32 %v11173_v6  ;;  %v4159_v60 = vand.u32 2147483647, %v11173_v6 }
 0x402   :  { %v4171_v8 = vsel %vm855_vm0, %v4059_v43, %v4170_v49 }
 0x403   :  { %v4173_v63 = vadd.f32 %v4171_v8, %v4166_v39  ;;  %v4073_v0 = vpop.f32.mrf.mxu2  ;;  %v4086_v1 = vpop.f32.mrf.mxu3  ;;  %v8669_v39 = vld [vmem:[#allocation9 + $0x20] sm:$0xf0]  ;;  %4864 = vmatpush.bf16.msra.mxu0 %v8668_v31  ;;  %vm4160_vm8 = vcmp.eq.f32.partialorder %v4159_v60, 8.507059e+37  ;;  %v9037_v31 = vld [vmem:[#allocation9 + $0x2f8] sm:$0xf0] }
 0x404   :  { %v8672_v45 = vor.u32 %v10300_v38, %v8669_v39  ;;  %4903 = vmatpush.bf16.msra.mxu3 %v8864_v46  ;;  %v4162_v0 = vor.u32 1.1754944e-38, %v4161_v40  ;;  %v8819_v39 = vld [vmem:[#allocation9 + $0x130] sm:$0xf]  ;;  %v10337_v46 = vld [vmem:[#allocation9 + $0x134] sm:$0xf] }
 0x405   :  { %v8654_v7 = vmul.f32 -1.442695, %v4173_v63  ;;  %v4097_v20 = vpop.f32.mrf.mxu0  ;;  %v4110_v11 = vpop.f32.mrf.mxu1  ;;  %4877 = vmatpush.bf16.msra.mxu1 %v8860_v35  ;;  %v9036_v35 = vor.u32 %v10394_v18, %v9035_v37  ;;  %v10367_v37 = vld [vmem:[#allocation9 + $0x224] sm:$0xf]  ;;  %v8941_v18 = vld [vmem:[#allocation9 + $0x238] sm:$0xf0] }
 0x406   :  { %v10640_v61 = vpop.eup %10639  ;;  %v4098_v43 = vadd.f32 %v4097_v20, %v10929_v29  ;;  %4890 = vmatpush.bf16.msra.mxu2 %v8672_v45  ;;  %v10388_v45 = vld [vmem:[#allocation9 + $0x2c4] sm:$0xf0] }
 0x407   :  { %10641 = vpow2.f32 %v8654_v7  ;;  %v4151_v16 = vmul.f32 %v10640_v61, %v11173_v6  ;;  %vm4156_vm5 = vweird.f32 %v10640_v61 }
 0x408   :  { %vm4157_vm7 = vmor %vm4155_vm6, %vm4156_vm5  ;;  %v4111_v63 = vadd.f32 %v4110_v11, %v4098_v43  ;;  %v10385_v43 = vld [vmem:[#allocation9 + $0x2b4] sm:$0xf] }
 0x409   :  { %v4152_v28 = vsub.f32 1.0, %v4151_v16 }
 0x40b   :  { %v4153_v34 = vmul.f32 %v10640_v61, %v4152_v28  ;;  %v10343_v28 = vld [vmem:[#allocation9 + $0x164] sm:$0xf] }
 0x40c   :  { %v4123_v58 = vpop.f32.mrf.mxu2  ;;  %v4136_v33 = vpop.f32.mrf.mxu3  ;;  %v8848_v44 = vor.u32 %v10343_v28, %v8845_v30 }
 0x40d   :  { %v10642_v48 = vpop.eup %10641  ;;  %v4124_v49 = vadd.f32 %v4123_v58, %v10933_v47  ;;  %v4154_v50 = vadd.f32 %v10640_v61, %v4153_v34  ;;  %v4099_v52 = vpop.f32.mrf.mxu0  ;;  %v8844_v34 = vor.u32 %v10346_v25, %v8843_v19  ;;  %v9040_v58 = vor.u32 %v10391_v27, %v9037_v31  ;;  %v10319_v19 = vld [vmem:[#allocation9 + $0xa4] sm:$0xf]  ;;  %v8749_v25 = vld [vmem:[#allocation9 + $0xb8] sm:$0xf0]  ;;  %v8723_v27 = vld [vmem:[#allocation9 + $0x70] sm:$0xf] }
 0x40e   :  { %v4112_v53 = vpop.f32.mrf.mxu1  ;;  %v4177_v8 = vadd.f32 1.0, %v10642_v48  ;;  %v8821_v48 = vld [vmem:[#allocation9 + $0x148] sm:$0xf0]  ;;  %v8795_v52 = vld [vmem:[#allocation9 + $0x100] sm:$0xf] }
 0x40f   :  { %v4137_v10 = vadd.f32 %v4136_v33, %v4124_v49  ;;  %v4158_v51 = vsel %vm4157_vm7, %v10640_v61, %v4154_v50  ;;  %v9011_v33 = vld [vmem:[#allocation9 + $0x2b0] sm:$0xf]  ;;  %v9013_v49 = vld [vmem:[#allocation9 + $0x2c8] sm:$0xf0]  ;;  %v8820_v50 = vor.u32 %v10340_v56, %v8819_v39  ;;  %v10334_v53 = vld [vmem:[#allocation9 + $0x114] sm:$0xf0] }
 0x410   :  { %10643 = vrcp.f32 %v4177_v8  ;;  %v4163_v59 = vsel %vm4160_vm8, %v4162_v0, %v4158_v51  ;;  %v4189_v3 = vand.u32 2147483648, %v4177_v8  ;;  %v4187_v61 = vand.u32 2147483647, %v4177_v8  ;;  %v10382_v51 = vld [vmem:[#allocation9 + $0x294] sm:$0xf0] }
 0x411   :  { %v4195_v1 = vrot.slane %v4137_v10, 7  ;;  %vm4183_vm11 = vweird.f32 %v4177_v8  ;;  %v9012_v40 = vor.u32 %v10388_v45, %v9011_v33  ;;  %v9016_v60 = vor.u32 %v10385_v43, %v9013_v49  ;;  %v8987_v10 = vld [vmem:[#allocation9 + $0x280] sm:$0xf]  ;;  %v8797_v0 = vld [vmem:[#allocation9 + $0x118] sm:$0xf0] }
 0x412   :  { %v4190_v14 = vor.u32 1.1754944e-38, %v4189_v3  ;;  %vm4188_vm13 = vcmp.eq.f32.partialorder %v4187_v61, 8.507059e+37  ;;  %v8773_v3 = vld [vmem:[#allocation9 + $0xe8] sm:$0xf0]  ;;  %v10316_v31 = vld [vmem:[#allocation9 + $0x84] sm:$0xf0] }
 0x413   :  { %v4196_v62 = vsel %vm855_vm0, %v4111_v63, %v4195_v1  ;;  %v10331_v63 = vld [vmem:[#allocation9 + $0x104] sm:$0xf]  ;;  %v8965_v61 = vld [vmem:[#allocation9 + $0x268] sm:$0xf0]  ;;  %v10313_v39 = vld [vmem:[#allocation9 + $0x74] sm:$0xf]  ;;  %v8724_v33 = vor.u32 %v10316_v31, %v8723_v27 }
 0x414   :  { %v4198_v55 = vmul.f32 %v4196_v62, %v4163_v59  ;;  %v4125_v6 = vpop.f32.mrf.mxu2  ;;  %v4138_v4 = vpop.f32.mrf.mxu3  ;;  %v10379_v1 = vld [vmem:[#allocation9 + $0x284] sm:$0xf]  ;;  %v8989_v59 = vld [vmem:[#allocation9 + $0x298] sm:$0xf0]  ;;  %v8796_v62 = vor.u32 %v10334_v53, %v8795_v52  ;;  %v8725_v56 = vld [vmem:[#allocation9 + $0x88] sm:$0xf0] }
 0x415   :  { %v10328_v6 = vld [vmem:[#allocation9 + $0xe4] sm:$0xf0]  ;;  %v8800_v4 = vor.u32 %v10331_v63, %v8797_v0  ;;  %v8728_v43 = vor.u32 %v10313_v39, %v8725_v56  ;;  %v10307_v52 = vld [vmem:[#allocation9 + $0x44] sm:$0xf]  ;;  %v8701_v53 = vld [vmem:[#allocation9 + $0x58] sm:$0xf0] }
 0x416   :  { %v10644_v5 = vpop.eup %10643  ;;  %v4201_v20 = vadd.f32 %v4199_v2, %v4198_v55  ;;  %v8988_v55 = vor.u32 %v10382_v51, %v8987_v10  ;;  %v8771_v2 = vld [vmem:[#allocation9 + $0xd0] sm:$0xf]  ;;  %v10304_v0 = vld [vmem:[#allocation9 + $0x24] sm:$0xf0]  ;;  %v9193_v27 = vld [vmem:[#allocation9 + $0x138] sm:$0xf0] }
 0x417   :  { %v4179_v7 = vmul.f32 %v10644_v5, %v4177_v8  ;;  %vm4184_vm10 = vweird.f32 %v10644_v5  ;;  %v8824_v8 = vor.u32 %v10337_v46, %v8821_v48  ;;  %v8699_v46 = vld [vmem:[#allocation9 + $0x40] sm:$0xf]  ;;  %v10310_v48 = vld [vmem:[#allocation9 + $0x54] sm:$0xf0]  ;;  %v8675_v63 = vld [vmem:[#allocation9 + $0x10] sm:$0xf] }
 0x418   :  { %10645 = vtanh.f32 %v4201_v20  ;;  %vm4185_vm12 = vmor %vm4183_vm11, %vm4184_vm10  ;;  %v10376_v20 = vld [vmem:[#allocation9 + $0x264] sm:$0xf0]  ;;  %v8700_v10 = vor.u32 %v10310_v48, %v8699_v46  ;;  %v9167_v39 = vld [vmem:[#allocation9 + $0xf0] sm:$0xf] }
 0x419   :  { %v4180_v17 = vsub.f32 1.0, %v4179_v7  ;;  %v8963_v7 = vld [vmem:[#allocation9 + $0x250] sm:$0xf]  ;;  %v10428_v56 = vld [vmem:[#allocation9 + $0x104] sm:$0xf0] }
 0x41a   :  { %v9169_v46 = vld [vmem:[#allocation9 + $0x108] sm:$0xf0] }
 0x41b   :  { %v4181_v12 = vmul.f32 %v10644_v5, %v4180_v17  ;;  %v10325_v17 = vld [vmem:[#allocation9 + $0xd4] sm:$0xf] }
 0x41d   :  { %v4182_v11 = vadd.f32 %v10644_v5, %v4181_v12  ;;  %v10373_v12 = vld [vmem:[#allocation9 + $0x254] sm:$0xf] }
 0x41e   :  { %v10646_v22 = vpop.eup %10645 }
 0x41f   :  { %v4186_v15 = vsel %vm4185_vm12, %v10644_v5, %v4182_v11  ;;  %v8992_v5 = vor.u32 %v10379_v1, %v8989_v59  ;;  %v8772_v11 = vor.u32 %v10328_v6, %v8771_v2  ;;  %v8704_v1 = vor.u32 %v10307_v52, %v8701_v53  ;;  %v10301_v2 = vld [vmem:[#allocation9 + $0x14] sm:$0xf]  ;;  %v8677_v6 = vld [vmem:[#allocation9 + $0x28] sm:$0xf0]  ;;  %v9143_v52 = vld [vmem:[#allocation9 + $0xc0] sm:$0xf] }
 0x420   :  { %v4191_v41 = vsel %vm4188_vm13, %v4190_v14, %v4186_v15  ;;  %v8964_v14 = vor.u32 %v10376_v20, %v8963_v7  ;;  %v8747_v15 = vld [vmem:[#allocation9 + $0xa0] sm:$0xf]  ;;  %v8676_v7 = vor.u32 %v10304_v0, %v8675_v63  ;;  %v10422_v53 = vld [vmem:[#allocation9 + $0xd4] sm:$0xf0]  ;;  %v9145_v63 = vld [vmem:[#allocation9 + $0xd8] sm:$0xf0] }
 0x421   :  { %v4203_v9 = vsub.f32 1.0, %v4191_v41  ;;  %v4205_v23 = vmul.f32 %v4191_v41, %v11130_v42  ;;  %v10322_v41 = vld [vmem:[#allocation9 + $0xb4] sm:$0xf0] }
 0x422   :  { %v8748_v28 = vor.u32 %v10322_v41, %v8747_v15  ;;  %v10488_v15 = vld [vmem:[#allocation9 + $0x2e4] sm:$0xf0]  ;;  %v10437_v41 = vld [vmem:[#allocation9 + $0x154] sm:$0xf] }
 0x423   :  { %v4204_v16 = vmul.f32 %v10646_v22, %v4203_v9  ;;  %v8776_v9 = vor.u32 %v10325_v17, %v8773_v3  ;;  %v8968_v22 = vor.u32 %v10373_v12, %v8965_v61  ;;  %v8680_v17 = vor.u32 %v10301_v2, %v8677_v6  ;;  %v9215_v12 = vld [vmem:[#allocation9 + $0x150] sm:$0xf]  ;;  %v10440_v61 = vld [vmem:[#allocation9 + $0x164] sm:$0xf0] }
 0x424   :  { %v9119_v2 = vld [vmem:[#allocation9 + $0x90] sm:$0xf]  ;;  %v10416_v6 = vld [vmem:[#allocation9 + $0xa4] sm:$0xf0] }
 0x425   :  { %v11189_v36 = vadd.f32 %v4205_v23, %v4204_v16  ;;  %v8939_v16 = vld [vmem:[#allocation9 + $0x220] sm:$0xf]  ;;  %v10370_v23 = vld [vmem:[#allocation9 + $0x234] sm:$0xf0] }
 0x426   :  { %v8940_v30 = vor.u32 %v10370_v23, %v8939_v16  ;;  %v10485_v23 = vld [vmem:[#allocation9 + $0x2d4] sm:$0xf] }
 0x427   :  { %4208 = vst.msk [vmem:[#allocation12 + $0x4] ss:$8 sm:$0x3] %vm10949_vm9, %v11189_v36  ;;  %v4223_v32 = vperm.slane %v11189_v36, 0  ;;  %v4224_v26 = vperm.slane %v11189_v36, 1 }
 0x429   :  { %v11196_v38 = vpack.c.bf16 %v4223_v32, %v4223_v32  ;;  %v11198_v42 = vpack.c.bf16 %v4224_v26, %v4224_v26  ;;  %v8752_v32 = vor.u32 %v10319_v19, %v8749_v25  ;;  %v8944_v26 = vor.u32 %v10367_v37, %v8941_v18  ;;  %v9409_v19 = vld [vmem:[#allocation9 + $0x2e8] sm:$0xf0]  ;;  %v10434_v37 = vld [vmem:[#allocation9 + $0x134] sm:$0xf0] }
 0x42a   :  { %v9412_v25 = vor.u32 %v10485_v23, %v9409_v19  ;;  %v10458_v19 = vld [vmem:[#allocation9 + $0x1f4] sm:$0xf0] }
 0x42b   :  { %4813 = vmatmul.bf16.vlgmr.msrb.gmra.mxu0 %v11196_v38  ;;  %4826 = vmatmul.bf16.vlgmr.msrb.gmra.mxu1 %v11198_v42 }
 0x42c   :  { %4839 = vmatmul.bf16.vlgmr.msrb.gmra.mxu2 %v11196_v38  ;;  %4852 = vmatmul.bf16.vlgmr.msrb.gmra.mxu3 %v11198_v42 }
 0x42d   :  { %4909 = vmatpush.bf16.msrb.mxu0 %v8844_v34  ;;  %4922 = vmatpush.bf16.msrb.mxu1 %v9036_v35  ;;  %v8915_v34 = vld [vmem:[#allocation9 + $0x1f0] sm:$0xf]  ;;  %v10364_v35 = vld [vmem:[#allocation9 + $0x204] sm:$0xf0] }
 0x42e   :  { %4935 = vmatpush.bf16.msrb.mxu2 %v8848_v44  ;;  %4948 = vmatpush.bf16.msrb.mxu3 %v9040_v58  ;;  %v10361_v44 = vld [vmem:[#allocation9 + $0x1f4] sm:$0xf]  ;;  %v8917_v58 = vld [vmem:[#allocation9 + $0x208] sm:$0xf0]  ;;  %v8916_v45 = vor.u32 %v10364_v35, %v8915_v34  ;;  %v9385_v34 = vld [vmem:[#allocation9 + $0x2b8] sm:$0xf0] }
 0x42f   :  { %v8920_v49 = vor.u32 %v10361_v44, %v8917_v58  ;;  %v9359_v44 = vld [vmem:[#allocation9 + $0x270] sm:$0xf]  ;;  %v9168_v58 = vor.u32 %v10428_v56, %v9167_v39  ;;  %v9073_v39 = vld [vmem:[#allocation9 + $0x48] sm:$0xf0] }
 0x431   :  { %4910 = vmatpush.bf16.msrb.mxu0 %v8820_v50  ;;  %4923 = vmatpush.bf16.msrb.mxu1 %v9012_v40  ;;  %v8891_v50 = vld [vmem:[#allocation9 + $0x1c0] sm:$0xf]  ;;  %v10358_v40 = vld [vmem:[#allocation9 + $0x1d4] sm:$0xf0] }
 0x432   :  { %4936 = vmatpush.bf16.msrb.mxu2 %v8824_v8  ;;  %4949 = vmatpush.bf16.msrb.mxu3 %v9016_v60  ;;  %v10355_v8 = vld [vmem:[#allocation9 + $0x1c4] sm:$0xf]  ;;  %v8893_v60 = vld [vmem:[#allocation9 + $0x1d8] sm:$0xf0]  ;;  %v8892_v51 = vor.u32 %v10358_v40, %v8891_v50  ;;  %v9361_v50 = vld [vmem:[#allocation9 + $0x288] sm:$0xf0] }
 0x433   :  { %v8896_v59 = vor.u32 %v10355_v8, %v8893_v60  ;;  %v9335_v8 = vld [vmem:[#allocation9 + $0x240] sm:$0xf]  ;;  %v9144_v60 = vor.u32 %v10422_v53, %v9143_v52 }
 0x435   :  { %4911 = vmatpush.bf16.msrb.mxu0 %v8796_v62  ;;  %4924 = vmatpush.bf16.msrb.mxu1 %v8988_v55  ;;  %v8867_v62 = vld [vmem:[#allocation9 + $0x190] sm:$0xf]  ;;  %v10352_v55 = vld [vmem:[#allocation9 + $0x1a4] sm:$0xf0] }
 0x436   :  { %4937 = vmatpush.bf16.msrb.mxu2 %v8800_v4  ;;  %4950 = vmatpush.bf16.msrb.mxu3 %v8992_v5  ;;  %v10349_v4 = vld [vmem:[#allocation9 + $0x194] sm:$0xf]  ;;  %v8869_v5 = vld [vmem:[#allocation9 + $0x1a8] sm:$0xf0]  ;;  %v8868_v20 = vor.u32 %v10352_v55, %v8867_v62  ;;  %v9337_v62 = vld [vmem:[#allocation9 + $0x258] sm:$0xf0] }
 0x437   :  { %v8872_v3 = vor.u32 %v10349_v4, %v8869_v5  ;;  %v9120_v4 = vor.u32 %v10416_v6, %v9119_v2  ;;  %v9311_v5 = vld [vmem:[#allocation9 + $0x210] sm:$0xf]  ;;  %v10443_v2 = vld [vmem:[#allocation9 + $0x184] sm:$0xf]  ;;  %v9241_v6 = vld [vmem:[#allocation9 + $0x198] sm:$0xf0] }
 0x439   :  { %4912 = vmatpush.bf16.msrb.mxu0 %v8772_v11  ;;  %4925 = vmatpush.bf16.msrb.mxu1 %v8964_v14  ;;  %v9407_v11 = vld [vmem:[#allocation9 + $0x2d0] sm:$0xf]  ;;  %v9216_v14 = vor.u32 %v10440_v61, %v9215_v12  ;;  %v10461_v12 = vld [vmem:[#allocation9 + $0x214] sm:$0xf]  ;;  %v9313_v61 = vld [vmem:[#allocation9 + $0x228] sm:$0xf0] }
 0x43a   :  { %4938 = vmatpush.bf16.msrb.mxu2 %v8776_v9  ;;  %4951 = vmatpush.bf16.msrb.mxu3 %v8968_v22  ;;  %v9217_v9 = vld [vmem:[#allocation9 + $0x168] sm:$0xf0]  ;;  %v9408_v22 = vor.u32 %v10488_v15, %v9407_v11 }
 0x43b   :  { %4865 = vmatmul.bf16.vlgmr.msra.gmra.mxu0 %v11196_v38  ;;  %4878 = vmatmul.bf16.vlgmr.msra.gmra.mxu1 %v11198_v42  ;;  %v9220_v16 = vor.u32 %v10437_v41, %v9217_v9  ;;  %v9095_v9 = vld [vmem:[#allocation9 + $0x60] sm:$0xf] }
 0x43c   :  { %4891 = vmatmul.bf16.vlgmr.msra.gmra.mxu2 %v11196_v38  ;;  %4904 = vmatmul.bf16.vlgmr.msra.gmra.mxu3 %v11198_v42 }
 0x43d   :  { %4913 = vmatpush.bf16.msrb.mxu0 %v8748_v28  ;;  %4926 = vmatpush.bf16.msrb.mxu1 %v8940_v30  ;;  %v10482_v28 = vld [vmem:[#allocation9 + $0x2b4] sm:$0xf0]  ;;  %v10431_v30 = vld [vmem:[#allocation9 + $0x124] sm:$0xf] }
 0x43e   :  { %4939 = vmatpush.bf16.msrb.mxu2 %v8752_v32  ;;  %4952 = vmatpush.bf16.msrb.mxu3 %v8944_v26  ;;  %v9196_v32 = vor.u32 %v10431_v30, %v9193_v27  ;;  %v10479_v26 = vld [vmem:[#allocation9 + $0x2a4] sm:$0xf]  ;;  %v9071_v27 = vld [vmem:[#allocation9 + $0x30] sm:$0xf] }
 0x43f   :  { %v9388_v35 = vor.u32 %v10479_v26, %v9385_v34  ;;  %v10452_v34 = vld [vmem:[#allocation9 + $0x1c4] sm:$0xf0] }
 0x441   :  { %4914 = vmatpush.bf16.msrb.mxu0 %v8724_v33  ;;  %4927 = vmatpush.bf16.msrb.mxu1 %v8916_v45  ;;  %v10476_v33 = vld [vmem:[#allocation9 + $0x284] sm:$0xf0]  ;;  %v10425_v45 = vld [vmem:[#allocation9 + $0xf4] sm:$0xf] }
 0x442   :  { %4940 = vmatpush.bf16.msrb.mxu2 %v8728_v43  ;;  %4953 = vmatpush.bf16.msrb.mxu3 %v8920_v49  ;;  %v9360_v48 = vor.u32 %v10476_v33, %v9359_v44  ;;  %v9172_v43 = vor.u32 %v10425_v45, %v9169_v46  ;;  %v10473_v49 = vld [vmem:[#allocation9 + $0x274] sm:$0xf]  ;;  %v9265_v33 = vld [vmem:[#allocation9 + $0x1c8] sm:$0xf0] }
 0x443   :  { %v9364_v40 = vor.u32 %v10473_v49, %v9361_v50  ;;  %v4219_v46 = vld [vmem:[%s4218_s21] ss:$8 sm:$0xf] }
 0x445   :  { %4915 = vmatpush.bf16.msrb.mxu0 %v8700_v10  ;;  %4928 = vmatpush.bf16.msrb.mxu1 %v8892_v51  ;;  %v10470_v10 = vld [vmem:[#allocation9 + $0x254] sm:$0xf0]  ;;  %v10419_v51 = vld [vmem:[#allocation9 + $0xc4] sm:$0xf] }
 0x446   :  { %4941 = vmatpush.bf16.msrb.mxu2 %v8704_v1  ;;  %4954 = vmatpush.bf16.msrb.mxu3 %v8896_v59  ;;  %v9336_v0 = vor.u32 %v10470_v10, %v9335_v8  ;;  %v9148_v1 = vor.u32 %v10419_v51, %v9145_v63  ;;  %v10467_v59 = vld [vmem:[#allocation9 + $0x244] sm:$0xf]  ;;  %v9047_v8 = vld [vmem:[#allocation9] sm:$0xf]  ;;  %v10446_v63 = vld [vmem:[#allocation9 + $0x194] sm:$0xf0] }
 0x447   :  { %v9340_v55 = vor.u32 %v10467_v59, %v9337_v62  ;;  %v9239_v10 = vld [vmem:[#allocation9 + $0x180] sm:$0xf] }
 0x448   :  { %v9240_v62 = vor.u32 %v10446_v63, %v9239_v10  ;;  %v10423_v63 = vld [vmem:[#allocation9 + $0xdc] sm:$0xf0] }
 0x449   :  { %4916 = vmatpush.bf16.msrb.mxu0 %v8676_v7  ;;  %4929 = vmatpush.bf16.msrb.mxu1 %v8868_v20  ;;  %v10464_v7 = vld [vmem:[#allocation9 + $0x224] sm:$0xf0]  ;;  %v10413_v20 = vld [vmem:[#allocation9 + $0x94] sm:$0xf] }
 0x44a   :  { %4942 = vmatpush.bf16.msrb.mxu2 %v8680_v17  ;;  %4955 = vmatpush.bf16.msrb.mxu3 %v8872_v3  ;;  %v9312_v17 = vor.u32 %v10464_v7, %v9311_v5  ;;  %v9121_v3 = vld [vmem:[#allocation9 + $0xa8] sm:$0xf0]  ;;  %v9244_v7 = vor.u32 %v10443_v2, %v9241_v6 }
 0x44b   :  { %v9124_v11 = vor.u32 %v10413_v20, %v9121_v3  ;;  %v10441_v20 = vld [vmem:[#allocation9 + $0x16c] sm:$0xf0] }
 0x44c   :  { %4917 = vmatmul.bf16.vlgmr.msrb.gmra.mxu0 %v11196_v38  ;;  %4930 = vmatmul.bf16.vlgmr.msrb.gmra.mxu1 %v11198_v42  ;;  %v10489_v3 = vld [vmem:[#allocation9 + $0x2ec] sm:$0xf0] }
 0x44d   :  { %4943 = vmatmul.bf16.vlgmr.msrb.gmra.mxu2 %v11196_v38  ;;  %4956 = vmatmul.bf16.vlgmr.msrb.gmra.mxu3 %v11198_v42  ;;  %v9191_v38 = vld [vmem:[#allocation9 + $0x120] sm:$0xf] }
 0x44e   :  { %5626 = vmatpush.bf16.msra.mxu0 %v9216_v14  ;;  %5639 = vmatpush.bf16.msra.mxu1 %v9408_v22  ;;  %v9383_v42 = vld [vmem:[#allocation9 + $0x2a0] sm:$0xf]  ;;  %v9192_v18 = vor.u32 %v10434_v37, %v9191_v38  ;;  %v9316_v14 = vor.u32 %v10461_v12, %v9313_v61  ;;  %v10410_v22 = vld [vmem:[#allocation9 + $0x74] sm:$0xf0]  ;;  %v9097_v38 = vld [vmem:[#allocation9 + $0x78] sm:$0xf0] }
 0x44f   :  { %5652 = vmatpush.bf16.msra.mxu2 %v9220_v16  ;;  %5665 = vmatpush.bf16.msra.mxu3 %v9412_v25  ;;  %v9384_v31 = vor.u32 %v10482_v28, %v9383_v42  ;;  %v9287_v16 = vld [vmem:[#allocation9 + $0x1e0] sm:$0xf]  ;;  %v9096_v23 = vor.u32 %v10410_v22, %v9095_v9  ;;  %v10407_v25 = vld [vmem:[#allocation9 + $0x64] sm:$0xf]  ;;  %v9289_v28 = vld [vmem:[#allocation9 + $0x1f8] sm:$0xf0] }
 0x450   :  { %v9288_v37 = vor.u32 %v10458_v19, %v9287_v16  ;;  %v9100_v42 = vor.u32 %v10407_v25, %v9097_v38  ;;  %v9225_v9 = vld [vmem:[#allocation9 + $0x170] sm:$0xf0]  ;;  %v10486_v16 = vld [vmem:[#allocation9 + $0x2dc] sm:$0xf]  ;;  %v9199_v19 = vld [vmem:[#allocation9 + $0x128] sm:$0xf] }
 0x452   :  { %5627 = vmatpush.bf16.msra.mxu0 %v9192_v18  ;;  %5640 = vmatpush.bf16.msra.mxu1 %v9384_v31  ;;  %v10455_v18 = vld [vmem:[#allocation9 + $0x1e4] sm:$0xf]  ;;  %v10404_v31 = vld [vmem:[#allocation9 + $0x44] sm:$0xf0] }
 0x453   :  { %5653 = vmatpush.bf16.msra.mxu2 %v9196_v32  ;;  %5666 = vmatpush.bf16.msra.mxu3 %v9388_v35  ;;  %v9292_v30 = vor.u32 %v10455_v18, %v9289_v28  ;;  %v9263_v32 = vld [vmem:[#allocation9 + $0x1b0] sm:$0xf]  ;;  %v9072_v26 = vor.u32 %v10404_v31, %v9071_v27  ;;  %v10401_v35 = vld [vmem:[#allocation9 + $0x34] sm:$0xf] }
 0x454   :  { %v9264_v56 = vor.u32 %v10452_v34, %v9263_v32  ;;  %v9076_v44 = vor.u32 %v10401_v35, %v9073_v39  ;;  %v10432_v32 = vld [vmem:[#allocation9 + $0x12c] sm:$0xf] }
 0x455   :  { %v10480_v34 = vld [vmem:[#allocation9 + $0x2ac] sm:$0xf] }
 0x456   :  { %5628 = vmatpush.bf16.msra.mxu0 %v9168_v58  ;;  %5641 = vmatpush.bf16.msra.mxu1 %v9360_v48  ;;  %v10449_v58 = vld [vmem:[#allocation9 + $0x1b4] sm:$0xf]  ;;  %v4220_v48 = vld [vmem:[%s4218_s21] ss:$8 sm:$0x30] }
 0x457   :  { %5654 = vmatpush.bf16.msra.mxu2 %v9172_v43  ;;  %5667 = vmatpush.bf16.msra.mxu3 %v9364_v40  ;;  %v9268_v49 = vor.u32 %v10449_v58, %v9265_v33  ;;  %v11223_v5 = vor.u32 %v4220_v48, %v4219_v46  ;;  %v10429_v46 = vld [vmem:[#allocation9 + $0x10c] sm:$0xf0] }
 0x45a   :  { %5629 = vmatpush.bf16.msra.mxu0 %v9144_v60  ;;  %5642 = vmatpush.bf16.msra.mxu1 %v9336_v0  ;;  %v10398_v60 = vld [vmem:[#allocation9 + $0x14] sm:$0xf0]  ;;  %v10395_v0 = vld [vmem:[#allocation9 + $0x4] sm:$0xf] }
 0x45b   :  { %5655 = vmatpush.bf16.msra.mxu2 %v9148_v1  ;;  %5668 = vmatpush.bf16.msra.mxu3 %v9340_v55  ;;  %v9048_v51 = vor.u32 %v10398_v60, %v9047_v8  ;;  %v9049_v1 = vld [vmem:[#allocation9 + $0x18] sm:$0xf0]  ;;  %v9369_v8 = vld [vmem:[#allocation9 + $0x290] sm:$0xf0] }
 0x45c   :  { %v9052_v55 = vor.u32 %v10395_v0, %v9049_v1  ;;  %v9343_v0 = vld [vmem:[#allocation9 + $0x248] sm:$0xf] }
 0x45e   :  { %5630 = vmatpush.bf16.msra.mxu0 %v9120_v4  ;;  %5643 = vmatpush.bf16.msra.mxu1 %v9312_v17  ;;  %v9223_v4 = vld [vmem:[#allocation9 + $0x158] sm:$0xf] }
 0x45f   :  { %5656 = vmatpush.bf16.msra.mxu2 %v9124_v11  ;;  %5669 = vmatpush.bf16.msra.mxu3 %v9316_v14  ;;  %v9415_v17 = vld [vmem:[#allocation9 + $0x2d8] sm:$0xf]  ;;  %v9224_v11 = vor.u32 %v10441_v20, %v9223_v4  ;;  %v10468_v20 = vld [vmem:[#allocation9 + $0x24c] sm:$0xf] }
 0x460   :  { %v9416_v14 = vor.u32 %v10489_v3, %v9415_v17  ;;  %v9345_v17 = vld [vmem:[#allocation9 + $0x260] sm:$0xf0] }
 0x462   :  { %5631 = vmatpush.bf16.msra.mxu0 %v9096_v23  ;;  %5644 = vmatpush.bf16.msra.mxu1 %v9288_v37  ;;  %v9417_v23 = vld [vmem:[#allocation9 + $0x2f0] sm:$0xf0]  ;;  %v10435_v37 = vld [vmem:[#allocation9 + $0x13c] sm:$0xf0] }
 0x463   :  { %5657 = vmatpush.bf16.msra.mxu2 %v9100_v42  ;;  %5670 = vmatpush.bf16.msra.mxu3 %v9292_v30  ;;  %v9420_v38 = vor.u32 %v10486_v16, %v9417_v23  ;;  %v9391_v42 = vld [vmem:[#allocation9 + $0x2a8] sm:$0xf]  ;;  %v9200_v27 = vor.u32 %v10435_v37, %v9199_v19  ;;  %v9319_v16 = vld [vmem:[#allocation9 + $0x218] sm:$0xf]  ;;  %v10465_v37 = vld [vmem:[#allocation9 + $0x22c] sm:$0xf0] }
 0x466   :  { %5632 = vmatpush.bf16.msra.mxu0 %v9072_v26  ;;  %5645 = vmatpush.bf16.msra.mxu1 %v9264_v56  ;;  %v9201_v26 = vld [vmem:[#allocation9 + $0x140] sm:$0xf0] }
 0x467   :  { %5658 = vmatpush.bf16.msra.mxu2 %v9076_v44  ;;  %5671 = vmatpush.bf16.msra.mxu3 %v9268_v49  ;;  %v9204_v56 = vor.u32 %v10432_v32, %v9201_v26  ;;  %v9393_v44 = vld [vmem:[#allocation9 + $0x2c0] sm:$0xf0]  ;;  %v10477_v49 = vld [vmem:[#allocation9 + $0x28c] sm:$0xf0] }
 0x468   :  { %v9396_v33 = vor.u32 %v10480_v34, %v9393_v44  ;;  %v9103_v34 = vld [vmem:[#allocation9 + $0x68] sm:$0xf] }
 0x46a   :  { %5633 = vmatpush.bf16.msra.mxu0 %v9048_v51  ;;  %5646 = vmatpush.bf16.msra.mxu1 %v9240_v62  ;;  %v9151_v51 = vld [vmem:[#allocation9 + $0xc8] sm:$0xf]  ;;  %v10420_v62 = vld [vmem:[#allocation9 + $0xcc] sm:$0xf] }
 0x46b   :  { %5659 = vmatpush.bf16.msra.mxu2 %v9052_v55  ;;  %5672 = vmatpush.bf16.msra.mxu3 %v9244_v7  ;;  %v9152_v1 = vor.u32 %v10423_v63, %v9151_v51  ;;  %v9153_v55 = vld [vmem:[#allocation9 + $0xe0] sm:$0xf0]  ;;  %v9079_v51 = vld [vmem:[#allocation9 + $0x38] sm:$0xf]  ;;  %v10405_v63 = vld [vmem:[#allocation9 + $0x4c] sm:$0xf0] }
 0x46c   :  { %v9156_v7 = vor.u32 %v10420_v62, %v9153_v55  ;;  %v10453_v62 = vld [vmem:[#allocation9 + $0x1cc] sm:$0xf0]  ;;  %v10402_v55 = vld [vmem:[#allocation9 + $0x3c] sm:$0xf] }
 0x46e   :  { %5678 = vmatpush.bf16.msrb.mxu0 %v9224_v11  ;;  %5691 = vmatpush.bf16.msrb.mxu1 %v9416_v14  ;;  %v9348_v14 = vor.u32 %v10468_v20, %v9345_v17  ;;  %v9273_v20 = vld [vmem:[#allocation9 + $0x1d0] sm:$0xf0] }
 0x46f   :  { %5717 = vmatpush.bf16.msrb.mxu3 %v9420_v38 }
 0x472   :  { %5679 = vmatpush.bf16.msrb.mxu0 %v9200_v27 }
 0x473   :  { %5718 = vmatpush.bf16.msrb.mxu3 %v9396_v33  ;;  %v10459_v33 = vld [vmem:[#allocation9 + $0x1fc] sm:$0xf0] }
 0x4a8   :  { %v4814_v15 = vpop.f32.mrf.mxu0  ;;  %v11216_v41 = vpop.f32.mrf.mxu1 }
 0x4a9   :  { %v4815_v50 = vadd.f32 %v4814_v15, %v10897_v57  ;;  %v10438_v15 = vld [vmem:[#allocation9 + $0x15c] sm:$0xf] }
 0x4aa   :  { %v9228_v22 = vor.u32 %v10438_v15, %v9225_v9  ;;  %v9127_v9 = vld [vmem:[#allocation9 + $0x98] sm:$0xf] }
 0x4ab   :  { %v4828_v12 = vadd.f32 %v11216_v41, %v4815_v50  ;;  %v10483_v41 = vld [vmem:[#allocation9 + $0x2bc] sm:$0xf0]  ;;  %v10426_v50 = vld [vmem:[#allocation9 + $0xfc] sm:$0xf] }
 0x4ac   :  { %5704 = vmatpush.bf16.msrb.mxu2 %v9228_v22  ;;  %v9392_v31 = vor.u32 %v10483_v41, %v9391_v42  ;;  %v10417_v22 = vld [vmem:[#allocation9 + $0xac] sm:$0xf0]  ;;  %v10414_v42 = vld [vmem:[#allocation9 + $0x9c] sm:$0xf]  ;;  %v9320_v41 = vor.u32 %v10465_v37, %v9319_v16  ;;  %v9249_v37 = vld [vmem:[#allocation9 + $0x1a0] sm:$0xf0] }
 0x4ad   :  { %v9128_v38 = vor.u32 %v10417_v22, %v9127_v9  ;;  %v10447_v9 = vld [vmem:[#allocation9 + $0x19c] sm:$0xf0]  ;;  %v10396_v22 = vld [vmem:[#allocation9 + $0xc] sm:$0xf] }
 0x4ae   :  { %5692 = vmatpush.bf16.msrb.mxu1 %v9392_v31 }
 0x4af   :  { %v4840_v45 = vpop.f32.mrf.mxu2  ;;  %v4853_v43 = vpop.f32.mrf.mxu3 }
 0x4b0   :  { %v4841_v40 = vadd.f32 %v4840_v45, %v10894_v54  ;;  %v4816_v52 = vpop.f32.mrf.mxu0  ;;  %v4829_v53 = vpop.f32.mrf.mxu1  ;;  %v9175_v45 = vld [vmem:[#allocation9 + $0xf8] sm:$0xf]  ;;  %5705 = vmatpush.bf16.msrb.mxu2 %v9204_v56 }
 0x4b1   :  { %v9176_v48 = vor.u32 %v10429_v46, %v9175_v45  ;;  %v9177_v52 = vld [vmem:[#allocation9 + $0x110] sm:$0xf0]  ;;  %v10474_v53 = vld [vmem:[#allocation9 + $0x27c] sm:$0xf] }
 0x4b2   :  { %v4854_v59 = vadd.f32 %v4853_v43, %v4841_v40  ;;  %v9367_v43 = vld [vmem:[#allocation9 + $0x278] sm:$0xf]  ;;  %v9180_v60 = vor.u32 %v10426_v50, %v9177_v52  ;;  %v9372_v10 = vor.u32 %v10474_v53, %v9369_v8  ;;  %v9297_v52 = vld [vmem:[#allocation9 + $0x200] sm:$0xf0] }
 0x4b3   :  { %v9368_v40 = vor.u32 %v10477_v49, %v9367_v43  ;;  %5680 = vmatpush.bf16.msrb.mxu0 %v9176_v48  ;;  %v10408_v49 = vld [vmem:[#allocation9 + $0x6c] sm:$0xf] }
 0x4b4   :  { %v4963_v61 = vrot.slane %v4854_v59, 7  ;;  %v10471_v59 = vld [vmem:[#allocation9 + $0x25c] sm:$0xf0]  ;;  %5706 = vmatpush.bf16.msrb.mxu2 %v9180_v60  ;;  %5719 = vmatpush.bf16.msrb.mxu3 %v9372_v10 }
 0x4b5   :  { %5693 = vmatpush.bf16.msrb.mxu1 %v9368_v40  ;;  %v9344_v4 = vor.u32 %v10471_v59, %v9343_v0  ;;  %v10456_v40 = vld [vmem:[#allocation9 + $0x1ec] sm:$0xf]  ;;  %v9271_v59 = vld [vmem:[#allocation9 + $0x1b8] sm:$0xf] }
 0x4b6   :  { %v4964_v25 = vsel %vm855_vm0, %v4828_v12, %v4963_v61  ;;  %v9300_v10 = vor.u32 %v10456_v40, %v9297_v52 }
 0x4b7   :  { %v4966_v18 = vadd.f32 %v4964_v25, %v11223_v5  ;;  %v4842_v28 = vpop.f32.mrf.mxu2  ;;  %v4855_v30 = vpop.f32.mrf.mxu3  ;;  %v4987_v25 = vrot.slane %v11223_v5, 2  ;;  %5681 = vmatpush.bf16.msrb.mxu0 %v9152_v1  ;;  %v9080_v1 = vor.u32 %v10405_v63, %v9079_v51 }
 0x4b8   :  { %v4866_v35 = vpop.f32.mrf.mxu0  ;;  %v11228_v39 = vpop.f32.mrf.mxu1  ;;  %5707 = vmatpush.bf16.msrb.mxu2 %v9156_v7  ;;  %v10462_v28 = vld [vmem:[#allocation9 + $0x21c] sm:$0xf]  ;;  %v9321_v30 = vld [vmem:[#allocation9 + $0x230] sm:$0xf0]  ;;  %5720 = vmatpush.bf16.msrb.mxu3 %v9348_v14 }
 0x4b9   :  { %v9041_v58 = vmul.f32 -1.442695, %v4966_v18  ;;  %v4867_v3 = vadd.f32 %v4866_v35, %v10912_v21  ;;  %5694 = vmatpush.bf16.msrb.mxu1 %v9344_v4  ;;  %v9129_v18 = vld [vmem:[#allocation9 + $0xb0] sm:$0xf0]  ;;  %v9324_v26 = vor.u32 %v10462_v28, %v9321_v30  ;;  %v10411_v35 = vld [vmem:[#allocation9 + $0x7c] sm:$0xf0] }
 0x4ba   :  { %v9132_v32 = vor.u32 %v10414_v42, %v9129_v18  ;;  %v9104_v44 = vor.u32 %v10411_v35, %v9103_v34  ;;  %v9081_v4 = vld [vmem:[#allocation9 + $0x50] sm:$0xf0]  ;;  %v10450_v7 = vld [vmem:[#allocation9 + $0x1bc] sm:$0xf] }
 0x4bb   :  { %10647 = vpow2.f32 %v9041_v58  ;;  %v4880_v27 = vadd.f32 %v11228_v39, %v4867_v3  ;;  %5682 = vmatpush.bf16.msrb.mxu0 %v9128_v38  ;;  %v9295_v58 = vld [vmem:[#allocation9 + $0x1e8] sm:$0xf]  ;;  %v9105_v39 = vld [vmem:[#allocation9 + $0x80] sm:$0xf0]  ;;  %v9084_v17 = vor.u32 %v10402_v55, %v9081_v4  ;;  %v9276_v3 = vor.u32 %v10450_v7, %v9273_v20  ;;  %v10444_v38 = vld [vmem:[#allocation9 + $0x18c] sm:$0xf] }
 0x4bc   :  { %5708 = vmatpush.bf16.msrb.mxu2 %v9132_v32  ;;  %v9296_v43 = vor.u32 %v10459_v33, %v9295_v58  ;;  %5721 = vmatpush.bf16.msrb.mxu3 %v9324_v26  ;;  %v9108_v50 = vor.u32 %v10408_v49, %v9105_v39  ;;  %v9252_v28 = vor.u32 %v10444_v38, %v9249_v37  ;;  %v9231_v4 = vld [vmem:[#allocation9 + $0x160] sm:$0xf]  ;;  %v10442_v7 = vld [vmem:[#allocation9 + $0x174] sm:$0xf0]  ;;  %v10436_v38 = vld [vmem:[#allocation9 + $0x144] sm:$0xf0] }
 0x4bd   :  { %5695 = vmatpush.bf16.msrb.mxu1 %v9320_v41 }
 0x4bf   :  { %v4892_v2 = vpop.f32.mrf.mxu2  ;;  %v4905_v6 = vpop.f32.mrf.mxu3  ;;  %5683 = vmatpush.bf16.msrb.mxu0 %v9104_v44 }
 0x4c0   :  { %v4893_v12 = vadd.f32 %v4892_v2, %v10909_v13  ;;  %v4868_v61 = vpop.f32.mrf.mxu0  ;;  %v4881_v11 = vpop.f32.mrf.mxu1  ;;  %5709 = vmatpush.bf16.msrb.mxu2 %v9108_v50  ;;  %5722 = vmatpush.bf16.msrb.mxu3 %v9300_v10  ;;  %v5020_v50 = vrot.slane %v11223_v5, 4 }
 0x4c1   :  { %v10648_v15 = vpop.eup %10647  ;;  %5696 = vmatpush.bf16.msrb.mxu1 %v9296_v43  ;;  %v9055_v61 = vld [vmem:[#allocation9 + $0x8] sm:$0xf]  ;;  %v10399_v11 = vld [vmem:[#allocation9 + $0x1c] sm:$0xf0] }
 0x4c2   :  { %v11232_v23 = vadd.f32 1.0, %v10648_v15  ;;  %v4906_v19 = vadd.f32 %v4905_v6, %v4893_v12  ;;  %v9272_v6 = vor.u32 %v10453_v62, %v9271_v59  ;;  %v9056_v14 = vor.u32 %v10399_v11, %v9055_v61  ;;  %v9247_v15 = vld [vmem:[#allocation9 + $0x188] sm:$0xf]  ;;  %v9233_v61 = vld [vmem:[#allocation9 + $0x178] sm:$0xf0] }
 0x4c3   :  { %5684 = vmatpush.bf16.msrb.mxu0 %v9080_v1  ;;  %v10487_v11 = vld [vmem:[#allocation9 + $0x2e4] sm:$0xf] }
 0x4c4   :  { %10649 = vrcp.f32 %v11232_v23  ;;  %v4991_v31 = vrot.slane %v4906_v19, 7  ;;  %5710 = vmatpush.bf16.msrb.mxu2 %v9084_v17  ;;  %v9248_v19 = vor.u32 %v10447_v9, %v9247_v15  ;;  %5723 = vmatpush.bf16.msrb.mxu3 %v9276_v3  ;;  %v4982_v26 = vand.u32 2147483648, %v11232_v23  ;;  %v9423_v17 = vld [vmem:[#allocation9 + $0x2e0] sm:$0xf]  ;;  %v10490_v3 = vld [vmem:[#allocation9 + $0x2f4] sm:$0xf0] }
 0x4c5   :  { %5697 = vmatpush.bf16.msrb.mxu1 %v9272_v6  ;;  %vm4976_vm15 = vweird.f32 %v11232_v23  ;;  %v4980_v44 = vand.u32 2147483647, %v11232_v23 }
 0x4c6   :  { %v4992_v56 = vsel %vm855_vm0, %v4880_v27, %v4991_v31 }
 0x4c7   :  { %v4994_v45 = vadd.f32 %v4992_v56, %v4987_v25  ;;  %v4894_v46 = vpop.f32.mrf.mxu2  ;;  %v4907_v48 = vpop.f32.mrf.mxu3  ;;  %v9057_v25 = vld [vmem:[#allocation9 + $0x20] sm:$0xf0]  ;;  %5685 = vmatpush.bf16.msrb.mxu0 %v9056_v14  ;;  %vm4981_vm2 = vcmp.eq.f32.partialorder %v4980_v44, 8.507059e+37  ;;  %v9425_v14 = vld [vmem:[#allocation9 + $0x2f8] sm:$0xf0] }
 0x4c8   :  { %v9060_v18 = vor.u32 %v10396_v22, %v9057_v25  ;;  %5724 = vmatpush.bf16.msrb.mxu3 %v9252_v28  ;;  %v4983_v46 = vor.u32 1.1754944e-38, %v4982_v26  ;;  %v9207_v25 = vld [vmem:[#allocation9 + $0x130] sm:$0xf]  ;;  %v10433_v28 = vld [vmem:[#allocation9 + $0x134] sm:$0xf] }
 0x4c9   :  { %v9042_v53 = vmul.f32 -1.442695, %v4994_v45  ;;  %v4918_v8 = vpop.f32.mrf.mxu0  ;;  %v4931_v60 = vpop.f32.mrf.mxu1  ;;  %5698 = vmatpush.bf16.msrb.mxu1 %v9248_v19  ;;  %v9424_v19 = vor.u32 %v10490_v3, %v9423_v17  ;;  %v10463_v17 = vld [vmem:[#allocation9 + $0x224] sm:$0xf]  ;;  %v9329_v3 = vld [vmem:[#allocation9 + $0x238] sm:$0xf0] }
 0x4ca   :  { %v10650_v0 = vpop.eup %10649  ;;  %v4919_v27 = vadd.f32 %v4918_v8, %v10929_v29  ;;  %5711 = vmatpush.bf16.msrb.mxu2 %v9060_v18  ;;  %v10484_v18 = vld [vmem:[#allocation9 + $0x2c4] sm:$0xf0] }
 0x4cb   :  { %10651 = vpow2.f32 %v9042_v53  ;;  %v4972_v2 = vmul.f32 %v10650_v0, %v11232_v23  ;;  %vm4977_vm14 = vweird.f32 %v10650_v0 }
 0x4cc   :  { %vm4978_vm1 = vmor %vm4976_vm15, %vm4977_vm14  ;;  %v4932_v45 = vadd.f32 %v4931_v60, %v4919_v27  ;;  %v10481_v27 = vld [vmem:[#allocation9 + $0x2b4] sm:$0xf] }
 0x4cd   :  { %v4973_v12 = vsub.f32 1.0, %v4972_v2 }
 0x4cf   :  { %v4974_v16 = vmul.f32 %v10650_v0, %v4973_v12  ;;  %v10439_v12 = vld [vmem:[#allocation9 + $0x164] sm:$0xf] }
 0x4d0   :  { %v4944_v42 = vpop.f32.mrf.mxu2  ;;  %v4957_v41 = vpop.f32.mrf.mxu3  ;;  %v9236_v37 = vor.u32 %v10439_v12, %v9233_v61 }
 0x4d1   :  { %v10652_v30 = vpop.eup %10651  ;;  %v4945_v31 = vadd.f32 %v4944_v42, %v10933_v47  ;;  %v4975_v32 = vadd.f32 %v10650_v0, %v4974_v16  ;;  %v4920_v34 = vpop.f32.mrf.mxu0  ;;  %v9232_v16 = vor.u32 %v10442_v7, %v9231_v4  ;;  %v9428_v42 = vor.u32 %v10487_v11, %v9425_v14  ;;  %v10415_v4 = vld [vmem:[#allocation9 + $0xa4] sm:$0xf]  ;;  %v9137_v7 = vld [vmem:[#allocation9 + $0xb8] sm:$0xf0]  ;;  %v9111_v11 = vld [vmem:[#allocation9 + $0x70] sm:$0xf] }
 0x4d2   :  { %v4933_v35 = vpop.f32.mrf.mxu1  ;;  %v4998_v56 = vadd.f32 1.0, %v10652_v30  ;;  %v9209_v30 = vld [vmem:[#allocation9 + $0x148] sm:$0xf0]  ;;  %v9183_v34 = vld [vmem:[#allocation9 + $0x100] sm:$0xf] }
 0x4d3   :  { %v4958_v58 = vadd.f32 %v4957_v41, %v4945_v31  ;;  %v4979_v33 = vsel %vm4978_vm1, %v10650_v0, %v4975_v32  ;;  %v9399_v41 = vld [vmem:[#allocation9 + $0x2b0] sm:$0xf]  ;;  %v9401_v31 = vld [vmem:[#allocation9 + $0x2c8] sm:$0xf0]  ;;  %v9208_v32 = vor.u32 %v10436_v38, %v9207_v25  ;;  %v10430_v35 = vld [vmem:[#allocation9 + $0x114] sm:$0xf0] }
 0x4d4   :  { %10653 = vrcp.f32 %v4998_v56  ;;  %v4984_v43 = vsel %vm4981_vm2, %v4983_v46, %v4979_v33  ;;  %v5010_v51 = vand.u32 2147483648, %v4998_v56  ;;  %v5008_v0 = vand.u32 2147483647, %v4998_v56  ;;  %v10478_v33 = vld [vmem:[#allocation9 + $0x294] sm:$0xf0] }
 0x4d5   :  { %v5016_v48 = vrot.slane %v4958_v58, 7  ;;  %vm5004_vm4 = vweird.f32 %v4998_v56  ;;  %v9400_v26 = vor.u32 %v10484_v18, %v9399_v41  ;;  %v9404_v44 = vor.u32 %v10481_v27, %v9401_v31  ;;  %v9375_v58 = vld [vmem:[#allocation9 + $0x280] sm:$0xf]  ;;  %v9185_v46 = vld [vmem:[#allocation9 + $0x118] sm:$0xf0] }
 0x4d6   :  { %v5011_v1 = vor.u32 1.1754944e-38, %v5010_v51  ;;  %vm5009_vm6 = vcmp.eq.f32.partialorder %v5008_v0, 8.507059e+37  ;;  %v9161_v51 = vld [vmem:[#allocation9 + $0xe8] sm:$0xf0]  ;;  %v10412_v14 = vld [vmem:[#allocation9 + $0x84] sm:$0xf0] }
 0x4d7   :  { %v5017_v49 = vsel %vm855_vm0, %v4932_v45, %v5016_v48  ;;  %v10427_v45 = vld [vmem:[#allocation9 + $0x104] sm:$0xf]  ;;  %v9353_v0 = vld [vmem:[#allocation9 + $0x268] sm:$0xf0]  ;;  %v10409_v25 = vld [vmem:[#allocation9 + $0x74] sm:$0xf]  ;;  %v9112_v41 = vor.u32 %v10412_v14, %v9111_v11 }
 0x4d8   :  { %v5019_v39 = vmul.f32 %v5017_v49, %v4984_v43  ;;  %v4946_v23 = vpop.f32.mrf.mxu2  ;;  %v4959_v40 = vpop.f32.mrf.mxu3  ;;  %v10475_v48 = vld [vmem:[#allocation9 + $0x284] sm:$0xf]  ;;  %v9377_v43 = vld [vmem:[#allocation9 + $0x298] sm:$0xf0]  ;;  %v9184_v49 = vor.u32 %v10430_v35, %v9183_v34  ;;  %v9113_v38 = vld [vmem:[#allocation9 + $0x88] sm:$0xf0] }
 0x4d9   :  { %v10424_v23 = vld [vmem:[#allocation9 + $0xe4] sm:$0xf0]  ;;  %v9188_v40 = vor.u32 %v10427_v45, %v9185_v46  ;;  %v9116_v27 = vor.u32 %v10409_v25, %v9113_v38  ;;  %v10403_v34 = vld [vmem:[#allocation9 + $0x44] sm:$0xf]  ;;  %v9089_v35 = vld [vmem:[#allocation9 + $0x58] sm:$0xf0] }
 0x4da   :  { %v10654_v52 = vpop.eup %10653  ;;  %v5022_v8 = vadd.f32 %v5020_v50, %v5019_v39  ;;  %v9376_v39 = vor.u32 %v10478_v33, %v9375_v58  ;;  %v9159_v50 = vld [vmem:[#allocation9 + $0xd0] sm:$0xf]  ;;  %v10400_v46 = vld [vmem:[#allocation9 + $0x24] sm:$0xf0]  ;;  %v9581_v11 = vld [vmem:[#allocation9 + $0x138] sm:$0xf0] }
 0x4db   :  { %v5000_v53 = vmul.f32 %v10654_v52, %v4998_v56  ;;  %vm5005_vm3 = vweird.f32 %v10654_v52  ;;  %v9212_v56 = vor.u32 %v10433_v28, %v9209_v30  ;;  %v9087_v28 = vld [vmem:[#allocation9 + $0x40] sm:$0xf]  ;;  %v10406_v30 = vld [vmem:[#allocation9 + $0x54] sm:$0xf0]  ;;  %v9063_v45 = vld [vmem:[#allocation9 + $0x10] sm:$0xf] }
 0x4dc   :  { %10655 = vtanh.f32 %v5022_v8  ;;  %vm5006_vm5 = vmor %vm5004_vm4, %vm5005_vm3  ;;  %v10472_v8 = vld [vmem:[#allocation9 + $0x264] sm:$0xf0]  ;;  %v9088_v58 = vor.u32 %v10406_v30, %v9087_v28  ;;  %v9555_v25 = vld [vmem:[#allocation9 + $0xf0] sm:$0xf] }
 0x4dd   :  { %v5001_v10 = vsub.f32 1.0, %v5000_v53  ;;  %v9351_v53 = vld [vmem:[#allocation9 + $0x250] sm:$0xf]  ;;  %v10524_v38 = vld [vmem:[#allocation9 + $0x104] sm:$0xf0] }
 0x4de   :  { %v9557_v28 = vld [vmem:[#allocation9 + $0x108] sm:$0xf0] }
 0x4df   :  { %v5002_v63 = vmul.f32 %v10654_v52, %v5001_v10  ;;  %v10421_v10 = vld [vmem:[#allocation9 + $0xd4] sm:$0xf] }
 0x4e1   :  { %v5003_v60 = vadd.f32 %v10654_v52, %v5002_v63  ;;  %v10469_v63 = vld [vmem:[#allocation9 + $0x254] sm:$0xf] }
 0x4e2   :  { %v10656_v5 = vpop.eup %10655 }
 0x4e3   :  { %v5007_v59 = vsel %vm5006_vm5, %v10654_v52, %v5003_v60  ;;  %v9380_v52 = vor.u32 %v10475_v48, %v9377_v43  ;;  %v9160_v60 = vor.u32 %v10424_v23, %v9159_v50  ;;  %v9092_v48 = vor.u32 %v10403_v34, %v9089_v35  ;;  %v10397_v50 = vld [vmem:[#allocation9 + $0x14] sm:$0xf]  ;;  %v9065_v23 = vld [vmem:[#allocation9 + $0x28] sm:$0xf0]  ;;  %v9531_v34 = vld [vmem:[#allocation9 + $0xc0] sm:$0xf] }
 0x4e4   :  { %v5012_v62 = vsel %vm5009_vm6, %v5011_v1, %v5007_v59  ;;  %v9352_v1 = vor.u32 %v10472_v8, %v9351_v53  ;;  %v9135_v59 = vld [vmem:[#allocation9 + $0xa0] sm:$0xf]  ;;  %v9064_v53 = vor.u32 %v10400_v46, %v9063_v45  ;;  %v10518_v35 = vld [vmem:[#allocation9 + $0xd4] sm:$0xf0]  ;;  %v9533_v45 = vld [vmem:[#allocation9 + $0xd8] sm:$0xf0] }
 0x4e5   :  { %v5024_v55 = vsub.f32 1.0, %v5012_v62  ;;  %v5026_v6 = vmul.f32 %v5012_v62, %v11189_v36  ;;  %v10418_v62 = vld [vmem:[#allocation9 + $0xb4] sm:$0xf0] }
 0x4e6   :  { %v9136_v12 = vor.u32 %v10418_v62, %v9135_v59  ;;  %v10584_v59 = vld [vmem:[#allocation9 + $0x2e4] sm:$0xf0]  ;;  %v10533_v62 = vld [vmem:[#allocation9 + $0x154] sm:$0xf] }
 0x4e7   :  { %v5025_v2 = vmul.f32 %v10656_v5, %v5024_v55  ;;  %v9164_v55 = vor.u32 %v10421_v10, %v9161_v51  ;;  %v9356_v5 = vor.u32 %v10469_v63, %v9353_v0  ;;  %v9068_v10 = vor.u32 %v10397_v50, %v9065_v23  ;;  %v9603_v63 = vld [vmem:[#allocation9 + $0x150] sm:$0xf]  ;;  %v10536_v0 = vld [vmem:[#allocation9 + $0x164] sm:$0xf0] }
 0x4e8   :  { %v9507_v50 = vld [vmem:[#allocation9 + $0x90] sm:$0xf]  ;;  %v10512_v23 = vld [vmem:[#allocation9 + $0xa4] sm:$0xf0] }
 0x4e9   :  { %v11248_v20 = vadd.f32 %v5026_v6, %v5025_v2  ;;  %v9327_v2 = vld [vmem:[#allocation9 + $0x220] sm:$0xf]  ;;  %v10466_v6 = vld [vmem:[#allocation9 + $0x234] sm:$0xf0] }
 0x4ea   :  { %v9328_v61 = vor.u32 %v10466_v6, %v9327_v2  ;;  %v10581_v6 = vld [vmem:[#allocation9 + $0x2d4] sm:$0xf] }
 0x4eb   :  { %5029 = vst.msk [vmem:[#allocation12 + $0x5] ss:$8 sm:$0x3] %vm10949_vm9, %v11248_v20  ;;  %v5044_v15 = vperm.slane %v11248_v20, 0  ;;  %v5045_v9 = vperm.slane %v11248_v20, 1 }
 0x4ed   :  { %v11255_v22 = vpack.c.bf16 %v5044_v15, %v5044_v15  ;;  %v11257_v36 = vpack.c.bf16 %v5045_v9, %v5045_v9  ;;  %v9140_v15 = vor.u32 %v10415_v4, %v9137_v7  ;;  %v9332_v9 = vor.u32 %v10463_v17, %v9329_v3  ;;  %v9797_v4 = vld [vmem:[#allocation9 + $0x2e8] sm:$0xf0]  ;;  %v10530_v17 = vld [vmem:[#allocation9 + $0x134] sm:$0xf0] }
 0x4ee   :  { %v9800_v7 = vor.u32 %v10581_v6, %v9797_v4  ;;  %v10554_v4 = vld [vmem:[#allocation9 + $0x1f4] sm:$0xf0] }
 0x4ef   :  { %5634 = vmatmul.bf16.vlgmr.msra.gmra.mxu0 %v11255_v22  ;;  %5647 = vmatmul.bf16.vlgmr.msra.gmra.mxu1 %v11257_v36 }
 0x4f0   :  { %5660 = vmatmul.bf16.vlgmr.msra.gmra.mxu2 %v11255_v22  ;;  %5673 = vmatmul.bf16.vlgmr.msra.gmra.mxu3 %v11257_v36 }
 0x4f1   :  { %5730 = vmatpush.bf16.msra.mxu0 %v9232_v16  ;;  %5743 = vmatpush.bf16.msra.mxu1 %v9424_v19  ;;  %v9303_v16 = vld [vmem:[#allocation9 + $0x1f0] sm:$0xf]  ;;  %v10460_v19 = vld [vmem:[#allocation9 + $0x204] sm:$0xf0] }
 0x4f2   :  { %5756 = vmatpush.bf16.msra.mxu2 %v9236_v37  ;;  %5769 = vmatpush.bf16.msra.mxu3 %v9428_v42  ;;  %v10457_v37 = vld [vmem:[#allocation9 + $0x1f4] sm:$0xf]  ;;  %v9305_v42 = vld [vmem:[#allocation9 + $0x208] sm:$0xf0]  ;;  %v9304_v18 = vor.u32 %v10460_v19, %v9303_v16  ;;  %v9773_v16 = vld [vmem:[#allocation9 + $0x2b8] sm:$0xf0] }
 0x4f3   :  { %v9308_v31 = vor.u32 %v10457_v37, %v9305_v42  ;;  %v9747_v37 = vld [vmem:[#allocation9 + $0x270] sm:$0xf]  ;;  %v9556_v42 = vor.u32 %v10524_v38, %v9555_v25  ;;  %v9461_v25 = vld [vmem:[#allocation9 + $0x48] sm:$0xf0] }
 0x4f5   :  { %5731 = vmatpush.bf16.msra.mxu0 %v9208_v32  ;;  %5744 = vmatpush.bf16.msra.mxu1 %v9400_v26  ;;  %v9279_v32 = vld [vmem:[#allocation9 + $0x1c0] sm:$0xf]  ;;  %v10454_v26 = vld [vmem:[#allocation9 + $0x1d4] sm:$0xf0] }
 0x4f6   :  { %5757 = vmatpush.bf16.msra.mxu2 %v9212_v56  ;;  %5770 = vmatpush.bf16.msra.mxu3 %v9404_v44  ;;  %v10451_v56 = vld [vmem:[#allocation9 + $0x1c4] sm:$0xf]  ;;  %v9281_v44 = vld [vmem:[#allocation9 + $0x1d8] sm:$0xf0]  ;;  %v9280_v33 = vor.u32 %v10454_v26, %v9279_v32  ;;  %v9749_v32 = vld [vmem:[#allocation9 + $0x288] sm:$0xf0] }
 0x4f7   :  { %v9284_v43 = vor.u32 %v10451_v56, %v9281_v44  ;;  %v9723_v56 = vld [vmem:[#allocation9 + $0x240] sm:$0xf]  ;;  %v9532_v44 = vor.u32 %v10518_v35, %v9531_v34 }
 0x4f9   :  { %5732 = vmatpush.bf16.msra.mxu0 %v9184_v49  ;;  %5745 = vmatpush.bf16.msra.mxu1 %v9376_v39  ;;  %v9255_v49 = vld [vmem:[#allocation9 + $0x190] sm:$0xf]  ;;  %v10448_v39 = vld [vmem:[#allocation9 + $0x1a4] sm:$0xf0] }
 0x4fa   :  { %5758 = vmatpush.bf16.msra.mxu2 %v9188_v40  ;;  %5771 = vmatpush.bf16.msra.mxu3 %v9380_v52  ;;  %v10445_v40 = vld [vmem:[#allocation9 + $0x194] sm:$0xf]  ;;  %v9257_v52 = vld [vmem:[#allocation9 + $0x1a8] sm:$0xf0]  ;;  %v9256_v8 = vor.u32 %v10448_v39, %v9255_v49  ;;  %v9725_v49 = vld [vmem:[#allocation9 + $0x258] sm:$0xf0] }
 0x4fb   :  { %v9260_v51 = vor.u32 %v10445_v40, %v9257_v52  ;;  %v9508_v40 = vor.u32 %v10512_v23, %v9507_v50  ;;  %v9699_v52 = vld [vmem:[#allocation9 + $0x210] sm:$0xf]  ;;  %v10539_v50 = vld [vmem:[#allocation9 + $0x184] sm:$0xf]  ;;  %v9629_v23 = vld [vmem:[#allocation9 + $0x198] sm:$0xf0] }
 0x4fd   :  { %5733 = vmatpush.bf16.msra.mxu0 %v9160_v60  ;;  %5746 = vmatpush.bf16.msra.mxu1 %v9352_v1  ;;  %v9795_v60 = vld [vmem:[#allocation9 + $0x2d0] sm:$0xf]  ;;  %v9604_v1 = vor.u32 %v10536_v0, %v9603_v63  ;;  %v10557_v63 = vld [vmem:[#allocation9 + $0x214] sm:$0xf]  ;;  %v9701_v0 = vld [vmem:[#allocation9 + $0x228] sm:$0xf0] }
 0x4fe   :  { %5759 = vmatpush.bf16.msra.mxu2 %v9164_v55  ;;  %5772 = vmatpush.bf16.msra.mxu3 %v9356_v5  ;;  %v9605_v55 = vld [vmem:[#allocation9 + $0x168] sm:$0xf0]  ;;  %v9796_v5 = vor.u32 %v10584_v59, %v9795_v60 }
 0x4ff   :  { %5686 = vmatmul.bf16.vlgmr.msrb.gmra.mxu0 %v11255_v22  ;;  %5699 = vmatmul.bf16.vlgmr.msrb.gmra.mxu1 %v11257_v36  ;;  %v9608_v2 = vor.u32 %v10533_v62, %v9605_v55  ;;  %v9483_v55 = vld [vmem:[#allocation9 + $0x60] sm:$0xf] }
 0x500   :  { %5712 = vmatmul.bf16.vlgmr.msrb.gmra.mxu2 %v11255_v22  ;;  %5725 = vmatmul.bf16.vlgmr.msrb.gmra.mxu3 %v11257_v36 }
 0x501   :  { %5734 = vmatpush.bf16.msra.mxu0 %v9136_v12  ;;  %5747 = vmatpush.bf16.msra.mxu1 %v9328_v61  ;;  %v10578_v12 = vld [vmem:[#allocation9 + $0x2b4] sm:$0xf0]  ;;  %v10527_v61 = vld [vmem:[#allocation9 + $0x124] sm:$0xf] }
 0x502   :  { %5760 = vmatpush.bf16.msra.mxu2 %v9140_v15  ;;  %5773 = vmatpush.bf16.msra.mxu3 %v9332_v9  ;;  %v9584_v15 = vor.u32 %v10527_v61, %v9581_v11  ;;  %v10575_v9 = vld [vmem:[#allocation9 + $0x2a4] sm:$0xf]  ;;  %v9459_v11 = vld [vmem:[#allocation9 + $0x30] sm:$0xf] }
 0x503   :  { %v9776_v19 = vor.u32 %v10575_v9, %v9773_v16  ;;  %v10548_v16 = vld [vmem:[#allocation9 + $0x1c4] sm:$0xf0] }
 0x505   :  { %5735 = vmatpush.bf16.msra.mxu0 %v9112_v41  ;;  %5748 = vmatpush.bf16.msra.mxu1 %v9304_v18  ;;  %v10572_v41 = vld [vmem:[#allocation9 + $0x284] sm:$0xf0]  ;;  %v10521_v18 = vld [vmem:[#allocation9 + $0xf4] sm:$0xf] }
 0x506   :  { %5761 = vmatpush.bf16.msra.mxu2 %v9116_v27  ;;  %5774 = vmatpush.bf16.msra.mxu3 %v9308_v31  ;;  %v9748_v30 = vor.u32 %v10572_v41, %v9747_v37  ;;  %v9560_v27 = vor.u32 %v10521_v18, %v9557_v28  ;;  %v10569_v31 = vld [vmem:[#allocation9 + $0x274] sm:$0xf]  ;;  %v9653_v41 = vld [vmem:[#allocation9 + $0x1c8] sm:$0xf0] }
 0x507   :  { %v9752_v26 = vor.u32 %v10569_v31, %v9749_v32  ;;  %v5040_v28 = vld [vmem:[%s5039_s27] ss:$8 sm:$0xf] }
 0x509   :  { %5736 = vmatpush.bf16.msra.mxu0 %v9088_v58  ;;  %5749 = vmatpush.bf16.msra.mxu1 %v9280_v33  ;;  %v10566_v58 = vld [vmem:[#allocation9 + $0x254] sm:$0xf0]  ;;  %v10515_v33 = vld [vmem:[#allocation9 + $0xc4] sm:$0xf] }
 0x50a   :  { %5762 = vmatpush.bf16.msra.mxu2 %v9092_v48  ;;  %5775 = vmatpush.bf16.msra.mxu3 %v9284_v43  ;;  %v9724_v46 = vor.u32 %v10566_v58, %v9723_v56  ;;  %v9536_v48 = vor.u32 %v10515_v33, %v9533_v45  ;;  %v10563_v43 = vld [vmem:[#allocation9 + $0x244] sm:$0xf]  ;;  %v9435_v56 = vld [vmem:[#allocation9] sm:$0xf]  ;;  %v10542_v45 = vld [vmem:[#allocation9 + $0x194] sm:$0xf0] }
 0x50b   :  { %v9728_v39 = vor.u32 %v10563_v43, %v9725_v49  ;;  %v9627_v58 = vld [vmem:[#allocation9 + $0x180] sm:$0xf] }
 0x50c   :  { %v9628_v49 = vor.u32 %v10542_v45, %v9627_v58  ;;  %v10519_v45 = vld [vmem:[#allocation9 + $0xdc] sm:$0xf0] }
 0x50d   :  { %5737 = vmatpush.bf16.msra.mxu0 %v9064_v53  ;;  %5750 = vmatpush.bf16.msra.mxu1 %v9256_v8  ;;  %v10560_v53 = vld [vmem:[#allocation9 + $0x224] sm:$0xf0]  ;;  %v10509_v8 = vld [vmem:[#allocation9 + $0x94] sm:$0xf] }
 0x50e   :  { %5763 = vmatpush.bf16.msra.mxu2 %v9068_v10  ;;  %5776 = vmatpush.bf16.msra.mxu3 %v9260_v51  ;;  %v9700_v10 = vor.u32 %v10560_v53, %v9699_v52  ;;  %v9509_v51 = vld [vmem:[#allocation9 + $0xa8] sm:$0xf0]  ;;  %v9632_v53 = vor.u32 %v10539_v50, %v9629_v23 }
 0x50f   :  { %v9512_v60 = vor.u32 %v10509_v8, %v9509_v51  ;;  %v10537_v8 = vld [vmem:[#allocation9 + $0x16c] sm:$0xf0] }
 0x510   :  { %5738 = vmatmul.bf16.vlgmr.msra.gmra.mxu0 %v11255_v22  ;;  %5751 = vmatmul.bf16.vlgmr.msra.gmra.mxu1 %v11257_v36  ;;  %v10585_v51 = vld [vmem:[#allocation9 + $0x2ec] sm:$0xf0] }
 0x511   :  { %5764 = vmatmul.bf16.vlgmr.msra.gmra.mxu2 %v11255_v22  ;;  %5777 = vmatmul.bf16.vlgmr.msra.gmra.mxu3 %v11257_v36  ;;  %v9579_v22 = vld [vmem:[#allocation9 + $0x120] sm:$0xf] }
 0x512   :  { %6447 = vmatpush.bf16.msrb.mxu0 %v9604_v1  ;;  %6460 = vmatpush.bf16.msrb.mxu1 %v9796_v5  ;;  %v9771_v36 = vld [vmem:[#allocation9 + $0x2a0] sm:$0xf]  ;;  %v9580_v3 = vor.u32 %v10530_v17, %v9579_v22  ;;  %v9704_v1 = vor.u32 %v10557_v63, %v9701_v0  ;;  %v10506_v5 = vld [vmem:[#allocation9 + $0x74] sm:$0xf0]  ;;  %v9485_v22 = vld [vmem:[#allocation9 + $0x78] sm:$0xf0] }
 0x513   :  { %6473 = vmatpush.bf16.msrb.mxu2 %v9608_v2  ;;  %6486 = vmatpush.bf16.msrb.mxu3 %v9800_v7  ;;  %v9772_v14 = vor.u32 %v10578_v12, %v9771_v36  ;;  %v9675_v2 = vld [vmem:[#allocation9 + $0x1e0] sm:$0xf]  ;;  %v9484_v6 = vor.u32 %v10506_v5, %v9483_v55  ;;  %v10503_v7 = vld [vmem:[#allocation9 + $0x64] sm:$0xf]  ;;  %v9677_v12 = vld [vmem:[#allocation9 + $0x1f8] sm:$0xf0] }
 0x514   :  { %v9676_v17 = vor.u32 %v10554_v4, %v9675_v2  ;;  %v9488_v36 = vor.u32 %v10503_v7, %v9485_v22  ;;  %v9613_v55 = vld [vmem:[#allocation9 + $0x170] sm:$0xf0]  ;;  %v10582_v2 = vld [vmem:[#allocation9 + $0x2dc] sm:$0xf]  ;;  %v9587_v4 = vld [vmem:[#allocation9 + $0x128] sm:$0xf] }
 0x516   :  { %6448 = vmatpush.bf16.msrb.mxu0 %v9580_v3  ;;  %6461 = vmatpush.bf16.msrb.mxu1 %v9772_v14  ;;  %v10551_v3 = vld [vmem:[#allocation9 + $0x1e4] sm:$0xf]  ;;  %v10500_v14 = vld [vmem:[#allocation9 + $0x44] sm:$0xf0] }
 0x517   :  { %6474 = vmatpush.bf16.msrb.mxu2 %v9584_v15  ;;  %6487 = vmatpush.bf16.msrb.mxu3 %v9776_v19  ;;  %v9680_v61 = vor.u32 %v10551_v3, %v9677_v12  ;;  %v9651_v15 = vld [vmem:[#allocation9 + $0x1b0] sm:$0xf]  ;;  %v9460_v9 = vor.u32 %v10500_v14, %v9459_v11  ;;  %v10497_v19 = vld [vmem:[#allocation9 + $0x34] sm:$0xf] }
 0x518   :  { %v9652_v38 = vor.u32 %v10548_v16, %v9651_v15  ;;  %v9464_v37 = vor.u32 %v10497_v19, %v9461_v25  ;;  %v10528_v15 = vld [vmem:[#allocation9 + $0x12c] sm:$0xf] }
 0x519   :  { %v10576_v16 = vld [vmem:[#allocation9 + $0x2ac] sm:$0xf] }
 0x51a   :  { %6449 = vmatpush.bf16.msrb.mxu0 %v9556_v42  ;;  %6462 = vmatpush.bf16.msrb.mxu1 %v9748_v30  ;;  %v10545_v42 = vld [vmem:[#allocation9 + $0x1b4] sm:$0xf]  ;;  %v5041_v30 = vld [vmem:[%s5039_s27] ss:$8 sm:$0x30] }
 0x51b   :  { %6475 = vmatpush.bf16.msrb.mxu2 %v9560_v27  ;;  %6488 = vmatpush.bf16.msrb.mxu3 %v9752_v26  ;;  %v9656_v31 = vor.u32 %v10545_v42, %v9653_v41  ;;  %v11282_v52 = vor.u32 %v5041_v30, %v5040_v28  ;;  %v10525_v28 = vld [vmem:[#allocation9 + $0x10c] sm:$0xf0] }
 0x51e   :  { %6450 = vmatpush.bf16.msrb.mxu0 %v9532_v44  ;;  %6463 = vmatpush.bf16.msrb.mxu1 %v9724_v46  ;;  %v10494_v44 = vld [vmem:[#allocation9 + $0x14] sm:$0xf0]  ;;  %v10491_v46 = vld [vmem:[#allocation9 + $0x4] sm:$0xf] }
 0x51f   :  { %6476 = vmatpush.bf16.msrb.mxu2 %v9536_v48  ;;  %6489 = vmatpush.bf16.msrb.mxu3 %v9728_v39  ;;  %v9436_v33 = vor.u32 %v10494_v44, %v9435_v56  ;;  %v9437_v48 = vld [vmem:[#allocation9 + $0x18] sm:$0xf0]  ;;  %v9757_v56 = vld [vmem:[#allocation9 + $0x290] sm:$0xf0] }
 0x520   :  { %v9440_v39 = vor.u32 %v10491_v46, %v9437_v48  ;;  %v9731_v46 = vld [vmem:[#allocation9 + $0x248] sm:$0xf] }
 0x522   :  { %6451 = vmatpush.bf16.msrb.mxu0 %v9508_v40  ;;  %6464 = vmatpush.bf16.msrb.mxu1 %v9700_v10  ;;  %v9611_v40 = vld [vmem:[#allocation9 + $0x158] sm:$0xf] }
 0x523   :  { %6477 = vmatpush.bf16.msrb.mxu2 %v9512_v60  ;;  %6490 = vmatpush.bf16.msrb.mxu3 %v9704_v1  ;;  %v9803_v10 = vld [vmem:[#allocation9 + $0x2d8] sm:$0xf]  ;;  %v9612_v60 = vor.u32 %v10537_v8, %v9611_v40  ;;  %v10564_v8 = vld [vmem:[#allocation9 + $0x24c] sm:$0xf] }
 0x524   :  { %v9804_v1 = vor.u32 %v10585_v51, %v9803_v10  ;;  %v9733_v10 = vld [vmem:[#allocation9 + $0x260] sm:$0xf0] }
 0x526   :  { %6452 = vmatpush.bf16.msrb.mxu0 %v9484_v6  ;;  %6465 = vmatpush.bf16.msrb.mxu1 %v9676_v17  ;;  %v9805_v6 = vld [vmem:[#allocation9 + $0x2f0] sm:$0xf0]  ;;  %v10531_v17 = vld [vmem:[#allocation9 + $0x13c] sm:$0xf0] }
 0x527   :  { %6478 = vmatpush.bf16.msrb.mxu2 %v9488_v36  ;;  %6491 = vmatpush.bf16.msrb.mxu3 %v9680_v61  ;;  %v9808_v22 = vor.u32 %v10582_v2, %v9805_v6  ;;  %v9779_v36 = vld [vmem:[#allocation9 + $0x2a8] sm:$0xf]  ;;  %v9588_v11 = vor.u32 %v10531_v17, %v9587_v4  ;;  %v9707_v2 = vld [vmem:[#allocation9 + $0x218] sm:$0xf]  ;;  %v10561_v17 = vld [vmem:[#allocation9 + $0x22c] sm:$0xf0] }
 0x52a   :  { %6453 = vmatpush.bf16.msrb.mxu0 %v9460_v9  ;;  %6466 = vmatpush.bf16.msrb.mxu1 %v9652_v38  ;;  %v9589_v9 = vld [vmem:[#allocation9 + $0x140] sm:$0xf0] }
 0x52b   :  { %6479 = vmatpush.bf16.msrb.mxu2 %v9464_v37  ;;  %6492 = vmatpush.bf16.msrb.mxu3 %v9656_v31  ;;  %v9592_v38 = vor.u32 %v10528_v15, %v9589_v9  ;;  %v9781_v37 = vld [vmem:[#allocation9 + $0x2c0] sm:$0xf0]  ;;  %v10573_v31 = vld [vmem:[#allocation9 + $0x28c] sm:$0xf0] }
 0x52c   :  { %v9784_v41 = vor.u32 %v10576_v16, %v9781_v37  ;;  %v9491_v16 = vld [vmem:[#allocation9 + $0x68] sm:$0xf] }
 0x52e   :  { %6454 = vmatpush.bf16.msrb.mxu0 %v9436_v33  ;;  %6467 = vmatpush.bf16.msrb.mxu1 %v9628_v49  ;;  %v9539_v33 = vld [vmem:[#allocation9 + $0xc8] sm:$0xf]  ;;  %v10516_v49 = vld [vmem:[#allocation9 + $0xcc] sm:$0xf] }
 0x52f   :  { %6480 = vmatpush.bf16.msrb.mxu2 %v9440_v39  ;;  %6493 = vmatpush.bf16.msrb.mxu3 %v9632_v53  ;;  %v9540_v48 = vor.u32 %v10519_v45, %v9539_v33  ;;  %v9541_v39 = vld [vmem:[#allocation9 + $0xe0] sm:$0xf0]  ;;  %v9467_v33 = vld [vmem:[#allocation9 + $0x38] sm:$0xf]  ;;  %v10501_v45 = vld [vmem:[#allocation9 + $0x4c] sm:$0xf0] }
 0x530   :  { %v9544_v53 = vor.u32 %v10516_v49, %v9541_v39  ;;  %v10549_v49 = vld [vmem:[#allocation9 + $0x1cc] sm:$0xf0]  ;;  %v10498_v39 = vld [vmem:[#allocation9 + $0x3c] sm:$0xf] }
 0x532   :  { %6499 = vmatpush.bf16.msra.mxu0 %v9612_v60  ;;  %6512 = vmatpush.bf16.msra.mxu1 %v9804_v1  ;;  %v9736_v1 = vor.u32 %v10564_v8, %v9733_v10  ;;  %v9661_v8 = vld [vmem:[#allocation9 + $0x1d0] sm:$0xf0] }
 0x533   :  { %6538 = vmatpush.bf16.msra.mxu3 %v9808_v22 }
 0x536   :  { %6500 = vmatpush.bf16.msra.mxu0 %v9588_v11 }
 0x537   :  { %6539 = vmatpush.bf16.msra.mxu3 %v9784_v41  ;;  %v10555_v41 = vld [vmem:[#allocation9 + $0x1fc] sm:$0xf0] }
 0x56c   :  { %v5635_v59 = vpop.f32.mrf.mxu0  ;;  %v11275_v62 = vpop.f32.mrf.mxu1 }
 0x56d   :  { %v5636_v32 = vadd.f32 %v5635_v59, %v10897_v57  ;;  %v10534_v59 = vld [vmem:[#allocation9 + $0x15c] sm:$0xf] }
 0x56e   :  { %v9616_v5 = vor.u32 %v10534_v59, %v9613_v55  ;;  %v9515_v55 = vld [vmem:[#allocation9 + $0x98] sm:$0xf] }
 0x56f   :  { %v5649_v63 = vadd.f32 %v11275_v62, %v5636_v32  ;;  %v10579_v62 = vld [vmem:[#allocation9 + $0x2bc] sm:$0xf0]  ;;  %v10522_v32 = vld [vmem:[#allocation9 + $0xfc] sm:$0xf] }
 0x570   :  { %6525 = vmatpush.bf16.msra.mxu2 %v9616_v5  ;;  %v9780_v14 = vor.u32 %v10579_v62, %v9779_v36  ;;  %v10513_v5 = vld [vmem:[#allocation9 + $0xac] sm:$0xf0]  ;;  %v10510_v36 = vld [vmem:[#allocation9 + $0x9c] sm:$0xf]  ;;  %v9708_v62 = vor.u32 %v10561_v17, %v9707_v2  ;;  %v9637_v17 = vld [vmem:[#allocation9 + $0x1a0] sm:$0xf0] }
 0x571   :  { %v9516_v22 = vor.u32 %v10513_v5, %v9515_v55  ;;  %v10543_v55 = vld [vmem:[#allocation9 + $0x19c] sm:$0xf0]  ;;  %v10492_v5 = vld [vmem:[#allocation9 + $0xc] sm:$0xf] }
 0x572   :  { %6513 = vmatpush.bf16.msra.mxu1 %v9780_v14 }
 0x573   :  { %v5661_v18 = vpop.f32.mrf.mxu2  ;;  %v5674_v27 = vpop.f32.mrf.mxu3 }
 0x574   :  { %v5662_v26 = vadd.f32 %v5661_v18, %v10894_v54  ;;  %v5637_v34 = vpop.f32.mrf.mxu0  ;;  %v5650_v35 = vpop.f32.mrf.mxu1  ;;  %v9563_v18 = vld [vmem:[#allocation9 + $0xf8] sm:$0xf]  ;;  %6526 = vmatpush.bf16.msra.mxu2 %v9592_v38 }
 0x575   :  { %v9564_v30 = vor.u32 %v10525_v28, %v9563_v18  ;;  %v9565_v34 = vld [vmem:[#allocation9 + $0x110] sm:$0xf0]  ;;  %v10570_v35 = vld [vmem:[#allocation9 + $0x27c] sm:$0xf] }
 0x576   :  { %v5675_v43 = vadd.f32 %v5674_v27, %v5662_v26  ;;  %v9755_v27 = vld [vmem:[#allocation9 + $0x278] sm:$0xf]  ;;  %v9568_v44 = vor.u32 %v10522_v32, %v9565_v34  ;;  %v9760_v58 = vor.u32 %v10570_v35, %v9757_v56  ;;  %v9685_v34 = vld [vmem:[#allocation9 + $0x200] sm:$0xf0] }
 0x577   :  { %v9756_v26 = vor.u32 %v10573_v31, %v9755_v27  ;;  %6501 = vmatpush.bf16.msra.mxu0 %v9564_v30  ;;  %v10504_v31 = vld [vmem:[#allocation9 + $0x6c] sm:$0xf] }
 0x578   :  { %v5784_v0 = vrot.slane %v5675_v43, 7  ;;  %v10567_v43 = vld [vmem:[#allocation9 + $0x25c] sm:$0xf0]  ;;  %6527 = vmatpush.bf16.msra.mxu2 %v9568_v44  ;;  %6540 = vmatpush.bf16.msra.mxu3 %v9760_v58 }
 0x579   :  { %6514 = vmatpush.bf16.msra.mxu1 %v9756_v26  ;;  %v9732_v40 = vor.u32 %v10567_v43, %v9731_v46  ;;  %v10552_v26 = vld [vmem:[#allocation9 + $0x1ec] sm:$0xf]  ;;  %v9659_v43 = vld [vmem:[#allocation9 + $0x1b8] sm:$0xf] }
 0x57a   :  { %v5785_v7 = vsel %vm855_vm0, %v5649_v63, %v5784_v0  ;;  %v9688_v58 = vor.u32 %v10552_v26, %v9685_v34 }
 0x57b   :  { %v5787_v3 = vadd.f32 %v5785_v7, %v11282_v52  ;;  %v5663_v12 = vpop.f32.mrf.mxu2  ;;  %v5676_v61 = vpop.f32.mrf.mxu3  ;;  %v5808_v7 = vrot.slane %v11282_v52, 2  ;;  %6502 = vmatpush.bf16.msra.mxu0 %v9540_v48  ;;  %v9468_v48 = vor.u32 %v10501_v45, %v9467_v33 }
 0x57c   :  { %v5687_v19 = vpop.f32.mrf.mxu0  ;;  %v11287_v25 = vpop.f32.mrf.mxu1  ;;  %6528 = vmatpush.bf16.msra.mxu2 %v9544_v53  ;;  %v10558_v12 = vld [vmem:[#allocation9 + $0x21c] sm:$0xf]  ;;  %v9709_v61 = vld [vmem:[#allocation9 + $0x230] sm:$0xf0]  ;;  %6541 = vmatpush.bf16.msra.mxu3 %v9736_v1 }
 0x57d   :  { %v9429_v42 = vmul.f32 -1.442695, %v5787_v3  ;;  %v5688_v51 = vadd.f32 %v5687_v19, %v10912_v21  ;;  %6515 = vmatpush.bf16.msra.mxu1 %v9732_v40  ;;  %v9517_v3 = vld [vmem:[#allocation9 + $0xb0] sm:$0xf0]  ;;  %v9712_v9 = vor.u32 %v10558_v12, %v9709_v61  ;;  %v10507_v19 = vld [vmem:[#allocation9 + $0x7c] sm:$0xf0] }
 0x57e   :  { %v9520_v15 = vor.u32 %v10510_v36, %v9517_v3  ;;  %v9492_v37 = vor.u32 %v10507_v19, %v9491_v16  ;;  %v9469_v40 = vld [vmem:[#allocation9 + $0x50] sm:$0xf0]  ;;  %v10546_v53 = vld [vmem:[#allocation9 + $0x1bc] sm:$0xf] }
 0x57f   :  { %10657 = vpow2.f32 %v9429_v42  ;;  %v5701_v11 = vadd.f32 %v11287_v25, %v5688_v51  ;;  %6503 = vmatpush.bf16.msra.mxu0 %v9516_v22  ;;  %v9683_v42 = vld [vmem:[#allocation9 + $0x1e8] sm:$0xf]  ;;  %v9493_v25 = vld [vmem:[#allocation9 + $0x80] sm:$0xf0]  ;;  %v9472_v10 = vor.u32 %v10498_v39, %v9469_v40  ;;  %v9664_v51 = vor.u32 %v10546_v53, %v9661_v8  ;;  %v10540_v22 = vld [vmem:[#allocation9 + $0x18c] sm:$0xf] }
 0x580   :  { %6529 = vmatpush.bf16.msra.mxu2 %v9520_v15  ;;  %v9684_v27 = vor.u32 %v10555_v41, %v9683_v42  ;;  %6542 = vmatpush.bf16.msra.mxu3 %v9712_v9  ;;  %v9496_v32 = vor.u32 %v10504_v31, %v9493_v25  ;;  %v9640_v12 = vor.u32 %v10540_v22, %v9637_v17  ;;  %v9619_v40 = vld [vmem:[#allocation9 + $0x160] sm:$0xf]  ;;  %v10538_v53 = vld [vmem:[#allocation9 + $0x174] sm:$0xf0]  ;;  %v10532_v22 = vld [vmem:[#allocation9 + $0x144] sm:$0xf0] }
 0x581   :  { %6516 = vmatpush.bf16.msra.mxu1 %v9708_v62 }
 0x583   :  { %v5713_v50 = vpop.f32.mrf.mxu2  ;;  %v5726_v23 = vpop.f32.mrf.mxu3  ;;  %6504 = vmatpush.bf16.msra.mxu0 %v9492_v37 }
 0x584   :  { %v5714_v63 = vadd.f32 %v5713_v50, %v10909_v13  ;;  %v5689_v0 = vpop.f32.mrf.mxu0  ;;  %v5702_v60 = vpop.f32.mrf.mxu1  ;;  %6530 = vmatpush.bf16.msra.mxu2 %v9496_v32  ;;  %6543 = vmatpush.bf16.msra.mxu3 %v9688_v58  ;;  %v5841_v32 = vrot.slane %v11282_v52, 4 }
 0x585   :  { %v10658_v59 = vpop.eup %10657  ;;  %6517 = vmatpush.bf16.msra.mxu1 %v9684_v27  ;;  %v9443_v0 = vld [vmem:[#allocation9 + $0x8] sm:$0xf]  ;;  %v10495_v60 = vld [vmem:[#allocation9 + $0x1c] sm:$0xf0] }
 0x586   :  { %v11291_v6 = vadd.f32 1.0, %v10658_v59  ;;  %v5727_v4 = vadd.f32 %v5726_v23, %v5714_v63  ;;  %v9660_v23 = vor.u32 %v10549_v49, %v9659_v43  ;;  %v9444_v1 = vor.u32 %v10495_v60, %v9443_v0  ;;  %v9635_v59 = vld [vmem:[#allocation9 + $0x188] sm:$0xf]  ;;  %v9621_v0 = vld [vmem:[#allocation9 + $0x178] sm:$0xf0] }
 0x587   :  { %6505 = vmatpush.bf16.msra.mxu0 %v9468_v48  ;;  %v10583_v60 = vld [vmem:[#allocation9 + $0x2e4] sm:$0xf] }
 0x588   :  { %10659 = vrcp.f32 %v11291_v6  ;;  %v5812_v14 = vrot.slane %v5727_v4, 7  ;;  %6531 = vmatpush.bf16.msra.mxu2 %v9472_v10  ;;  %v9636_v4 = vor.u32 %v10543_v55, %v9635_v59  ;;  %6544 = vmatpush.bf16.msra.mxu3 %v9664_v51  ;;  %v5803_v9 = vand.u32 2147483648, %v11291_v6  ;;  %v9811_v10 = vld [vmem:[#allocation9 + $0x2e0] sm:$0xf]  ;;  %v10586_v51 = vld [vmem:[#allocation9 + $0x2f4] sm:$0xf0] }
 0x589   :  { %6518 = vmatpush.bf16.msra.mxu1 %v9660_v23  ;;  %vm5797_vm8 = vweird.f32 %v11291_v6  ;;  %v5801_v37 = vand.u32 2147483647, %v11291_v6 }
 0x58a   :  { %v5813_v38 = vsel %vm855_vm0, %v5701_v11, %v5812_v14 }
 0x58b   :  { %v5815_v18 = vadd.f32 %v5813_v38, %v5808_v7  ;;  %v5715_v28 = vpop.f32.mrf.mxu2  ;;  %v5728_v30 = vpop.f32.mrf.mxu3  ;;  %v9445_v7 = vld [vmem:[#allocation9 + $0x20] sm:$0xf0]  ;;  %6506 = vmatpush.bf16.msra.mxu0 %v9444_v1  ;;  %vm5802_vm11 = vcmp.eq.f32.partialorder %v5801_v37, 8.507059e+37  ;;  %v9813_v1 = vld [vmem:[#allocation9 + $0x2f8] sm:$0xf0] }
 0x58c   :  { %v9448_v3 = vor.u32 %v10492_v5, %v9445_v7  ;;  %6545 = vmatpush.bf16.msra.mxu3 %v9640_v12  ;;  %v5804_v28 = vor.u32 1.1754944e-38, %v5803_v9  ;;  %v9595_v7 = vld [vmem:[#allocation9 + $0x130] sm:$0xf]  ;;  %v10529_v12 = vld [vmem:[#allocation9 + $0x134] sm:$0xf] }
 0x58d   :  { %v9430_v35 = vmul.f32 -1.442695, %v5815_v18  ;;  %v5739_v56 = vpop.f32.mrf.mxu0  ;;  %v5752_v44 = vpop.f32.mrf.mxu1  ;;  %6519 = vmatpush.bf16.msra.mxu1 %v9636_v4  ;;  %v9812_v4 = vor.u32 %v10586_v51, %v9811_v10  ;;  %v10559_v10 = vld [vmem:[#allocation9 + $0x224] sm:$0xf]  ;;  %v9717_v51 = vld [vmem:[#allocation9 + $0x238] sm:$0xf0] }
 0x58e   :  { %v10660_v46 = vpop.eup %10659  ;;  %v5740_v11 = vadd.f32 %v5739_v56, %v10929_v29  ;;  %6532 = vmatpush.bf16.msra.mxu2 %v9448_v3  ;;  %v10580_v3 = vld [vmem:[#allocation9 + $0x2c4] sm:$0xf0] }
 0x58f   :  { %10661 = vpow2.f32 %v9430_v35  ;;  %v5793_v50 = vmul.f32 %v10660_v46, %v11291_v6  ;;  %vm5798_vm7 = vweird.f32 %v10660_v46 }
 0x590   :  { %vm5799_vm10 = vmor %vm5797_vm8, %vm5798_vm7  ;;  %v5753_v18 = vadd.f32 %v5752_v44, %v5740_v11  ;;  %v10577_v11 = vld [vmem:[#allocation9 + $0x2b4] sm:$0xf] }
 0x591   :  { %v5794_v63 = vsub.f32 1.0, %v5793_v50 }
 0x593   :  { %v5795_v2 = vmul.f32 %v10660_v46, %v5794_v63  ;;  %v10535_v63 = vld [vmem:[#allocation9 + $0x164] sm:$0xf] }
 0x594   :  { %v5765_v36 = vpop.f32.mrf.mxu2  ;;  %v5778_v62 = vpop.f32.mrf.mxu3  ;;  %v9624_v17 = vor.u32 %v10535_v63, %v9621_v0 }
 0x595   :  { %v10662_v61 = vpop.eup %10661  ;;  %v5766_v14 = vadd.f32 %v5765_v36, %v10933_v47  ;;  %v5796_v15 = vadd.f32 %v10660_v46, %v5795_v2  ;;  %v5741_v16 = vpop.f32.mrf.mxu0  ;;  %v9620_v2 = vor.u32 %v10538_v53, %v9619_v40  ;;  %v9816_v36 = vor.u32 %v10583_v60, %v9813_v1  ;;  %v10511_v40 = vld [vmem:[#allocation9 + $0xa4] sm:$0xf]  ;;  %v9525_v53 = vld [vmem:[#allocation9 + $0xb8] sm:$0xf0]  ;;  %v9499_v60 = vld [vmem:[#allocation9 + $0x70] sm:$0xf] }
 0x596   :  { %v5754_v19 = vpop.f32.mrf.mxu1  ;;  %v5819_v38 = vadd.f32 1.0, %v10662_v61  ;;  %v9597_v61 = vld [vmem:[#allocation9 + $0x148] sm:$0xf0]  ;;  %v9571_v16 = vld [vmem:[#allocation9 + $0x100] sm:$0xf] }
 0x597   :  { %v5779_v42 = vadd.f32 %v5778_v62, %v5766_v14  ;;  %v5800_v41 = vsel %vm5799_vm10, %v10660_v46, %v5796_v15  ;;  %v9787_v62 = vld [vmem:[#allocation9 + $0x2b0] sm:$0xf]  ;;  %v9789_v14 = vld [vmem:[#allocation9 + $0x2c8] sm:$0xf0]  ;;  %v9596_v15 = vor.u32 %v10532_v22, %v9595_v7  ;;  %v10526_v19 = vld [vmem:[#allocation9 + $0x114] sm:$0xf0] }
 0x598   :  { %10663 = vrcp.f32 %v5819_v38  ;;  %v5805_v27 = vsel %vm5802_vm11, %v5804_v28, %v5800_v41  ;;  %v5831_v33 = vand.u32 2147483648, %v5819_v38  ;;  %v5829_v46 = vand.u32 2147483647, %v5819_v38  ;;  %v10574_v41 = vld [vmem:[#allocation9 + $0x294] sm:$0xf0] }
 0x599   :  { %v5837_v30 = vrot.slane %v5779_v42, 7  ;;  %vm5825_vm13 = vweird.f32 %v5819_v38  ;;  %v9788_v9 = vor.u32 %v10580_v3, %v9787_v62  ;;  %v9792_v37 = vor.u32 %v10577_v11, %v9789_v14  ;;  %v9763_v42 = vld [vmem:[#allocation9 + $0x280] sm:$0xf]  ;;  %v9573_v28 = vld [vmem:[#allocation9 + $0x118] sm:$0xf0] }
 0x59a   :  { %v5832_v48 = vor.u32 1.1754944e-38, %v5831_v33  ;;  %vm5830_vm15 = vcmp.eq.f32.partialorder %v5829_v46, 8.507059e+37  ;;  %v9549_v33 = vld [vmem:[#allocation9 + $0xe8] sm:$0xf0]  ;;  %v10508_v1 = vld [vmem:[#allocation9 + $0x84] sm:$0xf0] }
 0x59b   :  { %v5838_v31 = vsel %vm855_vm0, %v5753_v18, %v5837_v30  ;;  %v10523_v18 = vld [vmem:[#allocation9 + $0x104] sm:$0xf]  ;;  %v9741_v46 = vld [vmem:[#allocation9 + $0x268] sm:$0xf0]  ;;  %v10505_v7 = vld [vmem:[#allocation9 + $0x74] sm:$0xf]  ;;  %v9500_v62 = vor.u32 %v10508_v1, %v9499_v60 }
 0x59c   :  { %v5840_v25 = vmul.f32 %v5838_v31, %v5805_v27  ;;  %v5767_v6 = vpop.f32.mrf.mxu2  ;;  %v5780_v26 = vpop.f32.mrf.mxu3  ;;  %v10571_v30 = vld [vmem:[#allocation9 + $0x284] sm:$0xf]  ;;  %v9765_v27 = vld [vmem:[#allocation9 + $0x298] sm:$0xf0]  ;;  %v9572_v31 = vor.u32 %v10526_v19, %v9571_v16  ;;  %v9501_v22 = vld [vmem:[#allocation9 + $0x88] sm:$0xf0] }
 0x59d   :  { %v10520_v6 = vld [vmem:[#allocation9 + $0xe4] sm:$0xf0]  ;;  %v9576_v26 = vor.u32 %v10523_v18, %v9573_v28  ;;  %v9504_v11 = vor.u32 %v10505_v7, %v9501_v22  ;;  %v10499_v16 = vld [vmem:[#allocation9 + $0x44] sm:$0xf]  ;;  %v9477_v19 = vld [vmem:[#allocation9 + $0x58] sm:$0xf0] }
 0x59e   :  { %v10664_v34 = vpop.eup %10663  ;;  %v5843_v56 = vadd.f32 %v5841_v32, %v5840_v25  ;;  %v9764_v25 = vor.u32 %v10574_v41, %v9763_v42  ;;  %v9547_v32 = vld [vmem:[#allocation9 + $0xd0] sm:$0xf]  ;;  %v10496_v28 = vld [vmem:[#allocation9 + $0x24] sm:$0xf0] }
 0x59f   :  { %v5821_v35 = vmul.f32 %v10664_v34, %v5819_v38  ;;  %vm5826_vm12 = vweird.f32 %v10664_v34  ;;  %v9600_v38 = vor.u32 %v10529_v12, %v9597_v61  ;;  %v9475_v12 = vld [vmem:[#allocation9 + $0x40] sm:$0xf]  ;;  %v10502_v61 = vld [vmem:[#allocation9 + $0x54] sm:$0xf0]  ;;  %v9451_v18 = vld [vmem:[#allocation9 + $0x10] sm:$0xf] }
 0x5a0   :  { %10665 = vtanh.f32 %v5843_v56  ;;  %vm5827_vm14 = vmor %vm5825_vm13, %vm5826_vm12  ;;  %v10568_v56 = vld [vmem:[#allocation9 + $0x264] sm:$0xf0]  ;;  %v9476_v42 = vor.u32 %v10502_v61, %v9475_v12 }
 0x5a1   :  { %v5822_v58 = vsub.f32 1.0, %v5821_v35  ;;  %v9739_v35 = vld [vmem:[#allocation9 + $0x250] sm:$0xf] }
 0x5a3   :  { %v5823_v45 = vmul.f32 %v10664_v34, %v5822_v58  ;;  %v10517_v58 = vld [vmem:[#allocation9 + $0xd4] sm:$0xf] }
 0x5a5   :  { %v5824_v44 = vadd.f32 %v10664_v34, %v5823_v45  ;;  %v10565_v45 = vld [vmem:[#allocation9 + $0x254] sm:$0xf] }
 0x5a6   :  { %v10666_v52 = vpop.eup %10665 }
 0x5a7   :  { %v5828_v43 = vsel %vm5827_vm14, %v10664_v34, %v5824_v44  ;;  %v9768_v34 = vor.u32 %v10571_v30, %v9765_v27  ;;  %v9548_v44 = vor.u32 %v10520_v6, %v9547_v32  ;;  %v9480_v30 = vor.u32 %v10499_v16, %v9477_v19  ;;  %v10493_v32 = vld [vmem:[#allocation9 + $0x14] sm:$0xf]  ;;  %v9453_v6 = vld [vmem:[#allocation9 + $0x28] sm:$0xf0] }
 0x5a8   :  { %v5833_v49 = vsel %vm5830_vm15, %v5832_v48, %v5828_v43  ;;  %v9740_v48 = vor.u32 %v10568_v56, %v9739_v35  ;;  %v9523_v43 = vld [vmem:[#allocation9 + $0xa0] sm:$0xf]  ;;  %v9452_v35 = vor.u32 %v10496_v28, %v9451_v18 }
 0x5a9   :  { %v5845_v39 = vsub.f32 1.0, %v5833_v49  ;;  %v5847_v23 = vmul.f32 %v5833_v49, %v11248_v20  ;;  %v10514_v49 = vld [vmem:[#allocation9 + $0xb4] sm:$0xf0] }
 0x5aa   :  { %v9524_v63 = vor.u32 %v10514_v49, %v9523_v43 }
 0x5ab   :  { %v5846_v50 = vmul.f32 %v10666_v52, %v5845_v39  ;;  %v9552_v39 = vor.u32 %v10517_v58, %v9549_v33  ;;  %v9744_v52 = vor.u32 %v10565_v45, %v9741_v46  ;;  %v9456_v58 = vor.u32 %v10493_v32, %v9453_v6 }
 0x5ad   :  { %v11307_v8 = vadd.f32 %v5847_v23, %v5846_v50  ;;  %v9715_v50 = vld [vmem:[#allocation9 + $0x220] sm:$0xf]  ;;  %v10562_v23 = vld [vmem:[#allocation9 + $0x234] sm:$0xf0] }
 0x5ae   :  { %v9716_v0 = vor.u32 %v10562_v23, %v9715_v50 }
 0x5af   :  { %5850 = vst.msk [vmem:[#allocation12 + $0x6] ss:$8 sm:$0x3] %vm10949_vm9, %v11307_v8  ;;  %v5865_v59 = vperm.slane %v11307_v8, 0  ;;  %v5866_v55 = vperm.slane %v11307_v8, 1 }
 0x5b1   :  { %v11314_v5 = vpack.c.bf16 %v5865_v59, %v5865_v59  ;;  %v11316_v20 = vpack.c.bf16 %v5866_v55, %v5866_v55  ;;  %v9528_v59 = vor.u32 %v10511_v40, %v9525_v53  ;;  %v9720_v55 = vor.u32 %v10559_v10, %v9717_v51 }
 0x5b3   :  { %6455 = vmatmul.bf16.vlgmr.msrb.gmra.mxu0 %v11314_v5  ;;  %6468 = vmatmul.bf16.vlgmr.msrb.gmra.mxu1 %v11316_v20 }
 0x5b4   :  { %6481 = vmatmul.bf16.vlgmr.msrb.gmra.mxu2 %v11314_v5  ;;  %6494 = vmatmul.bf16.vlgmr.msrb.gmra.mxu3 %v11316_v20 }
 0x5b5   :  { %6551 = vmatpush.bf16.msrb.mxu0 %v9620_v2  ;;  %6564 = vmatpush.bf16.msrb.mxu1 %v9812_v4  ;;  %v9691_v2 = vld [vmem:[#allocation9 + $0x1f0] sm:$0xf]  ;;  %v10556_v4 = vld [vmem:[#allocation9 + $0x204] sm:$0xf0] }
 0x5b6   :  { %6577 = vmatpush.bf16.msrb.mxu2 %v9624_v17  ;;  %6590 = vmatpush.bf16.msrb.mxu3 %v9816_v36  ;;  %v10553_v17 = vld [vmem:[#allocation9 + $0x1f4] sm:$0xf]  ;;  %v9693_v36 = vld [vmem:[#allocation9 + $0x208] sm:$0xf0]  ;;  %v9692_v3 = vor.u32 %v10556_v4, %v9691_v2 }
 0x5b7   :  { %v9696_v14 = vor.u32 %v10553_v17, %v9693_v36 }
 0x5b9   :  { %6552 = vmatpush.bf16.msrb.mxu0 %v9596_v15  ;;  %6565 = vmatpush.bf16.msrb.mxu1 %v9788_v9  ;;  %v9667_v15 = vld [vmem:[#allocation9 + $0x1c0] sm:$0xf]  ;;  %v10550_v9 = vld [vmem:[#allocation9 + $0x1d4] sm:$0xf0] }
 0x5ba   :  { %6578 = vmatpush.bf16.msrb.mxu2 %v9600_v38  ;;  %6591 = vmatpush.bf16.msrb.mxu3 %v9792_v37  ;;  %v10547_v38 = vld [vmem:[#allocation9 + $0x1c4] sm:$0xf]  ;;  %v9669_v37 = vld [vmem:[#allocation9 + $0x1d8] sm:$0xf0]  ;;  %v9668_v41 = vor.u32 %v10550_v9, %v9667_v15 }
 0x5bb   :  { %v9672_v27 = vor.u32 %v10547_v38, %v9669_v37 }
 0x5bd   :  { %6553 = vmatpush.bf16.msrb.mxu0 %v9572_v31  ;;  %6566 = vmatpush.bf16.msrb.mxu1 %v9764_v25  ;;  %v9643_v31 = vld [vmem:[#allocation9 + $0x190] sm:$0xf]  ;;  %v10544_v25 = vld [vmem:[#allocation9 + $0x1a4] sm:$0xf0] }
 0x5be   :  { %6579 = vmatpush.bf16.msrb.mxu2 %v9576_v26  ;;  %6592 = vmatpush.bf16.msrb.mxu3 %v9768_v34  ;;  %v10541_v26 = vld [vmem:[#allocation9 + $0x194] sm:$0xf]  ;;  %v9645_v34 = vld [vmem:[#allocation9 + $0x1a8] sm:$0xf0]  ;;  %v9644_v56 = vor.u32 %v10544_v25, %v9643_v31 }
 0x5bf   :  { %v9648_v33 = vor.u32 %v10541_v26, %v9645_v34 }
 0x5c1   :  { %6554 = vmatpush.bf16.msrb.mxu0 %v9548_v44  ;;  %6567 = vmatpush.bf16.msrb.mxu1 %v9740_v48 }
 0x5c2   :  { %6580 = vmatpush.bf16.msrb.mxu2 %v9552_v39  ;;  %6593 = vmatpush.bf16.msrb.mxu3 %v9744_v52  ;;  %v5861_v39 = vld [vmem:[%s5860_s7] ss:$8 sm:$0xf] }
 0x5c3   :  { %6507 = vmatmul.bf16.vlgmr.msra.gmra.mxu0 %v11314_v5  ;;  %6520 = vmatmul.bf16.vlgmr.msra.gmra.mxu1 %v11316_v20  ;;  %v5862_v52 = vld [vmem:[%s5860_s7] ss:$8 sm:$0x30] }
 0x5c4   :  { %6533 = vmatmul.bf16.vlgmr.msra.gmra.mxu2 %v11314_v5  ;;  %6546 = vmatmul.bf16.vlgmr.msra.gmra.mxu3 %v11316_v20 }
 0x5c5   :  { %6555 = vmatpush.bf16.msrb.mxu0 %v9524_v63  ;;  %6568 = vmatpush.bf16.msrb.mxu1 %v9716_v0 }
 0x5c6   :  { %6581 = vmatpush.bf16.msrb.mxu2 %v9528_v59  ;;  %6594 = vmatpush.bf16.msrb.mxu3 %v9720_v55 }
 0x5c9   :  { %6556 = vmatpush.bf16.msrb.mxu0 %v9500_v62  ;;  %6569 = vmatpush.bf16.msrb.mxu1 %v9692_v3 }
 0x5ca   :  { %6582 = vmatpush.bf16.msrb.mxu2 %v9504_v11  ;;  %6595 = vmatpush.bf16.msrb.mxu3 %v9696_v14 }
 0x5cd   :  { %6557 = vmatpush.bf16.msrb.mxu0 %v9476_v42  ;;  %6570 = vmatpush.bf16.msrb.mxu1 %v9668_v41 }
 0x5ce   :  { %6583 = vmatpush.bf16.msrb.mxu2 %v9480_v30  ;;  %6596 = vmatpush.bf16.msrb.mxu3 %v9672_v27 }
 0x5d1   :  { %6558 = vmatpush.bf16.msrb.mxu0 %v9452_v35  ;;  %6571 = vmatpush.bf16.msrb.mxu1 %v9644_v56 }
 0x5d2   :  { %6584 = vmatpush.bf16.msrb.mxu2 %v9456_v58  ;;  %6597 = vmatpush.bf16.msrb.mxu3 %v9648_v33 }
 0x5d4   :  { %6559 = vmatmul.bf16.vlgmr.msrb.gmra.mxu0 %v11314_v5  ;;  %6572 = vmatmul.bf16.vlgmr.msrb.gmra.mxu1 %v11316_v20 }
 0x5d5   :  { %6585 = vmatmul.bf16.vlgmr.msrb.gmra.mxu2 %v11314_v5  ;;  %6598 = vmatmul.bf16.vlgmr.msrb.gmra.mxu3 %v11316_v20  ;;  %v11332_v20 = vor.u32 %v5862_v52, %v5861_v39 }
 0x5d7   :  { %v6629_v62 = vrot.slane %v11332_v20, 2 }
 0x630   :  { %v6456_v45 = vpop.f32.mrf.mxu0  ;;  %v6469_v46 = vpop.f32.mrf.mxu1 }
 0x631   :  { %v6457_v43 = vadd.f32 %v6456_v45, %v10897_v57 }
 0x633   :  { %v6470_v40 = vadd.f32 %v6469_v46, %v6457_v43 }
 0x637   :  { %v6482_v44 = vpop.f32.mrf.mxu2  ;;  %v6495_v48 = vpop.f32.mrf.mxu3 }
 0x638   :  { %v6483_v49 = vadd.f32 %v6482_v44, %v10894_v54  ;;  %v6458_v50 = vpop.f32.mrf.mxu0  ;;  %v6471_v5 = vpop.f32.mrf.mxu1 }
 0x63a   :  { %v6496_v23 = vadd.f32 %v6495_v48, %v6483_v49 }
 0x63c   :  { %v6605_v53 = vrot.slane %v6496_v23, 7 }
 0x63e   :  { %v6606_v10 = vsel %vm855_vm0, %v6470_v40, %v6605_v53 }
 0x63f   :  { %v6608_v51 = vadd.f32 %v6606_v10, %v11332_v20  ;;  %v6484_v63 = vpop.f32.mrf.mxu2  ;;  %v6497_v0 = vpop.f32.mrf.mxu3 }
 0x640   :  { %v6508_v60 = vpop.f32.mrf.mxu0  ;;  %v6521_v57 = vpop.f32.mrf.mxu1 }
 0x641   :  { %v9817_v1 = vmul.f32 -1.442695, %v6608_v51  ;;  %v6509_v55 = vadd.f32 %v6508_v60, %v10912_v21 }
 0x643   :  { %10667 = vpow2.f32 %v9817_v1  ;;  %v6522_v3 = vadd.f32 %v6521_v57, %v6509_v55 }
 0x647   :  { %v6534_v54 = vpop.f32.mrf.mxu2  ;;  %v6547_v59 = vpop.f32.mrf.mxu3 }
 0x648   :  { %v6535_v2 = vadd.f32 %v6534_v54, %v10909_v13  ;;  %v6510_v4 = vpop.f32.mrf.mxu0  ;;  %v6523_v7 = vpop.f32.mrf.mxu1 }
 0x649   :  { %v10668_v22 = vpop.eup %10667 }
 0x64a   :  { %v6612_v17 = vadd.f32 1.0, %v10668_v22  ;;  %v6548_v36 = vadd.f32 %v6547_v59, %v6535_v2 }
 0x64c   :  { %10669 = vrcp.f32 %v6612_v17  ;;  %v6633_v12 = vrot.slane %v6548_v36, 7  ;;  %v6624_v31 = vand.u32 2147483648, %v6612_v17  ;;  %vm6618_vm2 = vweird.f32 %v6612_v17 }
 0x64d   :  { %v6622_v26 = vand.u32 2147483647, %v6612_v17 }
 0x64e   :  { %v6634_v61 = vsel %vm855_vm0, %v6522_v3, %v6633_v12  ;;  %v6625_v58 = vor.u32 1.1754944e-38, %v6624_v31 }
 0x64f   :  { %v6636_v11 = vadd.f32 %v6634_v61, %v6629_v62  ;;  %v6536_v14 = vpop.f32.mrf.mxu2  ;;  %v6549_v15 = vpop.f32.mrf.mxu3  ;;  %vm6623_vm4 = vcmp.eq.f32.partialorder %v6622_v26, 8.507059e+37 }
 0x651   :  { %v9818_v9 = vmul.f32 -1.442695, %v6636_v11  ;;  %v6560_v16 = vpop.f32.mrf.mxu0  ;;  %v6573_v21 = vpop.f32.mrf.mxu1 }
 0x652   :  { %v10670_v19 = vpop.eup %10669  ;;  %v6561_v28 = vadd.f32 %v6560_v16, %v10929_v29 }
 0x653   :  { %10671 = vpow2.f32 %v9818_v9  ;;  %v6614_v13 = vmul.f32 %v10670_v19, %v6612_v17  ;;  %vm6619_vm1 = vweird.f32 %v10670_v19 }
 0x654   :  { %vm6620_vm3 = vmor %vm6618_vm2, %vm6619_vm1  ;;  %v6574_v56 = vadd.f32 %v6573_v21, %v6561_v28 }
 0x655   :  { %v6615_v38 = vsub.f32 1.0, %v6614_v13 }
 0x657   :  { %v6616_v37 = vmul.f32 %v10670_v19, %v6615_v38 }
 0x658   :  { %v6586_v42 = vpop.f32.mrf.mxu2  ;;  %v6599_v41 = vpop.f32.mrf.mxu3 }
 0x659   :  { %v10672_v18 = vpop.eup %10671  ;;  %v6587_v30 = vadd.f32 %v6586_v42, %v10933_v47  ;;  %v6617_v27 = vadd.f32 %v10670_v19, %v6616_v37  ;;  %v6562_v25 = vpop.f32.mrf.mxu0  ;;  %v6662_v47 = vrot.slane %v11332_v20, 4 }
 0x65a   :  { %v6575_v32 = vpop.f32.mrf.mxu1  ;;  %v6640_v6 = vadd.f32 1.0, %v10672_v18 }
 0x65b   :  { %v6600_v34 = vadd.f32 %v6599_v41, %v6587_v30  ;;  %v6621_v35 = vsel %vm6620_vm3, %v10670_v19, %v6617_v27 }
 0x65c   :  { %10673 = vrcp.f32 %v6640_v6  ;;  %v6626_v45 = vsel %vm6623_vm4, %v6625_v58, %v6621_v35  ;;  %v6652_v50 = vand.u32 2147483648, %v6640_v6  ;;  %v6650_v23 = vand.u32 2147483647, %v6640_v6 }
 0x65d   :  { %v6658_v33 = vrot.slane %v6600_v34, 7  ;;  %vm6646_vm6 = vweird.f32 %v6640_v6 }
 0x65e   :  { %v6653_v53 = vor.u32 1.1754944e-38, %v6652_v50 }
 0x65f   :  { %v6659_v29 = vsel %vm855_vm0, %v6574_v56, %v6658_v33  ;;  %vm6651_vm0 = vcmp.eq.f32.partialorder %v6650_v23, 8.507059e+37 }
 0x660   :  { %v6661_v46 = vmul.f32 %v6659_v29, %v6626_v45  ;;  %v6588_v44 = vpop.f32.mrf.mxu2  ;;  %v6601_v48 = vpop.f32.mrf.mxu3 }
 0x662   :  { %v10674_v43 = vpop.eup %10673  ;;  %v6664_v39 = vadd.f32 %v6662_v47, %v6661_v46 }
 0x663   :  { %v6642_v49 = vmul.f32 %v10674_v43, %v6640_v6  ;;  %vm6647_vm5 = vweird.f32 %v10674_v43 }
 0x664   :  { %10675 = vtanh.f32 %v6664_v39  ;;  %vm6648_vm7 = vmor %vm6646_vm6, %vm6647_vm5 }
 0x665   :  { %v6643_v52 = vsub.f32 1.0, %v6642_v49 }
 0x667   :  { %v6644_v5 = vmul.f32 %v10674_v43, %v6643_v52 }
 0x669   :  { %v6645_v40 = vadd.f32 %v10674_v43, %v6644_v5 }
 0x66a   :  { %v10676_v20 = vpop.eup %10675 }
 0x66b   :  { %v6649_v10 = vsel %vm6648_vm7, %v10674_v43, %v6645_v40 }
 0x66c   :  { %v6654_v51 = vsel %vm6651_vm0, %v6653_v53, %v6649_v10 }
 0x66d   :  { %v6666_v63 = vsub.f32 1.0, %v6654_v51  ;;  %v6668_v60 = vmul.f32 %v6654_v51, %v11307_v8 }
 0x66f   :  { %v6667_v0 = vmul.f32 %v10676_v20, %v6666_v63 }
 0x671   :  { %v6669_v57 = vadd.f32 %v6668_v60, %v6667_v0 }
 0x673   :  { %6671 = vst.msk [vmem:[#allocation12 + $0x7] ss:$8 sm:$0x3] %vm10949_vm9, %v6669_v57 }
 0x674   :  { %6683 = dma.vmem_to_hbm [thread:$0]  %s6679_s9, 256, %s6681_s11, [#allocation6]  }
 0x675   :  { %10818 = dma.done.wait [#allocation6], 256  }
 0x676   :  { %10819 = vsyncadd [#allocation6], 4294967040 }
 0x677   :  { %6688 = vsyncpa [#allocation5], 1 }
 0x678   :  { %6689 = vsyncpa [#allocation8], 1 }
 0x679   :  { %6690 = vsyncpa [#allocation11], 1 }
 0x67a   :  { %6691 = vsyncpa [#allocation6], 1 }

</bundles_post_ra>
